<compile_context>
chip_gen: v5e
topology: v5e:2x2
jax: 0.10.0
libtpu: 0.0.40
codegen_flags: <defaults>
</compile_context>

<pallas_src>
import functools

import jax
import jax.numpy as jnp
import numpy as np
from jax import lax
from jax.experimental import pallas as pl
from jax.experimental.pallas import tpu as pltpu

AFFINE_EPS = 1e-4  # opt['affine_eps']


def _round_up(x, m):
  return (x + m - 1) // m * m


# ---------------------------------------------------------------------------
# Fused kernel: all FlowStep.reverse_flow's for one batch tile.
# Rows of every slab/matmul are the (2-D zero-padded) pixels of B_tile images.
# ---------------------------------------------------------------------------
def _block_reverse_kernel(
    mask_ref, z_ref, cond_ref,
    w1_ref, b1_ref, w2_ref, b2_ref, w3_ref, b3_ref, wz_ref, bz_ref,
    zo_ref, ld_ref, slab_ref,
    *, n_flow, b_tile, rows_blk, wp2, guard, ch_nn, n_ch, cond_nc, hid2, eps):
  ch_co = n_ch - ch_nn
  cout_a = 2 * ch_co
  cin1 = ch_nn + cond_nc
  k1 = 3 * cin1                       # first-conv contraction size
  k3 = 3 * hid2                       # Conv2dZeros contraction size
  c1 = k3                             # stage-1 dy-stack column offset
  rows = b_tile * rows_blk            # LHS rows fed to every matmul
  n_cols = slab_ref.shape[1]
  alloc_rows = slab_ref.shape[0]

  mask = mask_ref[...]                # (rows, 1): 1.0 at valid pixel rows

  # Zero only the guard strips (once per grid step -> correct per TensorCore
  # under "parallel" megacore).  The dy-stacked stores below never touch the
  # rows that must stay zero, so the guarantee holds for every flow step.
  top = guard + wp2
  slab_ref[0:top, :] = jnp.zeros((top, n_cols), jnp.float32)
  bot = guard + rows - wp2
  slab_ref[bot:alloc_rows, :] = jnp.zeros((alloc_rows - bot, n_cols),
                                          jnp.float32)

  def store_dy_stack(col0, width, src):
    # Write `src` (rows, width) three times at +-(W+2)-shifted rows so that
    # slab[guard + r, col0 + g*width : ...] == src[r + (g-1)*(W+2)]  (g == dy).
    for g in range(3):
      r0 = guard - (g - 1) * wp2
      slab_ref[r0:r0 + rows, col0 + g * width:col0 + (g + 1) * width] = src

  def conv3x3(col0, ksize, w_ref, b_ref, s):
    # 3x3 'same' conv as 3 MXU dots: dy folded into K via the dy-stacked slab
    # columns, dx handled by a +-1 row shift of the LHS window.
    out = None
    for dx in range(3):
      lhs = slab_ref[guard - 1 + dx:guard - 1 + dx + rows,
                     col0:col0 + ksize].astype(jnp.bfloat16)
      d = jnp.dot(lhs, w_ref[s, dx], preferred_element_type=jnp.float32)
      out = d if out is None else out + d
    return out + b_ref[s]

  cond = cond_ref[...]                                  # (rows, cond_nc)
  z = z_ref[...]                                        # (rows, C) f32
  ld_img = [jnp.zeros((1, 1), jnp.float32) for _ in range(b_tile)]

  for s in range(n_flow):
    # ---- fAffine || fFeatures, fused (block-diagonal weights) --------------
    src1 = jnp.concatenate([z[:, 0:ch_nn] * mask, cond], axis=1)
    store_dy_stack(c1, cin1, src1)
    h = jnp.maximum(conv3x3(c1, k1, w1_ref, b1_ref, s), 0.0)
    h = jnp.maximum(
        jnp.dot(h.astype(jnp.bfloat16), w2_ref[s],
                preferred_element_type=jnp.float32) + b2_ref[s], 0.0)
    store_dy_stack(0, hid2, h * mask)
    h3 = conv3x3(0, k3, w3_ref, b3_ref, s)

    # ---- AffineInjectorAndCoupling (reverse): coupling on z2 ----------------
    shift_a = h3[:, 0:ch_co]
    scale_a = jax.nn.sigmoid(h3[:, ch_co:cout_a] + 2.0) + eps
    z2 = z[:, ch_nn:n_ch] / scale_a - shift_a            # exact divide

    # ---- AffineInjectorAndCoupling (reverse): injector on full z ------------
    shift_f = h3[:, cout_a:cout_a + n_ch]
    scale_f = jax.nn.sigmoid(h3[:, cout_a + n_ch:cout_a + 2 * n_ch] + 2.0) + eps
    zc = jnp.concatenate([z[:, 0:ch_nn], z2], axis=1)
    zc = zc / scale_f - shift_f

    # ---- per-image affine log-det contribution (masked to valid pixels) ----
    ld_rows = (jnp.sum(jnp.log(scale_a), axis=1, keepdims=True) +
               jnp.sum(jnp.log(scale_f), axis=1, keepdims=True)) * mask
    for b in range(b_tile):
      ld_img[b] = ld_img[b] + jnp.sum(
          ld_rows[b * rows_blk:(b + 1) * rows_blk], keepdims=True)

    # ---- InvertibleConv1x1^-1 fused with ActNorm2d^-1 -----------------------
    z = jnp.dot(zc.astype(jnp.bfloat16), wz_ref[s],
                preferred_element_type=jnp.float32) + bz_ref[s]

  zo_ref[...] = z
  ld_ref[0] = jnp.concatenate(
      [jnp.broadcast_to(-ld_img[b], (1, 128)) for b in range(b_tile)], axis=0)


# ------------------------- parameter preparation ----------------------------
def _prep_flowstep_fused(fp, ch_nn, cond_nc):
  """Fold ActNorm / Conv2dZeros scales into the weights, fuse fAffine and
  fFeatures into block-diagonal weights, stack the 3x3 taps dy-major for the
  dy-stacked slab layout, and fuse InvertibleConv1x1^-1 with ActNorm2d^-1."""
  C = fp['an_logs'].shape[0]
  ch_co = C - ch_nn
  pa, pf = fp['fAffine'], fp['fFeatures']
  hid_a, hid_f = pa['w1'].shape[-1], pf['w1'].shape[-1]
  hid2 = hid_a + hid_f
  cin1 = ch_nn + cond_nc
  cout_a, cout_f = 2 * ch_co, 2 * C

  # stage 1: Conv2d 3x3 + folded ActNorm (fFeatures only sees the cond rows)
  sa1, sf1 = jnp.exp(pa['logs1']), jnp.exp(pf['logs1'])
  w1f = jnp.zeros((3, 3, cin1, hid2), jnp.float32)
  w1f = w1f.at[:, :, :, 0:hid_a].set(pa['w1'] * sa1)
  w1f = w1f.at[:, :, ch_nn:, hid_a:].set(pf['w1'] * sf1)
  w1 = jnp.transpose(w1f, (1, 0, 2, 3)).reshape(3, 3 * cin1, hid2)
  b1 = jnp.concatenate([pa['bias1'] * sa1, pf['bias1'] * sf1]).reshape(1, hid2)

  # stage 2: Conv2d 1x1 + folded ActNorm (block diagonal)
  sa2, sf2 = jnp.exp(pa['logs2']), jnp.exp(pf['logs2'])
  w2 = jnp.zeros((hid2, hid2), jnp.float32)
  w2 = w2.at[0:hid_a, 0:hid_a].set(pa['w2'][0, 0] * sa2)
  w2 = w2.at[hid_a:, hid_a:].set(pf['w2'][0, 0] * sf2)
  b2 = jnp.concatenate([pa['bias2'] * sa2, pf['bias2'] * sf2]).reshape(1, hid2)

  # stage 3: Conv2dZeros 3x3; output columns permuted so the 'cross' split
  # becomes two contiguous halves (shift | raw-scale) per branch.
  sa3, sf3 = jnp.exp(3.0 * pa['logs3']), jnp.exp(3.0 * pf['logs3'])
  perm_a = np.concatenate([np.arange(0, cout_a, 2), np.arange(1, cout_a, 2)])
  perm_f = np.concatenate([np.arange(0, cout_f, 2), np.arange(1, cout_f, 2)])
  w3f = jnp.zeros((3, 3, hid2, cout_a + cout_f), jnp.float32)
  w3f = w3f.at[:, :, 0:hid_a, 0:cout_a].set((pa['w3'] * sa3)[..., perm_a])
  w3f = w3f.at[:, :, hid_a:, cout_a:].set((pf['w3'] * sf3)[..., perm_f])
  w3 = jnp.transpose(w3f, (1, 0, 2, 3)).reshape(3, 3 * hid2, cout_a + cout_f)
  b3 = jnp.concatenate([(pa['bias3'] * sa3)[perm_a],
                        (pf['bias3'] * sf3)[perm_f]]).reshape(1, cout_a + cout_f)

  # InvertibleConv1x1^-1 then ActNorm2d^-1: z <- (z @ Winv^T) * exp(-logs) - b
  wz = fp['w_inv'].T * jnp.exp(-fp['an_logs'])[None, :]
  bz = (-fp['an_bias']).reshape(1, C)
  return (w1.astype(jnp.bfloat16), b1, w2.astype(jnp.bfloat16), b2,
          w3.astype(jnp.bfloat16), b3, wz.astype(jnp.bfloat16), bz)


# ------------------------------ wrapper --------------------------------------
def _choose_b_tile(batch, rows_blk, target_rows=256):
  """Fold enough images per grid step to feed >= target_rows to the MXU, but
  keep >= 2 grid steps when possible so v7x's two TensorCores both get work."""
  target = max(1, target_rows // rows_blk)
  bt = 1
  for d in range(1, batch + 1):
    if batch % d == 0 and d <= target:
      bt = d
  if batch >= 2 and batch // bt < 2:
    for d in range(bt - 1, 0, -1):
      if batch % d == 0 and batch // d >= 2:
        bt = d
        break
  return bt


def _pad_to_rows(nchw, rows_blk, wp2):
  """NCHW -> (B*rows_blk, C): channel-last rows with full 2-D zero padding."""
  B, C, H, W = nchw.shape
  t = jnp.transpose(nchw, (0, 2, 3, 1)).astype(jnp.float32)
  t = jnp.pad(t, ((0, 0), (1, 1), (1, wp2 - W - 1), (0, 0)))
  t = t.reshape(B, (H + 2) * wp2, C)
  t = jnp.pad(t, ((0, 0), (0, rows_blk - (H + 2) * wp2), (0, 0)))
  return t.reshape(B * rows_blk, C)


def block_forward(x_nchw, cond_nchw, logdet, params):
  """Block.forward with reverse=True (the module's default path)."""
  # TODO(synk): reverse=False (normal_flow: squeeze + forward flow steps) and
  # the data-dependent ActNorm initialisation are not implemented; only the
  # default reverse path with initialised parameters is covered.
  B, C, H, W = x_nchw.shape
  n_flow = len(params)
  ch_nn = C // 2
  cond_nc = cond_nchw.shape[1]
  hid2 = (params[0]['fAffine']['w1'].shape[-1]
          + params[0]['fFeatures']['w1'].shape[-1])

  wp2 = W + 2
  rows_img = (H + 2) * wp2
  rows_blk = _round_up(rows_img, 8)
  b_tile = _choose_b_tile(B, rows_blk)
  num_tiles = B // b_tile
  rows = b_tile * rows_blk
  guard = _round_up(wp2, 8)
  alloc_rows = _round_up(guard + wp2 + rows, 8)
  n_cols = 3 * hid2 + 3 * (ch_nn + cond_nc)

  z_pad = _pad_to_rows(x_nchw, rows_blk, wp2)
  c_pad = _pad_to_rows(cond_nchw, rows_blk, wp2)
  m = jnp.pad(jnp.ones((H, W), jnp.float32), ((1, 1), (1, wp2 - W - 1)))
  m = jnp.pad(m.reshape(rows_img), (0, rows_blk - rows_img))
  mask = jnp.tile(m, b_tile).reshape(rows, 1)

  # prepped + stacked (over flows[::-1]) fused weights
  preps = [_prep_flowstep_fused(fp, ch_nn, cond_nc) for fp in params[::-1]]
  w_args = tuple(jnp.stack([p[i] for p in preps], axis=0) for i in range(8))

  kernel = functools.partial(
      _block_reverse_kernel, n_flow=n_flow, b_tile=b_tile, rows_blk=rows_blk,
      wp2=wp2, guard=guard, ch_nn=ch_nn, n_ch=C, cond_nc=cond_nc, hid2=hid2,
      eps=AFFINE_EPS)

  def full_spec(a):
    nd = a.ndim
    return pl.BlockSpec(a.shape, lambda b, _nd=nd: (0,) * _nd)

  z_new, ld = pl.pallas_call(
      kernel,
      grid=(num_tiles,),
      in_specs=[full_spec(mask),
                pl.BlockSpec((rows, C), lambda b: (b, 0)),
                pl.BlockSpec((rows, cond_nc), lambda b: (b, 0))]
               + [full_spec(a) for a in w_args],
      out_specs=(pl.BlockSpec((rows, C), lambda b: (b, 0)),
                 pl.BlockSpec((1, b_tile, 128), lambda b: (b, 0, 0))),
      out_shape=(jax.ShapeDtypeStruct((B * rows_blk, C), jnp.float32),
                 jax.ShapeDtypeStruct((num_tiles, b_tile, 128), jnp.float32)),
      scratch_shapes=[pltpu.VMEM((alloc_rows, n_cols), jnp.float32)],
      compiler_params=pltpu.CompilerParams(
          dimension_semantics=("parallel",)),
  )(mask, z_pad, c_pad, *w_args)

  # drop the padding rows / columns, back to NCHW
  z_new = z_new.reshape(B, rows_blk, C)[:, :rows_img, :]
  z_new = z_new.reshape(B, H + 2, wp2, C)[:, 1:H + 1, 1:W + 1, :]
  out = jnp.transpose(z_new, (0, 3, 1, 2))

  # log-det: per-image affine terms from the kernel + constant invconv/actnorm
  pixels = H * W
  const = jnp.zeros((), jnp.float32)
  for fp in params[::-1]:
    const = const - (fp['w_slogdet'] + jnp.sum(fp['an_logs'])) * pixels
  logdet = logdet + ld[:, :, 0].reshape(B) + const

  # unsqueeze (exact PyTorch index semantics)
  out = out.reshape(B, C // 4, 2, 2, H, W)
  out = jnp.transpose(out, (0, 1, 4, 2, 5, 3))
  out = out.reshape(B, C // 4, H * 2, W * 2)
  return out, logdet


# --------------------------- pure-JAX f32 reference --------------------------
def _conv_same_ref(x, w):
  return lax.conv_general_dilated(x, w, (1, 1), 'SAME',
                                  dimension_numbers=('NHWC', 'HWIO', 'NHWC'))


def _feature_extract_ref(x, p):
  h = jnp.maximum((_conv_same_ref(x, p['w1']) + p['bias1']) * jnp.exp(p['logs1']), 0.0)
  h = jnp.maximum((_conv_same_ref(h, p['w2']) + p['bias2']) * jnp.exp(p['logs2']), 0.0)
  h = (_conv_same_ref(h, p['w3']) + p['bias3']) * jnp.exp(p['logs3'] * 3.0)
  shift, raw = h[..., 0::2], h[..., 1::2]
  return jax.nn.sigmoid(raw + 2.0) + AFFINE_EPS, shift


def block_forward_ref(x_nchw, cond_nchw, logdet, params):
  B, C, H, W = x_nchw.shape
  ch_nn = C // 2
  pixels = H * W
  z = jnp.transpose(x_nchw, (0, 2, 3, 1)).astype(jnp.float32)
  cond = jnp.transpose(cond_nchw, (0, 2, 3, 1)).astype(jnp.float32)
  for fp in params[::-1]:
    z1, z2 = z[..., :ch_nn], z[..., ch_nn:]
    scale, shift = _feature_extract_ref(jnp.concatenate([z1, cond], -1), fp['fAffine'])
    z2 = z2 / scale - shift
    z = jnp.concatenate([z1, z2], -1)
    logdet = logdet - jnp.sum(jnp.log(scale), axis=(1, 2, 3))
    scale_ft, shift_ft = _feature_extract_ref(cond, fp['fFeatures'])
    z = z / scale_ft - shift_ft
    logdet = logdet - jnp.sum(jnp.log(scale_ft), axis=(1, 2, 3))
    z = jnp.einsum('bhwc,oc->bhwo', z, fp['w_inv'])
    logdet = logdet - fp['w_slogdet'] * pixels
    z = z * jnp.exp(-fp['an_logs']) - fp['an_bias']
    logdet = logdet - jnp.sum(fp['an_logs']) * pixels
  out = jnp.transpose(z, (0, 3, 1, 2))
  out = out.reshape(B, C // 4, 2, 2, H, W)
  out = jnp.transpose(out, (0, 1, 4, 2, 5, 3))
  out = out.reshape(B, C // 4, H * 2, W * 2)
  return out, logdet


# --------------------------- parameter construction --------------------------
def init_F_raw(key, cin, cout, hidden):
  ks = jax.random.split(key, 9)
  # Conv2d weight_std=0.05.  ActNorm / Conv2dZeros params are zero-init in
  # PyTorch; small random values are used so the path is numerically non-trivial.
  return dict(
      w1=0.05 * jax.random.normal(ks[0], (3, 3, cin, hidden), jnp.float32),
      logs1=0.1 * jax.random.normal(ks[1], (hidden,), jnp.float32),
      bias1=0.1 * jax.random.normal(ks[2], (hidden,), jnp.float32),
      w2=0.05 * jax.random.normal(ks[3], (1, 1, hidden, hidden), jnp.float32),
      logs2=0.1 * jax.random.normal(ks[4], (hidden,), jnp.float32),
      bias2=0.1 * jax.random.normal(ks[5], (hidden,), jnp.float32),
      w3=0.02 * jax.random.normal(ks[6], (3, 3, hidden, cout), jnp.float32),
      bias3=0.02 * jax.random.normal(ks[7], (cout,), jnp.float32),
      logs3=0.02 * jax.random.normal(ks[8], (cout,), jnp.float32),
  )


def init_flowstep_raw(key, C, cond_nc, hidden):
  ka, kl, kw, kf1, kf2 = jax.random.split(key, 5)
  w = jnp.linalg.qr(jax.random.normal(kw, (C, C), jnp.float32))[0]  # orthogonal
  ch_nn = C // 2
  ch_co = C - ch_nn
  return dict(
      an_bias=0.1 * jax.random.normal(ka, (C,), jnp.float32),
      an_logs=0.1 * jax.random.normal(kl, (C,), jnp.float32),
      w_inv=jnp.linalg.inv(w),
      w_slogdet=jnp.linalg.slogdet(w)[1],
      fAffine=init_F_raw(kf1, ch_nn + cond_nc, ch_co * 2, hidden),
      fFeatures=init_F_raw(kf2, cond_nc, C * 2, hidden),
  )


# ----------------------------------- main ------------------------------------
if __name__ == "__main__":
  # Block(in_channel=4, n_flow=2, opt={'in_nc_cond': 8, 'affine_nc': 32,
  #                                    'affine_eps': 1e-4})
  in_channel = 4
  squeeze_dim = in_channel * 4          # 16 channels inside the flow steps
  n_flow = 2
  cond_nc = 8
  hidden = 32
  B, H, W = 2, 8, 8                     # reverse-path input is already "squeezed"

  root = jax.random.PRNGKey(0)
  k_x, k_c, k_p = jax.random.split(root, 3)

  x = jax.random.normal(k_x, (B, squeeze_dim, H, W), jnp.float32)     # NCHW
  cond = jax.random.normal(k_c, (B, cond_nc, H, W), jnp.float32)      # NCHW
  logdet = jnp.zeros((B,), jnp.float32)

  params = [init_flowstep_raw(k, squeeze_dim, cond_nc, hidden)
            for k in jax.random.split(k_p, n_flow)]

  fwd = jax.jit(block_forward)
  out, ld = fwd(x, cond, logdet, params)
  jax.block_until_ready((out, ld))

  assert out.shape == (B, in_channel, H * 2, W * 2), out.shape
  assert ld.shape == (B,), ld.shape

  # pure-JAX f32 reference; tolerance covers the bf16 MXU inputs of the
  # Pallas path (the affine inverses use exact division in both paths).
  ref_out, ref_ld = jax.jit(block_forward_ref)(x, cond, logdet, params)
  jax.block_until_ready((ref_out, ref_ld))
  np.testing.assert_allclose(np.asarray(out), np.asarray(ref_out),
                             rtol=5e-2, atol=1e-1)
  np.testing.assert_allclose(np.asarray(ld), np.asarray(ref_ld),
                             rtol=2e-2, atol=0.5)

  print("KERNEL_OK")
</pallas_src>

<mosaic_0001>
module attributes {stable_mosaic.version = 11 : i64} {
  func.func @_block_reverse_kernel(%arg0: i32, %arg1: memref<104x1xf32, #tpu.memory_space<vmem>>, %arg2: memref<104x16xf32, #tpu.memory_space<vmem>>, %arg3: memref<104x8xf32, #tpu.memory_space<vmem>>, %arg4: memref<2x3x48x64xbf16, #tpu.memory_space<vmem>>, %arg5: memref<2x1x64xf32, #tpu.memory_space<vmem>>, %arg6: memref<2x64x64xbf16, #tpu.memory_space<vmem>>, %arg7: memref<2x1x64xf32, #tpu.memory_space<vmem>>, %arg8: memref<2x3x192x48xbf16, #tpu.memory_space<vmem>>, %arg9: memref<2x1x48xf32, #tpu.memory_space<vmem>>, %arg10: memref<2x16x16xbf16, #tpu.memory_space<vmem>>, %arg11: memref<2x1x16xf32, #tpu.memory_space<vmem>>, %arg12: memref<104x16xf32, #tpu.memory_space<vmem>>, %arg13: memref<1x1x128xf32, #tpu.memory_space<vmem>>, %arg14: memref<136x240xf32, #tpu.memory_space<vmem>>) attributes {dimension_semantics = [#tpu.dimension_semantics<parallel>], iteration_bounds = array<i64: 2>, scalar_prefetch = 0 : i64, scratch_operands = 1 : i64, tpu.core_type = #tpu.core_type<tc>, window_params = [{pipeline_mode = #tpu.pipeline_mode<synchronous>, transform_indices = @transform_0, window_bounds = array<i64: 104, 1>}, {transform_indices = @transform_1, window_bounds = array<i64: 104, 16>}, {transform_indices = @transform_2, window_bounds = array<i64: 104, 8>}, {pipeline_mode = #tpu.pipeline_mode<synchronous>, transform_indices = @transform_3, window_bounds = array<i64: 2, 3, 48, 64>}, {pipeline_mode = #tpu.pipeline_mode<synchronous>, transform_indices = @transform_4, window_bounds = array<i64: 2, 1, 64>}, {pipeline_mode = #tpu.pipeline_mode<synchronous>, transform_indices = @transform_5, window_bounds = array<i64: 2, 64, 64>}, {pipeline_mode = #tpu.pipeline_mode<synchronous>, transform_indices = @transform_6, window_bounds = array<i64: 2, 1, 64>}, {pipeline_mode = #tpu.pipeline_mode<synchronous>, transform_indices = @transform_7, window_bounds = array<i64: 2, 3, 192, 48>}, {pipeline_mode = #tpu.pipeline_mode<synchronous>, transform_indices = @transform_8, window_bounds = array<i64: 2, 1, 48>}, {pipeline_mode = #tpu.pipeline_mode<synchronous>, transform_indices = @transform_9, window_bounds = array<i64: 2, 16, 16>}, {pipeline_mode = #tpu.pipeline_mode<synchronous>, transform_indices = @transform_10, window_bounds = array<i64: 2, 1, 16>}, {transform_indices = @transform_11, window_bounds = array<i64: 104, 16>}, {transform_indices = @transform_12, window_bounds = array<i64: 1, 1, 128>}]} {
    %c0 = arith.constant 0 : index
    %c0_0 = arith.constant 0 : index
    %0 = vector.load %arg1[%c0, %c0_0] : memref<104x1xf32, #tpu.memory_space<vmem>>, vector<104x1xf32>
    %cst = arith.constant 0.000000e+00 : f32
    %1 = vector.broadcast %cst : f32 to vector<26x240xf32>
    %c0_1 = arith.constant 0 : index
    %c0_2 = arith.constant 0 : index
    %2 = vector.load %arg14[%c0_1, %c0_2] : memref<136x240xf32, #tpu.memory_space<vmem>>, vector<26x240xf32>
    tpu.vector_store %arg14[%c0_1, %c0_2], %1 {strides = array<i32>} : memref<136x240xf32, #tpu.memory_space<vmem>>, vector<26x240xf32>,
    %cst_3 = arith.constant 0.000000e+00 : f32
    %3 = vector.broadcast %cst_3 : f32 to vector<26x240xf32>
    %c110 = arith.constant 110 : index
    %c0_4 = arith.constant 0 : index
    %4 = vector.load %arg14[%c110, %c0_4] : memref<136x240xf32, #tpu.memory_space<vmem>>, vector<26x240xf32>
    tpu.vector_store %arg14[%c110, %c0_4], %3 {strides = array<i32>} : memref<136x240xf32, #tpu.memory_space<vmem>>, vector<26x240xf32>,
    %c0_5 = arith.constant 0 : index
    %c0_6 = arith.constant 0 : index
    %5 = vector.load %arg3[%c0_5, %c0_6] : memref<104x8xf32, #tpu.memory_space<vmem>>, vector<104x8xf32>
    %c0_7 = arith.constant 0 : index
    %c0_8 = arith.constant 0 : index
    %6 = vector.load %arg2[%c0_7, %c0_8] : memref<104x16xf32, #tpu.memory_space<vmem>>, vector<104x16xf32>
    %cst_9 = arith.constant 0.000000e+00 : f32
    %7 = vector.broadcast %cst_9 : f32 to vector<1x1xf32>
    %8 = vector.extract_strided_slice %6 {offsets = [0, 0], sizes = [104, 8], strides = [1, 1]} : vector<104x16xf32> to vector<104x8xf32>
    %9 = vector.broadcast %0 : vector<104x1xf32> to vector<104x8xf32>
    %10 = arith.mulf %8, %9 : vector<104x8xf32>
    %11 = tpu.concatenate %10, %5 in 1 : vector<104x8xf32>, vector<104x8xf32> -> vector<104x16xf32>
    %c26 = arith.constant 26 : index
    %c192 = arith.constant 192 : index
    %12 = vector.load %arg14[%c26, %c192] : memref<136x240xf32, #tpu.memory_space<vmem>>, vector<104x16xf32>
    tpu.vector_store %arg14[%c26, %c192], %11 {strides = array<i32>} : memref<136x240xf32, #tpu.memory_space<vmem>>, vector<104x16xf32>,
    %c16 = arith.constant 16 : index
    %c208 = arith.constant 208 : index
    %13 = vector.load %arg14[%c16, %c208] : memref<136x240xf32, #tpu.memory_space<vmem>>, vector<104x16xf32>
    tpu.vector_store %arg14[%c16, %c208], %11 {strides = array<i32>} : memref<136x240xf32, #tpu.memory_space<vmem>>, vector<104x16xf32>,
    %c6 = arith.constant 6 : index
    %c224 = arith.constant 224 : index
    %14 = vector.load %arg14[%c6, %c224] : memref<136x240xf32, #tpu.memory_space<vmem>>, vector<104x16xf32>
    tpu.vector_store %arg14[%c6, %c224], %11 {strides = array<i32>} : memref<136x240xf32, #tpu.memory_space<vmem>>, vector<104x16xf32>,
    %c15 = arith.constant 15 : index
    %c192_10 = arith.constant 192 : index
    %15 = vector.load %arg14[%c15, %c192_10] : memref<136x240xf32, #tpu.memory_space<vmem>>, vector<104x48xf32>
    %16 = arith.truncf %15 : vector<104x48xf32> to vector<104x48xbf16>
    %c0_11 = arith.constant 0 : index
    %c0_12 = arith.constant 0 : index
    %c0_13 = arith.constant 0 : index
    %c0_14 = arith.constant 0 : index
    %17 = vector.load %arg4[%c0_11, %c0_12, %c0_13, %c0_14] : memref<2x3x48x64xbf16, #tpu.memory_space<vmem>>, vector<1x1x48x64xbf16>
    %18 = vector.shape_cast %17 : vector<1x1x48x64xbf16> to vector<48x64xbf16>
    %cst_15 = arith.constant dense<0.000000e+00> : vector<104x64xf32>
    %19 = tpu.matmul %16, %18, %cst_15 {dimension_numbers = #tpu.dot_dimension_numbers<[1], [0], [0], [1], [0, 0, 1, 1], [], []>} : vector<104x48xbf16>, vector<48x64xbf16>, vector<104x64xf32> -> vector<104x64xf32>
    %c16_16 = arith.constant 16 : index
    %c192_17 = arith.constant 192 : index
    %20 = vector.load %arg14[%c16_16, %c192_17] : memref<136x240xf32, #tpu.memory_space<vmem>>, vector<104x48xf32>
    %21 = arith.truncf %20 : vector<104x48xf32> to vector<104x48xbf16>
    %c0_18 = arith.constant 0 : index
    %c1 = arith.constant 1 : index
    %c0_19 = arith.constant 0 : index
    %c0_20 = arith.constant 0 : index
    %22 = vector.load %arg4[%c0_18, %c1, %c0_19, %c0_20] : memref<2x3x48x64xbf16, #tpu.memory_space<vmem>>, vector<1x1x48x64xbf16>
    %23 = vector.shape_cast %22 : vector<1x1x48x64xbf16> to vector<48x64xbf16>
    %cst_21 = arith.constant dense<0.000000e+00> : vector<104x64xf32>
    %24 = tpu.matmul %21, %23, %cst_21 {dimension_numbers = #tpu.dot_dimension_numbers<[1], [0], [0], [1], [0, 0, 1, 1], [], []>} : vector<104x48xbf16>, vector<48x64xbf16>, vector<104x64xf32> -> vector<104x64xf32>
    %25 = arith.addf %19, %24 : vector<104x64xf32>
    %c17 = arith.constant 17 : index
    %c192_22 = arith.constant 192 : index
    %26 = vector.load %arg14[%c17, %c192_22] : memref<136x240xf32, #tpu.memory_space<vmem>>, vector<104x48xf32>
    %27 = arith.truncf %26 : vector<104x48xf32> to vector<104x48xbf16>
    %c0_23 = arith.constant 0 : index
    %c2 = arith.constant 2 : index
    %c0_24 = arith.constant 0 : index
    %c0_25 = arith.constant 0 : index
    %28 = vector.load %arg4[%c0_23, %c2, %c0_24, %c0_25] : memref<2x3x48x64xbf16, #tpu.memory_space<vmem>>, vector<1x1x48x64xbf16>
    %29 = vector.shape_cast %28 : vector<1x1x48x64xbf16> to vector<48x64xbf16>
    %cst_26 = arith.constant dense<0.000000e+00> : vector<104x64xf32>
    %30 = tpu.matmul %27, %29, %cst_26 {dimension_numbers = #tpu.dot_dimension_numbers<[1], [0], [0], [1], [0, 0, 1, 1], [], []>} : vector<104x48xbf16>, vector<48x64xbf16>, vector<104x64xf32> -> vector<104x64xf32>
    %31 = arith.addf %25, %30 : vector<104x64xf32>
    %c0_27 = arith.constant 0 : index
    %c0_28 = arith.constant 0 : index
    %c0_29 = arith.constant 0 : index
    %32 = vector.load %arg5[%c0_27, %c0_28, %c0_29] : memref<2x1x64xf32, #tpu.memory_space<vmem>>, vector<1x1x64xf32>
    %33 = vector.shape_cast %32 : vector<1x1x64xf32> to vector<1x64xf32>
    %34 = vector.broadcast %33 : vector<1x64xf32> to vector<104x64xf32>
    %35 = arith.addf %31, %34 : vector<104x64xf32>
    %cst_30 = arith.constant 0.000000e+00 : f32
    %36 = vector.broadcast %cst_30 : f32 to vector<104x64xf32>
    %37 = arith.maximumf %35, %36 : vector<104x64xf32>
    %38 = arith.truncf %37 : vector<104x64xf32> to vector<104x64xbf16>
    %c0_31 = arith.constant 0 : index
    %c0_32 = arith.constant 0 : index
    %c0_33 = arith.constant 0 : index
    %39 = vector.load %arg6[%c0_31, %c0_32, %c0_33] : memref<2x64x64xbf16, #tpu.memory_space<vmem>>, vector<1x64x64xbf16>
    %40 = vector.shape_cast %39 : vector<1x64x64xbf16> to vector<64x64xbf16>
    %cst_34 = arith.constant dense<0.000000e+00> : vector<104x64xf32>
    %41 = tpu.matmul %38, %40, %cst_34 {dimension_numbers = #tpu.dot_dimension_numbers<[1], [0], [0], [1], [0, 0, 1, 1], [], []>} : vector<104x64xbf16>, vector<64x64xbf16>, vector<104x64xf32> -> vector<104x64xf32>
    %c0_35 = arith.constant 0 : index
    %c0_36 = arith.constant 0 : index
    %c0_37 = arith.constant 0 : index
    %42 = vector.load %arg7[%c0_35, %c0_36, %c0_37] : memref<2x1x64xf32, #tpu.memory_space<vmem>>, vector<1x1x64xf32>
    %43 = vector.shape_cast %42 : vector<1x1x64xf32> to vector<1x64xf32>
    %44 = vector.broadcast %43 : vector<1x64xf32> to vector<104x64xf32>
    %45 = arith.addf %41, %44 : vector<104x64xf32>
    %cst_38 = arith.constant 0.000000e+00 : f32
    %46 = vector.broadcast %cst_38 : f32 to vector<104x64xf32>
    %47 = arith.maximumf %45, %46 : vector<104x64xf32>
    %48 = vector.broadcast %0 : vector<104x1xf32> to vector<104x64xf32>
    %49 = arith.mulf %47, %48 : vector<104x64xf32>
    %c26_39 = arith.constant 26 : index
    %c0_40 = arith.constant 0 : index
    %50 = vector.load %arg14[%c26_39, %c0_40] : memref<136x240xf32, #tpu.memory_space<vmem>>, vector<104x64xf32>
    tpu.vector_store %arg14[%c26_39, %c0_40], %49 {strides = array<i32>} : memref<136x240xf32, #tpu.memory_space<vmem>>, vector<104x64xf32>,
    %c16_41 = arith.constant 16 : index
    %c64 = arith.constant 64 : index
    %51 = vector.load %arg14[%c16_41, %c64] : memref<136x240xf32, #tpu.memory_space<vmem>>, vector<104x64xf32>
    tpu.vector_store %arg14[%c16_41, %c64], %49 {strides = array<i32>} : memref<136x240xf32, #tpu.memory_space<vmem>>, vector<104x64xf32>,
    %c6_42 = arith.constant 6 : index
    %c128 = arith.constant 128 : index
    %52 = vector.load %arg14[%c6_42, %c128] : memref<136x240xf32, #tpu.memory_space<vmem>>, vector<104x64xf32>
    tpu.vector_store %arg14[%c6_42, %c128], %49 {strides = array<i32>} : memref<136x240xf32, #tpu.memory_space<vmem>>, vector<104x64xf32>,
    %c15_43 = arith.constant 15 : index
    %c0_44 = arith.constant 0 : index
    %53 = vector.load %arg14[%c15_43, %c0_44] : memref<136x240xf32, #tpu.memory_space<vmem>>, vector<104x192xf32>
    %54 = arith.truncf %53 : vector<104x192xf32> to vector<104x192xbf16>
    %c0_45 = arith.constant 0 : index
    %c0_46 = arith.constant 0 : index
    %c0_47 = arith.constant 0 : index
    %c0_48 = arith.constant 0 : index
    %55 = vector.load %arg8[%c0_45, %c0_46, %c0_47, %c0_48] : memref<2x3x192x48xbf16, #tpu.memory_space<vmem>>, vector<1x1x192x48xbf16>
    %56 = vector.shape_cast %55 : vector<1x1x192x48xbf16> to vector<192x48xbf16>
    %cst_49 = arith.constant dense<0.000000e+00> : vector<104x48xf32>
    %57 = tpu.matmul %54, %56, %cst_49 {dimension_numbers = #tpu.dot_dimension_numbers<[1], [0], [0], [1], [0, 0, 1, 1], [], []>} : vector<104x192xbf16>, vector<192x48xbf16>, vector<104x48xf32> -> vector<104x48xf32>
    %c16_50 = arith.constant 16 : index
    %c0_51 = arith.constant 0 : index
    %58 = vector.load %arg14[%c16_50, %c0_51] : memref<136x240xf32, #tpu.memory_space<vmem>>, vector<104x192xf32>
    %59 = arith.truncf %58 : vector<104x192xf32> to vector<104x192xbf16>
    %c0_52 = arith.constant 0 : index
    %c1_53 = arith.constant 1 : index
    %c0_54 = arith.constant 0 : index
    %c0_55 = arith.constant 0 : index
    %60 = vector.load %arg8[%c0_52, %c1_53, %c0_54, %c0_55] : memref<2x3x192x48xbf16, #tpu.memory_space<vmem>>, vector<1x1x192x48xbf16>
    %61 = vector.shape_cast %60 : vector<1x1x192x48xbf16> to vector<192x48xbf16>
    %cst_56 = arith.constant dense<0.000000e+00> : vector<104x48xf32>
    %62 = tpu.matmul %59, %61, %cst_56 {dimension_numbers = #tpu.dot_dimension_numbers<[1], [0], [0], [1], [0, 0, 1, 1], [], []>} : vector<104x192xbf16>, vector<192x48xbf16>, vector<104x48xf32> -> vector<104x48xf32>
    %63 = arith.addf %57, %62 : vector<104x48xf32>
    %c17_57 = arith.constant 17 : index
    %c0_58 = arith.constant 0 : index
    %64 = vector.load %arg14[%c17_57, %c0_58] : memref<136x240xf32, #tpu.memory_space<vmem>>, vector<104x192xf32>
    %65 = arith.truncf %64 : vector<104x192xf32> to vector<104x192xbf16>
    %c0_59 = arith.constant 0 : index
    %c2_60 = arith.constant 2 : index
    %c0_61 = arith.constant 0 : index
    %c0_62 = arith.constant 0 : index
    %66 = vector.load %arg8[%c0_59, %c2_60, %c0_61, %c0_62] : memref<2x3x192x48xbf16, #tpu.memory_space<vmem>>, vector<1x1x192x48xbf16>
    %67 = vector.shape_cast %66 : vector<1x1x192x48xbf16> to vector<192x48xbf16>
    %cst_63 = arith.constant dense<0.000000e+00> : vector<104x48xf32>
    %68 = tpu.matmul %65, %67, %cst_63 {dimension_numbers = #tpu.dot_dimension_numbers<[1], [0], [0], [1], [0, 0, 1, 1], [], []>} : vector<104x192xbf16>, vector<192x48xbf16>, vector<104x48xf32> -> vector<104x48xf32>
    %69 = arith.addf %63, %68 : vector<104x48xf32>
    %c0_64 = arith.constant 0 : index
    %c0_65 = arith.constant 0 : index
    %c0_66 = arith.constant 0 : index
    %70 = vector.load %arg9[%c0_64, %c0_65, %c0_66] : memref<2x1x48xf32, #tpu.memory_space<vmem>>, vector<1x1x48xf32>
    %71 = vector.shape_cast %70 : vector<1x1x48xf32> to vector<1x48xf32>
    %72 = vector.broadcast %71 : vector<1x48xf32> to vector<104x48xf32>
    %73 = arith.addf %69, %72 : vector<104x48xf32>
    %74 = vector.extract_strided_slice %73 {offsets = [0, 0], sizes = [104, 8], strides = [1, 1]} : vector<104x48xf32> to vector<104x8xf32>
    %75 = vector.extract_strided_slice %73 {offsets = [0, 8], sizes = [104, 8], strides = [1, 1]} : vector<104x48xf32> to vector<104x8xf32>
    %cst_67 = arith.constant 2.000000e+00 : f32
    %76 = vector.broadcast %cst_67 : f32 to vector<104x8xf32>
    %77 = arith.addf %75, %76 : vector<104x8xf32>
    %78 = arith.negf %77 : vector<104x8xf32>
    %79 = math.exp %78 : vector<104x8xf32>
    %cst_68 = arith.constant 1.000000e+00 : f32
    %80 = vector.broadcast %cst_68 : f32 to vector<104x8xf32>
    %81 = arith.addf %80, %79 : vector<104x8xf32>
    %82 = arith.divf %80, %81 : vector<104x8xf32>
    %cst_69 = arith.constant 9.99999974E-5 : f32
    %83 = vector.broadcast %cst_69 : f32 to vector<104x8xf32>
    %84 = arith.addf %82, %83 : vector<104x8xf32>
    %85 = vector.extract_strided_slice %6 {offsets = [0, 8], sizes = [104, 8], strides = [1, 1]} : vector<104x16xf32> to vector<104x8xf32>
    %86 = arith.divf %85, %84 : vector<104x8xf32>
    %87 = arith.subf %86, %74 : vector<104x8xf32>
    %88 = vector.extract_strided_slice %73 {offsets = [0, 16], sizes = [104, 16], strides = [1, 1]} : vector<104x48xf32> to vector<104x16xf32>
    %89 = vector.extract_strided_slice %73 {offsets = [0, 32], sizes = [104, 16], strides = [1, 1]} : vector<104x48xf32> to vector<104x16xf32>
    %cst_70 = arith.constant 2.000000e+00 : f32
    %90 = vector.broadcast %cst_70 : f32 to vector<104x16xf32>
    %91 = arith.addf %89, %90 : vector<104x16xf32>
    %92 = arith.negf %91 : vector<104x16xf32>
    %93 = math.exp %92 : vector<104x16xf32>
    %cst_71 = arith.constant 1.000000e+00 : f32
    %94 = vector.broadcast %cst_71 : f32 to vector<104x16xf32>
    %95 = arith.addf %94, %93 : vector<104x16xf32>
    %96 = arith.divf %94, %95 : vector<104x16xf32>
    %cst_72 = arith.constant 9.99999974E-5 : f32
    %97 = vector.broadcast %cst_72 : f32 to vector<104x16xf32>
    %98 = arith.addf %96, %97 : vector<104x16xf32>
    %99 = vector.extract_strided_slice %6 {offsets = [0, 0], sizes = [104, 8], strides = [1, 1]} : vector<104x16xf32> to vector<104x8xf32>
    %100 = tpu.concatenate %99, %87 in 1 : vector<104x8xf32>, vector<104x8xf32> -> vector<104x16xf32>
    %101 = arith.divf %100, %98 : vector<104x16xf32>
    %102 = arith.subf %101, %88 : vector<104x16xf32>
    %103 = math.log %84 : vector<104x8xf32>
    %cst_73 = arith.constant dense<0.000000e+00> : vector<104xf32>
    %104 = vector.multi_reduction <add>, %103, %cst_73 [1] : vector<104x8xf32> to vector<104xf32>
    %105 = vector.shape_cast %104 : vector<104xf32> to vector<104x1xf32>
    %106 = math.log %98 : vector<104x16xf32>
    %cst_74 = arith.constant dense<0.000000e+00> : vector<104xf32>
    %107 = vector.multi_reduction <add>, %106, %cst_74 [1] : vector<104x16xf32> to vector<104xf32>
    %108 = vector.shape_cast %107 : vector<104xf32> to vector<104x1xf32>
    %109 = arith.addf %105, %108 : vector<104x1xf32>
    %110 = arith.mulf %109, %0 : vector<104x1xf32>
    %111 = vector.shape_cast %110 : vector<104x1xf32> to vector<1x104x1xf32>
    %cst_75 = arith.constant dense<0.000000e+00> : vector<1xf32>
    %112 = vector.multi_reduction <add>, %111, %cst_75 [1, 2] : vector<1x104x1xf32> to vector<1xf32>
    %113 = vector.shape_cast %112 : vector<1xf32> to vector<1x1x1xf32>
    %114 = vector.extract %113[0, 0, 0] : f32 from vector<1x1x1xf32>
    %115 = vector.broadcast %114 : f32 to vector<1x1xf32>
    %116 = arith.addf %7, %115 : vector<1x1xf32>
    %117 = arith.truncf %102 : vector<104x16xf32> to vector<104x16xbf16>
    %c0_76 = arith.constant 0 : index
    %c0_77 = arith.constant 0 : index
    %c0_78 = arith.constant 0 : index
    %118 = vector.load %arg10[%c0_76, %c0_77, %c0_78] : memref<2x16x16xbf16, #tpu.memory_space<vmem>>, vector<1x16x16xbf16>
    %119 = vector.shape_cast %118 : vector<1x16x16xbf16> to vector<16x16xbf16>
    %cst_79 = arith.constant dense<0.000000e+00> : vector<104x16xf32>
    %120 = tpu.matmul %117, %119, %cst_79 {dimension_numbers = #tpu.dot_dimension_numbers<[1], [0], [0], [1], [0, 0, 1, 1], [], []>} : vector<104x16xbf16>, vector<16x16xbf16>, vector<104x16xf32> -> vector<104x16xf32>
    %c0_80 = arith.constant 0 : index
    %c0_81 = arith.constant 0 : index
    %c0_82 = arith.constant 0 : index
    %121 = vector.load %arg11[%c0_80, %c0_81, %c0_82] : memref<2x1x16xf32, #tpu.memory_space<vmem>>, vector<1x1x16xf32>
    %122 = vector.shape_cast %121 : vector<1x1x16xf32> to vector<1x16xf32>
    %123 = vector.broadcast %122 : vector<1x16xf32> to vector<104x16xf32>
    %124 = arith.addf %120, %123 : vector<104x16xf32>
    %125 = vector.extract_strided_slice %124 {offsets = [0, 0], sizes = [104, 8], strides = [1, 1]} : vector<104x16xf32> to vector<104x8xf32>
    %126 = vector.broadcast %0 : vector<104x1xf32> to vector<104x8xf32>
    %127 = arith.mulf %125, %126 : vector<104x8xf32>
    %128 = tpu.concatenate %127, %5 in 1 : vector<104x8xf32>, vector<104x8xf32> -> vector<104x16xf32>
    %c26_83 = arith.constant 26 : index
    %c192_84 = arith.constant 192 : index
    %129 = vector.load %arg14[%c26_83, %c192_84] : memref<136x240xf32, #tpu.memory_space<vmem>>, vector<104x16xf32>
    tpu.vector_store %arg14[%c26_83, %c192_84], %128 {strides = array<i32>} : memref<136x240xf32, #tpu.memory_space<vmem>>, vector<104x16xf32>,
    %c16_85 = arith.constant 16 : index
    %c208_86 = arith.constant 208 : index
    %130 = vector.load %arg14[%c16_85, %c208_86] : memref<136x240xf32, #tpu.memory_space<vmem>>, vector<104x16xf32>
    tpu.vector_store %arg14[%c16_85, %c208_86], %128 {strides = array<i32>} : memref<136x240xf32, #tpu.memory_space<vmem>>, vector<104x16xf32>,
    %c6_87 = arith.constant 6 : index
    %c224_88 = arith.constant 224 : index
    %131 = vector.load %arg14[%c6_87, %c224_88] : memref<136x240xf32, #tpu.memory_space<vmem>>, vector<104x16xf32>
    tpu.vector_store %arg14[%c6_87, %c224_88], %128 {strides = array<i32>} : memref<136x240xf32, #tpu.memory_space<vmem>>, vector<104x16xf32>,
    %c15_89 = arith.constant 15 : index
    %c192_90 = arith.constant 192 : index
    %132 = vector.load %arg14[%c15_89, %c192_90] : memref<136x240xf32, #tpu.memory_space<vmem>>, vector<104x48xf32>
    %133 = arith.truncf %132 : vector<104x48xf32> to vector<104x48xbf16>
    %c1_91 = arith.constant 1 : index
    %c0_92 = arith.constant 0 : index
    %c0_93 = arith.constant 0 : index
    %c0_94 = arith.constant 0 : index
    %134 = vector.load %arg4[%c1_91, %c0_92, %c0_93, %c0_94] : memref<2x3x48x64xbf16, #tpu.memory_space<vmem>>, vector<1x1x48x64xbf16>
    %135 = vector.shape_cast %134 : vector<1x1x48x64xbf16> to vector<48x64xbf16>
    %cst_95 = arith.constant dense<0.000000e+00> : vector<104x64xf32>
    %136 = tpu.matmul %133, %135, %cst_95 {dimension_numbers = #tpu.dot_dimension_numbers<[1], [0], [0], [1], [0, 0, 1, 1], [], []>} : vector<104x48xbf16>, vector<48x64xbf16>, vector<104x64xf32> -> vector<104x64xf32>
    %c16_96 = arith.constant 16 : index
    %c192_97 = arith.constant 192 : index
    %137 = vector.load %arg14[%c16_96, %c192_97] : memref<136x240xf32, #tpu.memory_space<vmem>>, vector<104x48xf32>
    %138 = arith.truncf %137 : vector<104x48xf32> to vector<104x48xbf16>
    %c1_98 = arith.constant 1 : index
    %c1_99 = arith.constant 1 : index
    %c0_100 = arith.constant 0 : index
    %c0_101 = arith.constant 0 : index
    %139 = vector.load %arg4[%c1_98, %c1_99, %c0_100, %c0_101] : memref<2x3x48x64xbf16, #tpu.memory_space<vmem>>, vector<1x1x48x64xbf16>
    %140 = vector.shape_cast %139 : vector<1x1x48x64xbf16> to vector<48x64xbf16>
    %cst_102 = arith.constant dense<0.000000e+00> : vector<104x64xf32>
    %141 = tpu.matmul %138, %140, %cst_102 {dimension_numbers = #tpu.dot_dimension_numbers<[1], [0], [0], [1], [0, 0, 1, 1], [], []>} : vector<104x48xbf16>, vector<48x64xbf16>, vector<104x64xf32> -> vector<104x64xf32>
    %142 = arith.addf %136, %141 : vector<104x64xf32>
    %c17_103 = arith.constant 17 : index
    %c192_104 = arith.constant 192 : index
    %143 = vector.load %arg14[%c17_103, %c192_104] : memref<136x240xf32, #tpu.memory_space<vmem>>, vector<104x48xf32>
    %144 = arith.truncf %143 : vector<104x48xf32> to vector<104x48xbf16>
    %c1_105 = arith.constant 1 : index
    %c2_106 = arith.constant 2 : index
    %c0_107 = arith.constant 0 : index
    %c0_108 = arith.constant 0 : index
    %145 = vector.load %arg4[%c1_105, %c2_106, %c0_107, %c0_108] : memref<2x3x48x64xbf16, #tpu.memory_space<vmem>>, vector<1x1x48x64xbf16>
    %146 = vector.shape_cast %145 : vector<1x1x48x64xbf16> to vector<48x64xbf16>
    %cst_109 = arith.constant dense<0.000000e+00> : vector<104x64xf32>
    %147 = tpu.matmul %144, %146, %cst_109 {dimension_numbers = #tpu.dot_dimension_numbers<[1], [0], [0], [1], [0, 0, 1, 1], [], []>} : vector<104x48xbf16>, vector<48x64xbf16>, vector<104x64xf32> -> vector<104x64xf32>
    %148 = arith.addf %142, %147 : vector<104x64xf32>
    %c1_110 = arith.constant 1 : index
    %c0_111 = arith.constant 0 : index
    %c0_112 = arith.constant 0 : index
    %149 = vector.load %arg5[%c1_110, %c0_111, %c0_112] : memref<2x1x64xf32, #tpu.memory_space<vmem>>, vector<1x1x64xf32>
    %150 = vector.shape_cast %149 : vector<1x1x64xf32> to vector<1x64xf32>
    %151 = vector.broadcast %150 : vector<1x64xf32> to vector<104x64xf32>
    %152 = arith.addf %148, %151 : vector<104x64xf32>
    %cst_113 = arith.constant 0.000000e+00 : f32
    %153 = vector.broadcast %cst_113 : f32 to vector<104x64xf32>
    %154 = arith.maximumf %152, %153 : vector<104x64xf32>
    %155 = arith.truncf %154 : vector<104x64xf32> to vector<104x64xbf16>
    %c1_114 = arith.constant 1 : index
    %c0_115 = arith.constant 0 : index
    %c0_116 = arith.constant 0 : index
    %156 = vector.load %arg6[%c1_114, %c0_115, %c0_116] : memref<2x64x64xbf16, #tpu.memory_space<vmem>>, vector<1x64x64xbf16>
    %157 = vector.shape_cast %156 : vector<1x64x64xbf16> to vector<64x64xbf16>
    %cst_117 = arith.constant dense<0.000000e+00> : vector<104x64xf32>
    %158 = tpu.matmul %155, %157, %cst_117 {dimension_numbers = #tpu.dot_dimension_numbers<[1], [0], [0], [1], [0, 0, 1, 1], [], []>} : vector<104x64xbf16>, vector<64x64xbf16>, vector<104x64xf32> -> vector<104x64xf32>
    %c1_118 = arith.constant 1 : index
    %c0_119 = arith.constant 0 : index
    %c0_120 = arith.constant 0 : index
    %159 = vector.load %arg7[%c1_118, %c0_119, %c0_120] : memref<2x1x64xf32, #tpu.memory_space<vmem>>, vector<1x1x64xf32>
    %160 = vector.shape_cast %159 : vector<1x1x64xf32> to vector<1x64xf32>
    %161 = vector.broadcast %160 : vector<1x64xf32> to vector<104x64xf32>
    %162 = arith.addf %158, %161 : vector<104x64xf32>
    %cst_121 = arith.constant 0.000000e+00 : f32
    %163 = vector.broadcast %cst_121 : f32 to vector<104x64xf32>
    %164 = arith.maximumf %162, %163 : vector<104x64xf32>
    %165 = vector.broadcast %0 : vector<104x1xf32> to vector<104x64xf32>
    %166 = arith.mulf %164, %165 : vector<104x64xf32>
    %c26_122 = arith.constant 26 : index
    %c0_123 = arith.constant 0 : index
    %167 = vector.load %arg14[%c26_122, %c0_123] : memref<136x240xf32, #tpu.memory_space<vmem>>, vector<104x64xf32>
    tpu.vector_store %arg14[%c26_122, %c0_123], %166 {strides = array<i32>} : memref<136x240xf32, #tpu.memory_space<vmem>>, vector<104x64xf32>,
    %c16_124 = arith.constant 16 : index
    %c64_125 = arith.constant 64 : index
    %168 = vector.load %arg14[%c16_124, %c64_125] : memref<136x240xf32, #tpu.memory_space<vmem>>, vector<104x64xf32>
    tpu.vector_store %arg14[%c16_124, %c64_125], %166 {strides = array<i32>} : memref<136x240xf32, #tpu.memory_space<vmem>>, vector<104x64xf32>,
    %c6_126 = arith.constant 6 : index
    %c128_127 = arith.constant 128 : index
    %169 = vector.load %arg14[%c6_126, %c128_127] : memref<136x240xf32, #tpu.memory_space<vmem>>, vector<104x64xf32>
    tpu.vector_store %arg14[%c6_126, %c128_127], %166 {strides = array<i32>} : memref<136x240xf32, #tpu.memory_space<vmem>>, vector<104x64xf32>,
    %c15_128 = arith.constant 15 : index
    %c0_129 = arith.constant 0 : index
    %170 = vector.load %arg14[%c15_128, %c0_129] : memref<136x240xf32, #tpu.memory_space<vmem>>, vector<104x192xf32>
    %171 = arith.truncf %170 : vector<104x192xf32> to vector<104x192xbf16>
    %c1_130 = arith.constant 1 : index
    %c0_131 = arith.constant 0 : index
    %c0_132 = arith.constant 0 : index
    %c0_133 = arith.constant 0 : index
    %172 = vector.load %arg8[%c1_130, %c0_131, %c0_132, %c0_133] : memref<2x3x192x48xbf16, #tpu.memory_space<vmem>>, vector<1x1x192x48xbf16>
    %173 = vector.shape_cast %172 : vector<1x1x192x48xbf16> to vector<192x48xbf16>
    %cst_134 = arith.constant dense<0.000000e+00> : vector<104x48xf32>
    %174 = tpu.matmul %171, %173, %cst_134 {dimension_numbers = #tpu.dot_dimension_numbers<[1], [0], [0], [1], [0, 0, 1, 1], [], []>} : vector<104x192xbf16>, vector<192x48xbf16>, vector<104x48xf32> -> vector<104x48xf32>
    %c16_135 = arith.constant 16 : index
    %c0_136 = arith.constant 0 : index
    %175 = vector.load %arg14[%c16_135, %c0_136] : memref<136x240xf32, #tpu.memory_space<vmem>>, vector<104x192xf32>
    %176 = arith.truncf %175 : vector<104x192xf32> to vector<104x192xbf16>
    %c1_137 = arith.constant 1 : index
    %c1_138 = arith.constant 1 : index
    %c0_139 = arith.constant 0 : index
    %c0_140 = arith.constant 0 : index
    %177 = vector.load %arg8[%c1_137, %c1_138, %c0_139, %c0_140] : memref<2x3x192x48xbf16, #tpu.memory_space<vmem>>, vector<1x1x192x48xbf16>
    %178 = vector.shape_cast %177 : vector<1x1x192x48xbf16> to vector<192x48xbf16>
    %cst_141 = arith.constant dense<0.000000e+00> : vector<104x48xf32>
    %179 = tpu.matmul %176, %178, %cst_141 {dimension_numbers = #tpu.dot_dimension_numbers<[1], [0], [0], [1], [0, 0, 1, 1], [], []>} : vector<104x192xbf16>, vector<192x48xbf16>, vector<104x48xf32> -> vector<104x48xf32>
    %180 = arith.addf %174, %179 : vector<104x48xf32>
    %c17_142 = arith.constant 17 : index
    %c0_143 = arith.constant 0 : index
    %181 = vector.load %arg14[%c17_142, %c0_143] : memref<136x240xf32, #tpu.memory_space<vmem>>, vector<104x192xf32>
    %182 = arith.truncf %181 : vector<104x192xf32> to vector<104x192xbf16>
    %c1_144 = arith.constant 1 : index
    %c2_145 = arith.constant 2 : index
    %c0_146 = arith.constant 0 : index
    %c0_147 = arith.constant 0 : index
    %183 = vector.load %arg8[%c1_144, %c2_145, %c0_146, %c0_147] : memref<2x3x192x48xbf16, #tpu.memory_space<vmem>>, vector<1x1x192x48xbf16>
    %184 = vector.shape_cast %183 : vector<1x1x192x48xbf16> to vector<192x48xbf16>
    %cst_148 = arith.constant dense<0.000000e+00> : vector<104x48xf32>
    %185 = tpu.matmul %182, %184, %cst_148 {dimension_numbers = #tpu.dot_dimension_numbers<[1], [0], [0], [1], [0, 0, 1, 1], [], []>} : vector<104x192xbf16>, vector<192x48xbf16>, vector<104x48xf32> -> vector<104x48xf32>
    %186 = arith.addf %180, %185 : vector<104x48xf32>
    %c1_149 = arith.constant 1 : index
    %c0_150 = arith.constant 0 : index
    %c0_151 = arith.constant 0 : index
    %187 = vector.load %arg9[%c1_149, %c0_150, %c0_151] : memref<2x1x48xf32, #tpu.memory_space<vmem>>, vector<1x1x48xf32>
    %188 = vector.shape_cast %187 : vector<1x1x48xf32> to vector<1x48xf32>
    %189 = vector.broadcast %188 : vector<1x48xf32> to vector<104x48xf32>
    %190 = arith.addf %186, %189 : vector<104x48xf32>
    %191 = vector.extract_strided_slice %190 {offsets = [0, 0], sizes = [104, 8], strides = [1, 1]} : vector<104x48xf32> to vector<104x8xf32>
    %192 = vector.extract_strided_slice %190 {offsets = [0, 8], sizes = [104, 8], strides = [1, 1]} : vector<104x48xf32> to vector<104x8xf32>
    %cst_152 = arith.constant 2.000000e+00 : f32
    %193 = vector.broadcast %cst_152 : f32 to vector<104x8xf32>
    %194 = arith.addf %192, %193 : vector<104x8xf32>
    %195 = arith.negf %194 : vector<104x8xf32>
    %196 = math.exp %195 : vector<104x8xf32>
    %cst_153 = arith.constant 1.000000e+00 : f32
    %197 = vector.broadcast %cst_153 : f32 to vector<104x8xf32>
    %198 = arith.addf %197, %196 : vector<104x8xf32>
    %199 = arith.divf %197, %198 : vector<104x8xf32>
    %cst_154 = arith.constant 9.99999974E-5 : f32
    %200 = vector.broadcast %cst_154 : f32 to vector<104x8xf32>
    %201 = arith.addf %199, %200 : vector<104x8xf32>
    %202 = vector.extract_strided_slice %124 {offsets = [0, 8], sizes = [104, 8], strides = [1, 1]} : vector<104x16xf32> to vector<104x8xf32>
    %203 = arith.divf %202, %201 : vector<104x8xf32>
    %204 = arith.subf %203, %191 : vector<104x8xf32>
    %205 = vector.extract_strided_slice %190 {offsets = [0, 16], sizes = [104, 16], strides = [1, 1]} : vector<104x48xf32> to vector<104x16xf32>
    %206 = vector.extract_strided_slice %190 {offsets = [0, 32], sizes = [104, 16], strides = [1, 1]} : vector<104x48xf32> to vector<104x16xf32>
    %cst_155 = arith.constant 2.000000e+00 : f32
    %207 = vector.broadcast %cst_155 : f32 to vector<104x16xf32>
    %208 = arith.addf %206, %207 : vector<104x16xf32>
    %209 = arith.negf %208 : vector<104x16xf32>
    %210 = math.exp %209 : vector<104x16xf32>
    %cst_156 = arith.constant 1.000000e+00 : f32
    %211 = vector.broadcast %cst_156 : f32 to vector<104x16xf32>
    %212 = arith.addf %211, %210 : vector<104x16xf32>
    %213 = arith.divf %211, %212 : vector<104x16xf32>
    %cst_157 = arith.constant 9.99999974E-5 : f32
    %214 = vector.broadcast %cst_157 : f32 to vector<104x16xf32>
    %215 = arith.addf %213, %214 : vector<104x16xf32>
    %216 = vector.extract_strided_slice %124 {offsets = [0, 0], sizes = [104, 8], strides = [1, 1]} : vector<104x16xf32> to vector<104x8xf32>
    %217 = tpu.concatenate %216, %204 in 1 : vector<104x8xf32>, vector<104x8xf32> -> vector<104x16xf32>
    %218 = arith.divf %217, %215 : vector<104x16xf32>
    %219 = arith.subf %218, %205 : vector<104x16xf32>
    %220 = math.log %201 : vector<104x8xf32>
    %cst_158 = arith.constant dense<0.000000e+00> : vector<104xf32>
    %221 = vector.multi_reduction <add>, %220, %cst_158 [1] : vector<104x8xf32> to vector<104xf32>
    %222 = vector.shape_cast %221 : vector<104xf32> to vector<104x1xf32>
    %223 = math.log %215 : vector<104x16xf32>
    %cst_159 = arith.constant dense<0.000000e+00> : vector<104xf32>
    %224 = vector.multi_reduction <add>, %223, %cst_159 [1] : vector<104x16xf32> to vector<104xf32>
    %225 = vector.shape_cast %224 : vector<104xf32> to vector<104x1xf32>
    %226 = arith.addf %222, %225 : vector<104x1xf32>
    %227 = arith.mulf %226, %0 : vector<104x1xf32>
    %228 = vector.shape_cast %227 : vector<104x1xf32> to vector<1x104x1xf32>
    %cst_160 = arith.constant dense<0.000000e+00> : vector<1xf32>
    %229 = vector.multi_reduction <add>, %228, %cst_160 [1, 2] : vector<1x104x1xf32> to vector<1xf32>
    %230 = vector.shape_cast %229 : vector<1xf32> to vector<1x1x1xf32>
    %231 = vector.extract %230[0, 0, 0] : f32 from vector<1x1x1xf32>
    %232 = vector.broadcast %231 : f32 to vector<1x1xf32>
    %233 = arith.addf %116, %232 : vector<1x1xf32>
    %234 = arith.truncf %219 : vector<104x16xf32> to vector<104x16xbf16>
    %c1_161 = arith.constant 1 : index
    %c0_162 = arith.constant 0 : index
    %c0_163 = arith.constant 0 : index
    %235 = vector.load %arg10[%c1_161, %c0_162, %c0_163] : memref<2x16x16xbf16, #tpu.memory_space<vmem>>, vector<1x16x16xbf16>
    %236 = vector.shape_cast %235 : vector<1x16x16xbf16> to vector<16x16xbf16>
    %cst_164 = arith.constant dense<0.000000e+00> : vector<104x16xf32>
    %237 = tpu.matmul %234, %236, %cst_164 {dimension_numbers = #tpu.dot_dimension_numbers<[1], [0], [0], [1], [0, 0, 1, 1], [], []>} : vector<104x16xbf16>, vector<16x16xbf16>, vector<104x16xf32> -> vector<104x16xf32>
    %c1_165 = arith.constant 1 : index
    %c0_166 = arith.constant 0 : index
    %c0_167 = arith.constant 0 : index
    %238 = vector.load %arg11[%c1_165, %c0_166, %c0_167] : memref<2x1x16xf32, #tpu.memory_space<vmem>>, vector<1x1x16xf32>
    %239 = vector.shape_cast %238 : vector<1x1x16xf32> to vector<1x16xf32>
    %240 = vector.broadcast %239 : vector<1x16xf32> to vector<104x16xf32>
    %241 = arith.addf %237, %240 : vector<104x16xf32>
    %c0_168 = arith.constant 0 : index
    %c0_169 = arith.constant 0 : index
    %242 = vector.load %arg12[%c0_168, %c0_169] : memref<104x16xf32, #tpu.memory_space<vmem>>, vector<104x16xf32>
    tpu.vector_store %arg12[%c0_168, %c0_169], %241 {strides = array<i32>} : memref<104x16xf32, #tpu.memory_space<vmem>>, vector<104x16xf32>,
    %cst_170 = arith.constant 0.000000e+00 : f32
    %243 = vector.broadcast %cst_170 : f32 to vector<1x1xf32>
    %244 = arith.subf %243, %233 : vector<1x1xf32>
    %245 = vector.shape_cast %244 : vector<1x1xf32> to vector<1x1xf32>
    %246 = vector.broadcast %245 : vector<1x1xf32> to vector<1x128xf32>
    %c0_171 = arith.constant 0 : index
    %c0_172 = arith.constant 0 : index
    %c0_173 = arith.constant 0 : index
    %247 = vector.load %arg13[%c0_171, %c0_172, %c0_173] : memref<1x1x128xf32, #tpu.memory_space<vmem>>, vector<1x1x128xf32>
    %248 = vector.shape_cast %247 : vector<1x1x128xf32> to vector<1x128xf32>
    %249 = vector.shape_cast %246 : vector<1x128xf32> to vector<1x1x128xf32>
    tpu.vector_store %arg13[%c0_171, %c0_172, %c0_173], %249 {strides = array<i32>} : memref<1x1x128xf32, #tpu.memory_space<vmem>>, vector<1x1x128xf32>,
    return
  }
  func.func @transform_0(%arg0: i32) -> (i32, i32) {
    %c0_i32 = arith.constant 0 : i32
    %c0_i32_0 = arith.constant 0 : i32
    %c0_i32_1 = arith.constant 0 : i32
    return %c0_i32, %c0_i32_0 : i32, i32
  }
  func.func @transform_1(%arg0: i32) -> (i32, i32) {
    %c0_i32 = arith.constant 0 : i32
    %c0_i32_0 = arith.constant 0 : i32
    return %arg0, %c0_i32 : i32, i32
  }
  func.func @transform_2(%arg0: i32) -> (i32, i32) {
    %c0_i32 = arith.constant 0 : i32
    %c0_i32_0 = arith.constant 0 : i32
    return %arg0, %c0_i32 : i32, i32
  }
  func.func @transform_3(%arg0: i32) -> (i32, i32, i32, i32) {
    %c0_i32 = arith.constant 0 : i32
    %c0_i32_0 = arith.constant 0 : i32
    %c0_i32_1 = arith.constant 0 : i32
    %c0_i32_2 = arith.constant 0 : i32
    %c0_i32_3 = arith.constant 0 : i32
    return %c0_i32, %c0_i32_0, %c0_i32_1, %c0_i32_2 : i32, i32, i32, i32
  }
  func.func @transform_4(%arg0: i32) -> (i32, i32, i32) {
    %c0_i32 = arith.constant 0 : i32
    %c0_i32_0 = arith.constant 0 : i32
    %c0_i32_1 = arith.constant 0 : i32
    %c0_i32_2 = arith.constant 0 : i32
    return %c0_i32, %c0_i32_0, %c0_i32_1 : i32, i32, i32
  }
  func.func @transform_5(%arg0: i32) -> (i32, i32, i32) {
    %c0_i32 = arith.constant 0 : i32
    %c0_i32_0 = arith.constant 0 : i32
    %c0_i32_1 = arith.constant 0 : i32
    %c0_i32_2 = arith.constant 0 : i32
    return %c0_i32, %c0_i32_0, %c0_i32_1 : i32, i32, i32
  }
  func.func @transform_6(%arg0: i32) -> (i32, i32, i32) {
    %c0_i32 = arith.constant 0 : i32
    %c0_i32_0 = arith.constant 0 : i32
    %c0_i32_1 = arith.constant 0 : i32
    %c0_i32_2 = arith.constant 0 : i32
    return %c0_i32, %c0_i32_0, %c0_i32_1 : i32, i32, i32
  }
  func.func @transform_7(%arg0: i32) -> (i32, i32, i32, i32) {
    %c0_i32 = arith.constant 0 : i32
    %c0_i32_0 = arith.constant 0 : i32
    %c0_i32_1 = arith.constant 0 : i32
    %c0_i32_2 = arith.constant 0 : i32
    %c0_i32_3 = arith.constant 0 : i32
    return %c0_i32, %c0_i32_0, %c0_i32_1, %c0_i32_2 : i32, i32, i32, i32
  }
  func.func @transform_8(%arg0: i32) -> (i32, i32, i32) {
    %c0_i32 = arith.constant 0 : i32
    %c0_i32_0 = arith.constant 0 : i32
    %c0_i32_1 = arith.constant 0 : i32
    %c0_i32_2 = arith.constant 0 : i32
    return %c0_i32, %c0_i32_0, %c0_i32_1 : i32, i32, i32
  }
  func.func @transform_9(%arg0: i32) -> (i32, i32, i32) {
    %c0_i32 = arith.constant 0 : i32
    %c0_i32_0 = arith.constant 0 : i32
    %c0_i32_1 = arith.constant 0 : i32
    %c0_i32_2 = arith.constant 0 : i32
    return %c0_i32, %c0_i32_0, %c0_i32_1 : i32, i32, i32
  }
  func.func @transform_10(%arg0: i32) -> (i32, i32, i32) {
    %c0_i32 = arith.constant 0 : i32
    %c0_i32_0 = arith.constant 0 : i32
    %c0_i32_1 = arith.constant 0 : i32
    %c0_i32_2 = arith.constant 0 : i32
    return %c0_i32, %c0_i32_0, %c0_i32_1 : i32, i32, i32
  }
  func.func @transform_11(%arg0: i32) -> (i32, i32) {
    %c0_i32 = arith.constant 0 : i32
    %c0_i32_0 = arith.constant 0 : i32
    return %arg0, %c0_i32 : i32, i32
  }
  func.func @transform_12(%arg0: i32) -> (i32, i32, i32) {
    %c0_i32 = arith.constant 0 : i32
    %c0_i32_0 = arith.constant 0 : i32
    %c0_i32_1 = arith.constant 0 : i32
    return %arg0, %c0_i32, %c0_i32_0 : i32, i32, i32
  }
}

</mosaic_0001>

<bundles_post_ra>
// kernel: block_forward.1
= control target key start
LH: loop header
LB: loop body
LE: loop exit
PB: predicated region body
PF: predicated region fallthrough
CT: control target
= control target key end

     0   :  { %s8502_s21 = smov 0   ;;  %s12695_s0 = inlined_call_operand.vmem [shape: f32[104,1], index: 0, kind: input, shape index: {}]   ;;  %s12696_s1 = inlined_call_operand.vmem [shape: f32[208,16], index: 1, kind: input, shape index: {}]   ;;  %s12697_s2 = inlined_call_operand.vmem [shape: f32[208,8], index: 2, kind: input, shape index: {}]   ;;  %s12698_s3 = inlined_call_operand.vmem [shape: bf16[2,3,48,64], index: 3, kind: input, shape index: {}]   ;;  %s12699_s4 = inlined_call_operand.vmem [shape: f32[2,1,64], index: 4, kind: input, shape index: {}]   ;;  %s12700_s5 = inlined_call_operand.vmem [shape: bf16[2,64,64], index: 5, kind: input, shape index: {}]   ;;  %s12701_s6 = inlined_call_operand.vmem [shape: f32[2,1,64], index: 6, kind: input, shape index: {}]   ;;  %s12702_s7 = inlined_call_operand.vmem [shape: bf16[2,3,192,48], index: 7, kind: input, shape index: {}]   ;;  %s12703_s8 = inlined_call_operand.vmem [shape: f32[2,1,48], index: 8, kind: input, shape index: {}]   ;;  %s12704_s9 = inlined_call_operand.vmem [shape: bf16[2,16,16], index: 9, kind: input, shape index: {}]   ;;  %s12705_s10 = inlined_call_operand.vmem [shape: f32[2,1,16], index: 10, kind: input, shape index: {}]   ;;  %s12706_s11 = inlined_call_operand.vmem [shape: f32[208,16], index: 11, kind: output, shape index: {0}]   ;;  %s12707_s12 = inlined_call_operand.vmem [shape: f32[2,1,128], index: 12, kind: output, shape index: {1}]  }
   0x1 LB: > { %s8508_s22 = sadd.s32 4294967295, %s8427_s21   ;;  %p7277_p0 = scmp.ge.s32.totalorder %s8427_s21, 1  ;;  %s8427_s21 = sphi %s8502_s21, %s23_s21  }
   0x2   : > { %p377_p1 = scmp.lt.s32.totalorder %s8427_s21, 3 }
   0x4   : > { %p378_p2 = pnand %p7277_p0, %p377_p1 }
   0x6   : > { %381 = sbr.rel (%p378_p2) target bundleno = 3235 (0xca3), region = 64 }
   0xb   : > { %v459_v0 = vld [vmem:[%s12695_s0 + $0x50] sm:$0xff]  ;;  %v457_v1 = vld [vmem:[%s12695_s0 + $0x40] sm:$0xff]  ;;  %s427_s29 = smul.u32 13, %s8508_s22  ;;  %v8429_v3 = vmov 0   ;;  %v460_v4 = vld [vmem:[%s12695_s0 + $0x58] sm:$0xff]  ;;  %s8430_s24 = smov 8  }
   0xc   : > { %v455_v2 = vld [vmem:[%s12695_s0 + $0x30] sm:$0xff]  ;;  %8113 = vset.pattern.permute.xlu2 %v8429_v3  ;;  %8112 = vset.pattern.permute.xlu1 %v8429_v3  ;;  %v458_v5 = vld [vmem:[%s12695_s0 + $0x48] sm:$0xff]  ;;  %v456_v6 = vld [vmem:[%s12695_s0 + $0x38] sm:$0xff]  ;;  %vm637_vm0 = vcmask 64512   ;;  %vm802_vm1 = vcmask 1045504   ;;  %vm664_vm2 = vcmask 1041408  }
   0xd   : > { %8111 = vset.pattern.permute.xlu0 %v8429_v3  ;;  %559 = vperm.xlu2 %8113, %v459_v0   ;;  %p428_p3 = scmp.lt.s32.totalorder %s427_s29, 25  ;;  %v449_v13 = vld [vmem:[%s12695_s0] sm:$0xff]  ;;  %v452_v16 = vld [vmem:[%s12695_s0 + $0x18] sm:$0xff]  ;;  %v451_v17 = vld [vmem:[%s12695_s0 + $0x10] sm:$0xff]  ;;  %s8433_s30 = smov 96   ;;  %vm463_vm3 = vcmask 916480  }
   0xe   : > { %549 = vperm.xlu1 %8112, %v457_v1   ;;  %539 = vperm.xlu0 %8111, %v455_v2   ;;  %v461_v15 = vld [vmem:[%s12695_s0 + $0x60] sm:$0xff]  ;;  %v450_v18 = vld [vmem:[%s12695_s0 + $0x8] sm:$0xff]  ;;  %vm473_vm4 = vcmask 916486   ;;  %vm788_vm5 = vcmask 786048   ;;  %vm734_vm6 = vcmask 654848   ;;  %vm470_vm7 = vcmask 910336  }
   0xf   : > { %s13095_s29 = smov (!%p428_p3, %s427_s29), 25  ;;  %v454_v19 = vld [vmem:[%s12695_s0 + $0x28] sm:$0xff]  ;;  %v453_v20 = vld [vmem:[%s12695_s0 + $0x20] sm:$0xff]  ;;  %vm872_vm8 = vcmask 917248   ;;  %vm12752_vm9 = vcmask 915200   ;;  %vm732_vm10 = vcmask 654850  }
  0x10   : > { %s8531_s18 = sshll.u32 %s13095_s29, 3  ;;  %s8432_s29 = smov 64   ;;  %vm12755_vm11 = vsmask.f32 7424  ;;  %vm12754_vm12 = vsmask.f32 4352 }
  0x11   : > { %s8537_s23 = scalar_lea.vmem %s12697_s2, %s8531_s18  ;;  %s8596_s28 = scalar_lea.vmem %s12696_s1, %s8531_s18  ;;  %vm12753_vm13 = vcmask 392192   ;;  %vm12751_vm14 = vcmask 523264   ;;  %vm12750_vm15 = vcmask 523266  }
  0x12   : > { %v489_v7 = vld [vmem:[%s8537_s23 + $0x40] sm:$0xff]  ;;  %v488_v8 = vld [vmem:[%s8537_s23 + $0x38] sm:$0xff]  ;;  %v487_v9 = vld [vmem:[%s8537_s23 + $0x30] sm:$0xff]  ;;  %s8435_s17 = smov 112   ;;  %s8436_s25 = smov 120  }
  0x13   : > { %v492_v10 = vld [vmem:[%s8537_s23 + $0x58] sm:$0xff]  ;;  %v491_v11 = vld [vmem:[%s8537_s23 + $0x50] sm:$0xff]  ;;  %v490_v12 = vld [vmem:[%s8537_s23 + $0x48] sm:$0xff]  ;;  %s12564_s20 = scalar_lea.vmem %s12706_s11, %s8531_s18  ;;  %p445_p4 = scmp.lt.s32.totalorder %s8508_s22, 1 }
  0x14   : > { %v493_v14 = vld [vmem:[%s8537_s23 + $0x60] sm:$0xff]  ;;  %v484_v22 = vld [vmem:[%s8537_s23 + $0x18] sm:$0xff]  ;;  %v483_v23 = vld [vmem:[%s8537_s23 + $0x10] sm:$0xff] }
  0x15   : > { %564 = vperm.xlu2 %8113, %v460_v4   ;;  %v481_v21 = vld [vmem:[%s8537_s23] sm:$0xff]  ;;  %v482_v24 = vld [vmem:[%s8537_s23 + $0x8] sm:$0xff]  ;;  %v505_v35 = vld [vmem:[%s8596_s28 + $0x58] sm:$0xff]  ;;  %s13097_s22 = smov (!%p445_p4, %s8508_s22), 1 }
  0x16   : > { %554 = vperm.xlu1 %8112, %v458_v5   ;;  %544 = vperm.xlu0 %8111, %v456_v6   ;;  %v486_v25 = vld [vmem:[%s8537_s23 + $0x28] sm:$0xff]  ;;  %v485_v26 = vld [vmem:[%s8537_s23 + $0x20] sm:$0xff]  ;;  %s8431_s23 = smov 80   ;;  %v504_v45 = vld [vmem:[%s8596_s28 + $0x50] sm:$0xff] }
  0x17   : > { %v502_v30 = vld [vmem:[%s8596_s28 + $0x40] sm:$0xff]  ;;  %v503_v46 = vld [vmem:[%s8596_s28 + $0x48] sm:$0xff]  ;;  %v501_v47 = vld [vmem:[%s8596_s28 + $0x38] sm:$0xff] }
  0x18   : > { %v500_v48 = vld [vmem:[%s8596_s28 + $0x30] sm:$0xff] }
  0x1d   : > { %614 = vrot.lane.b32.xlu2 %v489_v7, %s8430_s24  ;;  %v499_v7 = vld [vmem:[%s8596_s28 + $0x28] sm:$0xff] }
  0x1e   : > { %612 = vrot.lane.b32.xlu1 %v488_v8, %s8430_s24  ;;  %610 = vrot.lane.b32.xlu0 %v487_v9, %s8430_s24  ;;  %v506_v9 = vld [vmem:[%s8596_s28 + $0x60] sm:$0xff] }
  0x25   : > { %620 = vrot.lane.b32.xlu2 %v492_v10, %s8430_s24 }
  0x26   : > { %618 = vrot.lane.b32.xlu1 %v491_v11, %s8430_s24  ;;  %616 = vrot.lane.b32.xlu0 %v490_v12, %s8430_s24 }
  0x2d   : > { %509 = vperm.xlu2 %8113, %v449_v13  }
  0x2e   : > { %622 = vrot.lane.b32.xlu1 %v493_v14, %s8430_s24  ;;  %569 = vperm.xlu0 %8111, %v461_v15  }
  0x35   : > { %524 = vperm.xlu2 %8113, %v452_v16  }
  0x36   : > { %519 = vperm.xlu1 %8112, %v451_v17   ;;  %514 = vperm.xlu0 %8111, %v450_v18  }
  0x3d   : > { %534 = vperm.xlu2 %8113, %v454_v19  }
  0x3e   : > { %529 = vperm.xlu1 %8112, %v453_v20   ;;  %598 = vrot.lane.b32.xlu0 %v481_v21, %s8430_s24  ;;  %v494_v21 = vld [vmem:[%s8596_s28] sm:$0xff] }
  0x45   : > { %604 = vrot.lane.b32.xlu2 %v484_v22, %s8430_s24 }
  0x46   : > { %602 = vrot.lane.b32.xlu1 %v483_v23, %s8430_s24  ;;  %600 = vrot.lane.b32.xlu0 %v482_v24, %s8430_s24 }
  0x4d   : > { %608 = vrot.lane.b32.xlu2 %v486_v25, %s8430_s24 }
  0x4e   : > { %606 = vrot.lane.b32.xlu1 %v485_v26, %s8430_s24 }
  0x67   : > { %v8586_v27 = vpop.permute.xlu2 %559 }
  0x68   : > { %12786 = vst [vmem:[#allocation3_spill] sm:$0xff] %v8586_v27  ;;  %v582_v50 = vmul.f32 %v8586_v27, %v504_v45 }
  0x6f   : > { %v8588_v28 = vpop.permute.xlu2 %564 }
  0x70   : > { %12787 = vst [vmem:[#allocation4_spill] sm:$0xff] %v8588_v28  ;;  %v583_v37 = vmul.f32 %v8588_v28, %v505_v35 }
  0x77   : > { %v8590_v29 = vpop.permute.xlu2 %614 }
  0x78   : > { %12788 = vst [vmem:[#allocation5_spill] sm:$0xff] %v8590_v29 }
  0x7f   : > { %v8599_v31 = vpop.permute.xlu2 %620 }
  0x80   : > { %12789 = vst [vmem:[#allocation6_spill] sm:$0xff] %v8599_v31  ;;  %v8601_v32 = vpop.permute.xlu1 %549  ;;  %v8603_v33 = vpop.permute.xlu0 %539  ;;  %v8622_v41 = vsel %vm637_vm0, %v583_v37, %v8599_v31  ;;  %v495_v37 = vld [vmem:[%s8596_s28 + $0x8] sm:$0xff] }
  0x81   : > { %12790 = vst [vmem:[#allocation7_spill] sm:$0xff] %v8601_v32  ;;  %v580_v34 = vmul.f32 %v8601_v32, %v502_v30  ;;  %v578_v53 = vmul.f32 %v8603_v33, %v500_v48  ;;  %v824_v11 = vrot.slane %v8622_v41, 2 }
  0x82   : > { %12791 = vst [vmem:[#allocation8_spill] sm:$0xff] %v8603_v33 }
  0x83   : > { %v8609_v36 = vsel %vm637_vm0, %v580_v34, %v8590_v29 }
  0x84   : > { %765 = vrot.lane.b32.xlu2 %v8609_v36, %s8431_s23  ;;  %v818_v61 = vrot.slane %v8609_v36, 2  ;;  %v680_v1 = vrot.slane %v8609_v36, 6 }
  0x87   : > { %v8614_v38 = vpop.permute.xlu2 %509 }
  0x88   : > { %v8616_v39 = vpop.permute.xlu1 %554  ;;  %v8618_v40 = vpop.permute.xlu0 %544  ;;  %v572_v23 = vmul.f32 %v8614_v38, %v494_v21 }
  0x89   : > { %12792 = vst [vmem:[#allocation9_spill] sm:$0xff] %v8616_v39  ;;  %v581_v51 = vmul.f32 %v8616_v39, %v503_v46  ;;  %v579_v52 = vmul.f32 %v8618_v40, %v501_v47 }
  0x8a   : > { %12793 = vst [vmem:[#allocation10_spill] sm:$0xff] %v8618_v40 }
  0x8c   : > { %771 = vrot.lane.b32.xlu2 %v8622_v41, %s8431_s23 }
  0x8f   : > { %v8626_v42 = vpop.permute.xlu2 %524 }
  0x90   : > { %12794 = vst [vmem:[#allocation11_spill] sm:$0xff] %v8626_v42  ;;  %v8628_v43 = vpop.permute.xlu1 %612  ;;  %v8630_v44 = vpop.permute.xlu0 %610 }
  0x91   : > { %12795 = vst [vmem:[#allocation12_spill] sm:$0xff] %v8628_v43  ;;  %v8654_v58 = vsel %vm637_vm0, %v579_v52, %v8628_v43  ;;  %v8658_v59 = vsel %vm637_vm0, %v578_v53, %v8630_v44 }
  0x92   : > { %12796 = vst [vmem:[#allocation13_spill] sm:$0xff] %v8630_v44  ;;  %v678_v62 = vrot.slane %v8654_v58, 6  ;;  %v676_v63 = vrot.slane %v8658_v59, 6 }
  0x94   : > { %v681_v5 = vsel %vm664_vm2, %v678_v62, %v680_v1  ;;  %v679_v6 = vsel %vm664_vm2, %v676_v63, %v678_v62 }
  0x97   : > { %v8636_v49 = vpop.permute.xlu2 %534 }
  0x98   : > { %12797 = vst [vmem:[#allocation14_spill] sm:$0xff] %v8636_v49  ;;  %v8642_v54 = vpop.permute.xlu1 %618  ;;  %v8644_v55 = vpop.permute.xlu0 %616  ;;  %v577_v10 = vmul.f32 %v8636_v49, %v499_v7  ;;  %v498_v7 = vld [vmem:[%s8596_s28 + $0x20] sm:$0xff] }
  0x99   : > { %12798 = vst [vmem:[#allocation15_spill] sm:$0xff] %v8642_v54  ;;  %v8648_v56 = vsel %vm637_vm0, %v582_v50, %v8642_v54  ;;  %v647_v57 = vsel %vm637_vm0, %v581_v51, %v8644_v55 }
  0x9a   : > { %12799 = vst [vmem:[#allocation16_spill] sm:$0xff] %v8644_v55  ;;  %769 = vrot.lane.b32.xlu1 %v8648_v56, %s8431_s23  ;;  %767 = vrot.lane.b32.xlu0 %v647_v57, %s8431_s23  ;;  %v820_v60 = vrot.slane %v647_v57, 2  ;;  %v822_v8 = vrot.slane %v8648_v56, 2  ;;  %v684_v34 = vrot.slane %v8648_v56, 6  ;;  %v682_v35 = vrot.slane %v647_v57, 6  ;;  %v496_v56 = vld [vmem:[%s8596_s28 + $0x10] sm:$0xff] }
  0x9b   : > { %v497_v57 = vld [vmem:[%s8596_s28 + $0x18] sm:$0xff] }
  0x9c   : > { %v8669_v0 = vsel %vm802_vm1, %v818_v61, %v820_v60  ;;  %v825_v18 = vsel %vm802_vm1, %v822_v8, %v824_v11  ;;  %v823_v19 = vsel %vm802_vm1, %v820_v60, %v822_v8  ;;  %v685_v48 = vsel %vm664_vm2, %v682_v35, %v684_v34 }
  0x9d   : > { %v683_v51 = vsel %vm664_vm2, %v680_v1, %v682_v35 }
  0x9f   : > { %v8672_v2 = vpop.permute.xlu2 %604 }
  0xa0   : > { %12800 = vst [vmem:[#allocation17_spill] sm:$0xff] %v8672_v2  ;;  %v8674_v3 = vpop.permute.xlu1 %622  ;;  %v8676_v4 = vpop.permute.xlu0 %569 }
  0xa1   : > { %12801 = vst [vmem:[#allocation18_spill] sm:$0xff] %v8674_v3  ;;  %v584_v15 = vmul.f32 %v8676_v4, %v506_v9 }
  0xa2   : > { %12802 = vst [vmem:[#allocation19_spill] sm:$0xff] %v8676_v4  ;;  %706 = vrot.lane.b32.xlu1 %v681_v5, %s8432_s29  ;;  %704 = vrot.lane.b32.xlu0 %v679_v6, %s8432_s29  ;;  %v575_v5 = vmul.f32 %v8626_v42, %v497_v57 }
  0xa3   : > { %v8711_v22 = vsel %vm637_vm0, %v584_v15, %v8674_v3 }
  0xa4   : > { %12806 = vst [vmem:[#allocation23_spill] sm:$0xff] %v8711_v22  ;;  %v826_v25 = vrot.slane %v8711_v22, 2  ;;  %v641_v6 = vsel %vm637_vm0, %v575_v5, %v8672_v2 }
  0xa5   : > { %v808_v9 = vrot.slane %v641_v6, 2 }
  0xa6   : > { %v827_v62 = vsel %vm802_vm1, %v824_v11, %v826_v25  ;;  %v686_v11 = vrot.slane %v8622_v41, 6 }
  0xa7   : > { %v8687_v12 = vpop.permute.xlu2 %608 }
  0xa8   : > { %12803 = vst [vmem:[#allocation20_spill] sm:$0xff] %v8687_v12  ;;  %v8689_v13 = vpop.permute.xlu0 %514  ;;  %v8693_v14 = vsel %vm637_vm0, %v577_v10, %v8687_v12  ;;  %v8696_v16 = vpop.permute.xlu1 %519  ;;  %v687_v21 = vsel %vm664_vm2, %v684_v34, %v686_v11 }
  0xa9   : > { %12804 = vst [vmem:[#allocation21_spill] sm:$0xff] %v8689_v13  ;;  %v674_v17 = vrot.slane %v8693_v14, 6  ;;  %v573_v46 = vmul.f32 %v8689_v13, %v495_v37  ;;  %v574_v60 = vmul.f32 %v8696_v16, %v496_v56  ;;  %v812_v34 = vrot.slane %v8693_v14, 2 }
  0xaa   : > { %12805 = vst [vmem:[#allocation22_spill] sm:$0xff] %v8696_v16  ;;  %850 = vrot.lane.b32.xlu1 %v825_v18, %s8433_s30  ;;  %848 = vrot.lane.b32.xlu0 %v823_v19, %s8433_s30  ;;  %v670_v56 = vrot.slane %v641_v6, 6 }
  0xab   : > { %v8706_v20 = vsel %vm664_vm2, %v674_v17, %v676_v63 }
  0xb0   : > { %v8714_v24 = vpop.permute.xlu0 %598  ;;  %v8724_v30 = vpop.permute.xlu1 %529 }
  0xb1   : > { %v8719_v26 = vsel %vm637_vm0, %v572_v23, %v8714_v24  ;;  %12808 = vst [vmem:[#allocation25_spill] sm:$0xff] %v8724_v30  ;;  %v576_v15 = vmul.f32 %v8724_v30, %v498_v7 }
  0xb2   : > { %12807 = vst [vmem:[#allocation24_spill] sm:$0xff] %v8719_v26  ;;  %854 = vrot.lane.b32.xlu1 %v826_v25, %s8433_s30  ;;  %773 = vrot.lane.b32.xlu0 %v8711_v22, %s8431_s23  ;;  %v665_v47 = vrot.slane %v8719_v26, 6 }
  0xb3   : > { %749 = vrot.lane.b32.xlu2 %v8719_v26, %s8431_s23 }
  0xb8   : > { %v8730_v45 = vpop.permute.xlu0 %600  ;;  %v8741_v52 = vpop.permute.xlu1 %602 }
  0xb9   : > { %12809 = vst [vmem:[#allocation26_spill] sm:$0xff] %v8730_v45  ;;  %v639_v50 = vsel %vm637_vm0, %v573_v46, %v8730_v45  ;;  %v640_v1 = vsel %vm637_vm0, %v574_v60, %v8741_v52 }
  0xba   : > { %710 = vrot.lane.b32.xlu0 %v685_v48, %s8432_s29  ;;  %690 = vrot.lane.b32.xlu1 %v665_v47, %s8432_s29  ;;  %12810 = vst [vmem:[#allocation27_spill] sm:$0xff] %v8741_v52  ;;  %v666_v53 = vrot.slane %v639_v50, 6  ;;  %v806_v8 = vrot.slane %v640_v1, 2  ;;  %v668_v25 = vrot.slane %v640_v1, 6  ;;  %v804_v46 = vrot.slane %v639_v50, 2 }
  0xbb   : > { %708 = vrot.lane.b32.xlu2 %v683_v51, %s8432_s29  ;;  %v12709_v51 = vrot.slane %v8719_v26, 2 }
  0xbc   : > { %v667_v63 = vsel %vm664_vm2, %v665_v47, %v666_v53  ;;  %v809_v18 = vsel %vm802_vm1, %v806_v8, %v808_v9  ;;  %v669_v37 = vsel %vm664_vm2, %v666_v53, %v668_v25  ;;  %v807_v47 = vsel %vm802_vm1, %v804_v46, %v806_v8 }
  0xbd   : > { %v805_v53 = vsel %vm802_vm1, %v12709_v51, %v804_v46  ;;  %v671_v57 = vsel %vm664_vm2, %v668_v25, %v670_v56 }
  0xc0   : > { %v8757_v10 = vpop.permute.xlu1 %606 }
  0xc1   : > { %12811 = vst [vmem:[#allocation28_spill] sm:$0xff] %v8757_v10  ;;  %v8764_v19 = vsel %vm637_vm0, %v576_v15, %v8757_v10 }
  0xc2   : > { %852 = vrot.lane.b32.xlu0 %v827_v62, %s8433_s30  ;;  %692 = vrot.lane.b32.xlu1 %v667_v63, %s8432_s29  ;;  %v810_v23 = vrot.slane %v8764_v19, 2  ;;  %v8434_v62 = vmov 0.0   ;;  %v814_v63 = vrot.slane %v8658_v59, 2 }
  0xc3   : > { %753 = vrot.lane.b32.xlu2 %v640_v1, %s8431_s23  ;;  %468 = vst.msk [vmem:[#allocation2 + $0x28] sm:$0xff] %vm463_vm3, %v8434_v62 }
  0xc4   : > { %v811_v35 = vsel %vm802_vm1, %v808_v9, %v810_v23  ;;  %v813_v48 = vsel %vm802_vm1, %v810_v23, %v812_v34  ;;  %465 = vst [vmem:[#allocation2 + $0x10] sm:$0xff] %v8434_v62  ;;  %v815_v5 = vsel %vm802_vm1, %v812_v34, %v814_v63 }
  0xc5   : > { %466 = vst.msk [vmem:[#allocation2 + $0x18] sm:$0xff] %vm463_vm3, %v8434_v62 }
  0xc6   : > { %467 = vst [vmem:[#allocation2 + $0x20] sm:$0xff] %v8434_v62 }
  0xc7   : > { %469 = vst [vmem:[#allocation2 + $0x30] sm:$0x3] %v8434_v62 }
  0xc8   : > { %472 = vst [vmem:[#allocation2 + $0xd0] sm:$0xc0] %v8434_v62 }
  0xc9   : > { %475 = vst [vmem:[#allocation2 + $0xe0] sm:$0xff] %v8434_v62 }
  0xca   : > { %751 = vrot.lane.b32.xlu0 %v639_v50, %s8431_s23  ;;  %834 = vrot.lane.b32.xlu1 %v809_v18, %s8433_s30  ;;  %v672_v50 = vrot.slane %v8764_v19, 6  ;;  %476 = vst.msk [vmem:[#allocation2 + $0xe8] sm:$0xff] %vm463_vm3, %v8434_v62 }
  0xcb   : > { %712 = vrot.lane.b32.xlu2 %v687_v21, %s8432_s29  ;;  %477 = vst [vmem:[#allocation2 + $0xf0] sm:$0xff] %v8434_v62 }
  0xcc   : > { %v673_v60 = vsel %vm664_vm2, %v670_v56, %v672_v50  ;;  %478 = vst.msk [vmem:[#allocation2 + $0xf8] sm:$0xff] %vm463_vm3, %v8434_v62  ;;  %v675_v1 = vsel %vm664_vm2, %v672_v50, %v674_v17  ;;  %vm12749_vm3 = vcmask 1048064  }
  0xcd   : > { %474 = vst.msk [vmem:[#allocation2 + $0xd8] sm:$0xc0] %vm473_vm4, %v8434_v62  ;;  %vm12748_vm4 = vcmask 521216  }
  0xce   : > { %471 = vst.msk [vmem:[#allocation2 + $0x38] sm:$0x3] %vm470_vm7, %v8434_v62  ;;  %v816_v62 = vrot.slane %v8654_v58, 2 }
  0xd2   : > { %755 = vrot.lane.b32.xlu0 %v641_v6, %s8431_s23  ;;  %836 = vrot.lane.b32.xlu1 %v811_v35, %s8433_s30 }
  0xd3   : > { %694 = vrot.lane.b32.xlu2 %v669_v37, %s8432_s29 }
  0xda   : > { %832 = vrot.lane.b32.xlu0 %v807_v47, %s8433_s30 }
  0xdb   : > { %838 = vrot.lane.b32.xlu2 %v813_v48, %s8433_s30 }
  0xde   : > { %v766_v6 = vpop.permute.xlu2 %765 }
  0xe2   : > { %830 = vrot.lane.b32.xlu0 %v805_v53, %s8433_s30 }
  0xe3   : > { %696 = vrot.lane.b32.xlu2 %v671_v57, %s8432_s29 }
  0xe6   : > { %v772_v7 = vpop.permute.xlu2 %771 }
  0xea   : > { %698 = vrot.lane.b32.xlu0 %v673_v60, %s8432_s29 }
  0xeb   : > { %759 = vrot.lane.b32.xlu2 %v8693_v14, %s8431_s23 }
  0xf2   : > { %840 = vrot.lane.b32.xlu0 %v815_v5, %s8433_s30 }
  0xfa   : > { %700 = vrot.lane.b32.xlu0 %v675_v1, %s8432_s29 }
 0x102   : > { %763 = vrot.lane.b32.xlu0 %v8654_v58, %s8431_s23 }
 0x10c   : > { %v770_v8 = vpop.permute.xlu1 %769  ;;  %v768_v9 = vpop.permute.xlu0 %767 }
 0x10d   : > { %v750_v15 = vpop.permute.xlu2 %749 }
 0x10e   : > { %789 = vst.msk [vmem:[#allocation2 + $0x28] sm:$0xff] %vm788_vm5, %v750_v15 }
 0x114   : > { %v707_v18 = vpop.permute.xlu1 %706  ;;  %v705_v14 = vpop.permute.xlu0 %704 }
 0x115   : > { %742 = vst.msk [vmem:[#allocation2 + $0xb8] sm:$0xff] %vm734_vm6, %v707_v18  ;;  %v709_v17 = vpop.permute.xlu2 %708 }
 0x116   : > { %798 = vst.msk [vmem:[#allocation2 + $0xb8] sm:$0xff] %vm788_vm5, %v768_v9 }
 0x117   : > { %741 = vst.msk [vmem:[#allocation2 + $0xa8] sm:$0xff] %vm734_vm6, %v705_v14 }
 0x118   : > { %797 = vst.msk [vmem:[#allocation2 + $0xa8] sm:$0xff] %vm788_vm5, %v766_v6 }
 0x119   : > { %743 = vst.msk [vmem:[#allocation2 + $0xc8] sm:$0xff] %vm734_vm6, %v709_v17 }
 0x11a   : > { %799 = vst.msk [vmem:[#allocation2 + $0xc8] sm:$0xff] %vm788_vm5, %v770_v8 }
 0x11c   : > { %v851_v21 = vpop.permute.xlu1 %850  ;;  %v849_v23 = vpop.permute.xlu0 %848 }
 0x11d   : > { %883 = vst.msk [vmem:[#allocation2 + $0xb8] sm:$0xff] %vm872_vm8, %v851_v21  ;;  %v754_v25 = vpop.permute.xlu2 %753 }
 0x11e   : > { %882 = vst.msk [vmem:[#allocation2 + $0xa8] sm:$0xff] %vm872_vm8, %v849_v23 }
 0x124   : > { %v855_v35 = vpop.permute.xlu1 %854  ;;  %v774_v37 = vpop.permute.xlu0 %773  ;;  %v8815_v46 = vld [vmem:[#allocation2 + $0xb8] sm:$0xff] }
 0x125   : > { %v713_v34 = vpop.permute.xlu2 %712  ;;  %v8817_v47 = vld [vmem:[#allocation2 + $0xa8] sm:$0xff] }
 0x126   : > { %745 = vst.msk [vmem:[#allocation2 + $0xe8] sm:$0xff] %vm734_vm6, %v713_v34  ;;  %v919_v48 = vpack.c.bf16 %v8815_v46, %v8817_v47 }
 0x127   : > { %801 = vst.msk [vmem:[#allocation2 + $0xe8] sm:$0xff] %vm788_vm5, %v774_v37 }
 0x128   : > { %944 = vrot.lane.b32.xlu1 %v919_v48, %s8432_s29 }
 0x12c   : > { %v711_v56 = vpop.permute.xlu0 %710  ;;  %v691_v53 = vpop.permute.xlu1 %690 }
 0x12d   : > { %744 = vst.msk [vmem:[#allocation2 + $0xd8] sm:$0xff] %vm734_vm6, %v711_v56  ;;  %v695_v57 = vpop.permute.xlu2 %694 }
 0x12e   : > { %800 = vst.msk [vmem:[#allocation2 + $0xd8] sm:$0xff] %vm788_vm5, %v772_v7  ;;  %v8826_v50 = vld [vmem:[#allocation2 + $0xe8] sm:$0xff]  ;;  %v817_v7 = vsel %vm802_vm1, %v814_v63, %v816_v62  ;;  %v1257_v63 = vshrl.u32 %v919_v48, 16 }
 0x12f   : > { %886 = vst.msk [vmem:[#allocation2 + $0xd8] sm:$0x3f] %vm12752_vm9, %v855_v35  ;;  %v921_v60 = vpack.c.bf16 %v8826_v50, %v8826_v50 }
 0x130   : > { %736 = vst.msk [vmem:[#allocation2 + $0x58] sm:$0xff] %vm734_vm6, %v695_v57  ;;  %757 = vrot.lane.b32.xlu1 %v8764_v19, %s8431_s23  ;;  %v1253_v19 = vshll.u32 %v919_v48, 16 }
 0x131   : > { %733 = vst.msk [vmem:[#allocation2 + $0x38] sm:$0xfc] %vm732_vm10, %v691_v53  ;;  %948 = vrot.lane.b32.xlu0 %v921_v60, %s8432_s29 }
 0x132   : > { %v8851_v17 = vrot.slane %v1253_v19, 1 }
 0x134   : > { %v853_v5 = vpop.permute.xlu0 %852  ;;  %v693_v1 = vpop.permute.xlu1 %692  ;;  %v1259_v23 = vor.u32 %v1257_v63, %v8851_v17 }
 0x135   : > { %884 = vst.msk [vmem:[#allocation2 + $0xc8] sm:$0xff] %vm872_vm8, %v853_v5  ;;  %v839_v6 = vpop.permute.xlu2 %838 }
 0x136   : > { %735 = vst.msk [vmem:[#allocation2 + $0x48] sm:$0xff] %vm734_vm6, %v693_v1  ;;  %v8846_v58 = vld [vmem:[#allocation2 + $0xd8] sm:$0xff] }
 0x137   : > { %791 = vst.msk [vmem:[#allocation2 + $0x48] sm:$0xff] %vm788_vm5, %v754_v25 }
 0x138   : > { %842 = vrot.lane.b32.xlu1 %v817_v7, %s8433_s30 }
 0x13c   : > { %v752_v8 = vpop.permute.xlu0 %751  ;;  %v835_v9 = vpop.permute.xlu1 %834  ;;  %v8844_v15 = vld [vmem:[#allocation2 + $0xc8] sm:$0xff] }
 0x13d   : > { %790 = vst.msk [vmem:[#allocation2 + $0x38] sm:$0xff] %vm788_vm5, %v752_v8  ;;  %v697_v18 = vpop.permute.xlu2 %696  ;;  %v920_v14 = vpack.c.bf16 %v8846_v58, %v8844_v15 }
 0x13e   : > { %737 = vst.msk [vmem:[#allocation2 + $0x68] sm:$0xff] %vm734_vm6, %v697_v18 }
 0x13f   : > { %875 = vst.msk [vmem:[#allocation2 + $0x38] sm:$0xff] %vm872_vm8, %v835_v9  ;;  %946 = vrot.lane.b32.xlu2 %v920_v14, %s8432_s29  ;;  %v1261_v21 = vshll.u32 %v920_v14, 16  ;;  %v1265_v35 = vshrl.u32 %v920_v14, 16 }
 0x140   : > { %702 = vrot.lane.b32.xlu1 %v8706_v20, %s8432_s29  ;;  %v819_v20 = vsel %vm802_vm1, %v816_v62, %v818_v61  ;;  %v7990_v62 = vld [vmem:[%s12698_s3 + $0x28] sm:$0xff] }
 0x141   : > { %v1263_v25 = vrot.slane %v1261_v21, 1  ;;  %8085 = vmatpush.bf16.msra.mxu2 %v7990_v62  ;;  %995 = vmatpush.bf16.msra.mxu0 %v7990_v62 }
 0x143   : > { %v8860_v37 = vsel %vm12755_vm11, %v1259_v23, %v1263_v25  ;;  %v8862_v34 = vor.u32 %v1265_v35, %v1263_v25  ;;  %v7988_v25 = vld [vmem:[%s12698_s3 + $0x18] sm:$0xff] }
 0x144   : > { %v756_v56 = vpop.permute.xlu0 %755  ;;  %v837_v53 = vpop.permute.xlu1 %836 }
 0x145   : > { %792 = vst.msk [vmem:[#allocation2 + $0x58] sm:$0xff] %vm788_vm5, %v756_v56 }
 0x146   : > { %877 = vst.msk [vmem:[#allocation2 + $0x58] sm:$0xff] %vm872_vm8, %v839_v6  ;;  %v889_v6 = vld [vmem:[#allocation2 + $0x38] sm:$0xff] }
 0x147   : > { %876 = vst.msk [vmem:[#allocation2 + $0x48] sm:$0xff] %vm872_vm8, %v837_v53  ;;  %761 = vrot.lane.b32.xlu2 %v8658_v59, %s8431_s23 }
 0x148   : > { %844 = vrot.lane.b32.xlu1 %v819_v20, %s8433_s30 }
 0x14c   : > { %v833_v48 = vpop.permute.xlu0 %832 }
 0x14d   : > { %874 = vst.msk [vmem:[#allocation2 + $0x28] sm:$0xff] %vm872_vm8, %v833_v48  ;;  %v8874_v57 = vld [vmem:[#allocation2 + $0x58] sm:$0xff] }
 0x14e   : > { %v1194_v60 = vld [vmem:[#allocation2 + $0x48] sm:$0xff] }
 0x14f   : > { %846 = vrot.lane.b32.xlu2 %v8669_v0, %s8433_s30  ;;  %v1207_v5 = vpack.c.bf16 %v8874_v57, %v1194_v60  ;;  %v7989_v0 = vld [vmem:[%s12698_s3 + $0x20] sm:$0xff]  ;;  %v902_v63 = vpack.c.bf16 %v1194_v60, %v889_v6 }
 0x150   : > { %8086 = vmatpush.bf16.msra.mxu2 %v7989_v0  ;;  %996 = vmatpush.bf16.msra.mxu0 %v7989_v0 }
 0x151   : > { %v1229_v1 = vshll.u32 %v1207_v5, 16  ;;  %v1233_v7 = vshrl.u32 %v1207_v5, 16  ;;  %v1043_v56 = vshrl.u32 %v902_v63, 16  ;;  %v1046_v53 = vshll.u32 %v902_v63, 16 }
 0x153   : > { %v1231_v59 = vrot.slane %v1229_v1, 1  ;;  %v760_v1 = vpop.permute.xlu2 %759  ;;  %v1048_v62 = vrot.slane %v1046_v53, 4 }
 0x154   : > { %v831_v36 = vpop.permute.xlu0 %830  ;;  %v888_v19 = vld [vmem:[#allocation2 + $0x28] sm:$0xff]  ;;  %8087 = vmatpush.bf16.msra.mxu2 %v7988_v25  ;;  %997 = vmatpush.bf16.msra.mxu0 %v7988_v25 }
 0x155   : > { %v1192_v61 = vld [vmem:[#allocation2 + $0x28] sm:$0xfe]  ;;  %873 = vst.msk [vmem:[#allocation2 + $0x18] sm:$0xff] %vm872_vm8, %v831_v36  ;;  %v915_v8 = vpack.c.bf16 %v889_v6, %v888_v19  ;;  %v8883_v18 = vor.u32 %v1233_v7, %v1231_v59 }
 0x156   : > { %v1206_v9 = vpack.c.bf16 %v889_v6, %v1192_v61  ;;  %v1045_v61 = vrot.slane %v1043_v56, 3 }
 0x157   : > { %936 = vrot.lane.b32.xlu2 %v915_v8, %s8432_s29 }
 0x158   : > { %v1224_v14 = vshll.u32 %v1206_v9, 16  ;;  %v1222_v21 = vshrl.u32 %v1206_v9, 16 }
 0x15a   : > { %v1226_v23 = vrot.slane %v1224_v14, 1 }
 0x15c   : > { %v1227_v35 = vor.u32 %v1226_v23, %v1222_v21  ;;  %v887_v20 = vld [vmem:[#allocation2 + $0x18] sm:$0x80]  ;;  %v699_v48 = vpop.permute.xlu0 %698 }
 0x15d   : > { %v901_v7 = vpack.c.bf16 %v888_v19, %v887_v20  ;;  %738 = vst.msk [vmem:[#allocation2 + $0x78] sm:$0xff] %vm734_vm6, %v699_v48  ;;  %v1049_v19 = vor.u32 %v1048_v62, %v1045_v61  ;;  %v7992_v20 = vld [vmem:[%s12698_s3 + $0x38] sm:$0xff] }
 0x15e   : > { %v1232_v36 = vsel %vm12755_vm11, %v1227_v35, %v1231_v59  ;;  %794 = vst.msk [vmem:[#allocation2 + $0x78] sm:$0xff] %vm788_vm5, %v760_v1  ;;  %v7993_v35 = vld [vmem:[%s12698_s3 + $0x40] sm:$0xff] }
 0x15f   : > { %1276 = vrot.lane.b32.xlu1 %v1232_v36, %s8432_s29  ;;  %938 = vrot.lane.b32.xlu2 %v1207_v5, %s8432_s29  ;;  %v1035_v60 = vshrl.u32 %v901_v7, 16  ;;  %v1038_v6 = vshll.u32 %v901_v7, 16  ;;  %v7987_v7 = vld [vmem:[%s12698_s3 + $0x10] sm:$0xff] }
 0x160   : > { %1334 = vmatpush.bf16.msrb.mxu2 %v7993_v35  ;;  %v7991_v36 = vld [vmem:[%s12698_s3 + $0x30] sm:$0xff]  ;;  %1154 = vmatpush.bf16.msra.mxu1 %v7987_v7 }
 0x161   : > { %v1037_v8 = vrot.slane %v1035_v60, 3  ;;  %v1040_v9 = vrot.slane %v1038_v6, 4  ;;  %8088 = vmatpush.bf16.msra.mxu3 %v7987_v7 }
 0x163   : > { %v1041_v0 = vor.u32 %v1040_v9, %v1037_v8 }
 0x164   : > { %v841_v14 = vpop.permute.xlu0 %840  ;;  %1335 = vmatpush.bf16.msrb.mxu2 %v7992_v20 }
 0x165   : > { %v1050_v59 = vsel %vm12754_vm12, %v1041_v0, %v1049_v19 }
 0x166   : > { %1096 = vrot.lane.b32.xlu0 %v1050_v59, %s8432_s29  ;;  %v7986_v59 = vld [vmem:[%s12698_s3 + $0x8] sm:$0xff] }
 0x167   : > { %1155 = vmatpush.bf16.msra.mxu1 %v7986_v59  ;;  %8089 = vmatpush.bf16.msra.mxu3 %v7986_v59 }
 0x168   : > { %1336 = vmatpush.bf16.msrb.mxu2 %v7991_v36 }
 0x16c   : > { %v701_v63 = vpop.permute.xlu0 %700 }
 0x16d   : > { %739 = vst.msk [vmem:[#allocation2 + $0x88] sm:$0xff] %vm734_vm6, %v701_v63 }
 0x174   : > { %v764_v9 = vpop.permute.xlu0 %763 }
 0x199   : > { %v947_v5 = vpop.permute.xlu2 %946 }
 0x19a   : > { %v945_v21 = vpop.permute.xlu1 %944 }
 0x19b   : > { %7303 = vmatmul.msk.bf16.vlgmr.msra.gmra.mxu2 %vm12753_vm13, %v945_v21 }
 0x1a1   : > { %v762_v23 = vpop.permute.xlu2 %761 }
 0x1a2   : > { %795 = vst.msk [vmem:[#allocation2 + $0x88] sm:$0xff] %vm788_vm5, %v762_v23  ;;  %v758_v25 = vpop.permute.xlu1 %757  ;;  %v7985_v23 = vld [vmem:[%s12698_s3] sm:$0xff] }
 0x1a3   : > { %793 = vst.msk [vmem:[#allocation2 + $0x68] sm:$0xff] %vm788_vm5, %v758_v25  ;;  %1156 = vmatpush.bf16.msra.mxu1 %v7985_v23  ;;  %8090 = vmatpush.bf16.msra.mxu3 %v7985_v23 }
 0x1a4   : > { %878 = vst.msk [vmem:[#allocation2 + $0x68] sm:$0xff] %vm872_vm8, %v841_v14 }
 0x1a9   : > { %v847_v56 = vpop.permute.xlu2 %846 }
 0x1aa   : > { %v843_v53 = vpop.permute.xlu1 %842 }
 0x1ab   : > { %879 = vst.msk [vmem:[#allocation2 + $0x78] sm:$0xff] %vm872_vm8, %v843_v53  ;;  %7304 = vmatmul.msk.bf16.gmra.mxu2 %vm12753_vm13, %v947_v5  ;;  %v892_v48 = vld [vmem:[#allocation2 + $0x68] sm:$0xff]  ;;  %v949_v53 = vpop.permute.xlu0 %948 }
 0x1ac   : > { %v903_v1 = vpack.c.bf16 %v892_v48, %v8874_v57 }
 0x1ae   : > { %v1052_v60 = vshrl.u32 %v903_v1, 16  ;;  %v1055_v6 = vshll.u32 %v903_v1, 16 }
 0x1b0   : > { %v1054_v61 = vrot.slane %v1052_v60, 3  ;;  %v1057_v62 = vrot.slane %v1055_v6, 4 }
 0x1b1   : > { %v937_v8 = vpop.permute.xlu2 %936 }
 0x1b2   : > { %v703_v0 = vpop.permute.xlu1 %702  ;;  %7299 = vmatmul.msk.bf16.vlgmr.msra.gmra.mxu0 %vm12753_vm13, %v937_v8  ;;  %v1058_v57 = vor.u32 %v1057_v62, %v1054_v61  ;;  %v1197_v14 = vld [vmem:[#allocation2 + $0x78] sm:$0xff] }
 0x1b3   : > { %740 = vst.msk [vmem:[#allocation2 + $0x98] sm:$0xff] %vm734_vm6, %v703_v0  ;;  %v1208_v63 = vpack.c.bf16 %v1197_v14, %v892_v48 }
 0x1b4   : > { %796 = vst.msk [vmem:[#allocation2 + $0x98] sm:$0xff] %vm788_vm5, %v764_v9  ;;  %v1059_v5 = vsel %vm12754_vm12, %v1049_v19, %v1058_v57  ;;  %v900_v9 = vld [vmem:[#allocation2 + $0xe8] sm:$0x7f] }
 0x1b5   : > { %881 = vst.msk [vmem:[#allocation2 + $0x98] sm:$0xff] %vm872_vm8, %v847_v56  ;;  %1098 = vrot.lane.b32.xlu0 %v1059_v5, %s8432_s29  ;;  %v1237_v21 = vshll.u32 %v1208_v63, 16  ;;  %v12708_v56 = vrot.slane %v8711_v22, 6  ;;  %v1241_v60 = vshrl.u32 %v1208_v63, 16  ;;  %v907_v41 = vpack.c.bf16 %v900_v9, %v8846_v58 }
 0x1b7   : > { %v1239_v25 = vrot.slane %v1237_v21, 1  ;;  %v689_v48 = vsel %vm664_vm2, %v686_v11, %v12708_v56 }
 0x1b9   : > { %v1240_v35 = vsel %vm12755_vm11, %v8883_v18, %v1239_v25  ;;  %v939_v20 = vpop.permute.xlu2 %938  ;;  %v1243_v11 = vor.u32 %v1241_v60, %v1239_v25 }
 0x1ba   : > { %1278 = vrot.lane.b32.xlu1 %v1240_v35, %s8432_s29  ;;  %v845_v19 = vpop.permute.xlu1 %844 }
 0x1bb   : > { %880 = vst.msk [vmem:[#allocation2 + $0x88] sm:$0xff] %vm872_vm8, %v845_v19  ;;  %7305 = vmatmul.msk.bf16.gmra.mxu2 %vm12753_vm13, %v949_v53 }
 0x1bc   : > { %v895_v1 = vld [vmem:[#allocation2 + $0x98] sm:$0xff] }
 0x1bd   : > { %940 = vrot.lane.b32.xlu0 %v1208_v63, %s8432_s29  ;;  %v905_v6 = vpack.c.bf16 %v8817_v47, %v895_v1  ;;  %v1088_v47 = vshrl.u32 %v907_v41, 16  ;;  %v906_v63 = vpack.c.bf16 %v8844_v15, %v8815_v46 }
 0x1bf   : > { %v1070_v35 = vshrl.u32 %v905_v6, 16  ;;  %v1082_v60 = vshll.u32 %v906_v63, 16 }
 0x1c1   : > { %v1072_v25 = vrot.slane %v1070_v35, 3 }
 0x1c2   : > { %714 = vrot.lane.b32.xlu1 %v689_v48, %s8432_s29  ;;  %7300 = vmatmul.msk.bf16.gmra.mxu0 %vm12753_vm13, %v939_v20  ;;  %v894_v18 = vld [vmem:[#allocation2 + $0x88] sm:$0xff]  ;;  %v1091_v20 = vshll.u32 %v907_v41, 16 }
 0x1c3   : > { %v918_v7 = vpack.c.bf16 %v895_v1, %v894_v18  ;;  %v904_v36 = vpack.c.bf16 %v894_v18, %v1197_v14  ;;  %v1073_v14 = vshll.u32 %v905_v6, 16  ;;  %v1090_v18 = vrot.slane %v1088_v47, 3 }
 0x1c4   : > { %v1093_v1 = vrot.slane %v1091_v20, 4 }
 0x1c5   : > { %942 = vrot.lane.b32.xlu0 %v918_v7, %s8432_s29  ;;  %v1245_v61 = vshll.u32 %v918_v7, 16  ;;  %v1061_v62 = vshrl.u32 %v904_v36, 16  ;;  %v1064_v8 = vshll.u32 %v904_v36, 16  ;;  %v1249_v19 = vshrl.u32 %v918_v7, 16 }
 0x1c6   : > { %v1075_v48 = vrot.slane %v1073_v14, 4  ;;  %v1079_v36 = vshrl.u32 %v906_v63, 16  ;;  %v1094_v7 = vor.u32 %v1093_v1, %v1090_v18 }
 0x1c7   : > { %v1247_v0 = vrot.slane %v1245_v61, 1  ;;  %v1063_v59 = vrot.slane %v1061_v62, 3  ;;  %v1066_v5 = vrot.slane %v1064_v8, 4  ;;  %v1084_v61 = vrot.slane %v1082_v60, 4 }
 0x1c8   : > { %v1076_v15 = vor.u32 %v1075_v48, %v1072_v25 }
 0x1c9   : > { %v1248_v21 = vsel %vm12755_vm11, %v1243_v11, %v1247_v0  ;;  %v1067_v23 = vor.u32 %v1066_v5, %v1063_v59  ;;  %v1251_v58 = vor.u32 %v1249_v19, %v1247_v0 }
 0x1ca   : > { %1280 = vrot.lane.b32.xlu2 %v1248_v21, %s8432_s29 }
 0x1cb   : > { %v1068_v53 = vsel %vm12754_vm12, %v1058_v57, %v1067_v23  ;;  %v1256_v46 = vsel %vm12755_vm11, %v1251_v58, %v8851_v17  ;;  %v1077_v57 = vsel %vm12754_vm12, %v1067_v23, %v1076_v15 }
 0x1cc   : > { %1100 = vrot.lane.b32.xlu1 %v1068_v53, %s8432_s29 }
 0x1cd   : > { %1284 = vrot.lane.b32.xlu0 %v8860_v37, %s8432_s29  ;;  %v1081_v37 = vrot.slane %v1079_v36, 3  ;;  %v7997_v36 = vld [vmem:[%s12700_s5 + $0x18] sm:$0xff] }
 0x1ce   : > { %1484 = vmatpush.bf16.msrb.mxu3 %v7997_v36 }
 0x1cf   : > { %v1085_v62 = vor.u32 %v1084_v61, %v1081_v37 }
 0x1d1   : > { %v1277_v6 = vpop.permute.xlu1 %1276  ;;  %v1086_v17 = vsel %vm12754_vm12, %v1076_v15, %v1085_v62  ;;  %v1095_v9 = vsel %vm12754_vm12, %v1085_v62, %v1094_v7 }
 0x1d2   : > { %7343 = vmatmul.msk.bf16.vlgmr.msrb.gmra.mxu2 %vm12753_vm13, %v1277_v6  ;;  %1282 = vrot.lane.b32.xlu2 %v1256_v46, %s8432_s29 }
 0x1d4   : > { %1102 = vrot.lane.b32.xlu1 %v1077_v57, %s8432_s29  ;;  %v7995_v57 = vld [vmem:[%s12700_s5 + $0x8] sm:$0xff] }
 0x1d5   : > { %1108 = vrot.lane.b32.xlu0 %v1094_v7, %s8432_s29 }
 0x1d8   : > { %v1097_v8 = vpop.permute.xlu0 %1096 }
 0x1d9   : > { %7318 = vmatmul.msk.bf16.vlgmr.msra.gmra.mxu1 %vm12753_vm13, %v1097_v8 }
 0x1da   : > { %1104 = vrot.lane.b32.xlu2 %v1086_v17, %s8432_s29 }
 0x1dc   : > { %1106 = vrot.lane.b32.xlu1 %v1095_v9, %s8432_s29 }
 0x21e   : > { %v8968_v41 = vpop.f32.mrf.mxu2 }
 0x224   : > { %v1281_v11 = vpop.permute.xlu2 %1280 }
 0x226   : > { %v8970_v0 = vpop.f32.mrf.mxu2 }
 0x227   : > { %v1099_v59 = vpop.permute.xlu0 %1098 }
 0x228   : > { %7319 = vmatmul.msk.bf16.gmra.mxu1 %vm12753_vm13, %v1099_v59 }
 0x22c   : > { %v1283_v5 = vpop.permute.xlu2 %1282  ;;  %v1279_v21 = vpop.permute.xlu1 %1278 }
 0x22d   : > { %7344 = vmatmul.msk.bf16.gmra.mxu2 %vm12753_vm13, %v1279_v21 }
 0x22e   : > { %v8974_v23 = vpop.f32.mrf.mxu2 }
 0x22f   : > { %v941_v35 = vpop.permute.xlu0 %940  ;;  %v999_v37 = vpop.f32.mrf.mxu0 }
 0x230   : > { %7301 = vmatmul.msk.bf16.gmra.mxu0 %vm12753_vm13, %v941_v35 }
 0x234   : > { %v1105_v14 = vpop.permute.xlu2 %1104  ;;  %v715_v47 = vpop.permute.xlu1 %714 }
 0x235   : > { %746 = vst.msk [vmem:[#allocation2 + $0xf8] sm:$0xff] %vm734_vm6, %v715_v47  ;;  %7322 = vmatmul.msk.bf16.vlgmr.msra.gmra.mxu3 %vm12753_vm13, %v1105_v14  ;;  %v9011_v47 = vld [vmem:[%s12699_s4] ss:$0 sm:$0xff] }
 0x236   : > { %v8979_v63 = vpop.f32.mrf.mxu2 }
 0x237   : > { %v943_v25 = vpop.permute.xlu0 %942  ;;  %v1001_v17 = vpop.f32.mrf.mxu0 }
 0x23c   : > { %v1205_v53 = vld [vmem:[#allocation2 + $0xf8] sm:$0x1] }
 0x23d   : > { %7345 = vmatmul.msk.bf16.gmra.mxu2 %vm12753_vm13, %v1281_v11  ;;  %v1212_v19 = vpack.c.bf16 %v1205_v53, %v8826_v50  ;;  %v7996_v50 = vld [vmem:[%s12700_s5 + $0x10] sm:$0xff] }
 0x23e   : > { %v8983_v20 = vpop.f32.mrf.mxu2  ;;  %v1101_v58 = vpop.permute.xlu1 %1100  ;;  %1485 = vmatpush.bf16.msrb.mxu3 %v7996_v50 }
 0x23f   : > { %7320 = vmatmul.msk.bf16.gmra.mxu1 %vm12753_vm13, %v1101_v58  ;;  %v1269_v48 = vshll.u32 %v1212_v19, 16  ;;  %v1273_v1 = vshrl.u32 %v1212_v19, 16  ;;  %v1285_v61 = vpop.permute.xlu0 %1284 }
 0x240   : > { %7302 = vmatmul.msk.bf16.gmra.mxu0 %vm12753_vm13, %v943_v25 }
 0x241   : > { %v1271_v18 = vrot.slane %v1269_v48, 1 }
 0x242   : > { %1486 = vmatpush.bf16.msrb.mxu3 %v7995_v57 }
 0x243   : > { %v1272_v60 = vsel %vm12755_vm11, %v8862_v34, %v1271_v18  ;;  %v1275_v6 = vor.u32 %v1273_v1, %v1271_v18  ;;  %v7994_v34 = vld [vmem:[%s12700_s5] sm:$0xff]  ;;  %v1004_v1 = vpop.f32.mrf.mxu0 }
 0x244   : > { %1286 = vrot.lane.b32.xlu2 %v1272_v60, %s8432_s29 }
 0x245   : > { %1288 = vrot.lane.b32.xlu1 %v1275_v6, %s8432_s29 }
 0x246   : > { %v1031_v46 = vpop.f32.mrf.mxu2  ;;  %v1103_v15 = vpop.permute.xlu1 %1102  ;;  %1487 = vmatpush.bf16.msrb.mxu3 %v7994_v34 }
 0x247   : > { %v1109_v9 = vpop.permute.xlu0 %1108 }
 0x24b   : > { %v1006_v60 = vpop.f32.mrf.mxu0 }
 0x24d   : > { %7346 = vmatmul.msk.bf16.gmra.mxu2 %vm12753_vm13, %v1283_v5 }
 0x24e   : > { %v1107_v7 = vpop.permute.xlu1 %1106 }
 0x24f   : > { %7321 = vmatmul.msk.bf16.gmra.mxu1 %vm12753_vm13, %v1103_v15  ;;  %7323 = vmatmul.msk.bf16.gmra.mxu3 %vm12753_vm13, %v1107_v7 }
 0x255   : > { %v1338_v62 = vpop.f32.mrf.mxu2 }
 0x256   : > { %v1158_v8 = vpop.f32.mrf.mxu1 }
 0x257   : > { %v1159_v59 = vadd.f32 %v1158_v8, %v999_v37 }
 0x259   : > { %v1372_v14 = vadd.f32 %v1338_v62, %v1159_v59 }
 0x25b   : > { %v1389_v19 = vadd.f32 %v9011_v47, %v1372_v14 }
 0x25d   : > { %7347 = vmatmul.msk.bf16.gmra.mxu2 %vm12753_vm13, %v1285_v61  ;;  %v1340_v5 = vpop.f32.mrf.mxu2  ;;  %v1402_v25 = vmax.f32 %v1389_v19, 0.0 }
 0x25e   : > { %v1160_v11 = vpop.f32.mrf.mxu1 }
 0x25f   : > { %v1161_v21 = vadd.f32 %v1160_v11, %v1001_v17  ;;  %7324 = vmatmul.msk.bf16.gmra.mxu3 %vm12753_vm13, %v1109_v9 }
 0x261   : > { %v1373_v35 = vadd.f32 %v1340_v5, %v1161_v21 }
 0x263   : > { %v1390_v53 = vadd.f32 %v9011_v47, %v1373_v35 }
 0x265   : > { %v1403_v58 = vmax.f32 %v1390_v53, 0.0 }
 0x267   : > { %v1415_v48 = vpack.c.bf16 %v1403_v58, %v1402_v25 }
 0x26f   : > { %7366 = vmatmul.msk.bf16.vlgmr.msrb.gmra.mxu3 %vm12751_vm14, %v1415_v48 }
 0x29e   : > { %v1287_v18 = vpop.permute.xlu2 %1286 }
 0x29f   : > { %7348 = vmatmul.msk.bf16.gmra.mxu2 %vm12753_vm13, %v1287_v18 }
 0x2a5   : > { %v1163_v36 = vpop.f32.mrf.mxu1 }
 0x2a6   : > { %v1164_v50 = vadd.f32 %v1163_v36, %v1004_v1 }
 0x2ad   : > { %v1165_v46 = vpop.f32.mrf.mxu1  ;;  %v1009_v7 = vpop.f32.mrf.mxu0 }
 0x2ae   : > { %v1166_v57 = vadd.f32 %v1165_v46, %v1006_v60 }
 0x2b0   : > { %v1343_v6 = vpop.f32.mrf.mxu2 }
 0x2b1   : > { %v1374_v15 = vadd.f32 %v1343_v6, %v1164_v50 }
 0x2b3   : > { %v1391_v61 = vadd.f32 %v9011_v47, %v1374_v15 }
 0x2b5   : > { %v1404_v9 = vmax.f32 %v1391_v61, 0.0  ;;  %v1011_v35 = vpop.f32.mrf.mxu0 }
 0x2b7   : > { %v1289_v34 = vpop.permute.xlu1 %1288 }
 0x2b8   : > { %v1345_v37 = vpop.f32.mrf.mxu2  ;;  %7349 = vmatmul.msk.bf16.gmra.mxu2 %vm12753_vm13, %v1289_v34  ;;  %v1178_v21 = vpop.f32.mrf.mxu3 }
 0x2b9   : > { %v1375_v62 = vadd.f32 %v1345_v37, %v1166_v57 }
 0x2bb   : > { %v1392_v8 = vadd.f32 %v9011_v47, %v1375_v62 }
 0x2bc   : > { %v1168_v17 = vpop.f32.mrf.mxu1 }
 0x2bd   : > { %v1405_v11 = vmax.f32 %v1392_v8, 0.0  ;;  %v1169_v14 = vadd.f32 %v1168_v17, %v1009_v7  ;;  %v1014_v60 = vpop.f32.mrf.mxu0 }
 0x2bf   : > { %v1416_v59 = vpack.c.bf16 %v1405_v11, %v1404_v9 }
 0x2c0   : > { %v1348_v5 = vpop.f32.mrf.mxu2  ;;  %v1180_v1 = vpop.f32.mrf.mxu3 }
 0x2c1   : > { %7367 = vmatmul.msk.bf16.gmra.mxu3 %vm12751_vm14, %v1416_v59  ;;  %v1376_v19 = vadd.f32 %v1348_v5, %v1169_v14 }
 0x2c3   : > { %v1393_v48 = vadd.f32 %v9011_v47, %v1376_v19 }
 0x2c4   : > { %v1170_v53 = vpop.f32.mrf.mxu1 }
 0x2c5   : > { %v1171_v58 = vadd.f32 %v1170_v53, %v1011_v35  ;;  %v1406_v50 = vmax.f32 %v1393_v48, 0.0  ;;  %v1016_v62 = vpop.f32.mrf.mxu0 }
 0x2c8   : > { %v1350_v25 = vpop.f32.mrf.mxu2 }
 0x2c9   : > { %v1377_v18 = vadd.f32 %v1350_v25, %v1171_v58  ;;  %v1179_v25 = vadd.f32 %v1178_v21, %v8968_v41 }
 0x2cb   : > { %v1394_v36 = vadd.f32 %v9011_v47, %v1377_v18  ;;  %v1181_v18 = vadd.f32 %v1180_v1, %v8970_v0 }
 0x2cc   : > { %v1173_v6 = vpop.f32.mrf.mxu1 }
 0x2cd   : > { %v1407_v46 = vmax.f32 %v1394_v36, 0.0  ;;  %v1174_v7 = vadd.f32 %v1173_v6, %v1014_v60 }
 0x2cf   : > { %v1417_v15 = vpack.c.bf16 %v1407_v46, %v1406_v50 }
 0x2d0   : > { %v1353_v57 = vpop.f32.mrf.mxu2 }
 0x2d1   : > { %7368 = vmatmul.msk.bf16.gmra.mxu3 %vm12751_vm14, %v1417_v15  ;;  %v1378_v61 = vadd.f32 %v1353_v57, %v1174_v7 }
 0x2d2   : > { %v1183_v34 = vpop.f32.mrf.mxu3 }
 0x2d3   : > { %v1395_v9 = vadd.f32 %v9011_v47, %v1378_v61 }
 0x2d4   : > { %v1175_v37 = vpop.f32.mrf.mxu1 }
 0x2d5   : > { %v1176_v8 = vadd.f32 %v1175_v37, %v1016_v62  ;;  %v1408_v35 = vmax.f32 %v1395_v9, 0.0  ;;  %v9034_v37 = vld [vmem:[%s12701_s6] ss:$0 sm:$0xff] }
 0x2d8   : > { %v1355_v17 = vpop.f32.mrf.mxu2 }
 0x2d9   : > { %v1379_v11 = vadd.f32 %v1355_v17, %v1176_v8 }
 0x2da   : > { %v1185_v59 = vpop.f32.mrf.mxu3 }
 0x2db   : > { %v1396_v5 = vadd.f32 %v9011_v47, %v1379_v11 }
 0x2dd   : > { %v1409_v14 = vmax.f32 %v1396_v5, 0.0 }
 0x2df   : > { %v1418_v53 = vpack.c.bf16 %v1409_v14, %v1408_v35 }
 0x2e0   : > { %v1358_v19 = vpop.f32.mrf.mxu2 }
 0x2e1   : > { %7369 = vmatmul.msk.bf16.gmra.mxu3 %vm12751_vm14, %v1418_v53  ;;  %v1380_v48 = vadd.f32 %v1358_v19, %v1179_v25  ;;  %v1184_v25 = vadd.f32 %v1183_v34, %v8974_v23  ;;  %v8020_v23 = vld [vmem:[%s12702_s7 + $0xb0] sm:$0xff]  ;;  %v8019_v34 = vld [vmem:[%s12702_s7 + $0xa8] sm:$0xff] }
 0x2e2   : > { %v1188_v58 = vpop.f32.mrf.mxu3 }
 0x2e3   : > { %v1397_v60 = vadd.f32 %v9011_v47, %v1380_v48 }
 0x2e5   : > { %v1410_v15 = vmax.f32 %v1397_v60, 0.0 }
 0x2e8   : > { %v1360_v36 = vpop.f32.mrf.mxu2 }
 0x2e9   : > { %v1381_v6 = vadd.f32 %v1360_v36, %v1181_v18  ;;  %v1186_v18 = vadd.f32 %v1185_v59, %v8979_v63  ;;  %v1189_v63 = vadd.f32 %v1188_v58, %v8983_v20  ;;  %v8009_v20 = vld [vmem:[%s12702_s7 + $0x58] sm:$0xff]  ;;  %v8016_v58 = vld [vmem:[%s12702_s7 + $0x90] sm:$0xff] }
 0x2ea   : > { %v1190_v50 = vpop.f32.mrf.mxu3  ;;  %2282 = vmatpush.bf16.msra.mxu3 %v8009_v20 }
 0x2eb   : > { %v1398_v46 = vadd.f32 %v9011_v47, %v1381_v6 }
 0x2ed   : > { %v1411_v57 = vmax.f32 %v1398_v46, 0.0 }
 0x2ef   : > { %v1419_v7 = vpack.c.bf16 %v1411_v57, %v1410_v15  ;;  %v8021_v57 = vld [vmem:[%s12702_s7 + $0xb8] sm:$0xff] }
 0x2f0   : > { %1972 = vmatpush.bf16.msrb.mxu1 %v8021_v57  ;;  %v8013_v57 = vld [vmem:[%s12702_s7 + $0x78] sm:$0xff] }
 0x2f1   : > { %7370 = vmatmul.msk.bf16.gmra.mxu3 %vm12751_vm14, %v1419_v7 }
 0x2f2   : > { %v1489_v41 = vpop.f32.mrf.mxu3 }
 0x2f3   : > { %v1490_v0 = vadd.f32 %v9034_v37, %v1489_v41 }
 0x2f4   : > { %1973 = vmatpush.bf16.msrb.mxu1 %v8020_v23 }
 0x2f5   : > { %v1523_v21 = vmax.f32 %v1490_v0, 0.0 }
 0x2f7   : > { %v1536_v1 = vmul.f32 %v1523_v21, %v8614_v38  ;;  %v8018_v21 = vld [vmem:[%s12702_s7 + $0xa0] sm:$0xff] }
 0x2f8   : > { %1974 = vmatpush.bf16.msrb.mxu1 %v8019_v34  ;;  %v8012_v34 = vld [vmem:[%s12702_s7 + $0x70] sm:$0xff] }
 0x2f9   : > { %v1562_v61 = vrot.slane %v1536_v1, 6  ;;  %1617 = vrot.lane.b32.xlu2 %v1536_v1, %s8432_s29  ;;  %v1670_v11 = vrot.slane %v1536_v1, 2  ;;  %v8017_v1 = vld [vmem:[%s12702_s7 + $0x98] sm:$0xff] }
 0x2fa   : > { %v1491_v62 = vpop.f32.mrf.mxu3  ;;  %1925 = vmatpush.bf16.msrb.mxu0 %v8017_v1  ;;  %v8011_v1 = vld [vmem:[%s12702_s7 + $0x68] sm:$0xff] }
 0x2fb   : > { %v1492_v8 = vadd.f32 %v9034_v37, %v1491_v62  ;;  %1602 = vst.msk [vmem:[#allocation2 + $0x30] sm:$0xfc] %vm12750_vm15, %v1562_v61 }
 0x2fc   : > { %1975 = vmatpush.bf16.msrb.mxu1 %v8018_v21 }
 0x2fd   : > { %v1524_v17 = vmax.f32 %v1492_v8, 0.0 }
 0x2fe   : > { %1926 = vmatpush.bf16.msrb.mxu0 %v8016_v58 }
 0x2ff   : > { %v9043_v9 = vmul.f32 %v1524_v17, %v8689_v13 }
 0x301   : > { %1619 = vrot.lane.b32.xlu0 %v9043_v9, %s8432_s29  ;;  %v1563_v5 = vrot.slane %v9043_v9, 6  ;;  %v1671_v35 = vrot.slane %v9043_v9, 2  ;;  %v8008_v9 = vld [vmem:[%s12702_s7 + $0x50] sm:$0xff] }
 0x302   : > { %2283 = vmatpush.bf16.msra.mxu3 %v8008_v9 }
 0x303   : > { %v1672_v14 = vsel %vm802_vm1, %v1670_v11, %v1671_v35  ;;  %v1564_v53 = vsel %vm664_vm2, %v1562_v61, %v1563_v5 }
 0x304   : > { %1711 = vst.msk [vmem:[#allocation2 + $0x18] sm:$0xff] %vm12751_vm14, %v1672_v14  ;;  %v8015_v14 = vld [vmem:[%s12702_s7 + $0x88] sm:$0xff] }
 0x305   : > { %1603 = vst.msk [vmem:[#allocation2 + $0x40] sm:$0xff] %vm12751_vm14, %v1564_v53  ;;  %1927 = vmatpush.bf16.msrb.mxu0 %v8015_v14 }
 0x322   : > { %v1363_v19 = vpop.f32.mrf.mxu2 }
 0x323   : > { %v1382_v48 = vadd.f32 %v1363_v19, %v1184_v25  ;;  %v8007_v19 = vld [vmem:[%s12702_s7 + $0x48] sm:$0xff] }
 0x324   : > { %2284 = vmatpush.bf16.msra.mxu3 %v8007_v19 }
 0x325   : > { %v1399_v60 = vadd.f32 %v9011_v47, %v1382_v48 }
 0x327   : > { %v1412_v46 = vmax.f32 %v1399_v60, 0.0 }
 0x32a   : > { %v1365_v36 = vpop.f32.mrf.mxu2 }
 0x32b   : > { %v1383_v6 = vadd.f32 %v1365_v36, %v1186_v18  ;;  %v8014_v36 = vld [vmem:[%s12702_s7 + $0x80] sm:$0xff] }
 0x32c   : > { %1928 = vmatpush.bf16.msrb.mxu0 %v8014_v36 }
 0x32d   : > { %v1400_v50 = vadd.f32 %v9011_v47, %v1383_v6 }
 0x32f   : > { %v1413_v15 = vmax.f32 %v1400_v50, 0.0  ;;  %v8006_v50 = vld [vmem:[%s12702_s7 + $0x40] sm:$0xff] }
 0x330   : > { %2285 = vmatpush.bf16.msra.mxu3 %v8006_v50  ;;  %1929 = vmatpush.bf16.msrb.mxu0 %v8013_v57 }
 0x331   : > { %v1420_v7 = vpack.c.bf16 %v1413_v15, %v1412_v46 }
 0x333   : > { %7371 = vmatmul.msk.bf16.gmra.mxu3 %vm12751_vm14, %v1420_v7 }
 0x334   : > { %1930 = vmatpush.bf16.msrb.mxu0 %v8012_v34 }
 0x338   : > { %1931 = vmatpush.bf16.msrb.mxu0 %v8011_v1 }
 0x33b   : > { %v1368_v59 = vpop.f32.mrf.mxu2 }
 0x33c   : > { %v1384_v41 = vadd.f32 %v1368_v59, %v1189_v63 }
 0x33e   : > { %v1401_v0 = vadd.f32 %v9011_v47, %v1384_v41 }
 0x340   : > { %v1414_v61 = vmax.f32 %v1401_v0, 0.0 }
 0x342   : > { %v1421_v47 = vpack.c.bf16 %v1414_v61, %v1414_v61 }
 0x343   : > { %v1370_v62 = vpop.f32.mrf.mxu2 }
 0x344   : > { %v1494_v8 = vpop.f32.mrf.mxu3  ;;  %7372 = vmatmul.msk.bf16.gmra.mxu3 %vm12751_vm14, %v1421_v47  ;;  %v8010_v62 = vld [vmem:[%s12702_s7 + $0x60] sm:$0xff] }
 0x345   : > { %v1495_v17 = vadd.f32 %v9034_v37, %v1494_v8  ;;  %1932 = vmatpush.bf16.msrb.mxu0 %v8010_v62 }
 0x347   : > { %v1525_v11 = vmax.f32 %v1495_v17, 0.0 }
 0x349   : > { %v1538_v53 = vmul.f32 %v1525_v11, %v8696_v16  ;;  %v9530_v16 = vld [vmem:[%s12703_s8] ss:$0 sm:$0xff] }
 0x34b   : > { %v1565_v25 = vrot.slane %v1538_v53, 6  ;;  %v1673_v48 = vrot.slane %v1538_v53, 2  ;;  %1621 = vrot.lane.b32.xlu1 %v1538_v53, %s8432_s29 }
 0x34c   : > { %v1496_v18 = vpop.f32.mrf.mxu3 }
 0x34d   : > { %v1674_v60 = vsel %vm802_vm1, %v1671_v35, %v1673_v48  ;;  %v1497_v6 = vadd.f32 %v9034_v37, %v1496_v18  ;;  %v1566_v46 = vsel %vm664_vm2, %v1563_v5, %v1565_v25 }
 0x34e   : > { %1712 = vst.msk [vmem:[#allocation2 + $0x28] sm:$0xff] %vm12751_vm14, %v1674_v60 }
 0x34f   : > { %v1526_v15 = vmax.f32 %v1497_v6, 0.0  ;;  %1604 = vst.msk [vmem:[#allocation2 + $0x50] sm:$0xff] %vm12751_vm14, %v1566_v46 }
 0x351   : > { %v1539_v35 = vmul.f32 %v1526_v15, %v8626_v42 }
 0x353   : > { %v1567_v7 = vrot.slane %v1539_v35, 6  ;;  %v1675_v23 = vrot.slane %v1539_v35, 2  ;;  %1623 = vrot.lane.b32.xlu2 %v1539_v35, %s8432_s29  ;;  %v1618_v5 = vpop.permute.xlu2 %1617 }
 0x354   : > { %1657 = vst.msk [vmem:[#allocation2 + $0x20] sm:$0xff] %vm12749_vm3, %v1618_v5  ;;  %v1499_v63 = vpop.f32.mrf.mxu3 }
 0x355   : > { %v1676_v59 = vsel %vm802_vm1, %v1673_v48, %v1675_v23  ;;  %v1500_v41 = vadd.f32 %v9034_v37, %v1499_v63  ;;  %v1568_v0 = vsel %vm664_vm2, %v1565_v25, %v1567_v7  ;;  %v1728_v9 = vld [vmem:[#allocation2 + $0x28] sm:$0xff]  ;;  %v1726_v25 = vld [vmem:[#allocation2 + $0x18] sm:$0x80] }
 0x356   : > { %1713 = vst.msk [vmem:[#allocation2 + $0x38] sm:$0xff] %vm12751_vm14, %v1676_v59  ;;  %v1754_v48 = vpack.c.bf16 %v1728_v9, %v1726_v25 }
 0x357   : > { %v1527_v21 = vmax.f32 %v1500_v41, 0.0  ;;  %1605 = vst.msk [vmem:[#allocation2 + $0x60] sm:$0xff] %vm12751_vm14, %v1568_v0 }
 0x358   : > { %v2029_v50 = vshrl.u32 %v1754_v48, 16  ;;  %v2032_v46 = vshll.u32 %v1754_v48, 16 }
 0x359   : > { %v1540_v61 = vmul.f32 %v1527_v21, %v8724_v30 }
 0x35a   : > { %v2031_v63 = vrot.slane %v2029_v50, 3  ;;  %v2034_v34 = vrot.slane %v2032_v46, 4 }
 0x35b   : > { %v1569_v20 = vrot.slane %v1540_v61, 6  ;;  %v1677_v58 = vrot.slane %v1540_v61, 2  ;;  %1625 = vrot.lane.b32.xlu0 %v1540_v61, %s8432_s29 }
 0x35c   : > { %v1501_v47 = vpop.f32.mrf.mxu3 }
 0x35d   : > { %v1678_v8 = vsel %vm802_vm1, %v1675_v23, %v1677_v58  ;;  %v1502_v17 = vadd.f32 %v9034_v37, %v1501_v47  ;;  %v9129_v11 = vld [vmem:[#allocation2 + $0x38] sm:$0xff]  ;;  %v1570_v14 = vsel %vm664_vm2, %v1567_v7, %v1569_v20  ;;  %v2035_v47 = vor.u32 %v2034_v34, %v2031_v63 }
 0x35e   : > { %1714 = vst.msk [vmem:[#allocation2 + $0x48] sm:$0xff] %vm12751_vm14, %v1678_v8  ;;  %v1794_v53 = vpack.c.bf16 %v9129_v11, %v1728_v9 }
 0x35f   : > { %v1528_v19 = vmax.f32 %v1502_v17, 0.0  ;;  %1606 = vst.msk [vmem:[#allocation2 + $0x70] sm:$0xff] %vm12751_vm14, %v1570_v14 }
 0x360   : > { %7445 = vmatmul.msk.bf16.vlgmr.msrb.gmra.mxu1 %vm12751_vm14, %v1794_v53 }
 0x361   : > { %v1541_v18 = vmul.f32 %v1528_v19, %v8636_v49 }
 0x363   : > { %v1571_v36 = vrot.slane %v1541_v18, 6  ;;  %v1679_v60 = vrot.slane %v1541_v18, 2  ;;  %1627 = vrot.lane.b32.xlu1 %v1541_v18, %s8432_s29 }
 0x364   : > { %v1504_v6 = vpop.f32.mrf.mxu3 }
 0x365   : > { %v1680_v15 = vsel %vm802_vm1, %v1677_v58, %v1679_v60  ;;  %v1505_v57 = vadd.f32 %v9034_v37, %v1504_v6  ;;  %v1732_v35 = vld [vmem:[#allocation2 + $0x48] sm:$0xff]  ;;  %v1572_v7 = vsel %vm664_vm2, %v1569_v20, %v1571_v36 }
 0x366   : > { %1715 = vst.msk [vmem:[#allocation2 + $0x58] sm:$0xff] %vm12751_vm14, %v1680_v15  ;;  %v1756_v23 = vpack.c.bf16 %v1732_v35, %v9129_v11 }
 0x367   : > { %v1529_v5 = vmax.f32 %v1505_v57, 0.0  ;;  %1607 = vst.msk [vmem:[#allocation2 + $0x80] sm:$0xff] %vm12751_vm14, %v1572_v7 }
 0x368   : > { %v2037_v59 = vshrl.u32 %v1756_v23, 16  ;;  %v2040_v41 = vshll.u32 %v1756_v23, 16 }
 0x369   : > { %v1542_v0 = vmul.f32 %v1529_v5, %v8603_v33 }
 0x36a   : > { %v2039_v21 = vrot.slane %v2037_v59, 3  ;;  %v2042_v1 = vrot.slane %v2040_v41, 4 }
 0x36b   : > { %v1573_v61 = vrot.slane %v1542_v0, 6  ;;  %v1681_v58 = vrot.slane %v1542_v0, 2  ;;  %1629 = vrot.lane.b32.xlu2 %v1542_v0, %s8432_s29 }
 0x36c   : > { %v1506_v20 = vpop.f32.mrf.mxu3  ;;  %v2043_v62 = vor.u32 %v2042_v1, %v2039_v21  ;;  %v9164_v1 = vld [vmem:[#allocation2 + $0x20] sm:$0xff] }
 0x36d   : > { %v1682_v8 = vsel %vm802_vm1, %v1679_v60, %v1681_v58  ;;  %v1507_v17 = vadd.f32 %v9034_v37, %v1506_v20  ;;  %v1734_v9 = vld [vmem:[#allocation2 + $0x58] sm:$0xff]  ;;  %v1574_v14 = vsel %vm664_vm2, %v1571_v36, %v1573_v61 }
 0x36e   : > { %1716 = vst.msk [vmem:[#allocation2 + $0x68] sm:$0xff] %vm12751_vm14, %v1682_v8  ;;  %v2044_v53 = vsel %vm12754_vm12, %v2035_v47, %v2043_v62  ;;  %v1796_v19 = vpack.c.bf16 %v1734_v9, %v1732_v35 }
 0x36f   : > { %v1530_v25 = vmax.f32 %v1507_v17, 0.0  ;;  %7500 = vmatmul.msk.bf16.vlgmr.msra.gmra.mxu3 %vm12751_vm14, %v2044_v53  ;;  %1608 = vst.msk [vmem:[#allocation2 + $0x90] sm:$0xff] %vm12751_vm14, %v1574_v14 }
 0x370   : > { %7446 = vmatmul.msk.bf16.gmra.mxu1 %vm12751_vm14, %v1796_v19  ;;  %v2408_v41 = vshll.u32 %v1796_v19, 16 }
 0x371   : > { %v1543_v48 = vmul.f32 %v1530_v25, %v8618_v40 }
 0x373   : > { %v1575_v18 = vrot.slane %v1543_v48, 6  ;;  %v1683_v60 = vrot.slane %v1543_v48, 2  ;;  %1631 = vrot.lane.b32.xlu0 %v1543_v48, %s8432_s29  ;;  %v1620_v6 = vpop.permute.xlu0 %1619  ;;  %v9175_v48 = vrot.slane %v2408_v41, 1 }
 0x374   : > { %1658 = vst.msk [vmem:[#allocation2 + $0x30] sm:$0xff] %vm12749_vm3, %v1620_v6  ;;  %v1509_v36 = vpop.f32.mrf.mxu3 }
 0x375   : > { %v1736_v50 = vld [vmem:[#allocation2 + $0x68] sm:$0xff]  ;;  %v1684_v46 = vsel %vm802_vm1, %v1681_v58, %v1683_v60  ;;  %v1510_v15 = vadd.f32 %v9034_v37, %v1509_v36  ;;  %v1576_v57 = vsel %vm664_vm2, %v1573_v61, %v1575_v18 }
 0x376   : > { %v1758_v35 = vpack.c.bf16 %v1736_v50, %v1734_v9  ;;  %1717 = vst.msk [vmem:[#allocation2 + $0x78] sm:$0xff] %vm12751_vm14, %v1684_v46 }
 0x377   : > { %v1531_v7 = vmax.f32 %v1510_v15, 0.0  ;;  %1609 = vst.msk [vmem:[#allocation2 + $0xa0] sm:$0xff] %vm12751_vm14, %v1576_v57 }
 0x378   : > { %v2055_v23 = vshrl.u32 %v1758_v35, 16  ;;  %v2058_v5 = vshll.u32 %v1758_v35, 16 }
 0x379   : > { %v1544_v63 = vmul.f32 %v1531_v7, %v8601_v32 }
 0x37a   : > { %v2057_v34 = vrot.slane %v2055_v23, 3  ;;  %v2060_v59 = vrot.slane %v2058_v5, 4 }
 0x37b   : > { %v1577_v0 = vrot.slane %v1544_v63, 6  ;;  %v1685_v21 = vrot.slane %v1544_v63, 2  ;;  %1633 = vrot.lane.b32.xlu1 %v1544_v63, %s8432_s29  ;;  %v9166_v61 = vld [vmem:[#allocation2 + $0x30] sm:$0xff] }
 0x37c   : > { %v1511_v58 = vpop.f32.mrf.mxu3  ;;  %v1793_v20 = vpack.c.bf16 %v9166_v61, %v9164_v1  ;;  %v2061_v47 = vor.u32 %v2060_v59, %v2057_v34 }
 0x37d   : > { %v1686_v8 = vsel %vm802_vm1, %v1683_v60, %v1685_v21  ;;  %v1512_v17 = vadd.f32 %v9034_v37, %v1511_v58  ;;  %v1738_v9 = vld [vmem:[#allocation2 + $0x78] sm:$0xff]  ;;  %v1578_v14 = vsel %vm664_vm2, %v1575_v18, %v1577_v0  ;;  %v2420_v60 = vshrl.u32 %v1796_v19, 16 }
 0x37e   : > { %1718 = vst.msk [vmem:[#allocation2 + $0x88] sm:$0xff] %vm12751_vm14, %v1686_v8  ;;  %1933 = vmatmul.bf16.vlgmr.msrb.gmra.mxu0 %v1793_v20  ;;  %v2062_v53 = vsel %vm12754_vm12, %v2043_v62, %v2061_v47  ;;  %v1798_v25 = vpack.c.bf16 %v1738_v9, %v1736_v50  ;;  %v8004_v8 = vld [vmem:[%s12702_s7 + $0x30] sm:$0xff] }
 0x37f   : > { %v1532_v6 = vmax.f32 %v1512_v17, 0.0  ;;  %7501 = vmatmul.msk.bf16.gmra.mxu3 %vm12751_vm14, %v2062_v53  ;;  %1610 = vst.msk [vmem:[#allocation2 + $0xb0] sm:$0xff] %vm12751_vm14, %v1578_v14  ;;  %v2422_v18 = vor.u32 %v2420_v60, %v9175_v48  ;;  %v8002_v60 = vld [vmem:[%s12702_s7 + $0x20] sm:$0xff] }
 0x380   : > { %7447 = vmatmul.msk.bf16.gmra.mxu1 %vm12751_vm14, %v1798_v25  ;;  %v2424_v36 = vshll.u32 %v1798_v25, 16  ;;  %v2436_v17 = vshrl.u32 %v1798_v25, 16  ;;  %v8001_v25 = vld [vmem:[%s12702_s7 + $0x18] sm:$0xff] }
 0x381   : > { %v1545_v46 = vmul.f32 %v1532_v6, %v8616_v39  ;;  %v8003_v6 = vld [vmem:[%s12702_s7 + $0x28] sm:$0xff] }
 0x382   : > { %v2426_v15 = vrot.slane %v2424_v36, 1  ;;  %v8000_v36 = vld [vmem:[%s12702_s7 + $0x10] sm:$0xff] }
 0x383   : > { %v1579_v57 = vrot.slane %v1545_v46, 6  ;;  %v1687_v35 = vrot.slane %v1545_v46, 2  ;;  %1635 = vrot.lane.b32.xlu2 %v1545_v46, %s8432_s29  ;;  %v7999_v46 = vld [vmem:[%s12702_s7 + $0x8] sm:$0xff] }
 0x384   : > { %v9184_v62 = vsel %vm12755_vm11, %v2422_v18, %v2426_v15 }
 0x385   : > { %v1740_v50 = vld [vmem:[#allocation2 + $0x88] sm:$0xff]  ;;  %v1688_v7 = vsel %vm802_vm1, %v1685_v21, %v1687_v35  ;;  %v1580_v23 = vsel %vm664_vm2, %v1577_v0, %v1579_v57  ;;  %v8005_v0 = vld [vmem:[%s12702_s7 + $0x38] sm:$0xff] }
 0x386   : > { %v1760_v5 = vpack.c.bf16 %v1740_v50, %v1738_v9  ;;  %1719 = vst.msk [vmem:[#allocation2 + $0x98] sm:$0xff] %vm12751_vm14, %v1688_v7  ;;  %2235 = vmatpush.bf16.msra.mxu2 %v8005_v0  ;;  %v2438_v9 = vor.u32 %v2436_v17, %v2426_v15  ;;  %v7998_v15 = vld [vmem:[%s12702_s7] sm:$0xff] }
 0x387   : > { %1611 = vst.msk [vmem:[#allocation2 + $0xc0] sm:$0xff] %vm12751_vm14, %v1580_v23 }
 0x388   : > { %v2073_v19 = vshrl.u32 %v1760_v5, 16  ;;  %v2076_v63 = vshll.u32 %v1760_v5, 16 }
 0x38a   : > { %v2075_v34 = vrot.slane %v2073_v19, 3  ;;  %v2078_v59 = vrot.slane %v2076_v63, 4  ;;  %2236 = vmatpush.bf16.msra.mxu2 %v8004_v8  ;;  %v1725_v19 = vld [vmem:[#allocation2 + $0x10] sm:$0x80] }
 0x38b   : > { %v1753_v0 = vpack.c.bf16 %v9164_v1, %v1725_v19 }
 0x38c   : > { %v9190_v41 = vor.u32 %v2078_v59, %v2075_v34 }
 0x38d   : > { %v9192_v58 = vld [vmem:[#allocation2 + $0x98] sm:$0xff] }
 0x38e   : > { %v2080_v20 = vsel %vm12754_vm12, %v2061_v47, %v9190_v41  ;;  %v9197_v21 = vpack.c.bf16 %v9192_v58, %v1740_v50  ;;  %2237 = vmatpush.bf16.msra.mxu2 %v8003_v6 }
 0x38f   : > { %7502 = vmatmul.msk.bf16.gmra.mxu3 %vm12751_vm14, %v2080_v20 }
 0x390   : > { %7448 = vmatmul.msk.bf16.gmra.mxu1 %vm12751_vm14, %v9197_v21  ;;  %v2440_v47 = vshll.u32 %v9197_v21, 16 }
 0x392   : > { %v9209_v14 = vrot.slane %v2440_v47, 1  ;;  %2238 = vmatpush.bf16.msra.mxu2 %v8002_v60  ;;  %v2012_v60 = vshrl.u32 %v1753_v0, 16 }
 0x394   : > { %v9213_v53 = vsel %vm12755_vm11, %v2438_v9, %v9209_v14 }
 0x396   : > { %2239 = vmatpush.bf16.msra.mxu2 %v8001_v25  ;;  %v2015_v25 = vshll.u32 %v1753_v0, 16 }
 0x39a   : > { %2240 = vmatpush.bf16.msra.mxu2 %v8000_v36 }
 0x39e   : > { %2241 = vmatpush.bf16.msra.mxu2 %v7999_v46 }
 0x3a2   : > { %2242 = vmatpush.bf16.msra.mxu2 %v7998_v15 }
 0x3ad   : > { %v1624_v18 = vpop.permute.xlu2 %1623 }
 0x3ae   : > { %1660 = vst.msk [vmem:[#allocation2 + $0x50] sm:$0xff] %vm12749_vm3, %v1624_v18 }
 0x3b6   : > { %v1514_v50 = vpop.f32.mrf.mxu3 }
 0x3b7   : > { %v1515_v7 = vadd.f32 %v9034_v37, %v1514_v50 }
 0x3b9   : > { %v1533_v23 = vmax.f32 %v1515_v7, 0.0 }
 0x3bb   : > { %v1546_v5 = vmul.f32 %v1533_v23, %v8586_v27  ;;  %v2014_v23 = vrot.slane %v2012_v60, 3 }
 0x3bd   : > { %v1581_v63 = vrot.slane %v1546_v5, 6  ;;  %v1689_v34 = vrot.slane %v1546_v5, 2  ;;  %1637 = vrot.lane.b32.xlu0 %v1546_v5, %s8432_s29  ;;  %v1622_v59 = vpop.permute.xlu1 %1621  ;;  %v2017_v5 = vrot.slane %v2015_v25, 4 }
 0x3be   : > { %1659 = vst.msk [vmem:[#allocation2 + $0x40] sm:$0xff] %vm12749_vm3, %v1622_v59  ;;  %v1516_v20 = vpop.f32.mrf.mxu3 }
 0x3bf   : > { %v1690_v8 = vsel %vm802_vm1, %v1687_v35, %v1689_v34  ;;  %v1517_v17 = vadd.f32 %v9034_v37, %v1516_v20  ;;  %v1582_v47 = vsel %vm664_vm2, %v1579_v57, %v1581_v63  ;;  %v1733_v35 = vld [vmem:[#allocation2 + $0x50] sm:$0xff] }
 0x3c0   : > { %1720 = vst.msk [vmem:[#allocation2 + $0xa8] sm:$0xff] %vm12751_vm14, %v1690_v8 }
 0x3c1   : > { %v1534_v9 = vmax.f32 %v1517_v17, 0.0  ;;  %1612 = vst.msk [vmem:[#allocation2 + $0xd0] sm:$0xff] %vm12751_vm14, %v1582_v47 }
 0x3c3   : > { %v1547_v6 = vmul.f32 %v1534_v9, %v8588_v28 }
 0x3c5   : > { %v1630_v36 = vpop.permute.xlu2 %1629  ;;  %1639 = vrot.lane.b32.xlu1 %v1547_v6, %s8432_s29  ;;  %v1583_v46 = vrot.slane %v1547_v6, 6  ;;  %v1691_v1 = vrot.slane %v1547_v6, 2  ;;  %v1731_v18 = vld [vmem:[#allocation2 + $0x40] sm:$0xff] }
 0x3c6   : > { %1663 = vst.msk [vmem:[#allocation2 + $0x80] sm:$0xff] %vm12749_vm3, %v1630_v36  ;;  %v1755_v57 = vpack.c.bf16 %v1731_v18, %v9166_v61  ;;  %v9248_v15 = vpack.c.bf16 %v1733_v35, %v1731_v18 }
 0x3c7   : > { %v1692_v50 = vsel %vm802_vm1, %v1689_v34, %v1691_v1  ;;  %v1519_v7 = vpop.f32.mrf.mxu3  ;;  %v1744_v19 = vld [vmem:[#allocation2 + $0xa8] sm:$0xff]  ;;  %v1584_v59 = vsel %vm664_vm2, %v1581_v63, %v1583_v46  ;;  %v2018_v63 = vor.u32 %v2017_v5, %v2014_v23 }
 0x3c8   : > { %1721 = vst.msk [vmem:[#allocation2 + $0xb8] sm:$0xff] %vm12751_vm14, %v1692_v50  ;;  %v1520_v20 = vadd.f32 %v9034_v37, %v1519_v7  ;;  %1938 = vmatmul.bf16.gmra.mxu0 %v9248_v15  ;;  %v2020_v0 = vshrl.u32 %v1755_v57, 16  ;;  %v2023_v8 = vshll.u32 %v1755_v57, 16  ;;  %v1762_v17 = vpack.c.bf16 %v1744_v19, %v9192_v58 }
 0x3c9   : > { %1613 = vst.msk [vmem:[#allocation2 + $0xe0] sm:$0xff] %vm12751_vm14, %v1584_v59 }
 0x3ca   : > { %v1535_v47 = vmax.f32 %v1520_v20, 0.0  ;;  %v2022_v34 = vrot.slane %v2020_v0, 3  ;;  %v2025_v9 = vrot.slane %v2023_v8, 4  ;;  %v2091_v6 = vshrl.u32 %v1762_v17, 16 }
 0x3cb   : > { %v2094_v60 = vshll.u32 %v1762_v17, 16  ;;  %v2452_v17 = vshrl.u32 %v9197_v21, 16 }
 0x3cc   : > { %v1548_v25 = vmul.f32 %v1535_v47, %v8676_v4  ;;  %v2026_v36 = vor.u32 %v2025_v9, %v2022_v34  ;;  %v2093_v18 = vrot.slane %v2091_v6, 3 }
 0x3cd   : > { %v1626_v50 = vpop.permute.xlu0 %1625  ;;  %v2096_v37 = vrot.slane %v2094_v60, 4 }
 0x3ce   : > { %v1585_v7 = vrot.slane %v1548_v25, 6  ;;  %v1693_v56 = vrot.slane %v1548_v25, 2  ;;  %1661 = vst.msk [vmem:[#allocation2 + $0x60] sm:$0xff] %vm12749_vm3, %v1626_v50  ;;  %1641 = vrot.lane.b32.xlu2 %v1548_v25, %s8432_s29  ;;  %v2027_v58 = vsel %vm12754_vm12, %v2018_v63, %v2026_v36  ;;  %v2396_v63 = vshll.u32 %v9248_v15, 16 }
 0x3cf   : > { %v1521_v57 = vpop.f32.mrf.mxu3  ;;  %2243 = vmatmul.bf16.vlgmr.msra.gmra.mxu2 %v2027_v58  ;;  %v9261_v59 = vor.u32 %v2096_v37, %v2093_v18  ;;  %v1746_v20 = vld [vmem:[#allocation2 + $0xb8] sm:$0xff] }
 0x3d0   : > { %v1586_v0 = vsel %vm664_vm2, %v1583_v46, %v1585_v7  ;;  %v1694_v23 = vsel %vm802_vm1, %v1691_v1, %v1693_v56  ;;  %v1802_v5 = vpack.c.bf16 %v1746_v20, %v1744_v19  ;;  %1724 = vst.msk [vmem:[#allocation2 + $0xd8] sm:$0x3f] %vm12748_vm4, %v1693_v56  ;;  %v8033_v46 = vld [vmem:[%s12702_s7 + $0x118] sm:$0xff]  ;;  %v2454_v1 = vor.u32 %v2452_v17, %v9209_v14  ;;  %v8032_v14 = vld [vmem:[%s12702_s7 + $0x110] sm:$0xff] }
 0x3d1   : > { %1614 = vst.msk [vmem:[#allocation2 + $0xf0] sm:$0xff] %vm12751_vm14, %v1586_v0  ;;  %v2098_v8 = vsel %vm12754_vm12, %v9190_v41, %v9261_v59  ;;  %2645 = vmatpush.bf16.msra.mxu1 %v8033_v46  ;;  %v8029_v56 = vld [vmem:[%s12702_s7 + $0xf8] sm:$0xff] }
 0x3d2   : > { %1722 = vst.msk [vmem:[#allocation2 + $0xc8] sm:$0xff] %vm12751_vm14, %v1694_v23  ;;  %7503 = vmatmul.msk.bf16.gmra.mxu3 %vm12751_vm14, %v2098_v8  ;;  %7449 = vmatmul.msk.bf16.gmra.mxu1 %vm12751_vm14, %v1802_v5  ;;  %v2456_v47 = vshll.u32 %v1802_v5, 16  ;;  %v8031_v23 = vld [vmem:[%s12702_s7 + $0x108] sm:$0xff]  ;;  %v2468_v46 = vshrl.u32 %v1802_v5, 16 }
 0x3d3   : > { %2598 = vmatpush.bf16.msra.mxu0 %v8029_v56 }
 0x3d4   : > { %v2458_v19 = vrot.slane %v2456_v47, 1  ;;  %v1739_v47 = vld [vmem:[#allocation2 + $0x80] sm:$0xff] }
 0x3d5   : > { %v1628_v34 = vpop.permute.xlu1 %1627  ;;  %v1735_v41 = vld [vmem:[#allocation2 + $0x60] sm:$0xff]  ;;  %2646 = vmatpush.bf16.msra.mxu1 %v8032_v14 }
 0x3d6   : > { %1662 = vst.msk [vmem:[#allocation2 + $0x70] sm:$0xff] %vm12749_vm3, %v1628_v34  ;;  %v1757_v9 = vpack.c.bf16 %v1735_v41, %v1733_v35  ;;  %v9280_v6 = vsel %vm12755_vm11, %v2454_v1, %v2458_v19  ;;  %v9295_v34 = vrot.slane %v2396_v63, 1  ;;  %v8030_v14 = vld [vmem:[%s12702_s7 + $0x100] sm:$0xff]  ;;  %v8028_v63 = vld [vmem:[%s12702_s7 + $0xf0] sm:$0xff] }
 0x3d7   : > { %v1750_v35 = vld [vmem:[#allocation2 + $0xd8] sm:$0xff]  ;;  %2599 = vmatpush.bf16.msra.mxu0 %v8028_v63 }
 0x3d8   : > { %v2046_v21 = vshrl.u32 %v1757_v9, 16  ;;  %v2049_v60 = vshll.u32 %v1757_v9, 16 }
 0x3d9   : > { %v1748_v25 = vld [vmem:[#allocation2 + $0xc8] sm:$0xff]  ;;  %2647 = vmatpush.bf16.msra.mxu1 %v8031_v23 }
 0x3da   : > { %v2048_v18 = vrot.slane %v2046_v21, 3  ;;  %v2051_v50 = vrot.slane %v2049_v60, 4  ;;  %v1764_v37 = vpack.c.bf16 %v1748_v25, %v1746_v20  ;;  %v9289_v7 = vpack.c.bf16 %v1750_v35, %v1748_v25 }
 0x3db   : > { %v2470_v25 = vor.u32 %v2468_v46, %v2458_v19 }
 0x3dc   : > { %v2052_v58 = vor.u32 %v2051_v50, %v2048_v18  ;;  %v2109_v57 = vshrl.u32 %v1764_v37, 16  ;;  %v2112_v0 = vshll.u32 %v1764_v37, 16  ;;  %v2472_v1 = vshll.u32 %v9289_v7, 16 }
 0x3dd   : > { %v1636_v8 = vpop.permute.xlu2 %1635  ;;  %v1737_v17 = vld [vmem:[#allocation2 + $0x70] sm:$0xff]  ;;  %2648 = vmatpush.bf16.msra.mxu1 %v8030_v14  ;;  %v2484_v3 = vshrl.u32 %v9289_v7, 16 }
 0x3de   : > { %1666 = vst.msk [vmem:[#allocation2 + $0xb0] sm:$0xff] %vm12749_vm3, %v1636_v8  ;;  %v2053_v20 = vsel %vm12754_vm12, %v2026_v36, %v2052_v58  ;;  %v1759_v9 = vpack.c.bf16 %v1739_v47, %v1737_v17  ;;  %v1797_v21 = vpack.c.bf16 %v1737_v17, %v1735_v41  ;;  %v2111_v60 = vrot.slane %v2109_v57, 3 }
 0x3df   : > { %2248 = vmatmul.bf16.gmra.mxu2 %v2053_v20  ;;  %v2114_v56 = vrot.slane %v2112_v0, 4  ;;  %v9302_v5 = vrot.slane %v2472_v1, 1  ;;  %v2412_v36 = vshrl.u32 %v9248_v15, 16  ;;  %v1752_v0 = vld [vmem:[#allocation2 + $0xe8] sm:$0x7f] }
 0x3e0   : > { %1943 = vmatmul.bf16.gmra.mxu0 %v1797_v21  ;;  %v2416_v18 = vshll.u32 %v1797_v21, 16  ;;  %v2064_v37 = vshrl.u32 %v1759_v9, 16  ;;  %v2067_v57 = vshll.u32 %v1759_v9, 16  ;;  %v1766_v8 = vpack.c.bf16 %v1752_v0, %v1750_v35 }
 0x3e1   : > { %v2115_v41 = vor.u32 %v2114_v56, %v2111_v60  ;;  %v9310_v50 = vsel %vm12755_vm11, %v2470_v25, %v9302_v5  ;;  %v2414_v19 = vor.u32 %v2412_v36, %v9295_v34 }
 0x3e2   : > { %7450 = vmatmul.msk.bf16.gmra.mxu1 %vm12751_vm14, %v9289_v7  ;;  %v2418_v23 = vrot.slane %v2416_v18, 1  ;;  %v2066_v1 = vrot.slane %v2064_v37, 3  ;;  %v2069_v20 = vrot.slane %v2067_v57, 4  ;;  %v2127_v9 = vshrl.u32 %v1766_v8, 16  ;;  %v9322_v18 = vld [vmem:[#allocation2 + $0xe8] sm:$0xff] }
 0x3e3   : > { %v2116_v15 = vsel %vm12754_vm12, %v9261_v59, %v2115_v41  ;;  %v2130_v60 = vshll.u32 %v1766_v8, 16  ;;  %v8027_v59 = vld [vmem:[%s12702_s7 + $0xe8] sm:$0xff]  ;;  %v1806_v57 = vpack.c.bf16 %v9322_v18, %v9322_v18 }
 0x3e4   : > { %7504 = vmatmul.msk.bf16.gmra.mxu3 %vm12751_vm14, %v2116_v15  ;;  %v9319_v17 = vsel %vm12755_vm11, %v2414_v19, %v2418_v23  ;;  %v2070_v56 = vor.u32 %v2069_v20, %v2066_v1  ;;  %v2129_v25 = vrot.slane %v2127_v9, 3  ;;  %2600 = vmatpush.bf16.msra.mxu0 %v8027_v59  ;;  %v2428_v19 = vshrl.u32 %v1797_v21, 16  ;;  %v2322_v15 = vld [vmem:[#allocation2 + $0x28] sm:$0xfe] }
 0x3e5   : > { %v1632_v46 = vpop.permute.xlu0 %1631  ;;  %v2132_v63 = vrot.slane %v2130_v60, 4  ;;  %v2350_v9 = vpack.c.bf16 %v9129_v11, %v2322_v15  ;;  %v1745_v60 = vld [vmem:[#allocation2 + $0xb0] sm:$0xff]  ;;  %v8026_v11 = vld [vmem:[%s12702_s7 + $0xe0] sm:$0xff]  ;;  %v1977_v15 = vpop.f32.mrf.mxu1 }
 0x3e6   : > { %1664 = vst.msk [vmem:[#allocation2 + $0x90] sm:$0xff] %vm12749_vm3, %v1632_v46  ;;  %v2071_v14 = vsel %vm12754_vm12, %v2052_v58, %v2070_v56  ;;  %v2430_v46 = vor.u32 %v2428_v19, %v2418_v23 }
 0x3e7   : > { %v2133_v37 = vor.u32 %v2132_v63, %v2129_v25  ;;  %v2403_v21 = vshll.u32 %v2350_v9, 16 }
 0x3e8   : > { %2601 = vmatpush.bf16.msra.mxu0 %v8026_v11 }
 0x3e9   : > { %v2134_v20 = vsel %vm12754_vm12, %v2115_v41, %v2133_v37 }
 0x3ed   : > { %v1634_v35 = vpop.permute.xlu1 %1633  ;;  %v1741_v36 = vld [vmem:[#allocation2 + $0x90] sm:$0xff] }
 0x3ee   : > { %1665 = vst.msk [vmem:[#allocation2 + $0xa0] sm:$0xff] %vm12749_vm3, %v1634_v35  ;;  %v1799_v0 = vpack.c.bf16 %v1741_v36, %v1739_v47 }
 0x3ef   : > { %2253 = vmatmul.bf16.gmra.mxu2 %v2071_v14 }
 0x3f0   : > { %1948 = vmatmul.bf16.gmra.mxu0 %v1799_v0  ;;  %v2432_v8 = vshll.u32 %v1799_v0, 16  ;;  %v2444_v14 = vshrl.u32 %v1799_v0, 16 }
 0x3f2   : > { %7451 = vmatmul.msk.bf16.gmra.mxu1 %vm12751_vm14, %v1806_v57  ;;  %v2434_v1 = vrot.slane %v2432_v8, 1 }
 0x3f4   : > { %7505 = vmatmul.msk.bf16.gmra.mxu3 %vm12751_vm14, %v2134_v20  ;;  %v9336_v58 = vsel %vm12755_vm11, %v2430_v46, %v2434_v1  ;;  %v2446_v19 = vor.u32 %v2444_v14, %v2434_v1  ;;  %v9361_v14 = vpop.f32.mrf.mxu1 }
 0x3f5   : > { %v1743_v47 = vld [vmem:[#allocation2 + $0xa0] sm:$0xff] }
 0x3f6   : > { %v1761_v25 = vpack.c.bf16 %v1743_v47, %v1741_v36  ;;  %v9338_v63 = vpack.c.bf16 %v1745_v60, %v1743_v47  ;;  %v2405_v36 = vrot.slane %v2403_v21, 1  ;;  %v8025_v21 = vld [vmem:[%s12702_s7 + $0xd8] sm:$0xff] }
 0x3f7   : > { %2602 = vmatpush.bf16.msra.mxu0 %v8025_v21 }
 0x3f8   : > { %v2082_v35 = vshrl.u32 %v1761_v25, 16  ;;  %v2085_v59 = vshll.u32 %v1761_v25, 16  ;;  %v2448_v23 = vshll.u32 %v9338_v63, 16  ;;  %v2401_v25 = vshrl.u32 %v2350_v9, 16  ;;  %v9370_v9 = vpop.f32.mrf.mxu3 }
 0x3fa   : > { %v2084_v57 = vrot.slane %v2082_v35, 3  ;;  %v2087_v41 = vrot.slane %v2085_v59, 4  ;;  %v9344_v8 = vrot.slane %v2448_v23, 1  ;;  %v2406_v59 = vor.u32 %v2405_v36, %v2401_v25 }
 0x3fb   : > { %v1934_v46 = vpop.f32.mrf.mxu0 }
 0x3fc   : > { %v9346_v20 = vadd.f32 %v1977_v15, %v1934_v46  ;;  %v2088_v47 = vor.u32 %v2087_v41, %v2084_v57  ;;  %v9350_v0 = vsel %vm12755_vm11, %v2446_v19, %v9344_v8  ;;  %v2411_v1 = vsel %vm12755_vm11, %v2406_v59, %v9175_v48  ;;  %v8024_v48 = vld [vmem:[%s12702_s7 + $0xd0] sm:$0xff]  ;;  %v8022_v15 = vld [vmem:[%s12702_s7 + $0xc0] sm:$0xff] }
 0x3fd   : > { %2603 = vmatpush.bf16.msra.mxu0 %v8024_v48 }
 0x3fe   : > { %v2089_v35 = vsel %vm12754_vm12, %v2070_v56, %v2088_v47  ;;  %v9365_v56 = vpop.f32.mrf.mxu1 }
 0x3ff   : > { %2258 = vmatmul.bf16.gmra.mxu2 %v2089_v35 }
 0x400   : > { %1953 = vmatmul.bf16.gmra.mxu0 %v9338_v63  ;;  %v9376_v23 = vpop.f32.mrf.mxu3 }
 0x402   : > { %7579 = vmatmul.msk.bf16.vlgmr.msra.gmra.mxu1 %vm12751_vm14, %v2411_v1 }
 0x404   : > { %7506 = vmatmul.msk.bf16.gmra.mxu3 %vm12751_vm14, %v2133_v37 }
 0x406   : > { %v9372_v37 = vpop.f32.mrf.mxu1 }
 0x408   : > { %v9384_v11 = vpop.f32.mrf.mxu3 }
 0x40e   : > { %v9381_v41 = vpop.f32.mrf.mxu1 }
 0x410   : > { %v9395_v35 = vpop.f32.mrf.mxu3 }
 0x412   : > { %7580 = vmatmul.msk.bf16.gmra.mxu1 %vm12751_vm14, %v9184_v62  ;;  %v8023_v62 = vld [vmem:[%s12702_s7 + $0xc8] sm:$0xff] }
 0x413   : > { %2604 = vmatpush.bf16.msra.mxu0 %v8023_v62 }
 0x417   : > { %2605 = vmatpush.bf16.msra.mxu0 %v8022_v15 }
 0x422   : > { %7581 = vmatmul.msk.bf16.gmra.mxu1 %vm12751_vm14, %v9213_v53  ;;  %v9389_v53 = vpop.f32.mrf.mxu1 }
 0x428   : > { %v1642_v57 = vpop.permute.xlu2 %1641 }
 0x429   : > { %1669 = vst.msk [vmem:[#allocation2 + $0xe0] sm:$0xff] %vm12749_vm3, %v1642_v57 }
 0x42a   : > { %v9397_v62 = vpop.f32.mrf.mxu1 }
 0x42f   : > { %v1638_v19 = vpop.permute.xlu0 %1637 }
 0x430   : > { %1667 = vst.msk [vmem:[#allocation2 + $0xc0] sm:$0xff] %vm12749_vm3, %v1638_v19  ;;  %v1751_v19 = vld [vmem:[#allocation2 + $0xe0] sm:$0x7f] }
 0x432   : > { %7582 = vmatmul.msk.bf16.gmra.mxu1 %vm12751_vm14, %v9280_v6 }
 0x437   : > { %v1640_v46 = vpop.permute.xlu1 %1639  ;;  %v1747_v36 = vld [vmem:[#allocation2 + $0xc0] sm:$0xff] }
 0x438   : > { %1668 = vst.msk [vmem:[#allocation2 + $0xd0] sm:$0xff] %vm12749_vm3, %v1640_v46  ;;  %v1763_v25 = vpack.c.bf16 %v1747_v36, %v1745_v60  ;;  %v2460_v60 = vshrl.u32 %v9338_v63, 16  ;;  %v9407_v46 = vpop.f32.mrf.mxu0 }
 0x43a   : > { %v2100_v59 = vshrl.u32 %v1763_v25, 16  ;;  %v2103_v1 = vshll.u32 %v1763_v25, 16  ;;  %v9409_v25 = vpop.f32.mrf.mxu3 }
 0x43c   : > { %v2102_v21 = vrot.slane %v2100_v59, 3  ;;  %v2105_v48 = vrot.slane %v2103_v1, 4 }
 0x43e   : > { %v2106_v6 = vor.u32 %v2105_v48, %v2102_v21 }
 0x43f   : > { %v1749_v57 = vld [vmem:[#allocation2 + $0xd0] sm:$0xff] }
 0x440   : > { %v2107_v51 = vsel %vm12754_vm12, %v2088_v47, %v2106_v6  ;;  %v1765_v22 = vpack.c.bf16 %v1751_v19, %v1749_v57  ;;  %v9400_v26 = vpack.c.bf16 %v1749_v57, %v1747_v36  ;;  %v2348_v47 = vld [vmem:[#allocation2 + $0xf8] sm:$0x1]  ;;  %v2462_v36 = vor.u32 %v2460_v60, %v9344_v8  ;;  %v9424_v8 = vld [vmem:[#allocation2 + $0xe0] sm:$0xff] }
 0x441   : > { %2263 = vmatmul.bf16.gmra.mxu2 %v2107_v51  ;;  %v2362_v63 = vpack.c.bf16 %v2348_v47, %v9322_v18  ;;  %v2486_v60 = vor.u32 %v2484_v3, %v9302_v5  ;;  %v1805_v18 = vpack.c.bf16 %v9424_v8, %v9424_v8 }
 0x442   : > { %1958 = vmatmul.bf16.gmra.mxu0 %v9400_v26  ;;  %7583 = vmatmul.msk.bf16.gmra.mxu1 %vm12751_vm14, %v9310_v50  ;;  %v2464_v15 = vshll.u32 %v9400_v26, 16  ;;  %v2118_v59 = vshrl.u32 %v1765_v22, 16  ;;  %v2121_v1 = vshll.u32 %v1765_v22, 16  ;;  %v9418_v50 = vpop.f32.mrf.mxu1  ;;  %v9422_v31 = vpop.f32.mrf.mxu3 }
 0x443   : > { %v2488_v4 = vshll.u32 %v2362_v63, 16 }
 0x444   : > { %v9412_v21 = vrot.slane %v2464_v15, 1  ;;  %v2120_v48 = vrot.slane %v2118_v59, 3  ;;  %v2123_v57 = vrot.slane %v2121_v1, 4  ;;  %v2321_v1 = vld [vmem:[#allocation2 + $0x20] sm:$0xfe] }
 0x445   : > { %v1939_v19 = vpop.f32.mrf.mxu0  ;;  %v2349_v3 = vpack.c.bf16 %v9166_v61, %v2321_v1 }
 0x446   : > { %v9416_v51 = vsel %vm12755_vm11, %v2462_v36, %v9412_v21  ;;  %v2124_v22 = vor.u32 %v2123_v57, %v2120_v48  ;;  %v2490_v36 = vrot.slane %v2488_v4, 1  ;;  %v1983_v61 = vadd.f32 %v9365_v56, %v1939_v19 }
 0x447   : > { %v2391_v48 = vshll.u32 %v2349_v3, 16  ;;  %v2389_v54 = vshrl.u32 %v2349_v3, 16 }
 0x448   : > { %v2125_v28 = vsel %vm12754_vm12, %v2106_v6, %v2124_v22  ;;  %v2491_v59 = vsel %vm12755_vm11, %v2486_v60, %v2490_v36 }
 0x44d   : > { %v9436_v5 = vpop.f32.mrf.mxu0 }
 0x44f   : > { %v1997_v15 = vpop.f32.mrf.mxu1 }
 0x451   : > { %2268 = vmatmul.bf16.gmra.mxu2 %v2125_v28  ;;  %v2393_v28 = vrot.slane %v2391_v48, 1 }
 0x452   : > { %1963 = vmatmul.bf16.gmra.mxu0 %v1805_v18  ;;  %v2244_v7 = vpop.f32.mrf.mxu2  ;;  %7584 = vmatmul.msk.bf16.gmra.mxu1 %vm12751_vm14, %v2491_v59  ;;  %v2495_v59 = vshrl.u32 %v2362_v63, 16 }
 0x453   : > { %v9433_v47 = vadd.f32 %v2244_v7, %v9346_v20  ;;  %v2394_v20 = vor.u32 %v2393_v28, %v2389_v54 }
 0x454   : > { %v2497_v7 = vor.u32 %v2495_v59, %v2490_v36 }
 0x455   : > { %v2302_v4 = vpop.f32.mrf.mxu3  ;;  %v2399_v1 = vsel %vm12755_vm11, %v2394_v20, %v9295_v34 }
 0x457   : > { %v9438_v6 = vpop.f32.mrf.mxu1 }
 0x45a   : > { %v9440_v57 = vpop.f32.mrf.mxu2 }
 0x45d   : > { %v9442_v60 = vpop.f32.mrf.mxu3  ;;  %v1944_v18 = vpop.f32.mrf.mxu0 }
 0x45e   : > { %v1988_v34 = vadd.f32 %v9381_v41, %v1944_v18 }
 0x45f   : > { %v9444_v27 = vpop.f32.mrf.mxu1 }
 0x461   : > { %2273 = vmatmul.bf16.gmra.mxu2 %v2124_v22 }
 0x462   : > { %v2249_v55 = vpop.f32.mrf.mxu2  ;;  %2606 = vmatmul.bf16.vlgmr.msra.gmra.mxu0 %v2399_v1  ;;  %7585 = vmatmul.msk.bf16.gmra.mxu1 %vm12751_vm14, %v2497_v7 }
 0x463   : > { %v9450_v48 = vadd.f32 %v2249_v55, %v1983_v61 }
 0x465   : > { %v9452_v39 = vpop.f32.mrf.mxu0 }
 0x467   : > { %v9454_v3 = vpop.f32.mrf.mxu3  ;;  %v9456_v63 = vpop.f32.mrf.mxu1 }
 0x46a   : > { %v9458_v54 = vpop.f32.mrf.mxu2 }
 0x46d   : > { %v1949_v36 = vpop.f32.mrf.mxu0 }
 0x46e   : > { %v1993_v43 = vadd.f32 %v9397_v62, %v1949_v36  ;;  %v2347_v62 = vld [vmem:[#allocation2 + $0xf0] sm:$0x1] }
 0x46f   : > { %v9460_v56 = vpop.f32.mrf.mxu3  ;;  %v9462_v19 = vpop.f32.mrf.mxu1 }
 0x472   : > { %v2254_v22 = vpop.f32.mrf.mxu2  ;;  %2611 = vmatmul.bf16.gmra.mxu0 %v9319_v17 }
 0x473   : > { %v9466_v55 = vadd.f32 %v2254_v22, %v1988_v34 }
 0x475   : > { %v9468_v28 = vpop.f32.mrf.mxu0 }
 0x477   : > { %v9470_v59 = vpop.f32.mrf.mxu3  ;;  %v2009_v20 = vpop.f32.mrf.mxu1 }
 0x47a   : > { %v9472_v7 = vpop.f32.mrf.mxu2 }
 0x47d   : > { %v1954_v61 = vpop.f32.mrf.mxu0 }
 0x47e   : > { %v1998_v1 = vadd.f32 %v1997_v15, %v1954_v61 }
 0x47f   : > { %v9474_v29 = vpop.f32.mrf.mxu3  ;;  %v2650_v32 = vpop.f32.mrf.mxu1 }
 0x482   : > { %v2259_v41 = vpop.f32.mrf.mxu2  ;;  %2616 = vmatmul.bf16.gmra.mxu0 %v9336_v58  ;;  %v2476_v58 = vshrl.u32 %v9400_v26, 16 }
 0x483   : > { %v2260_v17 = vadd.f32 %v2259_v41, %v1993_v43  ;;  %v2361_v43 = vpack.c.bf16 %v2347_v62, %v9424_v8 }
 0x485   : > { %v9478_v18 = vadd.f32 %v2302_v4, %v2260_v17  ;;  %v2480_v4 = vshll.u32 %v2361_v43, 16  ;;  %v9498_v44 = vpop.f32.mrf.mxu0  ;;  %v2492_v12 = vshrl.u32 %v2361_v43, 16 }
 0x487   : > { %v9480_v34 = vpop.f32.mrf.mxu3  ;;  %v2652_v22 = vpop.f32.mrf.mxu1  ;;  %v2482_v17 = vrot.slane %v2480_v4, 1 }
 0x489   : > { %v2494_v26 = vor.u32 %v2492_v12, %v2482_v17 }
 0x48f   : > { %v2319_v40 = vpop.f32.mrf.mxu3  ;;  %v9482_v20 = vpop.f32.mrf.mxu1 }
 0x490   : > { %v2478_v40 = vor.u32 %v2476_v58, %v9412_v21 }
 0x492   : > { %2621 = vmatmul.bf16.gmra.mxu0 %v9350_v0  ;;  %v2483_v0 = vsel %vm12755_vm11, %v2478_v40, %v2482_v17 }
 0x497   : > { %v9485_v15 = vpop.f32.mrf.mxu1 }
 0x49f   : > { %v9487_v61 = vpop.f32.mrf.mxu1 }
 0x4a2   : > { %2626 = vmatmul.bf16.gmra.mxu0 %v9416_v51  ;;  %v9502_v51 = vpop.f32.mrf.mxu2 }
 0x4a7   : > { %v9490_v36 = vpop.f32.mrf.mxu1 }
 0x4af   : > { %v9495_v41 = vpop.f32.mrf.mxu1 }
 0x4b2   : > { %2631 = vmatmul.bf16.gmra.mxu0 %v2483_v0 }
 0x4b7   : > { %v9500_v33 = vpop.f32.mrf.mxu1 }
 0x4bf   : > { %v1959_v49 = vpop.f32.mrf.mxu0  ;;  %v9504_v8 = vpop.f32.mrf.mxu1 }
 0x4c0   : > { %v2003_v30 = vadd.f32 %v9444_v27, %v1959_v49  ;;  %v1980_v27 = vadd.f32 %v9361_v14, %v9407_v46 }
 0x4c2   : > { %2636 = vmatmul.bf16.gmra.mxu0 %v2494_v26 }
 0x4c4   : > { %v2264_v62 = vpop.f32.mrf.mxu2 }
 0x4c5   : > { %v9506_v21 = vadd.f32 %v2264_v62, %v1998_v1  ;;  %v2288_v62 = vadd.f32 %v9370_v9, %v9433_v47 }
 0x4c7   : > { %v9508_v58 = vpop.f32.mrf.mxu0  ;;  %v9510_v4 = vpop.f32.mrf.mxu1 }
 0x4cc   : > { %v9512_v40 = vpop.f32.mrf.mxu2 }
 0x4cf   : > { %v1964_v0 = vpop.f32.mrf.mxu0  ;;  %v9514_v10 = vpop.f32.mrf.mxu1 }
 0x4d0   : > { %v2008_v49 = vadd.f32 %v9462_v19, %v1964_v0 }
 0x4d4   : > { %v2269_v43 = vpop.f32.mrf.mxu2 }
 0x4d5   : > { %v9517_v2 = vadd.f32 %v2269_v43, %v2003_v30  ;;  %v2247_v30 = vadd.f32 %v9440_v57, %v1980_v27 }
 0x4d7   : > { %v1966_v42 = vpop.f32.mrf.mxu0  ;;  %v9519_v12 = vpop.f32.mrf.mxu1  ;;  %v2290_v14 = vadd.f32 %v9376_v23, %v2247_v30  ;;  %v1985_v23 = vadd.f32 %v9372_v37, %v9436_v5 }
 0x4d9   : > { %v2252_v30 = vadd.f32 %v9458_v54, %v1985_v23 }
 0x4dc   : > { %v9521_v17 = vpop.f32.mrf.mxu2 }
 0x4df   : > { %v2607_v1 = vpop.f32.mrf.mxu0  ;;  %v9523_v26 = vpop.f32.mrf.mxu1 }
 0x4e0   : > { %v2651_v52 = vadd.f32 %v2650_v32, %v2607_v1 }
 0x4e2   : > { %v2684_v42 = vadd.f32 %v2651_v52, %v2288_v62 }
 0x4e4   : > { %v2274_v43 = vpop.f32.mrf.mxu2  ;;  %v9537_v45 = vadd.f32 %v9530_v16, %v2684_v42  ;;  %v2293_v42 = vadd.f32 %v9384_v11, %v9450_v48  ;;  %v2295_v11 = vadd.f32 %v9395_v35, %v2252_v30  ;;  %v2298_v35 = vadd.f32 %v9409_v25, %v9466_v55 }
 0x4e5   : > { %v9539_v13 = vadd.f32 %v2274_v43, %v2008_v49 }
 0x4e6   : > { %3195 = vrot.lane.b32.xlu2 %v9537_v45, %s8430_s24  ;;  %v2714_v32 = vadd.f32 2.0, %v9537_v45 }
 0x4e7   : > { %v2609_v9 = vpop.f32.mrf.mxu0  ;;  %v2682_v47 = vpop.f32.mrf.mxu1 }
 0x4e8   : > { %v7586_v52 = vmul.f32 -1.442695, %v2714_v32  ;;  %v2653_v46 = vadd.f32 %v2652_v22, %v2609_v9 }
 0x4ea   : > { %8122 = vpow2.f32 %v7586_v52  ;;  %v2685_v19 = vadd.f32 %v2653_v46, %v2290_v14 }
 0x4ec   : > { %v2276_v57 = vpop.f32.mrf.mxu2  ;;  %v9546_v0 = vadd.f32 %v9530_v16, %v2685_v19 }
 0x4ee   : > { %v2715_v1 = vadd.f32 2.0, %v9546_v0 }
 0x4ef   : > { %v2612_v62 = vpop.f32.mrf.mxu0 }
 0x4f0   : > { %v8123_v27 = vpop.eup %8122  ;;  %v2656_v49 = vadd.f32 %v9482_v20, %v2612_v62  ;;  %v7587_v43 = vmul.f32 -1.442695, %v2715_v1 }
 0x4f1   : > { %v2766_v47 = vadd.f32 1.0, %v8123_v27 }
 0x4f2   : > { %v2686_v22 = vadd.f32 %v2656_v49, %v2293_v42  ;;  %8124 = vpow2.f32 %v7587_v43 }
 0x4f3   : > { %8126 = vrcp.f32 %v2766_v47  ;;  %v2790_v62 = vand.u32 2147483648, %v2766_v47  ;;  %v2788_v42 = vand.u32 2147483647, %v2766_v47  ;;  %vm2784_vm4 = vweird.f32 %v2766_v47 }
 0x4f4   : > { %v9556_v32 = vadd.f32 %v9530_v16, %v2686_v22 }
 0x4f5   : > { %vm2789_vm15 = vcmp.eq.f32.partialorder %v2788_v42, 8.507059e+37 }
 0x4f6   : > { %v2716_v9 = vadd.f32 2.0, %v9556_v32 }
 0x4f7   : > { %v2614_v14 = vpop.f32.mrf.mxu0 }
 0x4f8   : > { %v8125_v52 = vpop.eup %8124  ;;  %v7588_v48 = vmul.f32 -1.442695, %v2716_v9  ;;  %v2658_v20 = vadd.f32 %v9485_v15, %v2614_v14  ;;  %v1990_v9 = vadd.f32 %v9389_v53, %v9452_v39 }
 0x4f9   : > { %v8127_v46 = vpop.eup %8126  ;;  %v2767_v19 = vadd.f32 1.0, %v8125_v52  ;;  %v2791_v52 = vor.u32 1.1754944e-38, %v2790_v62 }
 0x4fa   : > { %v2780_v37 = vmul.f32 %v8127_v46, %v2766_v47  ;;  %8128 = vpow2.f32 %v7588_v48  ;;  %v2687_v5 = vadd.f32 %v2658_v20, %v2295_v11  ;;  %vm2785_vm7 = vweird.f32 %v8127_v46 }
 0x4fb   : > { %8130 = vrcp.f32 %v2767_v19  ;;  %vm2786_vm3 = vmor %vm2784_vm4, %vm2785_vm7  ;;  %v2257_v25 = vadd.f32 %v9472_v7, %v1990_v9  ;;  %v2803_v7 = vand.u32 2147483647, %v2767_v19 }
 0x4fc   : > { %v2781_v57 = vsub.f32 1.0, %v2780_v37  ;;  %v9562_v54 = vadd.f32 %v9530_v16, %v2687_v5  ;;  %v2805_v5 = vand.u32 2147483648, %v2767_v19 }
 0x4fd   : > { %vm2804_vm7 = vcmp.eq.f32.partialorder %v2803_v7, 8.507059e+37 }
 0x4fe   : > { %v2782_v1 = vmul.f32 %v8127_v46, %v2781_v57  ;;  %v2717_v27 = vadd.f32 2.0, %v9562_v54  ;;  %v2300_v57 = vadd.f32 %v9422_v31, %v2257_v25 }
 0x4ff   : > { %v2617_v15 = vpop.f32.mrf.mxu0 }
 0x500   : > { %v8129_v49 = vpop.eup %8128  ;;  %v2783_v43 = vadd.f32 %v8127_v46, %v2782_v1  ;;  %v2661_v23 = vadd.f32 %v9487_v61, %v2617_v15  ;;  %v7589_v22 = vmul.f32 -1.442695, %v2717_v27 }
 0x501   : > { %v8131_v30 = vpop.eup %8130  ;;  %v2768_v14 = vadd.f32 1.0, %v8129_v49 }
 0x502   : > { %v2688_v11 = vadd.f32 %v2661_v23, %v2298_v35  ;;  %v2787_v48 = vsel %vm2786_vm3, %v8127_v46, %v2783_v43  ;;  %v2795_v20 = vmul.f32 %v8131_v30, %v2767_v19  ;;  %vm2800_vm3 = vweird.f32 %v8131_v30 }
 0x503   : > { %8132 = vrcp.f32 %v2768_v14  ;;  %v2792_v47 = vsel %vm2789_vm15, %v2791_v52, %v2787_v48  ;;  %vm2799_vm15 = vweird.f32 %v2767_v19  ;;  %v2806_v43 = vor.u32 1.1754944e-38, %v2805_v5 }
 0x504   : > { %v9572_v55 = vadd.f32 %v9530_v16, %v2688_v11  ;;  %v2796_v61 = vsub.f32 1.0, %v2795_v20  ;;  %8134 = vpow2.f32 %v7589_v22  ;;  %v9574_v37 = vadd.f32 0.0001, %v2792_v47  ;;  %vm2801_vm4 = vmor %vm2799_vm15, %vm2800_vm3 }
 0x505   : > { %v2820_v19 = vand.u32 2147483648, %v2768_v14  ;;  %v2818_v20 = vand.u32 2147483647, %v2768_v14  ;;  %vm2814_vm3 = vweird.f32 %v2768_v14 }
 0x506   : > { %v2718_v39 = vadd.f32 2.0, %v9572_v55  ;;  %v2797_v53 = vmul.f32 %v8131_v30, %v2796_v61  ;;  %3273 = vrot.lane.b32.xlu0 %v9574_v37, %s8433_s30 }
 0x507   : > { %v2619_v46 = vpop.f32.mrf.mxu0 }
 0x508   : > { %v7590_v1 = vmul.f32 -1.442695, %v2718_v39  ;;  %v2663_v62 = vadd.f32 %v9490_v36, %v2619_v46  ;;  %v2798_v27 = vadd.f32 %v8131_v30, %v2797_v53  ;;  %v1995_v53 = vadd.f32 %v9418_v50, %v9468_v28 }
 0x509   : > { %v8133_v35 = vpop.eup %8132  ;;  %v2821_v46 = vor.u32 1.1754944e-38, %v2820_v19 }
 0x50a   : > { %v8135_v42 = vpop.eup %8134  ;;  %v2810_v15 = vmul.f32 %v8133_v35, %v2768_v14  ;;  %8136 = vpow2.f32 %v7590_v1  ;;  %v2689_v49 = vadd.f32 %v2663_v62, %v2300_v57  ;;  %v2802_v23 = vsel %vm2801_vm4, %v8131_v30, %v2798_v27 }
 0x50b   : > { %v2769_v22 = vadd.f32 1.0, %v8135_v42  ;;  %v2807_v52 = vsel %vm2804_vm7, %v2806_v43, %v2802_v23  ;;  %vm2815_vm14 = vweird.f32 %v8133_v35  ;;  %v2262_v62 = vadd.f32 %v9502_v51, %v1995_v53 }
 0x50c   : > { %v2811_v9 = vsub.f32 1.0, %v2810_v15  ;;  %v9582_v11 = vadd.f32 %v9530_v16, %v2689_v49  ;;  %v9584_v31 = vadd.f32 0.0001, %v2807_v52  ;;  %vm2816_vm15 = vmor %vm2814_vm3, %vm2815_vm14  ;;  %vm2819_vm4 = vcmp.eq.f32.partialorder %v2818_v20, 8.507059e+37 }
 0x50d   : > { %8138 = vrcp.f32 %v2769_v22  ;;  %v2835_v23 = vand.u32 2147483648, %v2769_v22  ;;  %v2833_v52 = vand.u32 2147483647, %v2769_v22  ;;  %vm2829_vm7 = vweird.f32 %v2769_v22 }
 0x50e   : > { %v2812_v36 = vmul.f32 %v8133_v35, %v2811_v9  ;;  %v2719_v48 = vadd.f32 2.0, %v9582_v11  ;;  %3197 = vrot.lane.b32.xlu0 %v9546_v0, %s8430_s24  ;;  %3275 = vrot.lane.b32.xlu1 %v9584_v31, %s8433_s30 }
 0x50f   : > { %v2622_v30 = vpop.f32.mrf.mxu0  ;;  %v2836_v20 = vor.u32 1.1754944e-38, %v2835_v23 }
 0x510   : > { %v8137_v25 = vpop.eup %8136  ;;  %v2813_v47 = vadd.f32 %v8133_v35, %v2812_v36  ;;  %v2666_v61 = vadd.f32 %v9495_v41, %v2622_v30  ;;  %v7591_v39 = vmul.f32 -1.442695, %v2719_v48 }
 0x511   : > { %v9594_v5 = vadd.f32 1.0, %v8137_v25 }
 0x512   : > { %v2690_v7 = vadd.f32 %v2666_v61, %v9478_v18  ;;  %v2817_v57 = vsel %vm2816_vm15, %v8133_v35, %v2813_v47  ;;  %8140 = vpow2.f32 %v7591_v39  ;;  %v2305_v18 = vadd.f32 %v9442_v60, %v2262_v62 }
 0x513   : > { %v8139_v1 = vpop.eup %8138  ;;  %8142 = vrcp.f32 %v9594_v5  ;;  %v2822_v14 = vsel %vm2819_vm4, %v2821_v46, %v2817_v57  ;;  %v2850_v30 = vand.u32 2147483648, %v9594_v5  ;;  %vm2834_vm15 = vcmp.eq.f32.partialorder %v2833_v52, 8.507059e+37 }
 0x514   : > { %v9600_v41 = vadd.f32 %v9530_v16, %v2690_v7  ;;  %v2825_v27 = vmul.f32 %v8139_v1, %v2769_v22  ;;  %v9602_v50 = vadd.f32 0.0001, %v2822_v14  ;;  %vm2830_vm14 = vweird.f32 %v8139_v1 }
 0x515   : > { %vm2831_vm3 = vmor %vm2829_vm7, %vm2830_vm14  ;;  %v2308_v22 = vadd.f32 %v9454_v3, %v9506_v21  ;;  %v2848_v53 = vand.u32 2147483647, %v9594_v5  ;;  %vm2844_vm14 = vweird.f32 %v9594_v5  ;;  %v8034_v3 = vld [vmem:[%s12704_s9] sm:$0xff] }
 0x516   : > { %v2720_v28 = vadd.f32 2.0, %v9600_v41  ;;  %v2826_v42 = vsub.f32 1.0, %v2825_v27  ;;  %3507 = vrot.lane.b32.xlu0 %v9537_v45, %s8435_s17  ;;  %3277 = vrot.lane.b32.xlu1 %v9602_v50, %s8433_s30 }
 0x517   : > { %v2624_v51 = vpop.f32.mrf.mxu0  ;;  %3865 = vmatpush.bf16.msrb.mxu2 %v8034_v3 }
 0x518   : > { %v8141_v35 = vpop.eup %8140  ;;  %v7592_v15 = vmul.f32 -1.442695, %v2720_v28  ;;  %v2668_v49 = vadd.f32 %v9500_v33, %v2624_v51  ;;  %v2827_v43 = vmul.f32 %v8139_v1, %v2826_v42  ;;  %v2851_v28 = vor.u32 1.1754944e-38, %v2850_v30 }
 0x519   : > { %v8143_v9 = vpop.eup %8142  ;;  %v9611_v36 = vadd.f32 1.0, %v8141_v35 }
 0x51a   : > { %v2840_v60 = vmul.f32 %v8143_v9, %v9594_v5  ;;  %8144 = vpow2.f32 %v7592_v15  ;;  %v2691_v19 = vadd.f32 %v2668_v49, %v2305_v18  ;;  %v2828_v45 = vadd.f32 %v8139_v1, %v2827_v43 }
 0x51b   : > { %8146 = vrcp.f32 %v9611_v36  ;;  %vm2845_vm4 = vweird.f32 %v8143_v9  ;;  %v2865_v43 = vand.u32 2147483648, %v9611_v36  ;;  %v2863_v23 = vand.u32 2147483647, %v9611_v36 }
 0x51c   : > { %v2841_v48 = vsub.f32 1.0, %v2840_v60  ;;  %v9616_v33 = vadd.f32 %v9530_v16, %v2691_v19  ;;  %v2832_v25 = vsel %vm2831_vm3, %v8139_v1, %v2828_v45  ;;  %vm2846_vm7 = vmor %vm2844_vm14, %vm2845_vm4  ;;  %vm2849_vm3 = vcmp.eq.f32.partialorder %v2848_v53, 8.507059e+37 }
 0x51d   : > { %v2837_v61 = vsel %vm2834_vm15, %v2836_v20, %v2832_v25  ;;  %vm2859_vm4 = vweird.f32 %v9611_v36  ;;  %v2866_v25 = vor.u32 1.1754944e-38, %v2865_v43 }
 0x51e   : > { %v2842_v47 = vmul.f32 %v8143_v9, %v2841_v48  ;;  %v2721_v39 = vadd.f32 2.0, %v9616_v33  ;;  %3509 = vrot.lane.b32.xlu1 %v9546_v0, %s8435_s17  ;;  %3201 = vrot.lane.b32.xlu0 %v9562_v54, %s8430_s24  ;;  %v9627_v46 = vadd.f32 0.0001, %v2837_v61  ;;  %v2000_v0 = vadd.f32 %v9438_v6, %v9498_v44 }
 0x51f   : > { %v2627_v7 = vpop.f32.mrf.mxu0 }
 0x520   : > { %v8145_v57 = vpop.eup %8144  ;;  %v2843_v1 = vadd.f32 %v8143_v9, %v2842_v47  ;;  %v2671_v62 = vadd.f32 %v9504_v8, %v2627_v7  ;;  %v7593_v21 = vmul.f32 -1.442695, %v2721_v39  ;;  %3279 = vrot.lane.b32.xlu2 %v9627_v46, %s8433_s30  ;;  %v2267_v18 = vadd.f32 %v9512_v40, %v2000_v0 }
 0x521   : > { %v8147_v14 = vpop.eup %8146  ;;  %v9637_v27 = vadd.f32 1.0, %v8145_v57  ;;  %v2313_v7 = vadd.f32 %v9470_v59, %v9517_v2  ;;  %v2005_v0 = vadd.f32 %v9456_v63, %v9508_v58 }
 0x522   : > { %v2692_v5 = vadd.f32 %v2671_v62, %v2308_v22  ;;  %v2847_v42 = vsel %vm2846_vm7, %v8143_v9, %v2843_v1  ;;  %v2855_v8 = vmul.f32 %v8147_v14, %v9611_v36  ;;  %vm2860_vm15 = vweird.f32 %v8147_v14 }
 0x523   : > { %8148 = vrcp.f32 %v9637_v27  ;;  %v2852_v6 = vsel %vm2849_vm3, %v2851_v28, %v2847_v42  ;;  %v2310_v9 = vadd.f32 %v9460_v56, %v2267_v18  ;;  %vm2861_vm14 = vmor %vm2859_vm4, %vm2860_vm15  ;;  %vm2864_vm7 = vcmp.eq.f32.partialorder %v2863_v23, 8.507059e+37 }
 0x524   : > { %v9645_v44 = vadd.f32 %v9530_v16, %v2692_v5  ;;  %v2856_v51 = vsub.f32 1.0, %v2855_v8  ;;  %8150 = vpow2.f32 %v7593_v21  ;;  %v9647_v35 = vadd.f32 0.0001, %v2852_v6 }
 0x525   : > { %v2880_v36 = vand.u32 2147483648, %v9637_v27  ;;  %v2878_v57 = vand.u32 2147483647, %v9637_v27  ;;  %vm2874_vm15 = vweird.f32 %v9637_v27  ;;  %v2272_v42 = vadd.f32 %v9521_v17, %v2005_v0 }
 0x526   : > { %v2722_v15 = vadd.f32 2.0, %v9645_v44  ;;  %v2857_v49 = vmul.f32 %v8147_v14, %v2856_v51  ;;  %3511 = vrot.lane.b32.xlu0 %v9556_v32, %s8435_s17  ;;  %3281 = vrot.lane.b32.xlu1 %v9647_v35, %s8433_s30 }
 0x527   : > { %v2629_v40 = vpop.f32.mrf.mxu0  ;;  %v2881_v59 = vor.u32 1.1754944e-38, %v2880_v36  ;;  %v2315_v6 = vadd.f32 %v9474_v29, %v2272_v42 }
 0x528   : > { %v7594_v52 = vmul.f32 -1.442695, %v2722_v15  ;;  %v2673_v60 = vadd.f32 %v9510_v4, %v2629_v40  ;;  %v2858_v19 = vadd.f32 %v8147_v14, %v2857_v49  ;;  %3199 = vrot.lane.b32.xlu2 %v9556_v32, %s8430_s24 }
 0x529   : > { %v8149_v45 = vpop.eup %8148 }
 0x52a   : > { %v8151_v48 = vpop.eup %8150  ;;  %v2870_v20 = vmul.f32 %v8149_v45, %v9637_v27  ;;  %8152 = vpow2.f32 %v7594_v52  ;;  %v2693_v30 = vadd.f32 %v2673_v60, %v2310_v9  ;;  %v2862_v47 = vsel %vm2861_vm14, %v8147_v14, %v2858_v19 }
 0x52b   : > { %v9662_v56 = vadd.f32 1.0, %v8151_v48  ;;  %v2867_v4 = vsel %vm2864_vm7, %v2866_v25, %v2862_v47  ;;  %vm2875_vm3 = vweird.f32 %v8149_v45  ;;  %vm2879_vm14 = vcmp.eq.f32.partialorder %v2878_v57, 8.507059e+37 }
 0x52c   : > { %v2871_v61 = vsub.f32 1.0, %v2870_v20  ;;  %v9665_v39 = vadd.f32 %v9530_v16, %v2693_v30  ;;  %v9667_v22 = vadd.f32 0.0001, %v2867_v4  ;;  %vm2876_vm4 = vmor %vm2874_vm15, %vm2875_vm3 }
 0x52d   : > { %8154 = vrcp.f32 %v9662_v56  ;;  %v2895_v40 = vand.u32 2147483648, %v9662_v56  ;;  %v2893_v29 = vand.u32 2147483647, %v9662_v56  ;;  %vm2889_vm3 = vweird.f32 %v9662_v56 }
 0x52e   : > { %v2872_v32 = vmul.f32 %v8149_v45, %v2871_v61  ;;  %v2723_v53 = vadd.f32 2.0, %v9665_v39  ;;  %3513 = vrot.lane.b32.xlu1 %v9562_v54, %s8435_s17  ;;  %3205 = vrot.lane.b32.xlu0 %v9582_v11, %s8430_s24  ;;  %v2318_v61 = vadd.f32 %v9480_v34, %v9539_v13 }
 0x52f   : > { %v2632_v1 = vpop.f32.mrf.mxu0 }
 0x530   : > { %v8153_v62 = vpop.eup %8152  ;;  %v2873_v3 = vadd.f32 %v8149_v45, %v2872_v32  ;;  %v2676_v21 = vadd.f32 %v9514_v10, %v2632_v1  ;;  %v7595_v14 = vmul.f32 -1.442695, %v2723_v53  ;;  %3283 = vrot.lane.b32.xlu2 %v9667_v22, %s8433_s30 }
 0x531   : > { %v9683_v2 = vadd.f32 1.0, %v8153_v62 }
 0x532   : > { %v2694_v54 = vadd.f32 %v2676_v21, %v2313_v7  ;;  %v2877_v28 = vsel %vm2876_vm4, %v8149_v45, %v2873_v3  ;;  %8156 = vpow2.f32 %v7595_v14  ;;  %v2896_v45 = vor.u32 1.1754944e-38, %v2895_v40 }
 0x533   : > { %v8155_v5 = vpop.eup %8154  ;;  %8158 = vrcp.f32 %v9683_v2  ;;  %v2882_v63 = vsel %vm2879_vm14, %v2881_v59, %v2877_v28  ;;  %vm2894_vm4 = vcmp.eq.f32.partialorder %v2893_v29, 8.507059e+37 }
 0x534   : > { %v9690_v10 = vadd.f32 %v9530_v16, %v2694_v54  ;;  %v2885_v58 = vmul.f32 %v8155_v5, %v9662_v56  ;;  %v9693_v27 = vadd.f32 0.0001, %v2882_v63  ;;  %vm2890_vm7 = vweird.f32 %v8155_v5 }
 0x535   : > { %vm2891_vm15 = vmor %vm2889_vm3, %vm2890_vm7  ;;  %v2908_v56 = vand.u32 2147483647, %v9683_v2  ;;  %vm2904_vm7 = vweird.f32 %v9683_v2 }
 0x536   : > { %v2724_v8 = vadd.f32 2.0, %v9690_v10  ;;  %v2886_v18 = vsub.f32 1.0, %v2885_v58  ;;  %3515 = vrot.lane.b32.xlu0 %v9572_v55, %s8435_s17  ;;  %3285 = vrot.lane.b32.xlu1 %v9693_v27, %s8433_s30 }
 0x537   : > { %v2634_v17 = vpop.f32.mrf.mxu0 }
 0x538   : > { %v8157_v51 = vpop.eup %8156  ;;  %v7596_v15 = vmul.f32 -1.442695, %v2724_v8  ;;  %v2678_v49 = vadd.f32 %v9519_v12, %v2634_v17  ;;  %v2887_v43 = vmul.f32 %v8155_v5, %v2886_v18  ;;  %3203 = vrot.lane.b32.xlu2 %v9572_v55, %s8430_s24  ;;  %v2910_v55 = vand.u32 2147483648, %v9683_v2 }
 0x539   : > { %v8159_v23 = vpop.eup %8158  ;;  %v2775_v9 = vadd.f32 1.0, %v8157_v51 }
 0x53a   : > { %v2900_v52 = vmul.f32 %v8159_v23, %v9683_v2  ;;  %8160 = vpow2.f32 %v7596_v15  ;;  %v2695_v60 = vadd.f32 %v2678_v49, %v2315_v6  ;;  %v2888_v19 = vadd.f32 %v8155_v5, %v2887_v43 }
 0x53b   : > { %8162 = vrcp.f32 %v2775_v9  ;;  %vm2905_vm14 = vweird.f32 %v8159_v23  ;;  %v2911_v34 = vor.u32 1.1754944e-38, %v2910_v55  ;;  %v2925_v2 = vand.u32 2147483648, %v2775_v9 }
 0x53c   : > { %v2901_v12 = vsub.f32 1.0, %v2900_v52  ;;  %v9709_v48 = vadd.f32 %v9530_v16, %v2695_v60  ;;  %v2892_v20 = vsel %vm2891_vm15, %v8155_v5, %v2888_v19  ;;  %vm2906_vm3 = vmor %vm2904_vm7, %vm2905_vm14  ;;  %vm2909_vm15 = vcmp.eq.f32.partialorder %v2908_v56, 8.507059e+37 }
 0x53d   : > { %v2897_v25 = vsel %vm2894_vm4, %v2896_v45, %v2892_v20  ;;  %v2923_v28 = vand.u32 2147483647, %v2775_v9  ;;  %vm2919_vm14 = vweird.f32 %v2775_v9  ;;  %v2926_v58 = vor.u32 1.1754944e-38, %v2925_v2 }
 0x53e   : > { %v2902_v30 = vmul.f32 %v8159_v23, %v2901_v12  ;;  %v2725_v47 = vadd.f32 2.0, %v9709_v48  ;;  %3517 = vrot.lane.b32.xlu1 %v9582_v11, %s8435_s17  ;;  %3209 = vrot.lane.b32.xlu0 %v9616_v33, %s8430_s24  ;;  %v9720_v4 = vadd.f32 0.0001, %v2897_v25 }
 0x53f   : > { %v2637_v32 = vpop.f32.mrf.mxu0 }
 0x540   : > { %v8161_v36 = vpop.eup %8160  ;;  %v2903_v53 = vadd.f32 %v8159_v23, %v2902_v30  ;;  %v2681_v7 = vadd.f32 %v9523_v26, %v2637_v32  ;;  %v7597_v57 = vmul.f32 -1.442695, %v2725_v47  ;;  %3287 = vrot.lane.b32.xlu2 %v9720_v4, %s8433_s30 }
 0x541   : > { %v8163_v1 = vpop.eup %8162  ;;  %v2776_v13 = vadd.f32 1.0, %v8161_v36 }
 0x542   : > { %v2696_v11 = vadd.f32 %v2681_v7, %v2318_v61  ;;  %v2907_v62 = vsel %vm2906_vm3, %v8159_v23, %v2903_v53  ;;  %v2915_v3 = vmul.f32 %v8163_v1, %v2775_v9  ;;  %vm2920_vm4 = vweird.f32 %v8163_v1 }
 0x543   : > { %8164 = vrcp.f32 %v2776_v13  ;;  %v2912_v14 = vsel %vm2909_vm15, %v2911_v34, %v2907_v62  ;;  %vm2921_vm7 = vmor %vm2919_vm14, %vm2920_vm4  ;;  %vm2924_vm3 = vcmp.eq.f32.partialorder %v2923_v28, 8.507059e+37  ;;  %v2940_v40 = vand.u32 2147483648, %v2776_v13 }
 0x544   : > { %v9728_v21 = vadd.f32 %v9530_v16, %v2696_v11  ;;  %v2916_v0 = vsub.f32 1.0, %v2915_v3  ;;  %8166 = vpow2.f32 %v7597_v57  ;;  %v9730_v26 = vadd.f32 0.0001, %v2912_v14 }
 0x545   : > { %v2938_v23 = vand.u32 2147483647, %v2776_v13  ;;  %vm2934_vm4 = vweird.f32 %v2776_v13  ;;  %v2941_v52 = vor.u32 1.1754944e-38, %v2940_v40 }
 0x546   : > { %v2726_v59 = vadd.f32 2.0, %v9728_v21  ;;  %v2917_v54 = vmul.f32 %v8163_v1, %v2916_v0  ;;  %3519 = vrot.lane.b32.xlu0 %v9600_v41, %s8435_s17  ;;  %3289 = vrot.lane.b32.xlu1 %v9730_v26, %s8433_s30 }
 0x547   : > { %v2639_v5 = vpop.f32.mrf.mxu0 }
 0x548   : > { %v7598_v16 = vmul.f32 -1.442695, %v2726_v59  ;;  %v2918_v42 = vadd.f32 %v8163_v1, %v2917_v54  ;;  %3207 = vrot.lane.b32.xlu2 %v9600_v41, %s8430_s24  ;;  %v9786_v54 = vpop.permute.xlu2 %3195 }
 0x549   : > { %v8165_v63 = vpop.eup %8164 }
 0x54a   : > { %v8167_v8 = vpop.eup %8166  ;;  %v2930_v18 = vmul.f32 %v8165_v63, %v2776_v13  ;;  %8168 = vpow2.f32 %v7598_v16  ;;  %v2922_v6 = vsel %vm2921_vm7, %v8163_v1, %v2918_v42  ;;  %vm2935_vm15 = vweird.f32 %v8165_v63 }
 0x54b   : > { %v2927_v17 = vsel %vm2924_vm3, %v2926_v58, %v2922_v6  ;;  %v2777_v51 = vadd.f32 1.0, %v8167_v8  ;;  %vm2936_vm14 = vmor %vm2934_vm4, %vm2935_vm15  ;;  %vm2939_vm7 = vcmp.eq.f32.partialorder %v2938_v23, 8.507059e+37 }
 0x54c   : > { %v2931_v15 = vsub.f32 1.0, %v2930_v18  ;;  %v9739_v49 = vadd.f32 0.0001, %v2927_v17 }
 0x54d   : > { %8170 = vrcp.f32 %v2777_v51  ;;  %v2955_v20 = vand.u32 2147483648, %v2777_v51  ;;  %v2953_v25 = vand.u32 2147483647, %v2777_v51  ;;  %vm2949_vm15 = vweird.f32 %v2777_v51 }
 0x54e   : > { %v2932_v43 = vmul.f32 %v8165_v63, %v2931_v15  ;;  %3521 = vrot.lane.b32.xlu1 %v9616_v33, %s8435_s17  ;;  %3213 = vrot.lane.b32.xlu0 %v9665_v39, %s8430_s24  ;;  %v2996_v15 = vand.u32 2147483647, %v9574_v37 }
 0x54f   : > { %v2956_v32 = vor.u32 1.1754944e-38, %v2955_v20 }
 0x550   : > { %v8169_v41 = vpop.eup %8168  ;;  %v2933_v29 = vadd.f32 %v8165_v63, %v2932_v43  ;;  %3291 = vrot.lane.b32.xlu2 %v9739_v49, %s8433_s30 }
 0x551   : > { %v2778_v9 = vadd.f32 1.0, %v8169_v41  ;;  %v3011_v41 = vand.u32 2147483647, %v9584_v31 }
 0x552   : > { %v2937_v60 = vsel %vm2936_vm14, %v8165_v63, %v2933_v29  ;;  %vm2954_vm14 = vcmp.eq.f32.partialorder %v2953_v25, 8.507059e+37  ;;  %v3013_v29 = vand.u32 2147483648, %v9584_v31  ;;  %v3026_v25 = vand.u32 2147483647, %v9602_v50 }
 0x553   : > { %v8171_v19 = vpop.eup %8170  ;;  %8172 = vrcp.f32 %v2778_v9  ;;  %v2942_v12 = vsel %vm2939_vm7, %v2941_v52, %v2937_v60  ;;  %v2970_v7 = vand.u32 2147483648, %v2778_v9  ;;  %v2968_v13 = vand.u32 2147483647, %v2778_v9 }
 0x554   : > { %v2945_v45 = vmul.f32 %v8171_v19, %v2777_v51  ;;  %v9747_v55 = vadd.f32 0.0001, %v2942_v12  ;;  %vm2950_vm3 = vweird.f32 %v8171_v19  ;;  %vm2964_vm9 = vweird.f32 %v2778_v9 }
 0x555   : > { %vm2951_vm4 = vmor %vm2949_vm15, %vm2950_vm3  ;;  %v2971_v11 = vor.u32 1.1754944e-38, %v2970_v7  ;;  %vm2969_vm15 = vcmp.eq.f32.partialorder %v2968_v13, 8.507059e+37  ;;  %8174 = vrcp.f32 %v9574_v37  ;;  %v3028_v12 = vand.u32 2147483648, %v9602_v50 }
 0x556   : > { %v2946_v33 = vsub.f32 1.0, %v2945_v45  ;;  %3523 = vrot.lane.b32.xlu0 %v9645_v44, %s8435_s17  ;;  %3293 = vrot.lane.b32.xlu1 %v9747_v55, %s8433_s30  ;;  %8176 = vrcp.f32 %v9584_v31  ;;  %v3014_v7 = vor.u32 1.1754944e-38, %v3013_v29 }
 0x557   : > { %8178 = vrcp.f32 %v9602_v50 }
 0x558   : > { %v2947_v30 = vmul.f32 %v8171_v19, %v2946_v33  ;;  %3211 = vrot.lane.b32.xlu2 %v9645_v44, %s8430_s24  ;;  %8180 = vrcp.f32 %v9627_v46 }
 0x559   : > { %v8173_v47 = vpop.eup %8172 }
 0x55a   : > { %v2960_v61 = vmul.f32 %v8173_v47, %v2778_v9  ;;  %v2948_v56 = vadd.f32 %v8171_v19, %v2947_v30  ;;  %vm2965_vm7 = vweird.f32 %v8173_v47 }
 0x55b   : > { %vm2966_vm3 = vmor %vm2964_vm9, %vm2965_vm7 }
 0x55c   : > { %v2961_v36 = vsub.f32 1.0, %v2960_v61  ;;  %v2952_v53 = vsel %vm2951_vm4, %v8171_v19, %v2948_v56  ;;  %vm2992_vm4 = vweird.f32 %v9574_v37 }
 0x55d   : > { %v2957_v57 = vsel %vm2954_vm14, %v2956_v32, %v2952_v53 }
 0x55e   : > { %v2962_v1 = vmul.f32 %v8173_v47, %v2961_v36  ;;  %v9755_v34 = vadd.f32 0.0001, %v2957_v57  ;;  %3217 = vrot.lane.b32.xlu0 %v9709_v48, %s8430_s24  ;;  %3525 = vrot.lane.b32.xlu1 %v9665_v39, %s8435_s17  ;;  %v8175_v39 = vpop.eup %8174 }
 0x55f   : > { %v9774_v0 = vpop.eup %8176  ;;  %v2988_v59 = vmul.f32 %v8175_v39, %v9574_v37  ;;  %vm2993_vm9 = vweird.f32 %v8175_v39 }
 0x560   : > { %v2963_v44 = vadd.f32 %v8173_v47, %v2962_v1  ;;  %3295 = vrot.lane.b32.xlu2 %v9755_v34, %s8433_s30  ;;  %v9778_v2 = vpop.eup %8178  ;;  %vm3008_vm14 = vweird.f32 %v9774_v0  ;;  %vm9809_vm7 = vmor %vm2992_vm4, %vm2993_vm9  ;;  %vm3007_vm9 = vweird.f32 %v9584_v31 }
 0x561   : > { %v3018_v28 = vmul.f32 %v9778_v2, %v9602_v50  ;;  %v2989_v5 = vsub.f32 1.0, %v2988_v59  ;;  %v9790_v42 = vpop.eup %8180  ;;  %vm9834_vm4 = vmor %vm3007_vm9, %vm3008_vm14  ;;  %vm3012_vm14 = vcmp.eq.f32.partialorder %v3011_v41, 8.507059e+37 }
 0x562   : > { %v2967_v62 = vsel %vm2966_vm3, %v8173_v47, %v2963_v44  ;;  %v3033_v18 = vmul.f32 %v9790_v42, %v9627_v46  ;;  %vm3023_vm3 = vweird.f32 %v9778_v2  ;;  %v3029_v44 = vor.u32 1.1754944e-38, %v3028_v12 }
 0x563   : > { %v2972_v3 = vsel %vm2969_vm15, %v2971_v11, %v2967_v62  ;;  %v3019_v63 = vsub.f32 1.0, %v3018_v28  ;;  %v2990_v58 = vmul.f32 %v8175_v39, %v2989_v5  ;;  %vm9821_vm15 = vcmp.eq.f32.partialorder %v2996_v15, 8.507059e+37  ;;  %v8382_v28 = vld [vmem:[%s8596_s28] sm:$0xff]  ;;  %v9884_v15 = vld [vmem:[%s8596_s28 + $0x10] sm:$0xff] }
 0x564   : > { %v9763_v14 = vadd.f32 0.0001, %v2972_v3  ;;  %v3034_v40 = vsub.f32 1.0, %v3033_v18  ;;  %v3041_v11 = vand.u32 2147483647, %v9627_v46  ;;  %vm3038_vm9 = vweird.f32 %v9790_v42 }
 0x565   : > { %v3020_v17 = vmul.f32 %v9778_v2, %v3019_v63  ;;  %v2991_v51 = vadd.f32 %v8175_v39, %v2990_v58  ;;  %v8383_v58 = vld [vmem:[%s8596_s28 + $0x8] sm:$0xff] }
 0x566   : > { %3297 = vrot.lane.b32.xlu0 %v9763_v14, %s8433_s30  ;;  %3527 = vrot.lane.b32.xlu1 %v9690_v10, %s8435_s17  ;;  %v3035_v32 = vmul.f32 %v9790_v42, %v3034_v40 }
 0x567   : > { %v3021_v9 = vadd.f32 %v9778_v2, %v3020_v17  ;;  %v2995_v60 = vsel %vm9809_vm7, %v8175_v39, %v2991_v51  ;;  %vm3022_vm7 = vweird.f32 %v9602_v50  ;;  %v3056_v17 = vand.u32 2147483647, %v9647_v35 }
 0x568   : > { %3215 = vrot.lane.b32.xlu2 %v9690_v10, %s8430_s24  ;;  %v3003_v10 = vmul.f32 %v9774_v0, %v9584_v31  ;;  %vm9848_vm13 = vmor %vm3022_vm7, %vm3023_vm3  ;;  %vm3027_vm3 = vcmp.eq.f32.partialorder %v3026_v25, 8.507059e+37 }
 0x569   : > { %v3025_v57 = vsel %vm9848_vm13, %v9778_v2, %v3021_v9  ;;  %v3043_v2 = vand.u32 2147483648, %v9627_v46 }
 0x56a   : > { %v3004_v16 = vsub.f32 1.0, %v3003_v10  ;;  %v3030_v39 = vsel %vm3027_vm3, %v3029_v44, %v3025_v57 }
 0x56e   : > { %3219 = vrot.lane.b32.xlu1 %v9728_v21, %s8430_s24 }
 0x570   : > { %3529 = vrot.lane.b32.xlu2 %v9709_v48, %s8435_s17  ;;  %v3005_v48 = vmul.f32 %v9774_v0, %v3004_v16 }
 0x572   : > { %v3006_v43 = vadd.f32 %v9774_v0, %v3005_v48 }
 0x574   : > { %v3010_v61 = vsel %vm9834_vm4, %v9774_v0, %v3006_v43  ;;  %v3036_v0 = vadd.f32 %v9790_v42, %v3035_v32  ;;  %vm9878_vm4 = vcmp.eq.f32.partialorder %v3041_v11, 8.507059e+37 }
 0x575   : > { %v3015_v62 = vsel %vm3012_vm14, %v3014_v7, %v3010_v61 }
 0x576   : > { %v3016_v48 = vmul.f32 %v8383_v58, %v3015_v62 }
 0x578   : > { %3531 = vrot.lane.b32.xlu2 %v9728_v21, %s8435_s17  ;;  %v9794_v8 = vpop.permute.xlu0 %3273  ;;  %v2998_v21 = vand.u32 2147483648, %v9574_v37 }
 0x579   : > { %8182 = vrcp.f32 %v9794_v8  ;;  %v3323_v18 = vand.u32 2147483648, %v9794_v8  ;;  %vm3317_vm7 = vweird.f32 %v9794_v8  ;;  %v3321_v43 = vand.u32 2147483647, %v9794_v8 }
 0x57a   : > { %v9800_v6 = vpop.permute.xlu2 %3279  ;;  %8184 = vrcp.f32 %v9647_v35  ;;  %v2999_v47 = vor.u32 1.1754944e-38, %v2998_v21  ;;  %v9887_v21 = vmul.f32 %v9884_v15, %v3030_v39 }
 0x57b   : > { %8186 = vrcp.f32 %v9667_v22  ;;  %v3324_v61 = vor.u32 1.1754944e-38, %v3323_v18  ;;  %vm3362_vm11 = vweird.f32 %v9800_v6 }
 0x57c   : > { %v3000_v13 = vsel %vm9821_vm15, %v2999_v47, %v2995_v60  ;;  %vm3037_vm15 = vweird.f32 %v9627_v46  ;;  %v3044_v60 = vor.u32 1.1754944e-38, %v3043_v2 }
 0x57d   : > { %v3001_v5 = vmul.f32 %v8382_v28, %v3000_v13  ;;  %vm9897_vm14 = vmor %vm3037_vm15, %vm3038_vm9  ;;  %vm3322_vm9 = vcmp.eq.f32.partialorder %v3321_v43, 8.507059e+37 }
 0x57f   : > { %v9817_v52 = vpop.eup %8182  ;;  %v3234_v47 = vsub.f32 %v3001_v5, %v9786_v54 }
 0x580   : > { %v3313_v45 = vmul.f32 %v9817_v52, %v9794_v8  ;;  %v9830_v33 = vpop.permute.xlu0 %3197  ;;  %v9838_v30 = vpop.permute.xlu1 %3275  ;;  %vm3318_vm13 = vweird.f32 %v9817_v52  ;;  %v3040_v8 = vsel %vm9897_vm14, %v9790_v42, %v3036_v0 }
 0x581   : > { %8188 = vrcp.f32 %v9838_v30  ;;  %v9853_v36 = vpop.eup %8184  ;;  %vm9905_vm3 = vmor %vm3317_vm7, %vm3318_vm13  ;;  %v3336_v56 = vand.u32 2147483647, %v9838_v30  ;;  %v3338_v42 = vand.u32 2147483648, %v9838_v30  ;;  %v3045_v57 = vsel %vm9878_vm4, %v3044_v60, %v3040_v8 }
 0x582   : > { %v3314_v53 = vsub.f32 1.0, %v3313_v45  ;;  %v9858_v1 = vpop.permute.xlu2 %3199  ;;  %8190 = vrcp.f32 %v9800_v6  ;;  %v3048_v59 = vmul.f32 %v9853_v36, %v9647_v35  ;;  %v9870_v10 = vpop.eup %8186  ;;  %vm3332_vm15 = vweird.f32 %v9838_v30 }
 0x583   : > { %v3063_v25 = vmul.f32 %v9870_v10, %v9667_v22  ;;  %vm3053_vm7 = vweird.f32 %v9853_v36  ;;  %v3247_v62 = vsel %vm637_vm0, %v8382_v28, %v3234_v47  ;;  %vm3052_vm4 = vweird.f32 %v9647_v35 }
 0x584   : > { %v3315_v3 = vmul.f32 %v9817_v52, %v3314_v53  ;;  %v3049_v19 = vsub.f32 1.0, %v3048_v59 }
 0x585   : > { %v3064_v44 = vsub.f32 1.0, %v3063_v25 }
 0x586   : > { %v3316_v16 = vadd.f32 %v9817_v52, %v3315_v3  ;;  %v3050_v13 = vmul.f32 %v9853_v36, %v3049_v19  ;;  %v3339_v3 = vor.u32 1.1754944e-38, %v3338_v42 }
 0x587   : > { %v8189_v63 = vpop.eup %8188  ;;  %v3065_v9 = vmul.f32 %v9870_v10, %v3064_v44 }
 0x588   : > { %v3328_v51 = vmul.f32 %v8189_v63, %v9838_v30  ;;  %v9891_v40 = vpop.permute.xlu0 %3507  ;;  %v9893_v23 = vpop.permute.xlu1 %3277  ;;  %v3320_v45 = vsel %vm9905_vm3, %v9817_v52, %v3316_v16  ;;  %vm3333_vm13 = vweird.f32 %v8189_v63  ;;  %v3235_v52 = vsub.f32 %v3016_v48, %v9830_v33 }
 0x589   : > { %v9901_v29 = vpop.eup %8190  ;;  %8192 = vrcp.f32 %v9893_v23  ;;  %v3325_v7 = vsel %vm3322_vm9, %v3324_v61, %v3320_v45  ;;  %vm3334_vm14 = vmor %vm3332_vm15, %vm3333_vm13  ;;  %vm3337_vm3 = vcmp.eq.f32.partialorder %v3336_v56, 8.507059e+37  ;;  %v3058_v33 = vand.u32 2147483648, %v9647_v35 }
 0x58a   : > { %8194 = vrcp.f32 %v9693_v27  ;;  %v3329_v12 = vsub.f32 1.0, %v3328_v51  ;;  %v9917_v20 = vpop.permute.xlu2 %3283  ;;  %v3358_v32 = vmul.f32 %v9901_v29, %v9800_v6  ;;  %v3326_v2 = vmul.f32 %v3325_v7, %v3247_v62  ;;  %vm9958_vm9 = vmor %vm3052_vm4, %vm3053_vm7 }
 0x58b   : > { %v3248_v48 = vsel %vm637_vm0, %v8383_v58, %v3235_v52  ;;  %v9944_v18 = vadd.f32 %v9853_v36, %v3050_v13  ;;  %8196 = vrcp.f32 %v9917_v20  ;;  %v3059_v60 = vor.u32 1.1754944e-38, %v3058_v33 }
 0x58c   : > { %v3330_v53 = vmul.f32 %v8189_v63, %v3329_v12  ;;  %v3359_v0 = vsub.f32 1.0, %v3358_v32  ;;  %v3546_v19 = vsub.f32 %v3326_v2, %v9891_v40  ;;  %8198 = vrcp.f32 %v9720_v4 }
 0x58d   : > { %v3055_v61 = vsel %vm9958_vm9, %v9853_v36, %v9944_v18  ;;  %vm9969_vm13 = vcmp.eq.f32.partialorder %v3056_v17, 8.507059e+37  ;;  %vm3715_vm15 = vcmask 130048   ;;  %vm3067_vm7 = vweird.f32 %v9667_v22 }
 0x58e   : > { %v3331_v54 = vadd.f32 %v8189_v63, %v3330_v53  ;;  %v3360_v47 = vmul.f32 %v9901_v29, %v3359_v0  ;;  %v3066_v32 = vadd.f32 %v9870_v10, %v3065_v9  ;;  %v3353_v53 = vand.u32 2147483648, %v9893_v23 }
 0x58f   : > { %v9932_v11 = vpop.eup %8192  ;;  %v3073_v36 = vand.u32 2147483648, %v9667_v22  ;;  %vm3347_vm4 = vweird.f32 %v9893_v23  ;;  %v3351_v7 = vand.u32 2147483647, %v9893_v23  ;;  %vm3363_vm9 = vweird.f32 %v9901_v29 }
 0x590   : > { %v9936_v39 = vpop.eup %8194  ;;  %v3343_v30 = vmul.f32 %v9932_v11, %v9893_v23  ;;  %v3335_v59 = vsel %vm3334_vm14, %v8189_v63, %v3331_v54  ;;  %v3510_v5 = vpop.permute.xlu1 %3509  ;;  %v8385_v63 = vld [vmem:[%s8596_s28 + $0x18] sm:$0xff]  ;;  %vm3348_vm14 = vweird.f32 %v9932_v11  ;;  %v3361_v54 = vadd.f32 %v9901_v29, %v3360_v47 }
 0x591   : > { %v9940_v16 = vpop.permute.xlu0 %3201  ;;  %v3340_v28 = vsel %vm3337_vm3, %v3339_v3, %v3335_v59  ;;  %v3046_v8 = vmul.f32 %v8385_v63, %v3045_v57  ;;  %v3078_v58 = vmul.f32 %v9936_v39, %v9693_v27  ;;  %vm3068_vm3 = vweird.f32 %v9870_v10  ;;  %v9989_v44 = vpop.eup %8196  ;;  %vm9994_vm12 = vmor %vm3347_vm4, %vm3348_vm14 }
 0x592   : > { %v3344_v51 = vsub.f32 1.0, %v3343_v30  ;;  %v3341_v43 = vmul.f32 %v3340_v28, %v3248_v48  ;;  %v9948_v41 = vpop.permute.xlu2 %3203  ;;  %v3368_v23 = vand.u32 2147483648, %v9800_v6  ;;  %v3071_v33 = vand.u32 2147483647, %v9667_v22  ;;  %vm10013_vm14 = vmor %vm3067_vm7, %vm3068_vm3 }
 0x593   : > { %v3079_v52 = vsub.f32 1.0, %v3078_v58  ;;  %v3237_v62 = vsub.f32 %v3046_v8, %v9940_v16  ;;  %v3366_v30 = vand.u32 2147483647, %v9800_v6  ;;  %v3236_v16 = vsub.f32 %v9887_v21, %v9858_v1 }
 0x594   : > { %v3547_v12 = vsub.f32 %v3341_v43, %v3510_v5  ;;  %v3345_v25 = vmul.f32 %v9932_v11, %v3344_v51  ;;  %v10017_v5 = vpop.eup %8198  ;;  %v3070_v6 = vsel %vm10013_vm14, %v9870_v10, %v3066_v32  ;;  %v3388_v18 = vmul.f32 %v9989_v44, %v9917_v20 }
 0x595   : > { %v3080_v28 = vmul.f32 %v9936_v39, %v3079_v52  ;;  %vm3352_vm7 = vcmp.eq.f32.partialorder %v3351_v7, 8.507059e+37  ;;  %v3074_v21 = vor.u32 1.1754944e-38, %v3073_v36  ;;  %v3250_v51 = vsel %vm637_vm0, %v8385_v63, %v3237_v62  ;;  %v8387_v7 = vld [vmem:[%s8596_s28 + $0x28] sm:$0xff] }
 0x596   : > { %v3818_v56 = vpack.c.bf16 %v3547_v12, %v3546_v19  ;;  %v3346_v42 = vadd.f32 %v9932_v11, %v3345_v25  ;;  %v3369_v43 = vor.u32 1.1754944e-38, %v3368_v23  ;;  %v3060_v9 = vsel %vm9969_vm13, %v3059_v60, %v3055_v61 }
 0x597   : > { %vm3367_vm3 = vcmp.eq.f32.partialorder %v3366_v30, 8.507059e+37  ;;  %vm3083_vm4 = vweird.f32 %v9936_v39  ;;  %v3249_v58 = vsel %vm637_vm0, %v9884_v15, %v3236_v16  ;;  %v3081_v19 = vadd.f32 %v9936_v39, %v3080_v28 }
 0x598   : > { %v9984_v13 = vpop.permute.xlu1 %3281  ;;  %7603 = vmatmul.msk.bf16.vlgmr.msrb.gmra.mxu2 %vm3715_vm15, %v3818_v56  ;;  %v3350_v0 = vsel %vm9994_vm12, %v9932_v11, %v3346_v42  ;;  %v3354_v11 = vor.u32 1.1754944e-38, %v3353_v53  ;;  %vm10023_vm12 = vmor %vm3362_vm11, %vm3363_vm9  ;;  %vm3072_vm11 = vcmp.eq.f32.partialorder %v3071_v33, 8.507059e+37  ;;  %v3093_v63 = vmul.f32 %v10017_v5, %v9720_v4  ;;  %v10054_v56 = vld [vmem:[%s8596_s28 + $0x20] sm:$0xff] }
 0x599   : > { %v9982_v57 = vpop.permute.xlu0 %3511  ;;  %8200 = vrcp.f32 %v9984_v13  ;;  %v3365_v1 = vsel %vm10023_vm12, %v9901_v29, %v3361_v54  ;;  %v3075_v10 = vsel %vm3072_vm11, %v3074_v21, %v3070_v6  ;;  %v3389_v45 = vsub.f32 1.0, %v3388_v18 }
 0x59a   : > { %8202 = vrcp.f32 %v9730_v26  ;;  %v10005_v2 = vpop.permute.xlu2 %3287  ;;  %v3355_v17 = vsel %vm3352_vm7, %v3354_v11, %v3350_v0  ;;  %v3370_v29 = vsel %vm3367_vm3, %v3369_v43, %v3365_v1  ;;  %v10057_v15 = vmul.f32 %v10054_v56, %v3060_v9 }
 0x59b   : > { %v3356_v60 = vmul.f32 %v3355_v17, %v3249_v58  ;;  %v3371_v47 = vmul.f32 %v3370_v29, %v3250_v51  ;;  %v3086_v42 = vand.u32 2147483647, %v9693_v27  ;;  %v3088_v32 = vand.u32 2147483648, %v9693_v27 }
 0x59c   : > { %8204 = vrcp.f32 %v10005_v2  ;;  %vm3082_vm13 = vweird.f32 %v9693_v27  ;;  %v3076_v54 = vmul.f32 %v8387_v7, %v3075_v10  ;;  %v3094_v3 = vsub.f32 1.0, %v3093_v63 }
 0x59d   : > { %8206 = vrcp.f32 %v9739_v49  ;;  %vm10069_vm9 = vmor %vm3082_vm13, %vm3083_vm4  ;;  %v3548_v33 = vsub.f32 %v3356_v60, %v9982_v57  ;;  %v3390_v59 = vmul.f32 %v9989_v44, %v3389_v45  ;;  %vm3087_vm14 = vcmp.eq.f32.partialorder %v3086_v42, 8.507059e+37 }
 0x59e   : > { %v3085_v0 = vsel %vm10069_vm9, %v9936_v39, %v3081_v19  ;;  %v3089_v16 = vor.u32 1.1754944e-38, %v3088_v32  ;;  %vm3097_vm12 = vweird.f32 %v9720_v4  ;;  %vm3098_vm7 = vweird.f32 %v10017_v5  ;;  %v10112_v19 = vld [vmem:[%s8596_s28 + $0x30] sm:$0xff] }
 0x59f   : > { %v10040_v8 = vpop.eup %8200  ;;  %v3101_v57 = vand.u32 2147483647, %v9720_v4  ;;  %v3383_v39 = vand.u32 2147483648, %v9984_v13  ;;  %v3095_v28 = vmul.f32 %v10017_v5, %v3094_v3  ;;  %vm3377_vm3 = vweird.f32 %v9984_v13 }
 0x5a0   : > { %v10047_v12 = vpop.eup %8202  ;;  %v3373_v25 = vmul.f32 %v10040_v8, %v9984_v13  ;;  %v3514_v61 = vpop.permute.xlu1 %3513  ;;  %vm3378_vm11 = vweird.f32 %v10040_v8  ;;  %v3090_v6 = vsel %vm3087_vm14, %v3089_v16, %v3085_v0  ;;  %v3381_v21 = vand.u32 2147483647, %v9984_v13 }
 0x5a1   : > { %v10051_v40 = vpop.permute.xlu0 %3205  ;;  %v3549_v36 = vsub.f32 %v3371_v47, %v3514_v61  ;;  %v3108_v23 = vmul.f32 %v10047_v12, %v9730_v26  ;;  %v3391_v43 = vadd.f32 %v9989_v44, %v3390_v59  ;;  %vm3393_vm4 = vweird.f32 %v9989_v44  ;;  %vm10104_vm13 = vmor %vm3377_vm3, %vm3378_vm11 }
 0x5a2   : > { %v3374_v53 = vsub.f32 1.0, %v3373_v25  ;;  %v10063_v52 = vpop.permute.xlu2 %3207  ;;  %v10088_v1 = vpop.eup %8204  ;;  %v3239_v10 = vsub.f32 %v3076_v54, %v10051_v40  ;;  %v3398_v13 = vand.u32 2147483648, %v9917_v20  ;;  %v3103_v29 = vand.u32 2147483648, %v9720_v4 }
 0x5a3   : > { %v3819_v11 = vpack.c.bf16 %v3549_v36, %v3548_v33  ;;  %v3109_v18 = vsub.f32 1.0, %v3108_v23  ;;  %v10099_v9 = vpop.eup %8206  ;;  %v10115_v63 = vmul.f32 %v10112_v19, %v3090_v6  ;;  %vm3392_vm9 = vweird.f32 %v9917_v20 }
 0x5a4   : > { %v3375_v30 = vmul.f32 %v10040_v8, %v3374_v53  ;;  %v3396_v25 = vand.u32 2147483647, %v9917_v20  ;;  %v3238_v47 = vsub.f32 %v10057_v15, %v9948_v41  ;;  %v3418_v61 = vmul.f32 %v10088_v1, %v10005_v2  ;;  %vm10130_vm14 = vmor %vm3392_vm9, %vm3393_vm4 }
 0x5a5   : > { %v3384_v40 = vor.u32 1.1754944e-38, %v3383_v39  ;;  %vm3112_vm11 = vweird.f32 %v9730_v26  ;;  %vm3382_vm3 = vcmp.eq.f32.partialorder %v3381_v21, 8.507059e+37  ;;  %v3395_v20 = vsel %vm10130_vm14, %v9989_v44, %v3391_v43 }
 0x5a6   : > { %v3376_v48 = vadd.f32 %v10040_v8, %v3375_v30  ;;  %v3110_v41 = vmul.f32 %v10047_v12, %v3109_v18  ;;  %v3123_v15 = vmul.f32 %v10099_v9, %v9739_v49  ;;  %v3252_v53 = vsel %vm637_vm0, %v8387_v7, %v3239_v10 }
 0x5a7   : > { %v3399_v36 = vor.u32 1.1754944e-38, %v3398_v13  ;;  %vm3397_vm4 = vcmp.eq.f32.partialorder %v3396_v25, 8.507059e+37  ;;  %v3116_v54 = vand.u32 2147483647, %v9730_v26  ;;  %v3118_v62 = vand.u32 2147483648, %v9730_v26 }
 0x5a8   : > { %v10094_v51 = vpop.permute.xlu1 %3285  ;;  %7604 = vmatmul.msk.bf16.gmra.mxu2 %vm3715_vm15, %v3819_v11  ;;  %v3380_v45 = vsel %vm10104_vm13, %v10040_v8, %v3376_v48  ;;  %v3096_v8 = vadd.f32 %v10017_v5, %v3095_v28  ;;  %vm10149_vm13 = vmor %vm3097_vm12, %vm3098_vm7  ;;  %v3419_v23 = vsub.f32 1.0, %v3418_v61  ;;  %v3251_v7 = vsel %vm637_vm0, %v10054_v56, %v3238_v47  ;;  %v8389_v61 = vld [vmem:[%s8596_s28 + $0x38] sm:$0xff] }
 0x5a9   : > { %v10092_v17 = vpop.permute.xlu0 %3515  ;;  %8208 = vrcp.f32 %v10094_v51  ;;  %v3385_v32 = vsel %vm3382_vm3, %v3384_v40, %v3380_v45  ;;  %v3400_v33 = vsel %vm3397_vm4, %v3399_v36, %v3395_v20  ;;  %v3104_v6 = vor.u32 1.1754944e-38, %v3103_v29 }
 0x5aa   : > { %v10120_v60 = vpop.permute.xlu2 %3291  ;;  %8210 = vrcp.f32 %v9755_v34  ;;  %v3100_v0 = vsel %vm10149_vm13, %v10017_v5, %v3096_v8  ;;  %v3386_v30 = vmul.f32 %v3385_v32, %v3251_v7  ;;  %v3401_v16 = vmul.f32 %v3400_v33, %v3252_v53 }
 0x5ab   : > { %8212 = vrcp.f32 %v9747_v55  ;;  %vm3102_vm12 = vcmp.eq.f32.partialorder %v3101_v57, 8.507059e+37  ;;  %v3111_v39 = vadd.f32 %v10047_v12, %v3110_v41  ;;  %vm3113_vm7 = vweird.f32 %v10047_v12 }
 0x5ac   : > { %v3124_v28 = vsub.f32 1.0, %v3123_v15  ;;  %8214 = vrcp.f32 %v10120_v60  ;;  %v3105_v5 = vsel %vm3102_vm12, %v3104_v6, %v3100_v0  ;;  %vm10170_vm9 = vcmp.eq.f32.partialorder %v3116_v54, 8.507059e+37  ;;  %vm10181_vm3 = vmor %vm3112_vm11, %vm3113_vm7 }
 0x5ad   : > { %v3119_v57 = vor.u32 1.1754944e-38, %v3118_v62  ;;  %v3420_v58 = vmul.f32 %v10088_v1, %v3419_v23  ;;  %vm3128_vm14 = vweird.f32 %v10099_v9  ;;  %v3550_v29 = vsub.f32 %v3386_v30, %v10092_v17 }
 0x5ae   : > { %v3413_v47 = vand.u32 2147483648, %v10094_v51  ;;  %vm3127_vm13 = vweird.f32 %v9739_v49  ;;  %v3106_v40 = vmul.f32 %v8389_v61, %v3105_v5  ;;  %v3115_v42 = vsel %vm10181_vm3, %v10047_v12, %v3111_v39 }
 0x5af   : > { %v8209_v3 = vpop.eup %8208  ;;  %v3411_v17 = vand.u32 2147483647, %v10094_v51  ;;  %v3125_v8 = vmul.f32 %v10099_v9, %v3124_v28  ;;  %vm3407_vm11 = vweird.f32 %v10094_v51  ;;  %v3421_v53 = vadd.f32 %v10088_v1, %v3420_v58 }
 0x5b0   : > { %v3403_v59 = vmul.f32 %v8209_v3, %v10094_v51  ;;  %v3518_v11 = vpop.permute.xlu1 %3517  ;;  %v10168_v43 = vpop.eup %8210  ;;  %vm3408_vm4 = vweird.f32 %v8209_v3  ;;  %vm3423_vm7 = vweird.f32 %v10088_v1  ;;  %v3428_v12 = vand.u32 2147483648, %v10005_v2 }
 0x5b1   : > { %v10161_v48 = vpop.permute.xlu0 %3209  ;;  %v3551_v18 = vsub.f32 %v3401_v16, %v3518_v11  ;;  %v10176_v13 = vpop.eup %8212  ;;  %v3153_v15 = vmul.f32 %v10168_v43, %v9755_v34  ;;  %vm10196_vm12 = vmor %vm3407_vm11, %vm3408_vm4  ;;  %v3240_v51 = vsub.f32 %v10115_v63, %v10063_v52  ;;  %v3414_v23 = vor.u32 1.1754944e-38, %v3413_v47  ;;  %v8391_v63 = vld [vmem:[%s8596_s28 + $0x48] sm:$0xff] }
 0x5b2   : > { %v3404_v56 = vsub.f32 1.0, %v3403_v59  ;;  %v10166_v21 = vpop.permute.xlu2 %3211  ;;  %v3138_v36 = vmul.f32 %v10176_v13, %v9747_v55  ;;  %v10205_v44 = vpop.eup %8214  ;;  %v3241_v54 = vsub.f32 %v3106_v40, %v10161_v48  ;;  %vm3412_vm3 = vcmp.eq.f32.partialorder %v3411_v17, 8.507059e+37 }
 0x5b3   : > { %v3820_v20 = vpack.c.bf16 %v3551_v18, %v3550_v29  ;;  %vm3422_vm4 = vweird.f32 %v10005_v2  ;;  %v3426_v0 = vand.u32 2147483647, %v10005_v2  ;;  %v3131_v59 = vand.u32 2147483647, %v9739_v49 }
 0x5b4   : > { %v3405_v25 = vmul.f32 %v8209_v3, %v3404_v56  ;;  %vm10222_vm11 = vmor %vm3422_vm4, %vm3423_vm7  ;;  %v3154_v16 = vsub.f32 1.0, %v3153_v15  ;;  %v3448_v11 = vmul.f32 %v10205_v44, %v10120_v60  ;;  %v3133_v48 = vand.u32 2147483648, %v9739_v49 }
 0x5b5   : > { %v3425_v2 = vsel %vm10222_vm11, %v10088_v1, %v3421_v53  ;;  %v3120_v6 = vsel %vm10170_vm9, %v3119_v57, %v3115_v42  ;;  %v3253_v39 = vsel %vm637_vm0, %v10112_v19, %v3240_v51  ;;  %v3254_v28 = vsel %vm637_vm0, %v8389_v61, %v3241_v54  ;;  %vm10244_vm7 = vmor %vm3127_vm13, %vm3128_vm14 }
 0x5b6   : > { %v3406_v41 = vadd.f32 %v8209_v3, %v3405_v25  ;;  %v3429_v56 = vor.u32 1.1754944e-38, %v3428_v12  ;;  %v3139_v5 = vsub.f32 1.0, %v3138_v36  ;;  %vm10251_vm9 = vcmp.eq.f32.partialorder %v3131_v59, 8.507059e+37  ;;  %v10257_v25 = vld [vmem:[%s8596_s28 + $0x40] sm:$0xff] }
 0x5b7   : > { %v3155_v57 = vmul.f32 %v10168_v43, %v3154_v16  ;;  %v3449_v45 = vsub.f32 1.0, %v3448_v11  ;;  %v10260_v47 = vmul.f32 %v10257_v25, %v3120_v6  ;;  %v3134_v40 = vor.u32 1.1754944e-38, %v3133_v48 }
 0x5b8   : > { %v3410_v62 = vsel %vm10196_vm12, %v8209_v3, %v3406_v41  ;;  %v10212_v33 = vpop.permute.xlu1 %3289  ;;  %7605 = vmatmul.msk.bf16.gmra.mxu2 %vm3715_vm15, %v3820_v20  ;;  %v3126_v3 = vadd.f32 %v10099_v9, %v3125_v8  ;;  %vm3427_vm12 = vcmp.eq.f32.partialorder %v3426_v0, 8.507059e+37  ;;  %vm3142_vm14 = vweird.f32 %v9747_v55 }
 0x5b9   : > { %v3520_v7 = vpop.permute.xlu0 %3519  ;;  %8216 = vrcp.f32 %v10212_v33  ;;  %v3415_v30 = vsel %vm3412_vm3, %v3414_v23, %v3410_v62  ;;  %v3430_v58 = vsel %vm3427_vm12, %v3429_v56, %v3425_v2  ;;  %vm3143_vm13 = vweird.f32 %v10176_v13 }
 0x5ba   : > { %v10218_v52 = vpop.permute.xlu2 %3295  ;;  %v3416_v18 = vmul.f32 %v3415_v30, %v3253_v39  ;;  %v3130_v10 = vsel %vm10244_vm7, %v10099_v9, %v3126_v3  ;;  %v3431_v61 = vmul.f32 %v3430_v58, %v3254_v28  ;;  %v3148_v9 = vand.u32 2147483648, %v9747_v55 }
 0x5bb   : > { %8218 = vrcp.f32 %v10218_v52  ;;  %v3135_v32 = vsel %vm10251_vm9, %v3134_v40, %v3130_v10  ;;  %v3140_v53 = vmul.f32 %v10176_v13, %v3139_v5  ;;  %v3156_v36 = vadd.f32 %v10168_v43, %v3155_v57 }
 0x5bc   : > { %v3552_v41 = vsub.f32 %v3416_v18, %v3520_v7  ;;  %vm3158_vm3 = vweird.f32 %v10168_v43  ;;  %v3163_v51 = vand.u32 2147483648, %v9755_v34  ;;  %vm3157_vm4 = vweird.f32 %v9755_v34 }
 0x5bd   : > { %v3161_v62 = vand.u32 2147483647, %v9755_v34  ;;  %v3450_v23 = vmul.f32 %v10205_v44, %v3449_v45  ;;  %v3443_v30 = vand.u32 2147483648, %v10212_v33  ;;  %8220 = vrcp.f32 %v9763_v14  ;;  %vm10286_vm12 = vmor %vm3157_vm4, %vm3158_vm3 }
 0x5be   : > { %v3136_v3 = vmul.f32 %v8391_v63, %v3135_v32  ;;  %v3141_v59 = vadd.f32 %v10176_v13, %v3140_v53  ;;  %v3441_v16 = vand.u32 2147483647, %v10212_v33  ;;  %vm3437_vm7 = vweird.f32 %v10212_v33  ;;  %vm10312_vm4 = vmor %vm3142_vm14, %vm3143_vm13 }
 0x5bf   : > { %v8217_v29 = vpop.eup %8216  ;;  %v3160_v48 = vsel %vm10286_vm12, %v10168_v43, %v3156_v36  ;;  %v3164_v6 = vor.u32 1.1754944e-38, %v3163_v51  ;;  %v3242_v39 = vsub.f32 %v10260_v47, %v10166_v21  ;;  %v3451_v56 = vadd.f32 %v10205_v44, %v3450_v23  ;;  %v8392_v36 = vld [vmem:[%s8596_s28 + $0x58] sm:$0xff] }
 0x5c0   : > { %v3433_v42 = vmul.f32 %v8217_v29, %v10212_v33  ;;  %v3522_v17 = vpop.permute.xlu1 %3521  ;;  %vm3438_vm11 = vweird.f32 %v8217_v29  ;;  %vm3453_vm3 = vweird.f32 %v10205_v44  ;;  %v3458_v18 = vand.u32 2147483648, %v10120_v60 }
 0x5c1   : > { %v3214_v8 = vpop.permute.xlu0 %3213  ;;  %v10266_v20 = vpop.eup %8218  ;;  %v3553_v15 = vsub.f32 %v3431_v61, %v3522_v17  ;;  %vm10296_vm9 = vmor %vm3437_vm7, %vm3438_vm11  ;;  %v3444_v43 = vor.u32 1.1754944e-38, %v3443_v30  ;;  %vm3442_vm11 = vcmp.eq.f32.partialorder %v3441_v16, 8.507059e+37  ;;  %vm3452_vm12 = vweird.f32 %v10120_v60  ;;  %v8393_v16 = vld [vmem:[%s8596_s28 + $0x50] sm:$0xff] }
 0x5c2   : > { %v3434_v12 = vsub.f32 1.0, %v3433_v42  ;;  %v3478_v7 = vmul.f32 %v10266_v20, %v10218_v52  ;;  %v3243_v33 = vsub.f32 %v3136_v3, %v3214_v8  ;;  %v3456_v19 = vand.u32 2147483647, %v10120_v60 }
 0x5c3   : > { %v3821_v54 = vpack.c.bf16 %v3553_v15, %v3552_v41  ;;  %v3146_v57 = vand.u32 2147483647, %v9747_v55  ;;  %vm3162_vm7 = vcmp.eq.f32.partialorder %v3161_v62, 8.507059e+37  ;;  %v10322_v45 = vpop.eup %8220  ;;  %v3145_v47 = vsel %vm10312_vm4, %v10176_v13, %v3141_v59 }
 0x5c4   : > { %v3435_v0 = vmul.f32 %v8217_v29, %v3434_v12  ;;  %v3479_v1 = vsub.f32 1.0, %v3478_v7  ;;  %v3165_v61 = vsel %vm3162_vm7, %v3164_v6, %v3160_v48  ;;  %v3255_v60 = vsel %vm637_vm0, %v10257_v25, %v3242_v39  ;;  %v3216_v7 = vpop.permute.xlu2 %3215 }
 0x5c5   : > { %v3256_v17 = vsel %vm637_vm0, %v8391_v63, %v3243_v33  ;;  %v3459_v8 = vor.u32 1.1754944e-38, %v3458_v18  ;;  %v3149_v41 = vor.u32 1.1754944e-38, %v3148_v9  ;;  %vm3457_vm14 = vcmp.eq.f32.partialorder %v3456_v19, 8.507059e+37 }
 0x5c6   : > { %v3436_v2 = vadd.f32 %v8217_v29, %v3435_v0  ;;  %v3480_v42 = vmul.f32 %v10266_v20, %v3479_v1  ;;  %vm3147_vm13 = vcmp.eq.f32.partialorder %v3146_v57, 8.507059e+37  ;;  %v3166_v13 = vmul.f32 %v8392_v36, %v3165_v61 }
 0x5c7   : > { %v3150_v12 = vsel %vm3147_vm13, %v3149_v41, %v3145_v47  ;;  %v3168_v9 = vmul.f32 %v10322_v45, %v9763_v14  ;;  %v3488_v23 = vand.u32 2147483648, %v10218_v52  ;;  %vm3482_vm4 = vweird.f32 %v10218_v52 }
 0x5c8   : > { %v3440_v5 = vsel %vm10296_vm9, %v8217_v29, %v3436_v2  ;;  %7606 = vmatmul.msk.bf16.gmra.mxu2 %vm3715_vm15, %v3821_v54  ;;  %v10306_v21 = vpop.permute.xlu1 %3293  ;;  %vm3454_vm9 = vmor %vm3452_vm12, %vm3453_vm3  ;;  %v3481_v62 = vadd.f32 %v10266_v20, %v3480_v42  ;;  %vm3483_vm3 = vweird.f32 %v10266_v20  ;;  %v3486_v59 = vand.u32 2147483647, %v10218_v52 }
 0x5c9   : > { %v3524_v58 = vpop.permute.xlu0 %3523  ;;  %8222 = vrcp.f32 %v10306_v21  ;;  %v3445_v29 = vsel %vm3442_vm11, %v3444_v43, %v3440_v5  ;;  %v3455_v40 = vsel %vm3454_vm9, %v10205_v44, %v3451_v56  ;;  %v3151_v11 = vmul.f32 %v8393_v16, %v3150_v12  ;;  %vm3484_vm11 = vmor %vm3482_vm4, %vm3483_vm3 }
 0x5ca   : > { %v3446_v15 = vmul.f32 %v3445_v29, %v3255_v60  ;;  %v3460_v32 = vsel %vm3457_vm14, %v3459_v8, %v3455_v40  ;;  %v3473_v48 = vand.u32 2147483648, %v10306_v21  ;;  %v3485_v6 = vsel %vm3484_vm11, %v10266_v20, %v3481_v62 }
 0x5cb   : > { %v3461_v51 = vmul.f32 %v3460_v32, %v3256_v17  ;;  %v3471_v28 = vand.u32 2147483647, %v10306_v21  ;;  %v3489_v56 = vor.u32 1.1754944e-38, %v3488_v23  ;;  %v3244_v18 = vsub.f32 %v3151_v11, %v3216_v7 }
 0x5cc   : > { %v3554_v0 = vsub.f32 %v3446_v15, %v3524_v58  ;;  %v3169_v33 = vsub.f32 1.0, %v3168_v9  ;;  %vm3487_vm7 = vcmp.eq.f32.partialorder %v3486_v59, 8.507059e+37  ;;  %vm3467_vm9 = vweird.f32 %v10306_v21  ;;  %v3530_v61 = vpop.permute.xlu2 %3529  ;;  %v8394_v9 = vld [vmem:[%s8596_s28 + $0x60] sm:$0xff] }
 0x5cd   : > { %v3490_v52 = vsel %vm3487_vm7, %v3489_v56, %v3485_v6  ;;  %v3474_v43 = vor.u32 1.1754944e-38, %v3473_v48  ;;  %vm3472_vm13 = vcmp.eq.f32.partialorder %v3471_v28, 8.507059e+37  ;;  %v3257_v57 = vsel %vm637_vm0, %v8393_v16, %v3244_v18 }
 0x5ce   : > { %v3170_v29 = vmul.f32 %v10322_v45, %v3169_v33  ;;  %vm3173_vm3 = vweird.f32 %v10322_v45  ;;  %v3178_v8 = vand.u32 2147483648, %v9763_v14  ;;  %vm3172_vm4 = vweird.f32 %v9763_v14  ;;  %v12864_v33 = vld [vmem:[#allocation21_spill] sm:$0xff] }
 0x5cf   : > { %v8223_v53 = vpop.eup %8222  ;;  %v3176_v15 = vand.u32 2147483647, %v9763_v14  ;;  %vm3174_vm11 = vmor %vm3172_vm4, %vm3173_vm3  ;;  %vm12900_vm3 = vsmask.f32 4352 }
 0x5d0   : > { %v3463_v44 = vmul.f32 %v8223_v53, %v10306_v21  ;;  %v3526_v25 = vpop.permute.xlu1 %3525  ;;  %vm3468_vm12 = vweird.f32 %v8223_v53  ;;  %v3171_v60 = vadd.f32 %v10322_v45, %v3170_v29 }
 0x5d1   : > { %v3218_v54 = vpop.permute.xlu0 %3217  ;;  %v3555_v63 = vsub.f32 %v3461_v51, %v3526_v25  ;;  %vm3469_vm14 = vmor %vm3467_vm9, %vm3468_vm12  ;;  %vm3177_vm12 = vcmp.eq.f32.partialorder %v3176_v15, 8.507059e+37  ;;  %v12870_v15 = vld [vmem:[#allocation11_spill] sm:$0xff] }
 0x5d2   : > { %v3245_v30 = vsub.f32 %v3166_v13, %v3218_v54  ;;  %v3464_v3 = vsub.f32 1.0, %v3463_v44 }
 0x5d3   : > { %v3822_v2 = vpack.c.bf16 %v3555_v63, %v3554_v0 }
 0x5d4   : > { %v3465_v39 = vmul.f32 %v8223_v53, %v3464_v3  ;;  %v3258_v1 = vsel %vm637_vm0, %v8392_v36, %v3245_v30  ;;  %v3179_v36 = vor.u32 1.1754944e-38, %v3178_v8  ;;  %v3532_v59 = vpop.permute.xlu2 %3531 }
 0x5d5   : > { %v3491_v58 = vmul.f32 %v3490_v52, %v3258_v1  ;;  %v12865_v52 = vld [vmem:[#allocation26_spill] sm:$0xff] }
 0x5d6   : > { %v3466_v5 = vadd.f32 %v8223_v53, %v3465_v39 }
 0x5d7   : > { %v3557_v42 = vsub.f32 %v3491_v58, %v3530_v61 }
 0x5d8   : > { %7607 = vmatmul.msk.bf16.gmra.mxu2 %vm3715_vm15, %v3822_v2  ;;  %v3470_v20 = vsel %vm3469_vm14, %v8223_v53, %v3466_v5  ;;  %v3528_v40 = vpop.permute.xlu1 %3527  ;;  %v3175_v53 = vsel %vm3174_vm11, %v10322_v45, %v3171_v60  ;;  %v10363_v2 = vld [vmem:[%s12705_s10] ss:$0 sm:$0xff]  ;;  %vm12902_vm11 = vmmov %vm12900_vm3 }
 0x5d9   : > { %v3298_v10 = vpop.permute.xlu0 %3297  ;;  %v3475_v19 = vsel %vm3472_vm13, %v3474_v43, %v3470_v20  ;;  %v3180_v51 = vsel %vm3177_vm12, %v3179_v36, %v3175_v53  ;;  %v12871_v36 = vld [vmem:[#allocation17_spill] sm:$0xff] }
 0x5da   : > { %8224 = vrcp.f32 %v3298_v10  ;;  %v3476_v47 = vmul.f32 %v3475_v19, %v3257_v57  ;;  %v3503_v44 = vand.u32 2147483648, %v3298_v10  ;;  %vm3497_vm9 = vweird.f32 %v3298_v10 }
 0x5db   : > { %v3501_v62 = vand.u32 2147483647, %v3298_v10  ;;  %v3181_v23 = vmul.f32 %v8394_v9, %v3180_v51  ;;  %8226 = vlog2.f32 %v9574_v37 }
 0x5dc   : > { %v3556_v21 = vsub.f32 %v3476_v47, %v3528_v40  ;;  %v3504_v0 = vor.u32 1.1754944e-38, %v3503_v44  ;;  %v12867_v47 = vld [vmem:[#allocation22_spill] sm:$0xff]  ;;  %v12868_v40 = vld [vmem:[#allocation27_spill] sm:$0xff]  ;;  %v12873_v44 = vld [vmem:[#allocation25_spill] sm:$0xff]  ;;  %8228 = vlog2.f32 %v9627_v46 }
 0x5dd   : > { %vm3502_vm13 = vcmp.eq.f32.partialorder %v3501_v62, 8.507059e+37  ;;  %8230 = vlog2.f32 %v9693_v27 }
 0x5de   : > { %v3823_v17 = vpack.c.bf16 %v3557_v42, %v3556_v21  ;;  %8232 = vlog2.f32 %v9602_v50 }
 0x5df   : > { %8234 = vlog2.f32 %v9584_v31 }
 0x5e0   : > { %v8225_v41 = vpop.eup %8224  ;;  %v3220_v25 = vpop.permute.xlu1 %3219  ;;  %8236 = vlog2.f32 %v9739_v49 }
 0x5e1   : > { %v3493_v32 = vmul.f32 %v8225_v41, %v3298_v10  ;;  %vm3498_vm7 = vweird.f32 %v8225_v41  ;;  %v3246_v30 = vsub.f32 %v3181_v23, %v3220_v25  ;;  %8238 = vlog2.f32 %v9667_v22 }
 0x5e2   : > { %vm3499_vm14 = vmor %vm3497_vm9, %vm3498_vm7  ;;  %8240 = vlog2.f32 %v9647_v35 }
 0x5e3   : > { %v3494_v12 = vsub.f32 1.0, %v3493_v32  ;;  %v3259_v63 = vsel %vm637_vm0, %v8394_v9, %v3246_v30  ;;  %v12874_v9 = vld [vmem:[#allocation28_spill] sm:$0xff]  ;;  %vm12904_vm7 = vmmov %vm12900_vm3  ;;  %8242 = vlog2.f32 %v9763_v14 }
 0x5e4   : > { %vm12905_vm9 = vmmov %vm12900_vm3  ;;  %8244 = vlog2.f32 %v9730_v26 }
 0x5e5   : > { %v3495_v13 = vmul.f32 %v8225_v41, %v3494_v12  ;;  %8246 = vlog2.f32 %v9720_v4 }
 0x5e6   : > { %8248 = vlog2.f32 %v9755_v34 }
 0x5e7   : > { %v3496_v54 = vadd.f32 %v8225_v41, %v3495_v13  ;;  %8250 = vlog2.f32 %v9747_v55  ;;  %v8045_v55 = vld [vmem:[%s12700_s5 + $0x28] sm:$0xff] }
 0x5e8   : > { %7608 = vmatmul.msk.bf16.gmra.mxu2 %vm3715_vm15, %v3823_v17 }
 0x5e9   : > { %v3500_v7 = vsel %vm3499_vm14, %v8225_v41, %v3496_v54  ;;  %vm12907_vm14 = vmmov %vm12900_vm3 }
 0x5ea   : > { %v3505_v45 = vsel %vm3502_vm13, %v3504_v0, %v3500_v7  ;;  %vm12908_vm13 = vcmask 392192  }
 0x5eb   : > { %v3506_v3 = vmul.f32 %v3505_v45, %v3259_v63 }
 0x5ed   : > { %v3558_v16 = vsub.f32 %v3506_v3, %v3532_v59  ;;  %v12876_v59 = vld [vmem:[#allocation14_spill] sm:$0xff] }
 0x5ef   : > { %v3824_v11 = vpack.c.bf16 %v3558_v16, %v3558_v16 }
 0x5f8   : > { %7609 = vmatmul.msk.bf16.gmra.mxu2 %vm3715_vm15, %v3824_v11 }
 0x61b   : > { %v3867_v48 = vpop.f32.mrf.mxu2 }
 0x61c   : > { %v10366_v6 = vadd.f32 %v10363_v2, %v3867_v48  ;;  %v12877_v48 = vld [vmem:[#allocation20_spill] sm:$0xff] }
 0x61e   : > { %12862 = vst [vmem:[#allocation29_spill] sm:$0xff] %v10366_v6  ;;  %v3901_v39 = vmul.f32 %v10366_v6, %v8614_v38 }
 0x620   : > { %v10372_v28 = vsel %vm637_vm0, %v3901_v39, %v8714_v24 }
 0x621   : > { %4021 = vrot.lane.b32.xlu2 %v10372_v28, %s8431_s23  ;;  %v3940_v56 = vrot.slane %v10372_v28, 6  ;;  %v12756_v24 = vrot.slane %v10372_v28, 2 }
 0x623   : > { %v3869_v18 = vpop.f32.mrf.mxu2  ;;  %3965 = vrot.lane.b32.xlu0 %v3940_v56, %s8432_s29 }
 0x624   : > { %v10379_v1 = vadd.f32 %v10363_v2, %v3869_v18 }
 0x626   : > { %12863 = vst [vmem:[#allocation30_spill] sm:$0xff] %v10379_v1  ;;  %v3902_v5 = vmul.f32 %v10379_v1, %v12864_v33 }
 0x628   : > { %v3915_v43 = vsel %vm637_vm0, %v3902_v5, %v12865_v52 }
 0x629   : > { %v3941_v58 = vrot.slane %v3915_v43, 6  ;;  %v4074_v10 = vrot.slane %v3915_v43, 2 }
 0x62b   : > { %v3872_v20 = vpop.f32.mrf.mxu2  ;;  %4023 = vrot.lane.b32.xlu0 %v3915_v43, %s8431_s23  ;;  %v4075_v19 = vsel %vm802_vm1, %v12756_v24, %v4074_v10  ;;  %v3942_v57 = vsel %vm664_vm2, %v3940_v56, %v3941_v58 }
 0x62c   : > { %v10392_v29 = vadd.f32 %v10363_v2, %v3872_v20  ;;  %4100 = vrot.lane.b32.xlu2 %v4075_v19, %s8433_s30  ;;  %3967 = vrot.lane.b32.xlu1 %v3942_v57, %s8432_s29  ;;  %v12880_v19 = vld [vmem:[#allocation13_spill] sm:$0xff] }
 0x62e   : > { %12866 = vst [vmem:[#allocation21_spill] sm:$0xff] %v10392_v29  ;;  %v3903_v61 = vmul.f32 %v10392_v29, %v12867_v47 }
 0x630   : > { %v3916_v42 = vsel %vm637_vm0, %v3903_v61, %v12868_v40 }
 0x631   : > { %v4076_v21 = vrot.slane %v3916_v42, 2  ;;  %v3943_v41 = vrot.slane %v3916_v42, 6 }
 0x633   : > { %v3874_v60 = vpop.f32.mrf.mxu2  ;;  %v4077_v17 = vsel %vm802_vm1, %v4074_v10, %v4076_v21  ;;  %v3944_v12 = vsel %vm664_vm2, %v3941_v58, %v3943_v41  ;;  %v12879_v58 = vld [vmem:[#allocation8_spill] sm:$0xff] }
 0x634   : > { %v10402_v8 = vadd.f32 %v10363_v2, %v3874_v60  ;;  %4102 = vrot.lane.b32.xlu0 %v4077_v17, %s8433_s30  ;;  %4025 = vrot.lane.b32.xlu1 %v3916_v42, %s8431_s23  ;;  %v12882_v17 = vld [vmem:[#allocation10_spill] sm:$0xff] }
 0x636   : > { %12869 = vst [vmem:[#allocation26_spill] sm:$0xff] %v10402_v8  ;;  %v3904_v32 = vmul.f32 %v10402_v8, %v12870_v15 }
 0x638   : > { %v3917_v13 = vsel %vm637_vm0, %v3904_v32, %v12871_v36 }
 0x639   : > { %v3945_v62 = vrot.slane %v3917_v13, 6  ;;  %v4078_v25 = vrot.slane %v3917_v13, 2 }
 0x63b   : > { %v3877_v53 = vpop.f32.mrf.mxu2  ;;  %v3946_v30 = vsel %vm664_vm2, %v3943_v41, %v3945_v62  ;;  %v4079_v3 = vsel %vm802_vm1, %v4076_v21, %v4078_v25 }
 0x63c   : > { %v10412_v51 = vadd.f32 %v10363_v2, %v3877_v53  ;;  %3969 = vrot.lane.b32.xlu0 %v3944_v12, %s8432_s29  ;;  %4027 = vrot.lane.b32.xlu1 %v3917_v13, %s8431_s23  ;;  %v12883_v53 = vld [vmem:[#allocation12_spill] sm:$0xff] }
 0x63e   : > { %12872 = vst [vmem:[#allocation22_spill] sm:$0xff] %v10412_v51  ;;  %v3905_v54 = vmul.f32 %v10412_v51, %v12873_v44 }
 0x640   : > { %v3918_v23 = vsel %vm637_vm0, %v3905_v54, %v12874_v9  ;;  %v12885_v9 = vld [vmem:[#allocation7_spill] sm:$0xff] }
 0x641   : > { %v4080_v7 = vrot.slane %v3918_v23, 2  ;;  %v3947_v11 = vrot.slane %v3918_v23, 6 }
 0x643   : > { %v3879_v0 = vpop.f32.mrf.mxu2  ;;  %v4081_v45 = vsel %vm802_vm1, %v4078_v25, %v4080_v7  ;;  %v3948_v5 = vsel %vm664_vm2, %v3945_v62, %v3947_v11 }
 0x644   : > { %v10423_v63 = vadd.f32 %v10363_v2, %v3879_v0  ;;  %3971 = vrot.lane.b32.xlu0 %v3946_v30, %s8432_s29  ;;  %4106 = vrot.lane.b32.xlu2 %v4081_v45, %s8433_s30  ;;  %v12886_v0 = vld [vmem:[#allocation5_spill] sm:$0xff] }
 0x645   : > { %4104 = vrot.lane.b32.xlu1 %v4079_v3, %s8433_s30 }
 0x646   : > { %12875 = vst [vmem:[#allocation27_spill] sm:$0xff] %v10423_v63  ;;  %v3906_v16 = vmul.f32 %v10423_v63, %v12876_v59 }
 0x648   : > { %v3919_v39 = vsel %vm637_vm0, %v3906_v16, %v12877_v48 }
 0x649   : > { %v4082_v56 = vrot.slane %v3919_v39, 2  ;;  %v3949_v20 = vrot.slane %v3919_v39, 6 }
 0x64b   : > { %v3882_v18 = vpop.f32.mrf.mxu2  ;;  %v4083_v52 = vsel %vm802_vm1, %v4080_v7, %v4082_v56  ;;  %v3950_v42 = vsel %vm664_vm2, %v3947_v11, %v3949_v20 }
 0x64c   : > { %v10436_v43 = vadd.f32 %v10363_v2, %v3882_v18  ;;  %3973 = vrot.lane.b32.xlu0 %v3948_v5, %s8432_s29  ;;  %4108 = vrot.lane.b32.xlu2 %v4083_v52, %s8433_s30  ;;  %v12889_v52 = vld [vmem:[#allocation16_spill] sm:$0xff] }
 0x64d   : > { %4029 = vrot.lane.b32.xlu1 %v3918_v23, %s8431_s23 }
 0x64e   : > { %12878 = vst [vmem:[#allocation11_spill] sm:$0xff] %v10436_v43  ;;  %v3907_v10 = vmul.f32 %v10436_v43, %v12879_v58 }
 0x650   : > { %v3920_v57 = vsel %vm637_vm0, %v3907_v10, %v12880_v19 }
 0x651   : > { %v4084_v61 = vrot.slane %v3920_v57, 2  ;;  %v3951_v32 = vrot.slane %v3920_v57, 6 }
 0x653   : > { %v3884_v40 = vpop.f32.mrf.mxu2  ;;  %v4085_v21 = vsel %vm802_vm1, %v4082_v56, %v4084_v61  ;;  %v3952_v54 = vsel %vm664_vm2, %v3949_v20, %v3951_v32 }
 0x654   : > { %v10448_v60 = vadd.f32 %v10363_v2, %v3884_v40  ;;  %3975 = vrot.lane.b32.xlu0 %v3950_v42, %s8432_s29  ;;  %4110 = vrot.lane.b32.xlu2 %v4085_v21, %s8433_s30  ;;  %v12891_v40 = vld [vmem:[#allocation3_spill] sm:$0xff] }
 0x655   : > { %4031 = vrot.lane.b32.xlu1 %v3919_v39, %s8431_s23  ;;  %v12888_v39 = vld [vmem:[#allocation9_spill] sm:$0xff] }
 0x656   : > { %12881 = vst [vmem:[#allocation17_spill] sm:$0xff] %v10448_v60  ;;  %v3908_v41 = vmul.f32 %v10448_v60, %v12882_v17 }
 0x658   : > { %v3921_v12 = vsel %vm637_vm0, %v3908_v41, %v12883_v53 }
 0x659   : > { %v4086_v36 = vrot.slane %v3921_v12, 2  ;;  %v3953_v7 = vrot.slane %v3921_v12, 6 }
 0x65b   : > { %v3887_v13 = vpop.f32.mrf.mxu2  ;;  %v4087_v62 = vsel %vm802_vm1, %v4084_v61, %v4086_v36  ;;  %v3954_v16 = vsel %vm664_vm2, %v3951_v32, %v3953_v7 }
 0x65c   : > { %v10460_v25 = vadd.f32 %v10363_v2, %v3887_v13  ;;  %3977 = vrot.lane.b32.xlu0 %v3952_v54, %s8432_s29  ;;  %4112 = vrot.lane.b32.xlu2 %v4087_v62, %s8433_s30  ;;  %v12894_v13 = vld [vmem:[#allocation4_spill] sm:$0xff] }
 0x65d   : > { %4033 = vrot.lane.b32.xlu1 %v3920_v57, %s8431_s23 }
 0x65e   : > { %12884 = vst [vmem:[#allocation25_spill] sm:$0xff] %v10460_v25  ;;  %v3909_v23 = vmul.f32 %v10460_v25, %v12885_v9 }
 0x660   : > { %v3922_v30 = vsel %vm637_vm0, %v3909_v23, %v12886_v0  ;;  %v12895_v23 = vld [vmem:[#allocation6_spill] sm:$0xff] }
 0x661   : > { %v4088_v45 = vrot.slane %v3922_v30, 2  ;;  %v3955_v18 = vrot.slane %v3922_v30, 6 }
 0x663   : > { %v3889_v3 = vpop.f32.mrf.mxu2  ;;  %v4089_v11 = vsel %vm802_vm1, %v4086_v36, %v4088_v45  ;;  %v3956_v20 = vsel %vm664_vm2, %v3953_v7, %v3955_v18 }
 0x664   : > { %v10472_v48 = vadd.f32 %v10363_v2, %v3889_v3  ;;  %3979 = vrot.lane.b32.xlu0 %v3954_v16, %s8432_s29  ;;  %4114 = vrot.lane.b32.xlu2 %v4089_v11, %s8433_s30 }
 0x665   : > { %4035 = vrot.lane.b32.xlu1 %v3921_v12, %s8431_s23  ;;  %v12893_v12 = vld [vmem:[#allocation15_spill] sm:$0xff] }
 0x666   : > { %12887 = vst [vmem:[#allocation28_spill] sm:$0xff] %v10472_v48  ;;  %v3910_v56 = vmul.f32 %v10472_v48, %v12888_v39 }
 0x668   : > { %v3923_v10 = vsel %vm637_vm0, %v3910_v56, %v12889_v52  ;;  %v12897_v56 = vld [vmem:[#allocation19_spill] sm:$0xff]  ;;  %v12898_v52 = vld [vmem:[#allocation18_spill] sm:$0xff] }
 0x669   : > { %v3957_v57 = vrot.slane %v3923_v10, 6  ;;  %v4090_v61 = vrot.slane %v3923_v10, 2 }
 0x66b   : > { %v3892_v5 = vpop.f32.mrf.mxu2  ;;  %v4091_v41 = vsel %vm802_vm1, %v4088_v45, %v4090_v61  ;;  %v3958_v32 = vsel %vm664_vm2, %v3955_v18, %v3957_v57 }
 0x66c   : > { %v10483_v19 = vadd.f32 %v10363_v2, %v3892_v5  ;;  %4039 = vrot.lane.b32.xlu2 %v3923_v10, %s8431_s23  ;;  %3981 = vrot.lane.b32.xlu0 %v3956_v20, %s8432_s29 }
 0x66d   : > { %4037 = vrot.lane.b32.xlu1 %v3922_v30, %s8431_s23 }
 0x66e   : > { %12890 = vst [vmem:[#allocation14_spill] sm:$0xff] %v10483_v19  ;;  %v3911_v42 = vmul.f32 %v10483_v19, %v12891_v40 }
 0x670   : > { %v3924_v36 = vsel %vm637_vm0, %v3911_v42, %v12893_v12 }
 0x671   : > { %v4092_v62 = vrot.slane %v3924_v36, 2  ;;  %v3959_v5 = vrot.slane %v3924_v36, 6 }
 0x673   : > { %v3894_v21 = vpop.f32.mrf.mxu2  ;;  %v4093_v16 = vsel %vm802_vm1, %v4090_v61, %v4092_v62 }
 0x674   : > { %v10493_v53 = vadd.f32 %v10363_v2, %v3894_v21  ;;  %4116 = vrot.lane.b32.xlu2 %v4091_v41, %s8433_s30  ;;  %3983 = vrot.lane.b32.xlu0 %v3958_v32, %s8432_s29 }
 0x675   : > { %4041 = vrot.lane.b32.xlu1 %v3924_v36, %s8431_s23 }
 0x676   : > { %12892 = vst [vmem:[#allocation20_spill] sm:$0xff] %v10493_v53  ;;  %v3912_v54 = vmul.f32 %v10493_v53, %v12894_v13 }
 0x678   : > { %v10504_v7 = vsel %vm637_vm0, %v3912_v54, %v12895_v23 }
 0x679   : > { %v4094_v0 = vrot.slane %v10504_v7, 2  ;;  %v3961_v41 = vrot.slane %v10504_v7, 6 }
 0x67b   : > { %v4022_v30 = vpop.permute.xlu2 %4021  ;;  %v3897_v45 = vpop.f32.mrf.mxu2  ;;  %v4095_v3 = vsel %vm802_vm1, %v4092_v62, %v4094_v0  ;;  %v3962_v32 = vsel %vm664_vm2, %v3959_v5, %v3961_v41 }
 0x67c   : > { %4060 = vst.msk [vmem:[#allocation2 + $0x28] sm:$0xff] %vm788_vm5, %v4022_v30  ;;  %v10511_v11 = vadd.f32 %v10363_v2, %v3897_v45  ;;  %4120 = vrot.lane.b32.xlu0 %v4095_v3, %s8433_s30  ;;  %4118 = vrot.lane.b32.xlu2 %v4093_v16, %s8433_s30  ;;  %v3960_v2 = vsel %vm664_vm2, %v3957_v57, %v3959_v5 }
 0x67e   : > { %12896 = vst [vmem:[#allocation8_spill] sm:$0xff] %v10511_v11  ;;  %v3913_v18 = vmul.f32 %v10511_v11, %v12897_v56 }
 0x680   : > { %v10519_v10 = vsel %vm637_vm0, %v3913_v18, %v12898_v52 }
 0x681   : > { %v4096_v20 = vrot.slane %v10519_v10, 2  ;;  %v12757_v57 = vrot.slane %v10519_v10, 6 }
 0x683   : > { %v3899_v61 = vpop.f32.mrf.mxu2  ;;  %v4097_v42 = vsel %vm802_vm1, %v4094_v0, %v4096_v20  ;;  %v3964_v36 = vsel %vm664_vm2, %v3961_v41, %v12757_v57 }
 0x684   : > { %4122 = vrot.lane.b32.xlu2 %v4097_v42, %s8433_s30  ;;  %3985 = vrot.lane.b32.xlu0 %v3960_v2, %s8432_s29 }
 0x686   : > { %v4101_v21 = vpop.permute.xlu2 %4100 }
 0x687   : > { %4141 = vst.msk [vmem:[#allocation2 + $0x18] sm:$0xff] %vm872_vm8, %v4101_v21 }
 0x68c   : > { %4124 = vrot.lane.b32.xlu0 %v4096_v20, %s8433_s30 }
 0x68e   : > { %v4154_v42 = vld [vmem:[#allocation2 + $0x18] sm:$0x80] }
 0x694   : > { %3987 = vrot.lane.b32.xlu0 %v3962_v32, %s8432_s29 }
 0x695   : > { %v3966_v12 = vpop.permute.xlu0 %3965 }
 0x696   : > { %4007 = vst.msk [vmem:[#allocation2 + $0x38] sm:$0xfc] %vm732_vm10, %v3966_v12  ;;  %vm12899_vm10 = vsmask.f32 7424 }
 0x697   : > { %vm12901_vm4 = vmmov %vm12899_vm10 }
 0x698   : > { %vm12903_vm12 = vmmov %vm12901_vm4 }
 0x69c   : > { %3989 = vrot.lane.b32.xlu0 %v3964_v36, %s8432_s29 }
 0x69d   : > { %v4024_v54 = vpop.permute.xlu0 %4023 }
 0x69e   : > { %4061 = vst.msk [vmem:[#allocation2 + $0x38] sm:$0xff] %vm788_vm5, %v4024_v54  ;;  %v4107_v62 = vpop.permute.xlu2 %4106  ;;  %v3968_v23 = vpop.permute.xlu1 %3967 }
 0x69f   : > { %4008 = vst.msk [vmem:[#allocation2 + $0x48] sm:$0xff] %vm734_vm6, %v3968_v23 }
 0x6a6   : > { %v4103_v0 = vpop.permute.xlu0 %4102  ;;  %v4109_v30 = vpop.permute.xlu2 %4108 }
 0x6a7   : > { %4142 = vst.msk [vmem:[#allocation2 + $0x28] sm:$0xff] %vm872_vm8, %v4103_v0  ;;  %v4026_v45 = vpop.permute.xlu1 %4025 }
 0x6a8   : > { %4062 = vst.msk [vmem:[#allocation2 + $0x48] sm:$0xff] %vm788_vm5, %v4026_v45 }
 0x6a9   : > { %4144 = vst.msk [vmem:[#allocation2 + $0x48] sm:$0xff] %vm872_vm8, %v4107_v62 }
 0x6ae   : > { %v3970_v3 = vpop.permute.xlu0 %3969  ;;  %v4111_v16 = vpop.permute.xlu2 %4110  ;;  %v4155_v20 = vld [vmem:[#allocation2 + $0x28] sm:$0xff] }
 0x6af   : > { %4009 = vst.msk [vmem:[#allocation2 + $0x58] sm:$0xff] %vm734_vm6, %v3970_v3  ;;  %v4028_v18 = vpop.permute.xlu1 %4027  ;;  %v4168_v2 = vpack.c.bf16 %v4155_v20, %v4154_v42  ;;  %v4458_v0 = vld [vmem:[#allocation2 + $0x28] sm:$0xfe] }
 0x6b0   : > { %4063 = vst.msk [vmem:[#allocation2 + $0x58] sm:$0xff] %vm788_vm5, %v4028_v18  ;;  %v4157_v41 = vld [vmem:[#allocation2 + $0x48] sm:$0xff] }
 0x6b1   : > { %4145 = vst.msk [vmem:[#allocation2 + $0x58] sm:$0xff] %vm872_vm8, %v4109_v30  ;;  %v4301_v32 = vshrl.u32 %v4168_v2, 16  ;;  %v4304_v12 = vshll.u32 %v4168_v2, 16 }
 0x6b6   : > { %v3972_v5 = vpop.permute.xlu0 %3971  ;;  %v4113_v52 = vpop.permute.xlu2 %4112 }
 0x6b7   : > { %4010 = vst.msk [vmem:[#allocation2 + $0x68] sm:$0xff] %vm734_vm6, %v3972_v5  ;;  %v4105_v61 = vpop.permute.xlu1 %4104  ;;  %v4303_v5 = vrot.slane %v4301_v32, 3 }
 0x6b8   : > { %4143 = vst.msk [vmem:[#allocation2 + $0x38] sm:$0xff] %vm872_vm8, %v4105_v61  ;;  %v4461_v21 = vld [vmem:[#allocation2 + $0x58] sm:$0xff]  ;;  %v4306_v61 = vrot.slane %v4304_v12, 4 }
 0x6b9   : > { %v4473_v54 = vpack.c.bf16 %v4461_v21, %v4157_v41 }
 0x6bb   : > { %v4494_v2 = vshll.u32 %v4473_v54, 16 }
 0x6be   : > { %v3974_v36 = vpop.permute.xlu0 %3973  ;;  %v4115_v30 = vpop.permute.xlu2 %4114 }
 0x6bf   : > { %4011 = vst.msk [vmem:[#allocation2 + $0x78] sm:$0xff] %vm734_vm6, %v3974_v36  ;;  %v4030_v62 = vpop.permute.xlu1 %4029  ;;  %v4156_v23 = vld [vmem:[#allocation2 + $0x38] sm:$0xff] }
 0x6c0   : > { %4064 = vst.msk [vmem:[#allocation2 + $0x68] sm:$0xff] %vm788_vm5, %v4030_v62  ;;  %v4169_v45 = vpack.c.bf16 %v4157_v41, %v4156_v23  ;;  %v4183_v3 = vpack.c.bf16 %v4156_v23, %v4155_v20  ;;  %v4472_v18 = vpack.c.bf16 %v4156_v23, %v4458_v0  ;;  %v4496_v62 = vrot.slane %v4494_v2, 1 }
 0x6c1   : > { %4146 = vst.msk [vmem:[#allocation2 + $0x68] sm:$0xff] %vm872_vm8, %v4111_v16  ;;  %v4307_v41 = vor.u32 %v4306_v61, %v4303_v5  ;;  %v8037_v5 = vld [vmem:[%s12698_s3 + $0x58] sm:$0xff]  ;;  %v8043_v61 = vld [vmem:[%s12698_s3 + $0x88] sm:$0xff] }
 0x6c2   : > { %4204 = vrot.lane.b32.xlu1 %v4183_v3, %s8432_s29  ;;  %v4489_v42 = vshll.u32 %v4472_v18, 16  ;;  %v4309_v24 = vshrl.u32 %v4169_v45, 16  ;;  %v4312_v57 = vshll.u32 %v4169_v45, 16  ;;  %v4487_v36 = vshrl.u32 %v4472_v18, 16  ;;  %4420 = vmatpush.bf16.msrb.mxu0 %v8037_v5 }
 0x6c3   : > { %v4498_v3 = vshrl.u32 %v4473_v54, 16  ;;  %4599 = vmatpush.bf16.msrb.mxu1 %v8043_v61 }
 0x6c4   : > { %v4491_v11 = vrot.slane %v4489_v42, 1  ;;  %v4311_v19 = vrot.slane %v4309_v24, 3  ;;  %v4314_v53 = vrot.slane %v4312_v57, 4 }
 0x6c6   : > { %v3976_v60 = vpop.permute.xlu0 %3975  ;;  %v4492_v51 = vor.u32 %v4491_v11, %v4487_v36  ;;  %v4315_v20 = vor.u32 %v4314_v53, %v4311_v19  ;;  %v4040_v57 = vpop.permute.xlu2 %4039 }
 0x6c7   : > { %4012 = vst.msk [vmem:[#allocation2 + $0x88] sm:$0xff] %vm734_vm6, %v3976_v60  ;;  %v4032_v16 = vpop.permute.xlu1 %4031  ;;  %v8040_v60 = vld [vmem:[%s12698_s3 + $0x70] sm:$0xff] }
 0x6c8   : > { %4065 = vst.msk [vmem:[#allocation2 + $0x78] sm:$0xff] %vm788_vm5, %v4032_v16  ;;  %v4497_v32 = vsel %vm12899_vm10, %v4492_v51, %v4496_v62  ;;  %v4316_v12 = vsel %vm12900_vm3, %v4307_v41, %v4315_v20  ;;  %v4159_v23 = vld [vmem:[#allocation2 + $0x68] sm:$0xff]  ;;  %4262 = vmatpush.bf16.msrb.mxu3 %v8040_v60  ;;  %vm12909_vm10 = vcmask 915200   ;;  %vm12910_vm3 = vmmov %vm12908_vm13 }
 0x6c9   : > { %4147 = vst.msk [vmem:[#allocation2 + $0x78] sm:$0xff] %vm872_vm8, %v4113_v52  ;;  %4541 = vrot.lane.b32.xlu2 %v4497_v32, %s8432_s29  ;;  %v4170_v24 = vpack.c.bf16 %v4159_v23, %v4461_v21 }
 0x6ca   : > { %4362 = vrot.lane.b32.xlu1 %v4316_v12, %s8432_s29 }
 0x6cb   : > { %v4318_v19 = vshrl.u32 %v4170_v24, 16  ;;  %v4321_v53 = vshll.u32 %v4170_v24, 16 }
 0x6cd   : > { %v4320_v0 = vrot.slane %v4318_v19, 3  ;;  %v4323_v45 = vrot.slane %v4321_v53, 4 }
 0x6ce   : > { %v3978_v11 = vpop.permute.xlu0 %3977  ;;  %v4117_v42 = vpop.permute.xlu2 %4116 }
 0x6cf   : > { %4013 = vst.msk [vmem:[#allocation2 + $0x98] sm:$0xff] %vm734_vm6, %v3978_v11  ;;  %v4034_v51 = vpop.permute.xlu1 %4033  ;;  %v4324_v36 = vor.u32 %v4323_v45, %v4320_v0 }
 0x6d0   : > { %4066 = vst.msk [vmem:[#allocation2 + $0x88] sm:$0xff] %vm788_vm5, %v4034_v51  ;;  %v4463_v52 = vld [vmem:[#allocation2 + $0x78] sm:$0xff] }
 0x6d1   : > { %4148 = vst.msk [vmem:[#allocation2 + $0x88] sm:$0xff] %vm872_vm8, %v4115_v30  ;;  %4043 = vrot.lane.b32.xlu2 %v10504_v7, %s8431_s23  ;;  %v4474_v21 = vpack.c.bf16 %v4463_v52, %v4159_v23  ;;  %v4500_v30 = vor.u32 %v4498_v3, %v4496_v62  ;;  %v4325_v32 = vsel %vm12902_vm11, %v4315_v20, %v4324_v36  ;;  %vm12912_vm11 = vmmov %vm12910_vm3 }
 0x6d2   : > { %4206 = vrot.lane.b32.xlu1 %v4473_v54, %s8432_s29 }
 0x6d3   : > { %v4502_v18 = vshll.u32 %v4474_v21, 16 }
 0x6d5   : > { %v4504_v2 = vrot.slane %v4502_v18, 1 }
 0x6d6   : > { %v3980_v7 = vpop.permute.xlu0 %3979  ;;  %v4119_v24 = vpop.permute.xlu2 %4118 }
 0x6d7   : > { %4014 = vst.msk [vmem:[#allocation2 + $0xa8] sm:$0xff] %vm734_vm6, %v3980_v7  ;;  %v4036_v41 = vpop.permute.xlu1 %4035  ;;  %v4505_v54 = vsel %vm12901_vm4, %v4500_v30, %v4504_v2 }
 0x6d8   : > { %4067 = vst.msk [vmem:[#allocation2 + $0x98] sm:$0xff] %vm788_vm5, %v4036_v41  ;;  %v4161_v16 = vld [vmem:[#allocation2 + $0x88] sm:$0xff] }
 0x6d9   : > { %4149 = vst.msk [vmem:[#allocation2 + $0x98] sm:$0xff] %vm872_vm8, %v4117_v42  ;;  %4543 = vrot.lane.b32.xlu2 %v4505_v54, %s8432_s29  ;;  %v4171_v62 = vpack.c.bf16 %v4161_v16, %v4463_v52  ;;  %v4506_v52 = vshrl.u32 %v4474_v21, 16 }
 0x6da   : > { %4364 = vrot.lane.b32.xlu1 %v4325_v32, %s8432_s29 }
 0x6db   : > { %v4327_v12 = vshrl.u32 %v4171_v62, 16  ;;  %v4330_v23 = vshll.u32 %v4171_v62, 16  ;;  %v4508_v45 = vor.u32 %v4506_v52, %v4504_v2  ;;  %v8039_v62 = vld [vmem:[%s12698_s3 + $0x68] sm:$0xff] }
 0x6dc   : > { %4263 = vmatpush.bf16.msrb.mxu3 %v8039_v62 }
 0x6dd   : > { %v4329_v51 = vrot.slane %v4327_v12, 3  ;;  %v4332_v20 = vrot.slane %v4330_v23, 4  ;;  %v8036_v12 = vld [vmem:[%s12698_s3 + $0x50] sm:$0xff] }
 0x6de   : > { %v3982_v60 = vpop.permute.xlu0 %3981  ;;  %v4123_v42 = vpop.permute.xlu2 %4122  ;;  %4421 = vmatpush.bf16.msrb.mxu0 %v8036_v12 }
 0x6df   : > { %4015 = vst.msk [vmem:[#allocation2 + $0xb8] sm:$0xff] %vm734_vm6, %v3982_v60  ;;  %v4038_v19 = vpop.permute.xlu1 %4037  ;;  %v8041_v60 = vld [vmem:[%s12698_s3 + $0x78] sm:$0xff] }
 0x6e0   : > { %4069 = vst.msk [vmem:[#allocation2 + $0xb8] sm:$0xff] %vm788_vm5, %v4040_v57  ;;  %v4162_v53 = vld [vmem:[#allocation2 + $0x98] sm:$0xff]  ;;  %v4333_v57 = vor.u32 %v4332_v20, %v4329_v51 }
 0x6e1   : > { %4068 = vst.msk [vmem:[#allocation2 + $0xa8] sm:$0xff] %vm788_vm5, %v4038_v19  ;;  %4208 = vrot.lane.b32.xlu2 %v4474_v21, %s8432_s29  ;;  %v4186_v11 = vpack.c.bf16 %v4162_v53, %v4161_v16 }
 0x6e2   : > { %4150 = vst.msk [vmem:[#allocation2 + $0xa8] sm:$0xff] %vm872_vm8, %v4119_v24  ;;  %4045 = vrot.lane.b32.xlu1 %v10519_v10, %s8431_s23  ;;  %v4334_v21 = vsel %vm12904_vm7, %v4324_v36, %v4333_v57  ;;  %v8042_v36 = vld [vmem:[%s12698_s3 + $0x80] sm:$0xff]  ;;  %vm12914_vm7 = vmmov %vm12910_vm3 }
 0x6e3   : > { %4210 = vrot.lane.b32.xlu0 %v4186_v11, %s8432_s29  ;;  %v4510_v0 = vshll.u32 %v4186_v11, 16  ;;  %4600 = vmatpush.bf16.msrb.mxu1 %v8042_v36 }
 0x6e5   : > { %v4512_v3 = vrot.slane %v4510_v0, 1  ;;  %v4514_v0 = vshrl.u32 %v4186_v11, 16 }
 0x6e6   : > { %v3984_v18 = vpop.permute.xlu0 %3983 }
 0x6e7   : > { %4016 = vst.msk [vmem:[#allocation2 + $0xc8] sm:$0xff] %vm734_vm6, %v3984_v18  ;;  %v4042_v5 = vpop.permute.xlu1 %4041  ;;  %v4513_v61 = vsel %vm12903_vm12, %v4508_v45, %v4512_v3  ;;  %4601 = vmatpush.bf16.msrb.mxu1 %v8041_v60  ;;  %vm12913_vm12 = vmmov %vm12910_vm3 }
 0x6e8   : > { %4070 = vst.msk [vmem:[#allocation2 + $0xc8] sm:$0xff] %vm788_vm5, %v4042_v5  ;;  %v4516_v5 = vor.u32 %v4514_v0, %v4512_v3  ;;  %v8038_v3 = vld [vmem:[%s12698_s3 + $0x60] sm:$0xff] }
 0x6e9   : > { %v4163_v30 = vld [vmem:[#allocation2 + $0xa8] sm:$0xff]  ;;  %4152 = vst.msk [vmem:[#allocation2 + $0xc8] sm:$0xff] %vm872_vm8, %v4123_v42  ;;  %4545 = vrot.lane.b32.xlu2 %v4513_v61, %s8432_s29  ;;  %4264 = vmatpush.bf16.msrb.mxu3 %v8038_v3 }
 0x6ea   : > { %v4172_v7 = vpack.c.bf16 %v4163_v30, %v4162_v53  ;;  %4366 = vrot.lane.b32.xlu1 %v4334_v21, %s8432_s29 }
 0x6ec   : > { %v4336_v2 = vshrl.u32 %v4172_v7, 16  ;;  %v4339_v41 = vshll.u32 %v4172_v7, 16 }
 0x6ee   : > { %v4121_v54 = vpop.permute.xlu0 %4120  ;;  %v4338_v16 = vrot.slane %v4336_v2, 3  ;;  %v4341_v32 = vrot.slane %v4339_v41, 4 }
 0x6ef   : > { %4151 = vst.msk [vmem:[#allocation2 + $0xb8] sm:$0xff] %vm872_vm8, %v4121_v54  ;;  %vm12906_vm8 = vmmov %vm12901_vm4 }
 0x6f0   : > { %v4342_v23 = vor.u32 %v4341_v32, %v4338_v16  ;;  %v4165_v51 = vld [vmem:[#allocation2 + $0xc8] sm:$0xff] }
 0x6f1   : > { %v8035_v16 = vld [vmem:[%s12698_s3 + $0x48] sm:$0xff] }
 0x6f2   : > { %v4343_v24 = vsel %vm12905_vm9, %v4333_v57, %v4342_v23  ;;  %4422 = vmatpush.bf16.msrb.mxu0 %v8035_v16  ;;  %vm12915_vm9 = vmmov %vm12910_vm3 }
 0x6f3   : > { %4368 = vrot.lane.b32.xlu1 %v4343_v24, %s8432_s29 }
 0x6f6   : > { %v3986_v19 = vpop.permute.xlu0 %3985  ;;  %v4164_v53 = vld [vmem:[#allocation2 + $0xb8] sm:$0xff] }
 0x6f7   : > { %4017 = vst.msk [vmem:[#allocation2 + $0xd8] sm:$0xff] %vm734_vm6, %v3986_v19  ;;  %v4173_v20 = vpack.c.bf16 %v4165_v51, %v4164_v53  ;;  %v4187_v52 = vpack.c.bf16 %v4164_v53, %v4163_v30 }
 0x6f9   : > { %4212 = vrot.lane.b32.xlu0 %v4187_v52, %s8432_s29  ;;  %v4518_v45 = vshll.u32 %v4187_v52, 16  ;;  %v4345_v57 = vshrl.u32 %v4173_v20, 16  ;;  %v4348_v18 = vshll.u32 %v4173_v20, 16  ;;  %v4522_v60 = vshrl.u32 %v4187_v52, 16 }
 0x6fb   : > { %v4520_v61 = vrot.slane %v4518_v45, 1  ;;  %v4347_v42 = vrot.slane %v4345_v57, 3  ;;  %v4350_v21 = vrot.slane %v4348_v18, 4 }
 0x6fd   : > { %v4521_v7 = vsel %vm12906_vm8, %v4516_v5, %v4520_v61  ;;  %v10613_v2 = vor.u32 %v4350_v21, %v4347_v42  ;;  %v4524_v53 = vor.u32 %v4522_v60, %v4520_v61  ;;  %vm12916_vm8 = vmmov %vm12910_vm3 }
 0x6fe   : > { %4547 = vrot.lane.b32.xlu2 %v4521_v7, %s8432_s29  ;;  %v4125_v41 = vpop.permute.xlu0 %4124 }
 0x6ff   : > { %v4352_v30 = vsel %vm12907_vm14, %v4342_v23, %v10613_v2  ;;  %vm12917_vm14 = vmmov %vm12910_vm3 }
 0x700   : > { %4370 = vrot.lane.b32.xlu1 %v4352_v30, %s8432_s29 }
 0x706   : > { %v3988_v11 = vpop.permute.xlu0 %3987 }
 0x707   : > { %4018 = vst.msk [vmem:[#allocation2 + $0xe8] sm:$0xff] %vm734_vm6, %v3988_v11 }
 0x70e   : > { %v3990_v54 = vpop.permute.xlu0 %3989 }
 0x70f   : > { %4019 = vst.msk [vmem:[#allocation2 + $0xf8] sm:$0xff] %vm734_vm6, %v3990_v54  ;;  %vm12911_vm6 = vmmov %vm12910_vm3 }
 0x716   : > { %v4471_v7 = vld [vmem:[#allocation2 + $0xf8] sm:$0x1] }
 0x723   : > { %v4542_v32 = vpop.permute.xlu2 %4541 }
 0x724   : > { %7678 = vmatmul.msk.bf16.vlgmr.msrb.gmra.mxu1 %vm12908_vm13, %v4542_v32  ;;  %vm12918_vm13 = vmmov %vm12910_vm3 }
 0x72b   : > { %v4044_v62 = vpop.permute.xlu2 %4043 }
 0x72c   : > { %4071 = vst.msk [vmem:[#allocation2 + $0xd8] sm:$0xff] %vm788_vm5, %v4044_v62 }
 0x72d   : > { %4153 = vst.msk [vmem:[#allocation2 + $0xd8] sm:$0x3f] %vm12909_vm10, %v4125_v41  ;;  %vm12920_vm10 = vmmov %vm12910_vm3 }
 0x733   : > { %v4544_v12 = vpop.permute.xlu2 %4543 }
 0x734   : > { %v4205_v36 = vpop.permute.xlu1 %4204  ;;  %7679 = vmatmul.msk.bf16.gmra.mxu1 %vm12910_vm3, %v4544_v12  ;;  %v4166_v23 = vld [vmem:[#allocation2 + $0xd8] sm:$0xff]  ;;  %vm12921_vm3 = vsmask.f32 4352 }
 0x735   : > { %7634 = vmatmul.msk.bf16.vlgmr.msrb.gmra.mxu3 %vm12911_vm6, %v4205_v36  ;;  %v4188_v24 = vpack.c.bf16 %v4166_v23, %v4165_v51 }
 0x737   : > { %4214 = vrot.lane.b32.xlu0 %v4188_v24, %s8432_s29  ;;  %v4526_v19 = vshll.u32 %v4188_v24, 16  ;;  %v4530_v54 = vshrl.u32 %v4188_v24, 16 }
 0x739   : > { %v4528_v20 = vrot.slane %v4526_v19, 1 }
 0x73b   : > { %v4209_v0 = vpop.permute.xlu2 %4208  ;;  %v4529_v45 = vsel %vm12901_vm4, %v4524_v53, %v4528_v20  ;;  %v4532_v12 = vor.u32 %v4530_v54, %v4528_v20  ;;  %v8227_v53 = vpop.eup %8226  ;;  %v8046_v54 = vld [vmem:[%s12700_s5 + $0x30] sm:$0xff] }
 0x73c   : > { %v4363_v57 = vpop.permute.xlu1 %4362  ;;  %4549 = vrot.lane.b32.xlu2 %v4529_v45, %s8432_s29  ;;  %v10654_v20 = vmul.f32 0.6931472, %v8227_v53  ;;  %v8229_v46 = vpop.eup %8228 }
 0x73d   : > { %7653 = vmatmul.msk.bf16.vlgmr.msrb.gmra.mxu0 %vm12912_vm11, %v4363_v57 }
 0x743   : > { %v4546_v18 = vpop.permute.xlu2 %4545 }
 0x744   : > { %v4207_v5 = vpop.permute.xlu1 %4206  ;;  %7680 = vmatmul.msk.bf16.gmra.mxu1 %vm12913_vm12, %v4546_v18 }
 0x745   : > { %7635 = vmatmul.msk.bf16.gmra.mxu3 %vm12914_vm7, %v4207_v5 }
 0x74c   : > { %v4365_v51 = vpop.permute.xlu1 %4364 }
 0x74d   : > { %7654 = vmatmul.msk.bf16.gmra.mxu0 %vm12915_vm9, %v4365_v51  ;;  %v8231_v51 = vpop.eup %8230 }
 0x74e   : > { %v10674_v27 = vmul.f32 0.6931472, %v8231_v51 }
 0x754   : > { %v4046_v52 = vpop.permute.xlu1 %4045 }
 0x755   : > { %4072 = vst.msk [vmem:[#allocation2 + $0xe8] sm:$0xff] %vm788_vm5, %v4046_v52  ;;  %7636 = vmatmul.msk.bf16.gmra.mxu3 %vm12916_vm8, %v4209_v0  ;;  %vm12919_vm5 = vmmov %vm12901_vm4  ;;  %v4211_v37 = vpop.permute.xlu0 %4210  ;;  %vm12931_vm8 = vcmask 523264  }
 0x756   : > { %vm12924_vm4 = vmmov %vm12911_vm6 }
 0x757   : > { %vm12927_vm11 = vmmov %vm12924_vm4 }
 0x758   : > { %v4548_v61 = vpop.permute.xlu2 %4547  ;;  %vm12928_vm12 = vmmov %vm12924_vm4 }
 0x759   : > { %7681 = vmatmul.msk.bf16.gmra.mxu1 %vm12917_vm14, %v4548_v61  ;;  %v12922_v61 = vld [vmem:[#allocation24_spill] sm:$0xff]  ;;  %vm12929_vm7 = vmmov %vm12924_vm4 }
 0x75a   : > { %vm12930_vm9 = vmmov %vm12924_vm4 }
 0x75b   : > { %vm12932_vm14 = vmmov %vm12924_vm4 }
 0x75c   : > { %v4367_v42 = vpop.permute.xlu1 %4366  ;;  %v4182_v21 = vld [vmem:[#allocation2 + $0xe8] sm:$0xff] }
 0x75d   : > { %v4167_v41 = vld [vmem:[#allocation2 + $0xe8] sm:$0x7f]  ;;  %7655 = vmatmul.msk.bf16.gmra.mxu0 %vm12918_vm13, %v4367_v42  ;;  %v4189_v30 = vpack.c.bf16 %v4182_v21, %v4182_v21  ;;  %v4478_v11 = vpack.c.bf16 %v4471_v7, %v4182_v21  ;;  %v12923_v42 = vrot.slane %v12922_v61, 2  ;;  %v12925_v21 = vld [vmem:[#allocation23_spill] sm:$0xff]  ;;  %v10744_v61 = vld [vmem:[%s12699_s4 + $0x1] ss:$0 sm:$0xff] }
 0x75e   : > { %v4174_v3 = vpack.c.bf16 %v4167_v41, %v4166_v23  ;;  %v8047_v23 = vld [vmem:[%s12700_s5 + $0x38] sm:$0xff]  ;;  %v12926_v7 = vrot.slane %v12925_v21, 6  ;;  %v8233_v41 = vpop.eup %8232  ;;  %vm12933_vm13 = vmmov %vm12924_vm4 }
 0x75f   : > { %4216 = vrot.lane.b32.xlu0 %v4189_v30, %s8432_s29  ;;  %v4534_v16 = vshll.u32 %v4478_v11, 16  ;;  %4751 = vmatpush.bf16.msra.mxu2 %v8047_v23  ;;  %v4538_v57 = vshrl.u32 %v4478_v11, 16  ;;  %v8235_v31 = vpop.eup %8234  ;;  %v10682_v30 = vmul.f32 0.6931472, %v8233_v41  ;;  %v8044_v23 = vld [vmem:[%s12700_s5 + $0x20] sm:$0xff] }
 0x760   : > { %v4354_v32 = vshrl.u32 %v4174_v3, 16  ;;  %v4357_v62 = vshll.u32 %v4174_v3, 16  ;;  %v8237_v50 = vpop.eup %8236  ;;  %v10687_v11 = vmul.f32 0.6931472, %v8235_v31 }
 0x761   : > { %v4536_v36 = vrot.slane %v4534_v16, 1  ;;  %v10691_v3 = vmul.f32 0.6931472, %v8237_v50  ;;  %v8239_v22 = vpop.eup %8238 }
 0x762   : > { %v4356_v60 = vrot.slane %v4354_v32, 3  ;;  %v4359_v19 = vrot.slane %v4357_v62, 4  ;;  %v8241_v35 = vpop.eup %8240  ;;  %v10701_v14 = vmul.f32 0.6931472, %v8239_v22 }
 0x763   : > { %v4537_v0 = vsel %vm12919_vm5, %v4532_v12, %v4536_v36  ;;  %v4540_v18 = vor.u32 %v4538_v57, %v4536_v36  ;;  %v8243_v16 = vpop.eup %8242  ;;  %4752 = vmatpush.bf16.msra.mxu2 %v8046_v54  ;;  %v10706_v32 = vmul.f32 0.6931472, %v8241_v35  ;;  %vm12934_vm5 = vmmov %vm12924_vm4 }
 0x764   : > { %v4360_v45 = vor.u32 %v4359_v19, %v4356_v60  ;;  %4551 = vrot.lane.b32.xlu2 %v4537_v0, %s8432_s29  ;;  %v10708_v62 = vmul.f32 0.6931472, %v8243_v16  ;;  %v8245_v26 = vpop.eup %8244 }
 0x765   : > { %7637 = vmatmul.msk.bf16.gmra.mxu3 %vm12920_vm10, %v4211_v37  ;;  %v4369_v5 = vpop.permute.xlu1 %4368  ;;  %v8247_v12 = vpop.eup %8246  ;;  %v10715_v36 = vmul.f32 0.6931472, %v8245_v26  ;;  %vm12935_vm10 = vmmov %vm12931_vm8 }
 0x766   : > { %v4361_v24 = vsel %vm12921_vm3, %v10613_v2, %v4360_v45  ;;  %v10662_v2 = vmul.f32 0.6931472, %v8229_v46  ;;  %v10720_v4 = vmul.f32 0.6931472, %v8247_v12  ;;  %v8249_v60 = vpop.eup %8248  ;;  %vm12936_vm3 = vmmov %vm12924_vm4 }
 0x767   : > { %4372 = vrot.lane.b32.xlu1 %v4361_v24, %s8432_s29  ;;  %3598 = vrot.lane.b32.xlu0 %v10654_v20, %s8436_s25  ;;  %v8251_v19 = vpop.eup %8250  ;;  %v10724_v53 = vmul.f32 0.6931472, %v8249_v60 }
 0x768   : > { %v10728_v34 = vmul.f32 0.6931472, %v8251_v19  ;;  %4753 = vmatpush.bf16.msra.mxu2 %v8045_v55 }
 0x76b   : > { %v4213_v52 = vpop.permute.xlu0 %4212 }
 0x76c   : > { %4553 = vrot.lane.b32.xlu2 %v4540_v18, %s8432_s29  ;;  %4754 = vmatpush.bf16.msra.mxu2 %v8044_v23 }
 0x76d   : > { %7656 = vmatmul.msk.bf16.gmra.mxu0 %vm12911_vm6, %v4369_v5  ;;  %vm12937_vm6 = vmmov %vm12931_vm8 }
 0x76f   : > { %4374 = vrot.lane.b32.xlu1 %v4360_v45, %s8432_s29  ;;  %3604 = vrot.lane.b32.xlu0 %v10662_v2, %s8436_s25 }
 0x772   : > { %v4371_v49 = vpop.permute.xlu1 %4370 }
 0x774   : > { %828 = vrot.lane.b32.xlu2 %v12923_v42, %s8433_s30 }
 0x775   : > { %7638 = vmatmul.msk.bf16.gmra.mxu3 %vm12924_vm4, %v4213_v52  ;;  %vm12938_vm4 = vmmov %vm12937_vm6 }
 0x777   : > { %716 = vrot.lane.b32.xlu1 %v12926_v7, %s8432_s29  ;;  %3610 = vrot.lane.b32.xlu0 %v10674_v27, %s8436_s25 }
 0x77c   : > { %3602 = vrot.lane.b32.xlu2 %v10682_v30, %s8436_s25 }
 0x77d   : > { %7657 = vmatmul.msk.bf16.gmra.mxu0 %vm12927_vm11, %v4371_v49  ;;  %vm12939_vm11 = vmmov %vm12938_vm4 }
 0x77f   : > { %3600 = vrot.lane.b32.xlu1 %v10687_v11, %s8436_s25  ;;  %3616 = vrot.lane.b32.xlu0 %v10691_v3, %s8436_s25 }
 0x784   : > { %3608 = vrot.lane.b32.xlu2 %v10701_v14, %s8436_s25 }
 0x787   : > { %3606 = vrot.lane.b32.xlu1 %v10706_v32, %s8436_s25  ;;  %3622 = vrot.lane.b32.xlu0 %v10708_v62, %s8436_s25 }
 0x78c   : > { %3614 = vrot.lane.b32.xlu2 %v10715_v36, %s8436_s25 }
 0x78f   : > { %3612 = vrot.lane.b32.xlu1 %v10720_v4, %s8436_s25 }
 0x794   : > { %3620 = vrot.lane.b32.xlu2 %v10724_v53, %s8436_s25 }
 0x796   : > { %v4550_v0 = vpop.permute.xlu2 %4549 }
 0x797   : > { %3618 = vrot.lane.b32.xlu1 %v10728_v34, %s8436_s25  ;;  %7682 = vmatmul.msk.bf16.gmra.mxu1 %vm12928_vm12, %v4550_v0  ;;  %vm12940_vm12 = vcmask 523266  }
 0x7a1   : > { %v4603_v37 = vpop.f32.mrf.mxu1 }
 0x7a9   : > { %v4215_v45 = vpop.permute.xlu0 %4214  ;;  %v4605_v57 = vpop.f32.mrf.mxu1 }
 0x7aa   : > { %7639 = vmatmul.msk.bf16.gmra.mxu3 %vm12929_vm7, %v4215_v45  ;;  %vm12941_vm7 = vmmov %vm12938_vm4 }
 0x7b1   : > { %v4608_v21 = vpop.f32.mrf.mxu1 }
 0x7b8   : > { %v4266_v24 = vpop.f32.mrf.mxu3 }
 0x7b9   : > { %v4610_v12 = vpop.f32.mrf.mxu1 }
 0x7ba   : > { %v4424_v46 = vpop.f32.mrf.mxu0 }
 0x7bb   : > { %v4425_v18 = vadd.f32 %v4424_v46, %v4266_v24 }
 0x7bd   : > { %v4637_v52 = vadd.f32 %v4603_v37, %v4425_v18 }
 0x7be   : > { %v4552_v5 = vpop.permute.xlu2 %4551 }
 0x7bf   : > { %7683 = vmatmul.msk.bf16.gmra.mxu1 %vm12930_vm9, %v4552_v5  ;;  %v4655_v41 = vadd.f32 %v10744_v61, %v4637_v52  ;;  %vm12942_vm9 = vmmov %vm12938_vm4 }
 0x7c0   : > { %v4268_v51 = vpop.f32.mrf.mxu3 }
 0x7c1   : > { %v4668_v35 = vmax.f32 %v4655_v41, 0.0  ;;  %v4613_v18 = vpop.f32.mrf.mxu1 }
 0x7c2   : > { %v4426_v42 = vpop.f32.mrf.mxu0 }
 0x7c3   : > { %v4427_v7 = vadd.f32 %v4426_v42, %v4268_v51 }
 0x7c5   : > { %v4638_v31 = vadd.f32 %v4605_v57, %v4427_v7 }
 0x7c6   : > { %v4554_v50 = vpop.permute.xlu2 %4553 }
 0x7c7   : > { %v4656_v49 = vadd.f32 %v10744_v61, %v4638_v31 }
 0x7c8   : > { %v4271_v22 = vpop.f32.mrf.mxu3 }
 0x7c9   : > { %v4669_v54 = vmax.f32 %v4656_v49, 0.0 }
 0x7ca   : > { %v4429_v16 = vpop.f32.mrf.mxu0 }
 0x7cb   : > { %v4681_v26 = vpack.c.bf16 %v4669_v54, %v4668_v35  ;;  %v4430_v60 = vadd.f32 %v4429_v16, %v4271_v22 }
 0x7cd   : > { %7711 = vmatmul.msk.bf16.vlgmr.msra.gmra.mxu2 %vm12931_vm8, %v4681_v26  ;;  %v4639_v55 = vadd.f32 %v4608_v21, %v4430_v60  ;;  %vm12943_vm8 = vmmov %vm12938_vm4 }
 0x7ce   : > { %v829_v19 = vpop.permute.xlu2 %828 }
 0x7cf   : > { %7684 = vmatmul.msk.bf16.gmra.mxu1 %vm12932_vm14, %v4554_v50  ;;  %v4657_v24 = vadd.f32 %v10744_v61, %v4639_v55  ;;  %vm12944_vm14 = vmmov %vm12938_vm4 }
 0x7d0   : > { %v4273_v0 = vpop.f32.mrf.mxu3 }
 0x7d1   : > { %v4217_v45 = vpop.permute.xlu0 %4216  ;;  %v4670_v7 = vmax.f32 %v4657_v24, 0.0 }
 0x7d2   : > { %7640 = vmatmul.msk.bf16.gmra.mxu3 %vm12933_vm13, %v4217_v45  ;;  %v4431_v37 = vpop.f32.mrf.mxu0  ;;  %vm12945_vm13 = vmmov %vm12938_vm4 }
 0x7d3   : > { %v4432_v23 = vadd.f32 %v4431_v37, %v4273_v0 }
 0x7d5   : > { %v4640_v57 = vadd.f32 %v4610_v12, %v4432_v23  ;;  %v4615_v12 = vpop.f32.mrf.mxu1 }
 0x7d6   : > { %v3603_v46 = vpop.permute.xlu2 %3602 }
 0x7d7   : > { %v4658_v5 = vadd.f32 %v10744_v61, %v4640_v57  ;;  %v3643_v51 = vsel %vm637_vm0, %v3603_v46, 0.0 }
 0x7d8   : > { %v4276_v52 = vpop.f32.mrf.mxu3  ;;  %3644 = vadd.xlane.f32.xlu0 %v3643_v51 }
 0x7d9   : > { %v4373_v42 = vpop.permute.xlu1 %4372  ;;  %v4671_v41 = vmax.f32 %v4658_v5, 0.0  ;;  %v3599_v21 = vpop.permute.xlu0 %3598 }
 0x7da   : > { %7658 = vmatmul.msk.bf16.gmra.mxu0 %vm12934_vm5, %v4373_v42  ;;  %v4434_v31 = vpop.f32.mrf.mxu0  ;;  %v3637_v50 = vsel %vm637_vm0, %v3599_v21, 0.0  ;;  %vm12946_vm5 = vmmov %vm12938_vm4 }
 0x7db   : > { %3638 = vadd.xlane.f32.xlu1 %v3637_v50  ;;  %v4682_v49 = vpack.c.bf16 %v4671_v41, %v4670_v7  ;;  %v4435_v22 = vadd.f32 %v4434_v31, %v4276_v52 }
 0x7dd   : > { %7712 = vmatmul.msk.bf16.gmra.mxu2 %vm12935_vm10, %v4682_v49  ;;  %v4641_v16 = vadd.f32 %v4613_v18, %v4435_v22  ;;  %v4618_v5 = vpop.f32.mrf.mxu1  ;;  %vm12947_vm10 = vmmov %vm12938_vm4 }
 0x7df   : > { %v4659_v0 = vadd.f32 %v10744_v61, %v4641_v16 }
 0x7e0   : > { %v4278_v35 = vpop.f32.mrf.mxu3 }
 0x7e1   : > { %v4375_v54 = vpop.permute.xlu1 %4374  ;;  %v3605_v26 = vpop.permute.xlu0 %3604  ;;  %v4672_v24 = vmax.f32 %v4659_v0, 0.0 }
 0x7e2   : > { %v4436_v60 = vpop.f32.mrf.mxu0 }
 0x7e3   : > { %v4437_v19 = vadd.f32 %v4436_v60, %v4278_v35 }
 0x7e5   : > { %v4642_v55 = vadd.f32 %v4615_v12, %v4437_v19  ;;  %v4620_v22 = vpop.f32.mrf.mxu1 }
 0x7e7   : > { %v4660_v45 = vadd.f32 %v10744_v61, %v4642_v55  ;;  %v3646_v55 = vsel %vm637_vm0, %v3605_v26, 0.0 }
 0x7e8   : > { %v4281_v23 = vpop.f32.mrf.mxu3 }
 0x7e9   : > { %v717_v37 = vpop.permute.xlu1 %716  ;;  %v4673_v57 = vmax.f32 %v4660_v45, 0.0  ;;  %v3611_v46 = vpop.permute.xlu0 %3610 }
 0x7ea   : > { %7659 = vmatmul.msk.bf16.gmra.mxu0 %vm12936_vm3, %v4375_v54  ;;  %v4439_v51 = vpop.f32.mrf.mxu0  ;;  %v3655_v18 = vsel %vm637_vm0, %v3611_v46, 0.0  ;;  %v3609_v37 = vpop.permute.xlu2 %3608  ;;  %vm12948_vm3 = vmmov %vm12938_vm4 }
 0x7eb   : > { %3656 = vadd.xlane.f32.xlu0 %v3655_v18  ;;  %v4683_v52 = vpack.c.bf16 %v4673_v57, %v4672_v24  ;;  %v4440_v42 = vadd.f32 %v4439_v51, %v4281_v23  ;;  %v3652_v23 = vsel %vm637_vm0, %v3609_v37, 0.0  ;;  %v8071_v37 = vld [vmem:[%s12702_s7 + $0x1d8] sm:$0xff] }
 0x7ec   : > { %5235 = vmatpush.bf16.msra.mxu0 %v8071_v37  ;;  %v8068_v37 = vld [vmem:[%s12702_s7 + $0x1c0] sm:$0xff] }
 0x7ed   : > { %7713 = vmatmul.msk.bf16.gmra.mxu2 %vm12937_vm6, %v4683_v52  ;;  %v4643_v41 = vadd.f32 %v4618_v5, %v4440_v42  ;;  %vm12949_vm6 = vmmov %vm12948_vm3 }
 0x7ef   : > { %v4661_v35 = vadd.f32 %v10744_v61, %v4643_v41 }
 0x7f0   : > { %v4283_v31 = vpop.f32.mrf.mxu3 }
 0x7f1   : > { %v3601_v7 = vpop.permute.xlu1 %3600  ;;  %v4674_v60 = vmax.f32 %v4661_v35, 0.0 }
 0x7f2   : > { %v3640_v21 = vsel %vm637_vm0, %v3601_v7, 0.0  ;;  %v4441_v50 = vpop.f32.mrf.mxu0  ;;  %v3615_v24 = vpop.permute.xlu2 %3614 }
 0x7f3   : > { %3641 = vadd.xlane.f32.xlu2 %v3640_v21  ;;  %v4442_v49 = vadd.f32 %v4441_v50, %v4283_v31  ;;  %v3661_v57 = vsel %vm637_vm0, %v3615_v24, 0.0 }
 0x7f5   : > { %v4644_v54 = vadd.f32 %v4620_v22, %v4442_v49 }
 0x7f7   : > { %v4662_v16 = vadd.f32 %v10744_v61, %v4644_v54 }
 0x7f8   : > { %v4286_v5 = vpop.f32.mrf.mxu3 }
 0x7f9   : > { %v3607_v12 = vpop.permute.xlu1 %3606  ;;  %v4675_v19 = vmax.f32 %v4662_v16, 0.0 }
 0x7fa   : > { %v3649_v0 = vsel %vm637_vm0, %v3607_v12, 0.0  ;;  %v4444_v46 = vpop.f32.mrf.mxu0 }
 0x7fb   : > { %3650 = vadd.xlane.f32.xlu1 %v3649_v0  ;;  %3647 = vadd.xlane.f32.xlu2 %v3646_v55  ;;  %v4684_v45 = vpack.c.bf16 %v4675_v19, %v4674_v60  ;;  %v4445_v18 = vadd.f32 %v4444_v46, %v4286_v5  ;;  %v10776_v0 = vld [vmem:[%s12701_s6 + $0x1] ss:$0 sm:$0xff] }
 0x7fd   : > { %7714 = vmatmul.msk.bf16.gmra.mxu2 %vm12938_vm4, %v4684_v45  ;;  %vm12950_vm4 = vsmask.f32 4352 }
 0x800   : > { %v4288_v26 = vpop.f32.mrf.mxu3 }
 0x802   : > { %v4446_v52 = vpop.f32.mrf.mxu0 }
 0x803   : > { %3653 = vadd.xlane.f32.xlu2 %v3652_v23  ;;  %v4447_v7 = vadd.f32 %v4446_v52, %v4288_v26 }
 0x80b   : > { %3662 = vadd.xlane.f32.xlu2 %v3661_v57 }
 0x814   : > { %v4623_v51 = vpop.f32.mrf.mxu1 }
 0x815   : > { %v4645_v42 = vadd.f32 %v4623_v51, %v4445_v18 }
 0x817   : > { %v4663_v21 = vadd.f32 %v10744_v61, %v4645_v42 }
 0x819   : > { %v4676_v49 = vmax.f32 %v4663_v21, 0.0 }
 0x81c   : > { %v4625_v41 = vpop.f32.mrf.mxu1 }
 0x81d   : > { %v4646_v31 = vadd.f32 %v4625_v41, %v4447_v7  ;;  %v8069_v7 = vld [vmem:[%s12702_s7 + $0x1c8] sm:$0xff] }
 0x81f   : > { %v4664_v50 = vadd.f32 %v10744_v61, %v4646_v31 }
 0x821   : > { %v4677_v22 = vmax.f32 %v4664_v50, 0.0 }
 0x823   : > { %v4685_v35 = vpack.c.bf16 %v4677_v22, %v4676_v49 }
 0x825   : > { %7715 = vmatmul.msk.bf16.gmra.mxu2 %vm12939_vm11, %v4685_v35  ;;  %vm12951_vm11 = vmmov %vm12948_vm3 }
 0x82d   : > { %v4291_v16 = vpop.f32.mrf.mxu3 }
 0x835   : > { %v4293_v19 = vpop.f32.mrf.mxu3 }
 0x83c   : > { %v4628_v54 = vpop.f32.mrf.mxu1 }
 0x844   : > { %v4630_v12 = vpop.f32.mrf.mxu1 }
 0x84c   : > { %v4633_v60 = vpop.f32.mrf.mxu1 }
 0x850   : > { %v4756_v55 = vpop.f32.mrf.mxu2 }
 0x851   : > { %v4757_v45 = vadd.f32 %v10776_v0, %v4756_v55 }
 0x853   : > { %v4790_v23 = vmax.f32 %v4757_v45, 0.0 }
 0x854   : > { %v4635_v24 = vpop.f32.mrf.mxu1 }
 0x855   : > { %v10783_v57 = vmul.f32 %v4790_v23, %v8614_v38  ;;  %v4296_v46 = vpop.f32.mrf.mxu3  ;;  %v8070_v38 = vld [vmem:[%s12702_s7 + $0x1d0] sm:$0xff] }
 0x856   : > { %5236 = vmatpush.bf16.msra.mxu0 %v8070_v38 }
 0x857   : > { %v4449_v5 = vpop.f32.mrf.mxu0  ;;  %v4829_v51 = vrot.slane %v10783_v57, 6  ;;  %4882 = vrot.lane.b32.xlu0 %v10783_v57, %s8432_s29  ;;  %v4934_v49 = vrot.slane %v10783_v57, 2 }
 0x858   : > { %v4758_v18 = vpop.f32.mrf.mxu2  ;;  %v4450_v52 = vadd.f32 %v4449_v5, %v4291_v16 }
 0x859   : > { %4868 = vst.msk [vmem:[#allocation2 + $0x30] sm:$0xfc] %vm12940_vm12, %v4829_v51  ;;  %v4759_v42 = vadd.f32 %v10776_v0, %v4758_v18  ;;  %vm12952_vm12 = vmmov %vm12948_vm3 }
 0x85a   : > { %v4647_v41 = vadd.f32 %v4628_v54, %v4450_v52  ;;  %5237 = vmatpush.bf16.msra.mxu0 %v8069_v7 }
 0x85b   : > { %v4791_v26 = vmax.f32 %v4759_v42, 0.0 }
 0x85c   : > { %v4665_v55 = vadd.f32 %v10744_v61, %v4647_v41 }
 0x85d   : > { %v10799_v21 = vmul.f32 %v4791_v26, %v12864_v33  ;;  %v4298_v31 = vpop.f32.mrf.mxu3 }
 0x85e   : > { %5238 = vmatpush.bf16.msra.mxu0 %v8068_v37  ;;  %v4678_v5 = vmax.f32 %v4665_v55, 0.0 }
 0x85f   : > { %v4451_v50 = vpop.f32.mrf.mxu0  ;;  %v4935_v22 = vrot.slane %v10799_v21, 2  ;;  %4884 = vrot.lane.b32.xlu1 %v10799_v21, %s8432_s29 }
 0x860   : > { %v4452_v35 = vadd.f32 %v4451_v50, %v4293_v19  ;;  %v4761_v16 = vpop.f32.mrf.mxu2  ;;  %v8059_v19 = vld [vmem:[%s12702_s7 + $0x178] sm:$0xff] }
 0x861   : > { %v4936_v45 = vsel %vm802_vm1, %v4934_v49, %v4935_v22  ;;  %v4762_v33 = vadd.f32 %v10776_v0, %v4761_v16  ;;  %5545 = vmatpush.bf16.msrb.mxu2 %v8059_v19 }
 0x862   : > { %v4648_v54 = vadd.f32 %v4630_v12, %v4452_v35  ;;  %4974 = vst.msk [vmem:[#allocation2 + $0x18] sm:$0xff] %vm12941_vm7, %v4936_v45  ;;  %vm12953_vm7 = vmmov %vm12948_vm3 }
 0x863   : > { %v4792_v24 = vmax.f32 %v4762_v33, 0.0 }
 0x864   : > { %v4666_v23 = vadd.f32 %v10744_v61, %v4648_v54 }
 0x865   : > { %v10817_v12 = vmul.f32 %v4792_v24, %v12867_v47  ;;  %v8058_v47 = vld [vmem:[%s12702_s7 + $0x170] sm:$0xff] }
 0x866   : > { %v4679_v18 = vmax.f32 %v4666_v23, 0.0  ;;  %5546 = vmatpush.bf16.msrb.mxu2 %v8058_v47 }
 0x867   : > { %v4454_v52 = vpop.f32.mrf.mxu0  ;;  %v4937_v42 = vrot.slane %v10817_v12, 2  ;;  %4886 = vrot.lane.b32.xlu2 %v10817_v12, %s8432_s29 }
 0x868   : > { %v4455_v38 = vadd.f32 %v4454_v52, %v4296_v46  ;;  %v4686_v26 = vpack.c.bf16 %v4679_v18, %v4678_v5  ;;  %v4763_v7 = vpop.f32.mrf.mxu2  ;;  %v8057_v46 = vld [vmem:[%s12702_s7 + $0x168] sm:$0xff] }
 0x869   : > { %v4938_v41 = vsel %vm802_vm1, %v4935_v22, %v4937_v42  ;;  %v4764_v31 = vadd.f32 %v10776_v0, %v4763_v7 }
 0x86a   : > { %7716 = vmatmul.msk.bf16.gmra.mxu2 %vm12942_vm9, %v4686_v26  ;;  %4975 = vst.msk [vmem:[#allocation2 + $0x28] sm:$0xff] %vm12943_vm8, %v4938_v41  ;;  %v4649_v50 = vadd.f32 %v4633_v60, %v4455_v38  ;;  %vm12954_vm9 = vmmov %vm12950_vm4 }
 0x86b   : > { %v4793_v49 = vmax.f32 %v4764_v31, 0.0  ;;  %5547 = vmatpush.bf16.msrb.mxu2 %v8057_v46  ;;  %vm12955_vm8 = vmmov %vm12948_vm3 }
 0x86c   : > { %v4667_v16 = vadd.f32 %v10744_v61, %v4649_v50 }
 0x86d   : > { %v10833_v35 = vmul.f32 %v4793_v49, %v12870_v15  ;;  %v8056_v15 = vld [vmem:[%s12702_s7 + $0x160] sm:$0xff] }
 0x86e   : > { %v4680_v33 = vmax.f32 %v4667_v16, 0.0 }
 0x86f   : > { %v4456_v22 = vpop.f32.mrf.mxu0  ;;  %v4939_v55 = vrot.slane %v10833_v35, 2  ;;  %4888 = vrot.lane.b32.xlu0 %v10833_v35, %s8432_s29  ;;  %5548 = vmatpush.bf16.msrb.mxu2 %v8056_v15 }
 0x870   : > { %v4766_v45 = vpop.f32.mrf.mxu2  ;;  %v4687_v19 = vpack.c.bf16 %v4680_v33, %v4680_v33  ;;  %v3613_v33 = vpop.permute.xlu1 %3612 }
 0x871   : > { %v4940_v60 = vsel %vm802_vm1, %v4937_v42, %v4939_v55  ;;  %v4767_v54 = vadd.f32 %v10776_v0, %v4766_v45  ;;  %v4990_v52 = vld [vmem:[#allocation2 + $0x28] sm:$0xff] }
 0x872   : > { %4976 = vst.msk [vmem:[#allocation2 + $0x38] sm:$0xff] %vm12944_vm14, %v4940_v60  ;;  %vm12956_vm14 = vmmov %vm12948_vm3 }
 0x873   : > { %v4794_v37 = vmax.f32 %v4767_v54, 0.0 }
 0x875   : > { %v10846_v61 = vmul.f32 %v4794_v37, %v12873_v44  ;;  %v4988_v44 = vld [vmem:[#allocation2 + $0x18] sm:$0x80] }
 0x876   : > { %v5016_v7 = vpack.c.bf16 %v4990_v52, %v4988_v44 }
 0x877   : > { %v4941_v23 = vrot.slane %v10846_v61, 2 }
 0x878   : > { %v4768_v24 = vpop.f32.mrf.mxu2  ;;  %v5292_v50 = vshrl.u32 %v5016_v7, 16  ;;  %v5295_v49 = vshll.u32 %v5016_v7, 16 }
 0x879   : > { %v4942_v5 = vsel %vm802_vm1, %v4939_v55, %v4941_v23  ;;  %v4769_v18 = vadd.f32 %v10776_v0, %v4768_v24  ;;  %v10852_v42 = vld [vmem:[#allocation2 + $0x38] sm:$0xff] }
 0x87a   : > { %7717 = vmatmul.msk.bf16.gmra.mxu2 %vm12945_vm13, %v4687_v19  ;;  %4977 = vst.msk [vmem:[#allocation2 + $0x48] sm:$0xff] %vm12946_vm5, %v4942_v5  ;;  %v5057_v38 = vpack.c.bf16 %v10852_v42, %v4990_v52  ;;  %v5297_v60 = vrot.slane %v5295_v49, 4  ;;  %vm12957_vm13 = vmmov %vm12948_vm3 }
 0x87b   : > { %v4795_v26 = vmax.f32 %v4769_v18, 0.0  ;;  %v3658_v18 = vsel %vm637_vm0, %v3613_v33, 0.0  ;;  %vm12958_vm5 = vmmov %vm12948_vm3 }
 0x87c   : > { %7814 = vmatmul.msk.bf16.vlgmr.msra.gmra.mxu0 %vm12947_vm10, %v5057_v38  ;;  %vm12959_vm10 = vmmov %vm12948_vm3 }
 0x87d   : > { %v10858_v41 = vmul.f32 %v4795_v26, %v12876_v59  ;;  %v5294_v59 = vrot.slane %v5292_v50, 3 }
 0x87f   : > { %v4943_v31 = vrot.slane %v10858_v41, 2  ;;  %4892 = vrot.lane.b32.xlu2 %v10858_v41, %s8432_s29  ;;  %v5298_v52 = vor.u32 %v5297_v60, %v5294_v59  ;;  %v3617_v60 = vpop.permute.xlu0 %3616 }
 0x880   : > { %v4771_v47 = vpop.f32.mrf.mxu2 }
 0x881   : > { %v4944_v46 = vsel %vm802_vm1, %v4941_v23, %v4943_v31  ;;  %v4772_v22 = vadd.f32 %v10776_v0, %v4771_v47  ;;  %v4994_v16 = vld [vmem:[#allocation2 + $0x48] sm:$0xff] }
 0x882   : > { %4978 = vst.msk [vmem:[#allocation2 + $0x58] sm:$0xff] %vm12948_vm3, %v4944_v46  ;;  %v5018_v55 = vpack.c.bf16 %v4994_v16, %v10852_v42 }
 0x883   : > { %v4796_v45 = vmax.f32 %v4772_v22, 0.0 }
 0x884   : > { %v5300_v54 = vshrl.u32 %v5018_v55, 16  ;;  %v5303_v15 = vshll.u32 %v5018_v55, 16 }
 0x885   : > { %v10868_v37 = vmul.f32 %v4796_v45, %v12879_v58  ;;  %v10887_v45 = vpop.permute.xlu2 %3620 }
 0x886   : > { %v5302_v19 = vrot.slane %v5300_v54, 3  ;;  %v5305_v24 = vrot.slane %v5303_v15, 4  ;;  %v4830_v54 = vrot.slane %v10799_v21, 6 }
 0x887   : > { %v4945_v23 = vrot.slane %v10868_v37, 2 }
 0x888   : > { %v4773_v5 = vpop.f32.mrf.mxu2  ;;  %v5306_v38 = vor.u32 %v5305_v24, %v5302_v19  ;;  %v4831_v21 = vsel %vm664_vm2, %v4829_v51, %v4830_v54  ;;  %v8055_v51 = vld [vmem:[%s12702_s7 + $0x158] sm:$0xff] }
 0x889   : > { %v4946_v26 = vsel %vm802_vm1, %v4943_v31, %v4945_v23  ;;  %v4774_v44 = vadd.f32 %v10776_v0, %v4773_v5  ;;  %3659 = vadd.xlane.f32.xlu1 %v3658_v18  ;;  %v4996_v7 = vld [vmem:[#allocation2 + $0x58] sm:$0xff]  ;;  %4869 = vst.msk [vmem:[#allocation2 + $0x40] sm:$0xff] %vm12956_vm14, %v4831_v21  ;;  %5498 = vmatpush.bf16.msra.mxu1 %v8055_v51  ;;  %v8061_v51 = vld [vmem:[%s12702_s7 + $0x188] sm:$0xff]  ;;  %vm12967_vm14 = vmmov %vm12948_vm3 }
 0x88a   : > { %4979 = vst.msk [vmem:[#allocation2 + $0x68] sm:$0xff] %vm12949_vm6, %v4946_v26  ;;  %v5307_v58 = vsel %vm12950_vm4, %v5298_v52, %v5306_v38  ;;  %v10876_v47 = vpack.c.bf16 %v4996_v7, %v4994_v16  ;;  %v8067_v18 = vld [vmem:[%s12702_s7 + $0x1b8] sm:$0xff]  ;;  %v4832_v26 = vrot.slane %v10817_v12, 6  ;;  %v8054_v12 = vld [vmem:[%s12702_s7 + $0x150] sm:$0xff]  ;;  %vm12960_vm6 = vmmov %vm12948_vm3 }
 0x88b   : > { %v4797_v50 = vmax.f32 %v4774_v44, 0.0  ;;  %7869 = vmatmul.msk.bf16.vlgmr.msrb.gmra.mxu2 %vm12951_vm11, %v5307_v58  ;;  %5188 = vmatpush.bf16.msra.mxu3 %v8067_v18  ;;  %v8065_v44 = vld [vmem:[%s12702_s7 + $0x1a8] sm:$0xff]  ;;  %v4834_v58 = vrot.slane %v10833_v35, 6  ;;  %v8063_v35 = vld [vmem:[%s12702_s7 + $0x198] sm:$0xff]  ;;  %v10963_v18 = vpop.permute.xlu0 %3622  ;;  %vm12961_vm4 = vmmov %vm12948_vm3 }
 0x88c   : > { %7815 = vmatmul.msk.bf16.gmra.mxu0 %vm12952_vm12, %v10876_v47  ;;  %v4833_v57 = vsel %vm664_vm2, %v4830_v54, %v4832_v26  ;;  %v4836_v54 = vrot.slane %v10846_v61, 6  ;;  %vm12962_vm11 = vmmov %vm12948_vm3  ;;  %vm12963_vm12 = vcmask 1048064  }
 0x88d   : > { %v10882_v49 = vmul.f32 %v4797_v50, %v12882_v17  ;;  %v3664_v17 = vsel %vm637_vm0, %v3617_v60, 0.0  ;;  %v10906_v52 = vpop.xlane.xlu2 %3641  ;;  %4870 = vst.msk [vmem:[#allocation2 + $0x50] sm:$0xff] %vm12958_vm5, %v4833_v57  ;;  %v8064_v50 = vld [vmem:[%s12702_s7 + $0x1a0] sm:$0xff]  ;;  %5499 = vmatpush.bf16.msra.mxu1 %v8054_v12  ;;  %v4838_v12 = vrot.slane %v10858_v41, 6  ;;  %vm12969_vm5 = vsmask.f32 7424 }
 0x88f   : > { %v4947_v31 = vrot.slane %v10882_v49, 2 }
 0x891   : > { %v4948_v46 = vsel %vm802_vm1, %v4945_v23, %v4947_v31  ;;  %v4998_v22 = vld [vmem:[#allocation2 + $0x68] sm:$0xff] }
 0x892   : > { %4980 = vst.msk [vmem:[#allocation2 + $0x78] sm:$0xff] %vm12953_vm7, %v4948_v46  ;;  %v5020_v55 = vpack.c.bf16 %v4998_v22, %v4996_v7  ;;  %vm12964_vm7 = vmmov %vm12954_vm9 }
 0x894   : > { %v5318_v16 = vshrl.u32 %v5020_v55, 16  ;;  %v5321_v59 = vshll.u32 %v5020_v55, 16  ;;  %v8053_v55 = vld [vmem:[%s12702_s7 + $0x148] sm:$0xff] }
 0x895   : > { %v10926_v7 = vpop.xlane.xlu2 %3647  ;;  %5500 = vmatpush.bf16.msra.mxu1 %v8053_v55 }
 0x896   : > { %v5320_v15 = vrot.slane %v5318_v16, 3  ;;  %v5323_v33 = vrot.slane %v5321_v59, 4  ;;  %v4835_v59 = vsel %vm664_vm2, %v4832_v26, %v4834_v58  ;;  %v4837_v26 = vsel %vm664_vm2, %v4834_v58, %v4836_v54 }
 0x897   : > { %4871 = vst.msk [vmem:[#allocation2 + $0x60] sm:$0xff] %vm12959_vm10, %v4835_v59  ;;  %v5585_v59 = vld [vmem:[#allocation2 + $0x28] sm:$0xfe]  ;;  %vm12970_vm10 = vmmov %vm12948_vm3 }
 0x898   : > { %v10891_v19 = vor.u32 %v5323_v33, %v5320_v15  ;;  %v8052_v15 = vld [vmem:[%s12702_s7 + $0x140] sm:$0xff]  ;;  %4872 = vst.msk [vmem:[#allocation2 + $0x70] sm:$0xff] %vm12960_vm6, %v4837_v26 }
 0x899   : > { %3665 = vadd.xlane.f32.xlu0 %v3664_v17  ;;  %v10893_v24 = vld [vmem:[#allocation2 + $0x78] sm:$0xff]  ;;  %5501 = vmatpush.bf16.msra.mxu1 %v8052_v15 }
 0x89a   : > { %v5325_v23 = vsel %vm12954_vm9, %v5306_v38, %v10891_v19  ;;  %v10898_v5 = vpack.c.bf16 %v10893_v24, %v4998_v22  ;;  %v8066_v38 = vld [vmem:[%s12702_s7 + $0x1b0] sm:$0xff]  ;;  %vm12965_vm9 = vmmov %vm12948_vm3 }
 0x89b   : > { %7870 = vmatmul.msk.bf16.gmra.mxu2 %vm12955_vm8, %v5325_v23  ;;  %5189 = vmatpush.bf16.msra.mxu3 %v8066_v38  ;;  %v8051_v38 = vld [vmem:[%s12702_s7 + $0x138] sm:$0xff]  ;;  %vm12966_vm8 = vmmov %vm12948_vm3 }
 0x89c   : > { %7816 = vmatmul.msk.bf16.gmra.mxu0 %vm12957_vm13, %v10898_v5  ;;  %vm12968_vm13 = vmmov %vm12963_vm12 }
 0x89d   : > { %v10955_v33 = vpop.xlane.xlu2 %3653  ;;  %5502 = vmatpush.bf16.msra.mxu1 %v8051_v38 }
 0x89f   : > { %5190 = vmatpush.bf16.msra.mxu3 %v8065_v44  ;;  %v8050_v44 = vld [vmem:[%s12702_s7 + $0x130] sm:$0xff] }
 0x8a1   : > { %5503 = vmatpush.bf16.msra.mxu1 %v8050_v44 }
 0x8a2   : > { %4890 = vrot.lane.b32.xlu1 %v10846_v61, %s8432_s29 }
 0x8a3   : > { %5191 = vmatpush.bf16.msra.mxu3 %v8064_v50  ;;  %v8060_v50 = vld [vmem:[%s12702_s7 + $0x180] sm:$0xff] }
 0x8a7   : > { %5192 = vmatpush.bf16.msra.mxu3 %v8063_v35  ;;  %v4839_v35 = vsel %vm664_vm2, %v4836_v54, %v4838_v12  ;;  %v4840_v54 = vrot.slane %v10868_v37, 6 }
 0x8a8   : > { %v4776_v46 = vpop.f32.mrf.mxu2  ;;  %4873 = vst.msk [vmem:[#allocation2 + $0x80] sm:$0xff] %vm12962_vm11, %v4839_v35 }
 0x8a9   : > { %v4777_v22 = vadd.f32 %v10776_v0, %v4776_v46  ;;  %v10989_v46 = vpop.permute.xlu1 %3618 }
 0x8aa   : > { %4896 = vrot.lane.b32.xlu1 %v10882_v49, %s8432_s29 }
 0x8ab   : > { %v4798_v16 = vmax.f32 %v4777_v22, 0.0  ;;  %v10993_v22 = vpop.xlane.xlu2 %3662 }
 0x8ad   : > { %v10947_v60 = vmul.f32 %v4798_v16, %v12885_v9  ;;  %4894 = vrot.lane.b32.xlu0 %v10868_v37, %s8432_s29  ;;  %v8062_v9 = vld [vmem:[%s12702_s7 + $0x190] sm:$0xff]  ;;  %v4841_v37 = vsel %vm664_vm2, %v4838_v12, %v4840_v54 }
 0x8ae   : > { %5193 = vmatpush.bf16.msra.mxu3 %v8062_v9  ;;  %4874 = vst.msk [vmem:[#allocation2 + $0x90] sm:$0xff] %vm12967_vm14, %v4841_v37 }
 0x8af   : > { %v4949_v17 = vrot.slane %v10947_v60, 2  ;;  %4898 = vrot.lane.b32.xlu2 %v10947_v60, %s8432_s29 }
 0x8b0   : > { %v4778_v23 = vpop.f32.mrf.mxu2 }
 0x8b1   : > { %v4950_v61 = vsel %vm802_vm1, %v4947_v31, %v4949_v17  ;;  %v4779_v21 = vadd.f32 %v10776_v0, %v4778_v23  ;;  %v8049_v23 = vld [vmem:[%s12702_s7 + $0x128] sm:$0xff]  ;;  %v11010_v38 = vpop.xlane.xlu1 %3638 }
 0x8b2   : > { %4981 = vst.msk [vmem:[#allocation2 + $0x88] sm:$0xff] %vm12948_vm3, %v4950_v61  ;;  %5194 = vmatpush.bf16.msra.mxu3 %v8061_v51  ;;  %5504 = vmatpush.bf16.msra.mxu1 %v8049_v23  ;;  %vm12971_vm3 = vmmov %vm12963_vm12 }
 0x8b3   : > { %v4799_v57 = vmax.f32 %v4779_v21, 0.0  ;;  %vm12972_vm6 = vmmov %vm12971_vm3 }
 0x8b4   : > { %vm12974_vm11 = vmmov %vm12971_vm3 }
 0x8b5   : > { %v10977_v31 = vmul.f32 %v4799_v57, %v12888_v39  ;;  %v10991_v39 = vpop.xlane.xlu0 %3644 }
 0x8b6   : > { %5195 = vmatpush.bf16.msra.mxu3 %v8060_v50 }
 0x8b7   : > { %v12768_v58 = vrot.slane %v10977_v31, 2  ;;  %4900 = vrot.lane.b32.xlu0 %v10977_v31, %s8432_s29 }
 0x8b9   : > { %v4952_v41 = vsel %vm802_vm1, %v4949_v17, %v12768_v58  ;;  %v5002_v55 = vld [vmem:[#allocation2 + $0x88] sm:$0xff]  ;;  %v5613_v17 = vpack.c.bf16 %v10852_v42, %v5585_v59  ;;  %v5671_v59 = vshll.u32 %v10876_v47, 16 }
 0x8ba   : > { %4982 = vst.msk [vmem:[#allocation2 + $0x98] sm:$0xff] %vm12961_vm4, %v4952_v41  ;;  %v5022_v16 = vpack.c.bf16 %v5002_v55, %v10893_v24  ;;  %v8048_v24 = vld [vmem:[%s12702_s7 + $0x120] sm:$0xff]  ;;  %vm12973_vm4 = vmmov %vm12969_vm5 }
 0x8bb   : > { %v5666_v57 = vshll.u32 %v5613_v17, 16  ;;  %5505 = vmatpush.bf16.msra.mxu1 %v8048_v24  ;;  %v5664_v35 = vshrl.u32 %v5613_v17, 16  ;;  %v4987_v17 = vld [vmem:[#allocation2 + $0x10] sm:$0x80] }
 0x8bc   : > { %v5336_v15 = vshrl.u32 %v5022_v16, 16  ;;  %v5339_v9 = vshll.u32 %v5022_v16, 16 }
 0x8bd   : > { %v11014_v51 = vpop.xlane.xlu0 %3656  ;;  %v5668_v16 = vrot.slane %v5666_v57, 1  ;;  %v5683_v57 = vshrl.u32 %v10876_v47, 16 }
 0x8be   : > { %v5338_v61 = vrot.slane %v5336_v15, 3  ;;  %v5341_v21 = vrot.slane %v5339_v9, 4  ;;  %v4842_v15 = vrot.slane %v10882_v49, 6  ;;  %v5673_v9 = vrot.slane %v5671_v59, 1 }
 0x8c0   : > { %v11012_v26 = vor.u32 %v5341_v21, %v5338_v61  ;;  %v4843_v61 = vsel %vm664_vm2, %v4840_v54, %v4842_v15 }
 0x8c1   : > { %v4887_v44 = vpop.permute.xlu2 %4886  ;;  %v11016_v50 = vld [vmem:[#allocation2 + $0x98] sm:$0xff]  ;;  %4875 = vst.msk [vmem:[#allocation2 + $0xa0] sm:$0xff] %vm12970_vm10, %v4843_v61 }
 0x8c2   : > { %4923 = vst.msk [vmem:[#allocation2 + $0x40] sm:$0xff] %vm12963_vm12, %v4887_v44  ;;  %v5343_v42 = vsel %vm12964_vm7, %v10891_v19, %v11012_v26  ;;  %v11023_v41 = vpack.c.bf16 %v11016_v50, %v5002_v55  ;;  %v5669_v19 = vor.u32 %v5668_v16, %v5664_v35  ;;  %v11032_v55 = vpop.xlane.xlu1 %3650  ;;  %v5687_v44 = vshll.u32 %v10898_v5, 16  ;;  %vm12975_vm12 = vmmov %vm12964_vm7 }
 0x8c3   : > { %7871 = vmatmul.msk.bf16.gmra.mxu2 %vm12965_vm9, %v5343_v42  ;;  %v5685_v16 = vor.u32 %v5683_v57, %v5673_v9  ;;  %vm12976_vm7 = vmmov %vm12966_vm8 }
 0x8c4   : > { %7817 = vmatmul.msk.bf16.gmra.mxu0 %vm12966_vm8, %v11023_v41  ;;  %v11036_v12 = vsel %vm12969_vm5, %v5669_v19, %v5673_v9  ;;  %v5689_v35 = vrot.slane %v5687_v44, 1  ;;  %v3673_v44 = vsel %vm637_vm0, %v10963_v18, 0.0  ;;  %vm12977_vm9 = vmmov %vm12976_vm7 }
 0x8c5   : > { %vm12979_vm8 = vmmov %vm12976_vm7 }
 0x8c6   : > { %vm12980_vm14 = vmmov %vm12976_vm7 }
 0x8c7   : > { %vm12982_vm5 = vmmov %vm12973_vm4 }
 0x8c8   : > { %vm12983_vm10 = vmmov %vm12976_vm7 }
 0x8c9   : > { %v4883_v23 = vpop.permute.xlu0 %4882  ;;  %v4993_v54 = vld [vmem:[#allocation2 + $0x40] sm:$0xff] }
 0x8ca   : > { %4921 = vst.msk [vmem:[#allocation2 + $0x20] sm:$0xff] %vm12968_vm13, %v4883_v23  ;;  %vm12981_vm13 = vmmov %vm12976_vm7 }
 0x8d1   : > { %v4885_v21 = vpop.permute.xlu1 %4884  ;;  %v4989_v24 = vld [vmem:[#allocation2 + $0x20] sm:$0xff] }
 0x8d2   : > { %4922 = vst.msk [vmem:[#allocation2 + $0x30] sm:$0xff] %vm12971_vm3, %v4885_v21  ;;  %v5015_v49 = vpack.c.bf16 %v4989_v24, %v4987_v17  ;;  %v11049_v21 = vsel %vm12973_vm4, %v5685_v16, %v5689_v35  ;;  %vm12984_vm3 = vmmov %vm12975_vm12 }
 0x8d4   : > { %v5275_v42 = vshrl.u32 %v5015_v49, 16  ;;  %v5278_v37 = vshll.u32 %v5015_v49, 16 }
 0x8d6   : > { %v5277_v47 = vrot.slane %v5275_v42, 3  ;;  %v5280_v17 = vrot.slane %v5278_v37, 4  ;;  %v4844_v42 = vrot.slane %v10947_v60, 6 }
 0x8d8   : > { %v5281_v48 = vor.u32 %v5280_v17, %v5277_v47  ;;  %v4845_v18 = vsel %vm664_vm2, %v4842_v15, %v4844_v42  ;;  %v12978_v17 = vrot.slane %v10977_v31, 2 }
 0x8d9   : > { %v4893_v59 = vpop.permute.xlu2 %4892  ;;  %v11043_v19 = vld [vmem:[#allocation2 + $0x30] sm:$0xff]  ;;  %4876 = vst.msk [vmem:[#allocation2 + $0xb0] sm:$0xff] %vm12976_vm7, %v4845_v18 }
 0x8da   : > { %4926 = vst.msk [vmem:[#allocation2 + $0x70] sm:$0xff] %vm12972_vm6, %v4893_v59  ;;  %v5017_v23 = vpack.c.bf16 %v4993_v54, %v11043_v19  ;;  %v5056_v61 = vpack.c.bf16 %v11043_v19, %v4989_v24  ;;  %vm12985_vm6 = vmmov %vm12976_vm7 }
 0x8db   : > { %vm12986_vm4 = vmmov %vm12985_vm6 }
 0x8dc   : > { %5196 = vmatmul.bf16.vlgmr.msra.gmra.mxu3 %v5056_v61  ;;  %v5283_v58 = vshrl.u32 %v5017_v23, 16  ;;  %v5286_v49 = vshll.u32 %v5017_v23, 16  ;;  %v12773_v61 = vrot.slane %v10977_v31, 6 }
 0x8de   : > { %v5285_v9 = vrot.slane %v5283_v58, 3  ;;  %v5288_v57 = vrot.slane %v5286_v49, 4  ;;  %v4847_v15 = vsel %vm664_vm2, %v4844_v42, %v12773_v61 }
 0x8df   : > { %4877 = vst.msk [vmem:[#allocation2 + $0xc0] sm:$0xff] %vm12977_vm9, %v4847_v15  ;;  %v5699_v15 = vshrl.u32 %v10898_v5, 16  ;;  %vm12991_vm9 = vmmov %vm12984_vm3 }
 0x8e0   : > { %v11053_v8 = vor.u32 %v5288_v57, %v5285_v9 }
 0x8e1   : > { %3674 = vadd.xlane.f32.xlu0 %v3673_v44  ;;  %v4889_v59 = vpop.permute.xlu0 %4888 }
 0x8e2   : > { %4924 = vst.msk [vmem:[#allocation2 + $0x50] sm:$0xff] %vm12974_vm11, %v4889_v59  ;;  %v5290_v24 = vsel %vm12975_vm12, %v5281_v48, %v11053_v8  ;;  %vm12987_vm11 = vcmask 521216   ;;  %vm12988_vm12 = vmmov %vm12986_vm4 }
 0x8e3   : > { %5506 = vmatmul.bf16.vlgmr.msra.gmra.mxu1 %v5290_v24 }
 0x8e9   : > { %v11059_v37 = vld [vmem:[#allocation2 + $0x50] sm:$0xff] }
 0x8ea   : > { %v11062_v58 = vpack.c.bf16 %v11059_v37, %v4993_v54 }
 0x8ec   : > { %5201 = vmatmul.bf16.gmra.mxu3 %v11062_v58 }
 0x8ed   : > { %v4781_v16 = vpop.f32.mrf.mxu2 }
 0x8ee   : > { %v4782_v23 = vadd.f32 %v10776_v0, %v4781_v16 }
 0x8f0   : > { %v4800_v48 = vmax.f32 %v4782_v23, 0.0 }
 0x8f2   : > { %v11070_v47 = vmul.f32 %v4800_v48, %v12891_v40 }
 0x8f4   : > { %v4953_v60 = vrot.slane %v11070_v47, 2  ;;  %4902 = vrot.lane.b32.xlu1 %v11070_v47, %s8432_s29  ;;  %v4848_v44 = vrot.slane %v11070_v47, 6 }
 0x8f5   : > { %v4783_v54 = vpop.f32.mrf.mxu2 }
 0x8f6   : > { %v4954_v49 = vsel %vm802_vm1, %v12978_v17, %v4953_v60  ;;  %v4784_v9 = vadd.f32 %v10776_v0, %v4783_v54  ;;  %v5703_v54 = vshll.u32 %v11023_v41, 16 }
 0x8f7   : > { %4983 = vst.msk [vmem:[#allocation2 + $0xa8] sm:$0xff] %vm12979_vm8, %v4954_v49  ;;  %vm12992_vm8 = vmmov %vm12986_vm4 }
 0x8f8   : > { %v4801_v40 = vmax.f32 %v4784_v9, 0.0 }
 0x8fa   : > { %v4814_v57 = vmul.f32 %v4801_v40, %v12894_v13  ;;  %v5701_v40 = vor.u32 %v5699_v15, %v5689_v35 }
 0x8fc   : > { %v4850_v59 = vrot.slane %v4814_v57, 6  ;;  %v4955_v24 = vrot.slane %v4814_v57, 2  ;;  %4904 = vrot.lane.b32.xlu2 %v4814_v57, %s8432_s29  ;;  %v11097_v57 = vrot.slane %v5703_v54, 1 }
 0x8fd   : > { %v4786_v42 = vpop.f32.mrf.mxu2 }
 0x8fe   : > { %v4851_v18 = vsel %vm664_vm2, %v4848_v44, %v4850_v59  ;;  %v4956_v16 = vsel %vm802_vm1, %v4953_v60, %v4955_v24  ;;  %v4787_v23 = vadd.f32 %v10776_v0, %v4786_v42  ;;  %v5006_v48 = vld [vmem:[#allocation2 + $0xa8] sm:$0xff] }
 0x8ff   : > { %4984 = vst.msk [vmem:[#allocation2 + $0xb8] sm:$0xff] %vm12980_vm14, %v4956_v16  ;;  %v5024_v13 = vpack.c.bf16 %v5006_v48, %v11016_v50  ;;  %v11102_v16 = vsel %vm12982_vm5, %v5701_v40, %v11097_v57  ;;  %v8080_v40 = vld [vmem:[%s12702_s7 + $0x220] sm:$0xff]  ;;  %vm12993_vm14 = vmmov %vm12986_vm4 }
 0x900   : > { %4879 = vst.msk [vmem:[#allocation2 + $0xe0] sm:$0xff] %vm12981_vm13, %v4851_v18  ;;  %v4802_v17 = vmax.f32 %v4787_v23, 0.0 }
 0x901   : > { %v5354_v49 = vshrl.u32 %v5024_v13, 16  ;;  %v5357_v9 = vshll.u32 %v5024_v13, 16 }
 0x902   : > { %v4815_v60 = vmul.f32 %v4802_v17, %v12897_v56  ;;  %v8081_v17 = vld [vmem:[%s12702_s7 + $0x228] sm:$0xff] }
 0x903   : > { %v5356_v0 = vrot.slane %v5354_v49, 3  ;;  %v5359_v42 = vrot.slane %v5357_v9, 4 }
 0x904   : > { %v4852_v50 = vrot.slane %v4815_v60, 6  ;;  %v4957_v5 = vrot.slane %v4815_v60, 2  ;;  %4906 = vrot.lane.b32.xlu0 %v4815_v60, %s8432_s29 }
 0x905   : > { %v4788_v61 = vpop.f32.mrf.mxu2  ;;  %v5360_v18 = vor.u32 %v5359_v42, %v5356_v0 }
 0x906   : > { %v4853_v23 = vsel %vm664_vm2, %v4850_v59, %v4852_v50  ;;  %v4958_v35 = vsel %vm802_vm1, %v4955_v24, %v4957_v5  ;;  %v5008_v13 = vld [vmem:[#allocation2 + $0xb8] sm:$0xff]  ;;  %4986 = vst.msk [vmem:[#allocation2 + $0xd8] sm:$0x3f] %vm12987_vm11, %v4957_v5  ;;  %vm12989_vm1 = vcmask 1048064   ;;  %v11126_v24 = vpop.xlane.xlu1 %3659  ;;  %v5014_v5 = vld [vmem:[#allocation2 + $0xe8] sm:$0x7f] }
 0x907   : > { %4880 = vst.msk [vmem:[#allocation2 + $0xf0] sm:$0xff] %vm12983_vm10, %v4853_v23  ;;  %v5361_v56 = vsel %vm12984_vm3, %v11012_v26, %v5360_v18  ;;  %v11110_v15 = vpack.c.bf16 %v5008_v13, %v5006_v48  ;;  %v8083_v61 = vld [vmem:[%s12702_s7 + $0x238] sm:$0xff]  ;;  %v8082_v26 = vld [vmem:[%s12702_s7 + $0x230] sm:$0xff]  ;;  %vm12990_vm7 = vmmov %vm12989_vm1 }
 0x908   : > { %4985 = vst.msk [vmem:[#allocation2 + $0xc8] sm:$0xff] %vm12985_vm6, %v4958_v35  ;;  %7872 = vmatmul.msk.bf16.gmra.mxu2 %vm12986_vm4, %v5361_v56  ;;  %5908 = vmatpush.bf16.msrb.mxu0 %v8083_v61  ;;  %vm12994_vm13 = vmmov %vm12989_vm1 }
 0x909   : > { %7818 = vmatmul.msk.bf16.gmra.mxu0 %vm12988_vm12, %v11110_v15  ;;  %v4899_v59 = vpop.permute.xlu2 %4898  ;;  %vm12995_vm5 = vmmov %vm12989_vm1  ;;  %vm12999_vm12 = vsmask.f32 7424 }
 0x90a   : > { %4929 = vst.msk [vmem:[#allocation2 + $0xa0] sm:$0xff] %vm12989_vm1, %v4899_v59  ;;  %vm12996_vm10 = vmmov %vm12984_vm3 }
 0x90b   : > { %vm12997_vm6 = vmmov %vm12986_vm4 }
 0x90c   : > { %3680 = vrot.lane.b32.xlu0 %v10682_v30, %s8433_s30  ;;  %5909 = vmatpush.bf16.msrb.mxu0 %v8082_v26  ;;  %v11139_v35 = vpop.xlane.xlu0 %3665  ;;  %v5584_v26 = vld [vmem:[#allocation2 + $0x20] sm:$0xfe]  ;;  %vm12998_vm11 = vmmov %vm12989_vm1 }
 0x90d   : > { %v5012_v0 = vld [vmem:[#allocation2 + $0xd8] sm:$0xff]  ;;  %vm13001_vm1 = vmmov %vm12986_vm4 }
 0x90e   : > { %v5028_v56 = vpack.c.bf16 %v5014_v5, %v5012_v0  ;;  %v5610_v29 = vld [vmem:[#allocation2 + $0xf0] sm:$0x1] }
 0x90f   : > { %v5010_v48 = vld [vmem:[#allocation2 + $0xc8] sm:$0xff] }
 0x910   : > { %v5026_v54 = vpack.c.bf16 %v5010_v48, %v5008_v13  ;;  %5910 = vmatpush.bf16.msrb.mxu0 %v8081_v17  ;;  %v11137_v23 = vpack.c.bf16 %v5012_v0, %v5010_v48  ;;  %v5390_v61 = vshrl.u32 %v5028_v56, 16  ;;  %v5393_v59 = vshll.u32 %v5028_v56, 16  ;;  %v4999_v17 = vld [vmem:[#allocation2 + $0x70] sm:$0xff] }
 0x912   : > { %v5372_v49 = vshrl.u32 %v5026_v54, 16  ;;  %v5375_v9 = vshll.u32 %v5026_v54, 16  ;;  %v5392_v0 = vrot.slane %v5390_v61, 3 }
 0x914   : > { %3684 = vrot.lane.b32.xlu0 %v10706_v32, %s8433_s30  ;;  %v5374_v30 = vrot.slane %v5372_v49, 3  ;;  %v5377_v60 = vrot.slane %v5375_v9, 4  ;;  %v4891_v42 = vpop.permute.xlu1 %4890  ;;  %5911 = vmatpush.bf16.msrb.mxu0 %v8080_v40  ;;  %v8079_v32 = vld [vmem:[%s12702_s7 + $0x218] sm:$0xff]  ;;  %v5612_v49 = vpack.c.bf16 %v11043_v19, %v5584_v26  ;;  %v3670_v19 = vsel %vm637_vm0, %v10887_v45, 0.0 }
 0x915   : > { %4925 = vst.msk [vmem:[#allocation2 + $0x60] sm:$0xff] %vm12990_vm7, %v4891_v42  ;;  %5861 = vmatpush.bf16.msrb.mxu3 %v8079_v32  ;;  %v5395_v42 = vrot.slane %v5393_v59, 4  ;;  %v11163_v32 = vld [vmem:[#allocation2 + $0xe8] sm:$0xff]  ;;  %v5659_v45 = vshll.u32 %v11062_v58, 16  ;;  %vm13002_vm7 = vmmov %vm12984_vm3 }
 0x916   : > { %v5378_v50 = vor.u32 %v5377_v60, %v5374_v30  ;;  %v5069_v59 = vpack.c.bf16 %v11163_v32, %v11163_v32 }
 0x917   : > { %v5396_v56 = vor.u32 %v5395_v42, %v5392_v0 }
 0x918   : > { %v5379_v13 = vsel %vm12991_vm9, %v5360_v18, %v5378_v50  ;;  %v3667_v18 = vsel %vm637_vm0, %v10989_v46, 0.0  ;;  %v5654_v46 = vshll.u32 %v5612_v49, 16  ;;  %vm13003_vm9 = vmmov %vm13001_vm1 }
 0x919   : > { %7873 = vmatmul.msk.bf16.gmra.mxu2 %vm12992_vm8, %v5379_v13  ;;  %7819 = vmatmul.msk.bf16.gmra.mxu0 %vm12993_vm14, %v11137_v23  ;;  %vm13004_vm8 = vmmov %vm13001_vm1 }
 0x91a   : > { %v5656_v26 = vrot.slane %v5654_v46, 1  ;;  %vm13006_vm14 = vmmov %vm12999_vm12 }
 0x91c   : > { %3690 = vrot.lane.b32.xlu0 %v10720_v4, %s8433_s30  ;;  %v4897_v48 = vpop.permute.xlu1 %4896  ;;  %v4997_v54 = vld [vmem:[#allocation2 + $0x60] sm:$0xff] }
 0x91d   : > { %4928 = vst.msk [vmem:[#allocation2 + $0x90] sm:$0xff] %vm12994_vm13, %v4897_v48  ;;  %v5019_v9 = vpack.c.bf16 %v4997_v54, %v11059_v37  ;;  %v11155_v40 = vpack.c.bf16 %v4999_v17, %v4997_v54  ;;  %v5397_v48 = vsel %vm12984_vm3, %v5378_v50, %v5396_v56  ;;  %vm13007_vm13 = vmmov %vm13001_vm1 }
 0x91e   : > { %3668 = vadd.xlane.f32.xlu1 %v3667_v18  ;;  %v5652_v18 = vshrl.u32 %v5612_v49, 16 }
 0x91f   : > { %5206 = vmatmul.bf16.gmra.mxu3 %v11155_v40  ;;  %v5309_v4 = vshrl.u32 %v5019_v9, 16  ;;  %v5312_v30 = vshll.u32 %v5019_v9, 16  ;;  %v4895_v60 = vpop.permute.xlu0 %4894 }
 0x920   : > { %4927 = vst.msk [vmem:[#allocation2 + $0x80] sm:$0xff] %vm12995_vm5, %v4895_v60  ;;  %vm13008_vm5 = vmmov %vm12999_vm12 }
 0x921   : > { %v5311_v5 = vrot.slane %v5309_v4, 3  ;;  %v5314_v13 = vrot.slane %v5312_v30, 4  ;;  %v11176_v4 = vrot.slane %v5659_v45, 1  ;;  %v5719_v45 = vshll.u32 %v11110_v15, 16 }
 0x923   : > { %v5315_v37 = vor.u32 %v5314_v13, %v5311_v5  ;;  %v13000_v13 = vrot.slane %v10977_v31, 6  ;;  %v5240_v31 = vpop.f32.mrf.mxu0 }
 0x924   : > { %3696 = vrot.lane.b32.xlu0 %v10728_v34, %s8433_s30  ;;  %v8078_v34 = vld [vmem:[%s12702_s7 + $0x210] sm:$0xff] }
 0x925   : > { %3671 = vadd.xlane.f32.xlu2 %v3670_v19  ;;  %v5316_v61 = vsel %vm12996_vm10, %v11053_v8, %v5315_v37  ;;  %v5657_v8 = vor.u32 %v5656_v26, %v5652_v18  ;;  %5862 = vmatpush.bf16.msrb.mxu3 %v8078_v34  ;;  %v5003_v50 = vld [vmem:[#allocation2 + $0x90] sm:$0xff]  ;;  %v4849_v19 = vsel %vm664_vm2, %v13000_v13, %v4848_v44  ;;  %vm13005_vm2 = vmmov %vm12984_vm3 }
 0x926   : > { %5511 = vmatmul.bf16.gmra.mxu1 %v5316_v61  ;;  %4878 = vst.msk [vmem:[#allocation2 + $0xd0] sm:$0xff] %vm13001_vm1, %v4849_v19  ;;  %vm13009_vm10 = vmmov %vm13008_vm5  ;;  %v5675_v19 = vshrl.u32 %v11062_v58, 16 }
 0x927   : > { %v5001_v54 = vld [vmem:[#allocation2 + $0x80] sm:$0xff]  ;;  %v11181_v49 = vsel %vm12999_vm12, %v5657_v8, %v11176_v4  ;;  %vm13010_vm3 = vmmov %vm12998_vm11 }
 0x928   : > { %v5021_v9 = vpack.c.bf16 %v5001_v54, %v4999_v17  ;;  %v11183_v42 = vpack.c.bf16 %v5003_v50, %v5001_v54  ;;  %v8077_v17 = vld [vmem:[%s12702_s7 + $0x208] sm:$0xff]  ;;  %vm13014_vm12 = vmmov %vm13001_vm1 }
 0x929   : > { %7874 = vmatmul.msk.bf16.gmra.mxu2 %vm12997_vm6, %v5397_v48  ;;  %7820 = vmatmul.msk.bf16.gmra.mxu0 %vm12986_vm4, %v5069_v59  ;;  %v4901_v30 = vpop.permute.xlu0 %4900  ;;  %v5005_v59 = vld [vmem:[#allocation2 + $0xa0] sm:$0xff]  ;;  %vm13011_vm6 = vmmov %vm13001_vm1 }
 0x92a   : > { %4930 = vst.msk [vmem:[#allocation2 + $0xb0] sm:$0xff] %vm12998_vm11, %v4901_v30  ;;  %v5327_v60 = vshrl.u32 %v5021_v9, 16  ;;  %v5330_v0 = vshll.u32 %v5021_v9, 16  ;;  %5863 = vmatpush.bf16.msrb.mxu3 %v8077_v17  ;;  %v5023_v34 = vpack.c.bf16 %v5005_v59, %v5003_v50  ;;  %v5721_v9 = vrot.slane %v5719_v45, 1  ;;  %v8075_v17 = vld [vmem:[%s12702_s7 + $0x1f8] sm:$0xff]  ;;  %vm13012_vm4 = vmmov %vm13008_vm5 }
 0x92b   : > { %v11213_v48 = vpop.f32.mrf.mxu0  ;;  %vm13013_vm11 = vmmov %vm13010_vm3 }
 0x92c   : > { %v5329_v46 = vrot.slane %v5327_v60, 3  ;;  %v5332_v5 = vrot.slane %v5330_v0, 4  ;;  %v5345_v44 = vshrl.u32 %v5023_v34, 16  ;;  %v5348_v18 = vshll.u32 %v5023_v34, 16  ;;  %vm13015_vm1 = vmmov %vm13012_vm4 }
 0x92e   : > { %v5333_v26 = vor.u32 %v5332_v5, %v5329_v46  ;;  %v5747_v46 = vshrl.u32 %v11137_v23, 16 }
 0x92f   : > { %5211 = vmatmul.bf16.gmra.mxu3 %v11183_v42 }
 0x930   : > { %v5334_v61 = vsel %vm13002_vm7, %v5315_v37, %v5333_v26  ;;  %vm13016_vm7 = vmmov %vm13015_vm1 }
 0x931   : > { %v11201_v47 = vld [vmem:[#allocation2 + $0xb0] sm:$0xff] }
 0x932   : > { %v11206_v37 = vpack.c.bf16 %v11201_v47, %v5005_v59 }
 0x933   : > { %v11239_v5 = vpop.f32.mrf.mxu0 }
 0x936   : > { %5516 = vmatmul.bf16.gmra.mxu1 %v5334_v61  ;;  %v5677_v61 = vor.u32 %v5675_v19, %v11176_v4  ;;  %v5691_v4 = vshrl.u32 %v11155_v40, 16 }
 0x937   : > { %3676 = vrot.lane.b32.xlu1 %v10654_v20, %s8433_s30  ;;  %v5347_v20 = vrot.slane %v5345_v44, 3 }
 0x939   : > { %7875 = vmatmul.msk.bf16.gmra.mxu2 %vm13003_vm9, %v5396_v56  ;;  %7948 = vmatmul.msk.bf16.vlgmr.msrb.gmra.mxu0 %vm13004_vm8, %v11036_v12  ;;  %v5350_v56 = vrot.slane %v5348_v18, 4  ;;  %v5715_v12 = vshrl.u32 %v11023_v41, 16  ;;  %v5611_v41 = vld [vmem:[#allocation2 + $0xf8] sm:$0x1]  ;;  %vm13017_vm9 = vmmov %vm13010_vm3 }
 0x93a   : > { %v11229_v60 = vpack.c.bf16 %v5611_v41, %v11163_v32  ;;  %vm13018_vm8 = vmmov %vm13005_vm2 }
 0x93b   : > { %v11215_v54 = vor.u32 %v5350_v56, %v5347_v20  ;;  %v11262_v13 = vpop.f32.mrf.mxu0  ;;  %v5695_v56 = vshll.u32 %v11183_v42, 16 }
 0x93c   : > { %v5751_v0 = vshll.u32 %v11229_v60, 16 }
 0x93d   : > { %3678 = vrot.lane.b32.xlu2 %v10687_v11, %s8433_s30  ;;  %v8076_v11 = vld [vmem:[%s12702_s7 + $0x200] sm:$0xff]  ;;  %v5352_v8 = vsel %vm13005_vm2, %v5333_v26, %v11215_v54  ;;  %v5679_v26 = vshll.u32 %v11155_v40, 16  ;;  %vm13019_vm2 = vmmov %vm13011_vm6 }
 0x93e   : > { %5864 = vmatpush.bf16.msrb.mxu3 %v8076_v11  ;;  %v11246_v32 = vrot.slane %v5751_v0, 1 }
 0x93f   : > { %3682 = vrot.lane.b32.xlu1 %v10662_v2, %s8433_s30  ;;  %5216 = vmatmul.bf16.gmra.mxu3 %v11206_v37  ;;  %v5717_v2 = vor.u32 %v5715_v12, %v11097_v57  ;;  %v5735_v57 = vshll.u32 %v11137_v23, 16  ;;  %v11255_v23 = vpop.f32.mrf.mxu2  ;;  %v5681_v59 = vrot.slane %v5679_v26, 1 }
 0x941   : > { %v5722_v30 = vsel %vm13006_vm14, %v5717_v2, %v5721_v9  ;;  %v5737_v50 = vrot.slane %v5735_v57, 1  ;;  %v5693_v11 = vor.u32 %v5691_v4, %v5681_v59  ;;  %v5697_v2 = vrot.slane %v5695_v56, 1  ;;  %v8072_v57 = vld [vmem:[%s12702_s7 + $0x1e0] sm:$0xff]  ;;  %vm13020_vm14 = vmmov %vm13018_vm8 }
 0x942   : > { %5865 = vmatpush.bf16.msrb.mxu3 %v8075_v17 }
 0x945   : > { %3686 = vrot.lane.b32.xlu2 %v10701_v14, %s8433_s30  ;;  %v5731_v14 = vshrl.u32 %v11110_v15, 16  ;;  %v5749_v15 = vor.u32 %v5747_v46, %v5737_v50 }
 0x946   : > { %5521 = vmatmul.bf16.gmra.mxu1 %v5352_v8 }
 0x947   : > { %3688 = vrot.lane.b32.xlu1 %v10674_v27, %s8433_s30  ;;  %v5733_v27 = vor.u32 %v5731_v14, %v5721_v9  ;;  %v11269_v34 = vpop.f32.mrf.mxu2  ;;  %v11291_v9 = vsel %vm13015_vm1, %v5693_v11, %v5697_v2 }
 0x949   : > { %7949 = vmatmul.msk.bf16.gmra.mxu0 %vm13007_vm13, %v11049_v21  ;;  %v11244_v21 = vsel %vm13008_vm5, %v5733_v27, %v5737_v50  ;;  %v5707_v27 = vshrl.u32 %v11183_v42, 16  ;;  %v5711_v50 = vshll.u32 %v11206_v37, 16  ;;  %vm13021_vm13 = vmmov %vm13019_vm2 }
 0x94a   : > { %vm13022_vm5 = vmmov %vm13019_vm2 }
 0x94b   : > { %v11308_v19 = vrot.slane %v5711_v50, 1 }
 0x94d   : > { %3692 = vrot.lane.b32.xlu2 %v10715_v36, %s8433_s30  ;;  %v11253_v36 = vsel %vm13009_vm10, %v5749_v15, %v11246_v32  ;;  %vm13026_vm10 = vmmov %vm13015_vm1 }
 0x94f   : > { %3694 = vrot.lane.b32.xlu1 %v10691_v3, %s8433_s30  ;;  %v11283_v45 = vpop.f32.mrf.mxu2 }
 0x954   : > { %v11295_v8 = vpop.xlane.xlu0 %3674 }
 0x955   : > { %3698 = vrot.lane.b32.xlu2 %v10724_v53, %s8433_s30  ;;  %v11272_v53 = vsel %vm13012_vm4, %v5677_v61, %v5681_v59 }
 0x956   : > { %v4905_v3 = vpop.permute.xlu2 %4904 }
 0x957   : > { %4932 = vst.msk [vmem:[#allocation2 + $0xd0] sm:$0xff] %vm13010_vm3, %v4905_v3  ;;  %3700 = vrot.lane.b32.xlu1 %v10708_v62, %s8433_s30  ;;  %v8074_v62 = vld [vmem:[%s12702_s7 + $0x1f0] sm:$0xff]  ;;  %v11305_v46 = vpop.f32.mrf.mxu2  ;;  %v5709_v3 = vor.u32 %v5707_v27, %v5697_v2  ;;  %vm13028_vm3 = vmmov %vm13015_vm1 }
 0x958   : > { %5866 = vmatpush.bf16.msrb.mxu3 %v8074_v62 }
 0x959   : > { %7950 = vmatmul.msk.bf16.gmra.mxu0 %vm13011_vm6, %v11102_v16  ;;  %v11277_v16 = vpop.f32.mrf.mxu0  ;;  %vm3781_vm6 = vcmask 7168  }
 0x95e   : > { %v5011_v14 = vld [vmem:[#allocation2 + $0xd0] sm:$0xff] }
 0x95f   : > { %v5197_v44 = vpop.f32.mrf.mxu3 }
 0x960   : > { %v5241_v18 = vadd.f32 %v5240_v31, %v5197_v44  ;;  %v5507_v20 = vpop.f32.mrf.mxu1  ;;  %v8073_v31 = vld [vmem:[%s12702_s7 + $0x1e8] sm:$0xff] }
 0x961   : > { %5867 = vmatpush.bf16.msrb.mxu3 %v8073_v31  ;;  %v11293_v40 = vpop.f32.mrf.mxu0 }
 0x962   : > { %v11279_v58 = vadd.f32 %v5507_v20, %v5241_v18  ;;  %v11319_v18 = vpop.f32.mrf.mxu2 }
 0x965   : > { %5868 = vmatpush.bf16.msrb.mxu3 %v8072_v57 }
 0x966   : > { %v4903_v12 = vpop.permute.xlu1 %4902 }
 0x967   : > { %4931 = vst.msk [vmem:[#allocation2 + $0xc0] sm:$0xff] %vm13013_vm11, %v4903_v12 }
 0x969   : > { %7951 = vmatmul.msk.bf16.gmra.mxu0 %vm13014_vm12, %v5722_v30  ;;  %v11314_v59 = vpop.f32.mrf.mxu0 }
 0x96a   : > { %v11330_v57 = vpop.f32.mrf.mxu2 }
 0x96e   : > { %v5009_v41 = vld [vmem:[#allocation2 + $0xc0] sm:$0xff] }
 0x96f   : > { %v5025_v30 = vpack.c.bf16 %v5009_v41, %v11201_v47  ;;  %v11301_v0 = vpack.c.bf16 %v5011_v14, %v5009_v41  ;;  %v11312_v47 = vsel %vm13016_vm7, %v5709_v3, %v11308_v19 }
 0x971   : > { %5221 = vmatmul.bf16.gmra.mxu3 %v11301_v0  ;;  %v5363_v15 = vshrl.u32 %v5025_v30, 16  ;;  %v5366_v17 = vshll.u32 %v5025_v30, 16  ;;  %v11323_v20 = vpop.f32.mrf.mxu0 }
 0x973   : > { %v5365_v26 = vrot.slane %v5363_v15, 3  ;;  %v5368_v61 = vrot.slane %v5366_v17, 4  ;;  %v11334_v15 = vpop.f32.mrf.mxu3 }
 0x975   : > { %v5369_v42 = vor.u32 %v5368_v61, %v5365_v26 }
 0x976   : > { %v4907_v62 = vpop.permute.xlu0 %4906 }
 0x977   : > { %4933 = vst.msk [vmem:[#allocation2 + $0xe0] sm:$0xff] %vm13017_vm9, %v4907_v62  ;;  %v5370_v44 = vsel %vm13018_vm8, %v11215_v54, %v5369_v42  ;;  %v5758_v62 = vshrl.u32 %v11229_v60, 16 }
 0x978   : > { %5526 = vmatmul.bf16.gmra.mxu1 %v5370_v44 }
 0x979   : > { %7952 = vmatmul.msk.bf16.gmra.mxu0 %vm13019_vm2, %v11244_v21 }
 0x97b   : > { %v5202_v26 = vpop.f32.mrf.mxu3 }
 0x97e   : > { %v3681_v4 = vpop.permute.xlu0 %3680  ;;  %v11325_v56 = vld [vmem:[#allocation2 + $0xe0] sm:$0xff] }
 0x97f   : > { %v5013_v12 = vld [vmem:[#allocation2 + $0xe0] sm:$0x7f]  ;;  %v3722_v11 = vsel %vm3715_vm15, %v3681_v4, 0.0  ;;  %v5068_v2 = vpack.c.bf16 %v11325_v56, %v11325_v56  ;;  %v5760_v4 = vor.u32 %v5758_v62, %v11246_v32  ;;  %v5246_v32 = vadd.f32 %v11239_v5, %v5202_v26 }
 0x980   : > { %v5027_v31 = vpack.c.bf16 %v5013_v12, %v5011_v14  ;;  %v11355_v12 = vpop.f32.mrf.mxu1  ;;  %v5723_v26 = vshrl.u32 %v11206_v37, 16 }
 0x981   : > { %5226 = vmatmul.bf16.gmra.mxu3 %v5068_v2  ;;  %3723 = vadd.xlane.f32.xlu1 %v3722_v11 }
 0x982   : > { %v5381_v54 = vshrl.u32 %v5027_v31, 16  ;;  %v5384_v41 = vshll.u32 %v5027_v31, 16 }
 0x984   : > { %v5383_v30 = vrot.slane %v5381_v54, 3  ;;  %v5386_v21 = vrot.slane %v5384_v41, 4 }
 0x986   : > { %v5387_v27 = vor.u32 %v5386_v21, %v5383_v30  ;;  %v11332_v50 = vpop.f32.mrf.mxu0  ;;  %v3685_v31 = vpop.permute.xlu0 %3684 }
 0x988   : > { %v5388_v17 = vsel %vm13020_vm14, %v5369_v42, %v5387_v27 }
 0x989   : > { %5531 = vmatmul.bf16.gmra.mxu1 %v5388_v17  ;;  %7953 = vmatmul.msk.bf16.gmra.mxu0 %vm13021_vm13, %v11253_v36  ;;  %v11353_v36 = vpop.f32.mrf.mxu3 }
 0x98b   : > { %v11339_v14 = vpop.f32.mrf.mxu2 }
 0x98e   : > { %v11341_v3 = vpop.f32.mrf.mxu0 }
 0x991   : > { %5869 = vmatmul.bf16.vlgmr.msrb.gmra.mxu3 %v11181_v49  ;;  %v11361_v60 = vpop.xlane.xlu1 %3668 }
 0x993   : > { %v11344_v61 = vpop.f32.mrf.mxu2 }
 0x996   : > { %v11347_v44 = vpop.f32.mrf.mxu0 }
 0x998   : > { %v11350_v42 = vpop.xlane.xlu2 %3671 }
 0x999   : > { %5536 = vmatmul.bf16.gmra.mxu1 %v5387_v27  ;;  %7954 = vmatmul.msk.bf16.gmra.mxu0 %vm13022_vm5, %v5760_v4  ;;  %v3728_v4 = vsel %vm3715_vm15, %v3685_v31, 0.0  ;;  %v5725_v31 = vor.u32 %v5723_v26, %v11308_v19 }
 0x99c   : > { %v11357_v11 = vpop.f32.mrf.mxu2 }
 0x99d   : > { %13023 = vst [vmem:[#allocation13_spill] sm:$0xff] %v11357_v11 }
 0x99e   : > { %v11359_v49 = vpop.f32.mrf.mxu0 }
 0x9a0   : > { %v3679_v2 = vpop.permute.xlu2 %3678 }
 0x9a1   : > { %v3719_v54 = vsel %vm3715_vm15, %v3679_v2, 0.0  ;;  %5874 = vmatmul.bf16.gmra.mxu3 %v11272_v53  ;;  %v3691_v53 = vpop.permute.xlu0 %3690 }
 0x9a2   : > { %3720 = vadd.xlane.f32.xlu2 %v3719_v54  ;;  %v5207_v41 = vpop.f32.mrf.mxu3  ;;  %v5727_v54 = vshll.u32 %v11301_v0, 16 }
 0x9a3   : > { %v5512_v21 = vpop.f32.mrf.mxu1  ;;  %v5251_v63 = vadd.f32 %v11277_v16, %v5207_v41 }
 0x9a4   : > { %v11366_v30 = vpop.f32.mrf.mxu2  ;;  %v11368_v27 = vadd.f32 %v5512_v21, %v5246_v32  ;;  %v5729_v6 = vrot.slane %v5727_v54, 1 }
 0x9a5   : > { %13024 = vst [vmem:[#allocation10_spill] sm:$0xff] %v11366_v30 }
 0x9a6   : > { %v11370_v17 = vpop.f32.mrf.mxu0  ;;  %v5730_v1 = vsel %vm13026_vm10, %v5725_v31, %v5729_v6 }
 0x9a8   : > { %v3687_v62 = vpop.permute.xlu2 %3686 }
 0x9a9   : > { %v3731_v25 = vsel %vm3715_vm15, %v3687_v62, 0.0  ;;  %v3677_v43 = vpop.permute.xlu1 %3676 }
 0x9aa   : > { %v3716_v2 = vsel %vm3715_vm15, %v3677_v43, 0.0  ;;  %3732 = vadd.xlane.f32.xlu1 %v3731_v25  ;;  %3729 = vadd.xlane.f32.xlu2 %v3728_v4  ;;  %v5209_v5 = vpop.f32.mrf.mxu3  ;;  %v3737_v25 = vsel %vm3715_vm15, %v3691_v53, 0.0 }
 0x9ab   : > { %3717 = vadd.xlane.f32.xlu0 %v3716_v2  ;;  %v11379_v21 = vpop.f32.mrf.mxu1  ;;  %v5253_v41 = vadd.f32 %v11293_v40, %v5209_v5 }
 0x9ac   : > { %v11377_v32 = vpop.f32.mrf.mxu2 }
 0x9ad   : > { %13025 = vst [vmem:[#allocation12_spill] sm:$0xff] %v11377_v32 }
 0x9ae   : > { %v5272_v62 = vpop.f32.mrf.mxu0 }
 0x9af   : > { %v3697_v62 = vpop.permute.xlu0 %3696 }
 0x9b0   : > { %v3693_v43 = vpop.permute.xlu2 %3692 }
 0x9b1   : > { %v3740_v4 = vsel %vm3715_vm15, %v3693_v43, 0.0  ;;  %v3683_v2 = vpop.permute.xlu1 %3682  ;;  %5879 = vmatmul.bf16.gmra.mxu3 %v11291_v9  ;;  %v3746_v9 = vsel %vm3715_vm15, %v3697_v62, 0.0 }
 0x9b2   : > { %v3725_v37 = vsel %vm3715_vm15, %v3683_v2, 0.0  ;;  %3741 = vadd.xlane.f32.xlu1 %v3740_v4  ;;  %3738 = vadd.xlane.f32.xlu2 %v3737_v25  ;;  %v5212_v19 = vpop.f32.mrf.mxu3  ;;  %v5624_v25 = vpack.c.bf16 %v5610_v29, %v11325_v56 }
 0x9b3   : > { %3726 = vadd.xlane.f32.xlu0 %v3725_v37  ;;  %v5517_v54 = vpop.f32.mrf.mxu1  ;;  %v5739_v37 = vshrl.u32 %v11301_v0, 16 }
 0x9b4   : > { %v11388_v26 = vpop.f32.mrf.mxu2  ;;  %v11390_v31 = vadd.f32 %v5517_v54, %v5251_v63  ;;  %v5743_v54 = vshll.u32 %v5624_v25, 16 }
 0x9b5   : > { %13027 = vst [vmem:[#allocation7_spill] sm:$0xff] %v11388_v26  ;;  %v5741_v30 = vor.u32 %v5739_v37, %v5729_v6 }
 0x9b6   : > { %v11392_v53 = vpop.f32.mrf.mxu0  ;;  %v5745_v11 = vrot.slane %v5743_v54, 1  ;;  %v13029_v54 = vrot.slane %v10519_v10, 6 }
 0x9b8   : > { %v3699_v43 = vpop.permute.xlu2 %3698  ;;  %v5746_v40 = vsel %vm13028_vm3, %v5741_v30, %v5745_v11 }
 0x9b9   : > { %v3749_v2 = vsel %vm3715_vm15, %v3699_v43, 0.0  ;;  %v3689_v4 = vpop.permute.xlu1 %3688 }
 0x9ba   : > { %v3734_v16 = vsel %vm3715_vm15, %v3689_v4, 0.0  ;;  %3750 = vadd.xlane.f32.xlu1 %v3749_v2  ;;  %3747 = vadd.xlane.f32.xlu2 %v3746_v9  ;;  %v5214_v63 = vpop.f32.mrf.mxu3  ;;  %v5256_v9 = vadd.f32 %v11314_v59, %v5212_v19 }
 0x9bb   : > { %3735 = vadd.xlane.f32.xlu0 %v3734_v16  ;;  %v5258_v62 = vadd.f32 %v11323_v20, %v5214_v63  ;;  %v5519_v32 = vpop.f32.mrf.mxu1 }
 0x9bc   : > { %v11400_v26 = vpop.f32.mrf.mxu2  ;;  %v5520_v43 = vadd.f32 %v5519_v32, %v5253_v41 }
 0x9be   : > { %v11403_v29 = vpop.f32.mrf.mxu0  ;;  %v11406_v56 = vadd.f32 %v11330_v57, %v5520_v43 }
 0x9c1   : > { %v3695_v5 = vpop.permute.xlu1 %3694  ;;  %5884 = vmatmul.bf16.gmra.mxu3 %v11312_v47 }
 0x9c2   : > { %v3743_v0 = vsel %vm3715_vm15, %v3695_v5, 0.0  ;;  %v5217_v20 = vpop.f32.mrf.mxu3  ;;  %v13030_v5 = vrot.slane %v10372_v28, 2 }
 0x9c3   : > { %3744 = vadd.xlane.f32.xlu0 %v3743_v0  ;;  %v5261_v6 = vadd.f32 %v11332_v50, %v5217_v20  ;;  %v5522_v32 = vpop.f32.mrf.mxu1 }
 0x9c4   : > { %v5582_v2 = vpop.f32.mrf.mxu2  ;;  %v5523_v4 = vadd.f32 %v5522_v32, %v5256_v9 }
 0x9c6   : > { %v11413_v16 = vpop.f32.mrf.mxu0  ;;  %v11416_v57 = vadd.f32 %v11339_v14, %v5523_v4 }
 0x9c9   : > { %v3701_v30 = vpop.permute.xlu1 %3700 }
 0x9ca   : > { %v3752_v41 = vsel %vm3715_vm15, %v3701_v30, 0.0  ;;  %v5219_v47 = vpop.f32.mrf.mxu3 }
 0x9cb   : > { %3753 = vadd.xlane.f32.xlu0 %v3752_v41  ;;  %v5263_v63 = vadd.f32 %v11341_v3, %v5219_v47  ;;  %v5524_v59 = vpop.f32.mrf.mxu1 }
 0x9cc   : > { %v5525_v19 = vadd.f32 %v5524_v59, %v5258_v62  ;;  %v5755_v62 = vshrl.u32 %v5624_v25, 16 }
 0x9ce   : > { %v11420_v37 = vpop.f32.mrf.mxu0  ;;  %v11423_v50 = vadd.f32 %v11344_v61, %v5525_v19  ;;  %v5757_v61 = vor.u32 %v5755_v62, %v5745_v11  ;;  %v5243_v62 = vadd.f32 %v11213_v48, %v11334_v15 }
 0x9d1   : > { %5889 = vmatmul.bf16.gmra.mxu3 %v5730_v1 }
 0x9d3   : > { %3991 = vrot.lane.b32.xlu1 %v13029_v54, %s8432_s29 }
 0x9d6   : > { %v11428_v14 = vpop.f32.mrf.mxu0 }
 0x9de   : > { %v11430_v43 = vpop.f32.mrf.mxu0 }
 0x9df   : > { %4098 = vrot.lane.b32.xlu0 %v13030_v5, %s8433_s30 }
 0x9e1   : > { %5894 = vmatmul.bf16.gmra.mxu3 %v5746_v40 }
 0x9e6   : > { %v11435_v3 = vpop.f32.mrf.mxu0 }
 0x9ee   : > { %v11437_v0 = vpop.f32.mrf.mxu0 }
 0x9f1   : > { %5899 = vmatmul.bf16.gmra.mxu3 %v5757_v61 }
 0x9f4   : > { %v5222_v1 = vpop.f32.mrf.mxu3 }
 0x9f5   : > { %v5527_v9 = vpop.f32.mrf.mxu1  ;;  %v5266_v40 = vadd.f32 %v11347_v44, %v5222_v1  ;;  %v5551_v44 = vadd.f32 %v11255_v23, %v11279_v58 }
 0x9f6   : > { %v11439_v10 = vadd.f32 %v5527_v9, %v5261_v6  ;;  %v11441_v20 = vpop.f32.mrf.mxu0 }
 0x9fc   : > { %v5224_v2 = vpop.f32.mrf.mxu3 }
 0x9fd   : > { %v5529_v32 = vpop.f32.mrf.mxu1  ;;  %v5268_v47 = vadd.f32 %v11359_v49, %v5224_v2  ;;  %v11466_v49 = vld [vmem:[%s12703_s8 + $0x1] ss:$0 sm:$0xff] }
 0x9fe   : > { %v11443_v4 = vadd.f32 %v5529_v32, %v5263_v63  ;;  %v11445_v28 = vpop.f32.mrf.mxu0  ;;  %v5510_v32 = vadd.f32 %v11355_v12, %v5243_v62 }
 0xa04   : > { %v5227_v30 = vpop.f32.mrf.mxu3 }
 0xa05   : > { %v5271_v63 = vadd.f32 %v11370_v17, %v5227_v30 }
 0xa06   : > { %v5532_v25 = vpop.f32.mrf.mxu1  ;;  %v11450_v11 = vpop.f32.mrf.mxu0 }
 0xa07   : > { %v11448_v41 = vadd.f32 %v5532_v25, %v5266_v40 }
 0xa0c   : > { %v5229_v6 = vpop.f32.mrf.mxu3 }
 0xa0e   : > { %v5534_v59 = vpop.f32.mrf.mxu1  ;;  %v11455_v54 = vpop.f32.mrf.mxu0 }
 0xa0f   : > { %v11453_v19 = vadd.f32 %v5534_v59, %v5268_v47  ;;  %v3724_v59 = vpop.xlane.xlu1 %3723 }
 0xa14   : > { %v5870_v5 = vpop.f32.mrf.mxu3 }
 0xa15   : > { %v5914_v61 = vadd.f32 %v11392_v53, %v5870_v5  ;;  %v3721_v58 = vpop.xlane.xlu2 %3720  ;;  %v5553_v53 = vadd.f32 %v11269_v34, %v5510_v32  ;;  %v8395_v34 = vld [vmem:[%s12695_s0] sm:$0xff] }
 0xa16   : > { %v5537_v1 = vpop.f32.mrf.mxu1  ;;  %v11470_v2 = vpop.f32.mrf.mxu0 }
 0xa17   : > { %v11468_v9 = vadd.f32 %v5537_v1, %v5271_v63  ;;  %v5947_v17 = vadd.f32 %v5914_v61, %v5551_v44  ;;  %v3756_v44 = vadd.f32 %v3721_v58, %v10906_v52  ;;  %v3757_v52 = vadd.f32 %v3724_v59, %v10991_v39 }
 0xa19   : > { %v11474_v23 = vadd.f32 %v11466_v49, %v5947_v17 }
 0xa1b   : > { %v5978_v48 = vadd.f32 2.0, %v11474_v23  ;;  %6771 = vrot.lane.b32.xlu1 %v11474_v23, %s8435_s17 }
 0xa1c   : > { %v5872_v15 = vpop.f32.mrf.mxu3 }
 0xa1d   : > { %v7956_v40 = vmul.f32 -1.442695, %v5978_v48  ;;  %v5916_v30 = vadd.f32 %v11403_v29, %v5872_v15  ;;  %v3730_v32 = vpop.xlane.xlu2 %3729  ;;  %v8396_v15 = vld [vmem:[%s12695_s0 + $0x8] sm:$0xff] }
 0xa1e   : > { %v5539_v25 = vpop.f32.mrf.mxu1  ;;  %v5945_v47 = vpop.f32.mrf.mxu0 }
 0xa1f   : > { %8252 = vpow2.f32 %v7956_v40  ;;  %v5948_v6 = vadd.f32 %v5916_v30, %v5553_v53  ;;  %v3718_v12 = vpop.xlane.xlu0 %3717  ;;  %v3769_v53 = vmul.f32 %v8396_v15, %v3756_v44  ;;  %v3733_v30 = vpop.xlane.xlu1 %3732  ;;  %v8400_v15 = vld [vmem:[%s12695_s0 + $0x28] sm:$0xff] }
 0xa20   : > { %v3755_v63 = vadd.f32 %v3718_v12, %v11010_v38  ;;  %v5556_v38 = vadd.f32 %v11283_v45, %v11368_v27  ;;  %v5248_v27 = vadd.f32 %v11262_v13, %v11353_v36 }
 0xa21   : > { %v11483_v5 = vadd.f32 %v11466_v49, %v5948_v6  ;;  %v3783_v47 = vsel %vm3781_vm6, %v3769_v53, 0.0  ;;  %v3759_v6 = vadd.f32 %v3730_v32, %v11032_v55 }
 0xa22   : > { %v3768_v29 = vmul.f32 %v8395_v34, %v3755_v63  ;;  %v5515_v59 = vadd.f32 %v11379_v21, %v5248_v27  ;;  %v8398_v34 = vld [vmem:[%s12695_s0 + $0x18] sm:$0xff] }
 0xa23   : > { %v5979_v62 = vadd.f32 2.0, %v11483_v5  ;;  %6461 = vrot.lane.b32.xlu0 %v11483_v5, %s8430_s24 }
 0xa24   : > { %v5875_v61 = vpop.f32.mrf.mxu3  ;;  %v3782_v45 = vsel %vm3781_vm6, %v3768_v29, 0.0 }
 0xa25   : > { %v8253_v1 = vpop.eup %8252  ;;  %v7957_v17 = vmul.f32 -1.442695, %v5979_v62  ;;  %v5919_v48 = vadd.f32 %v11413_v16, %v5875_v61  ;;  %v8397_v16 = vld [vmem:[%s12695_s0 + $0x10] sm:$0xff]  ;;  %v3784_v63 = vadd.f32 %v3783_v47, %v3782_v45  ;;  %v3760_v62 = vadd.f32 %v3733_v30, %v10955_v33  ;;  %v3739_v32 = vpop.xlane.xlu2 %3738 }
 0xa26   : > { %v11496_v58 = vadd.f32 1.0, %v8253_v1  ;;  %v3770_v25 = vmul.f32 %v8397_v16, %v3757_v52  ;;  %v5558_v33 = vadd.f32 %v11305_v46, %v5515_v59  ;;  %v3762_v27 = vadd.f32 %v3739_v32, %v11126_v24 }
 0xa27   : > { %8254 = vpow2.f32 %v7957_v17  ;;  %v5949_v40 = vadd.f32 %v5919_v48, %v5556_v38  ;;  %v3727_v12 = vpop.xlane.xlu0 %3726  ;;  %v3773_v53 = vmul.f32 %v8400_v15, %v3760_v62  ;;  %v3742_v46 = vpop.xlane.xlu1 %3741 }
 0xa28   : > { %8256 = vrcp.f32 %v11496_v58  ;;  %v3758_v44 = vadd.f32 %v3727_v12, %v10926_v7  ;;  %v3785_v21 = vsel %vm3781_vm6, %v3770_v25, 0.0  ;;  %v8399_v7 = vld [vmem:[%s12695_s0 + $0x20] sm:$0xff]  ;;  %v6052_v59 = vand.u32 2147483647, %v11496_v58 }
 0xa29   : > { %v11506_v39 = vadd.f32 %v11466_v49, %v5949_v40  ;;  %v3772_v38 = vmul.f32 %v8399_v7, %v3759_v6  ;;  %v3786_v48 = vadd.f32 %v3785_v21, %v3784_v63  ;;  %vm6048_vm11 = vweird.f32 %v11496_v58 }
 0xa2a   : > { %v3771_v29 = vmul.f32 %v8398_v34, %v3758_v44  ;;  %v6054_v44 = vand.u32 2147483648, %v11496_v58  ;;  %vm11563_vm12 = vcmp.eq.f32.partialorder %v6052_v59, 8.507059e+37 }
 0xa2b   : > { %6463 = vrot.lane.b32.xlu1 %v11506_v39, %s8430_s24  ;;  %v3789_v45 = vsel %vm3781_vm6, %v3772_v38, 0.0 }
 0xa2c   : > { %v5877_v13 = vpop.f32.mrf.mxu3 }
 0xa2d   : > { %v8255_v36 = vpop.eup %8254  ;;  %v5921_v55 = vadd.f32 %v11420_v37, %v5877_v13  ;;  %v3787_v37 = vsel %vm3781_vm6, %v3771_v29, 0.0  ;;  %v3791_v13 = vsel %vm3781_vm6, %v3773_v53, 0.0  ;;  %v3763_v29 = vadd.f32 %v3742_v46, %v10993_v22  ;;  %v3748_v22 = vpop.xlane.xlu2 %3747 }
 0xa2e   : > { %v11522_v61 = vpop.eup %8256  ;;  %v11525_v1 = vadd.f32 1.0, %v8255_v36  ;;  %v3788_v40 = vadd.f32 %v3787_v37, %v3786_v48  ;;  %v8401_v36 = vld [vmem:[%s12695_s0 + $0x30] sm:$0xff]  ;;  %v6055_v48 = vor.u32 1.1754944e-38, %v6054_v44 }
 0xa2f   : > { %v6044_v17 = vmul.f32 %v11522_v61, %v11496_v58  ;;  %v5950_v30 = vadd.f32 %v5921_v55, %v5558_v33  ;;  %v3736_v16 = vpop.xlane.xlu0 %3735  ;;  %vm6049_vm4 = vweird.f32 %v11522_v61  ;;  %v8402_v55 = vld [vmem:[%s12695_s0 + $0x38] sm:$0xff]  ;;  %v8403_v58 = vld [vmem:[%s12695_s0 + $0x40] sm:$0xff] }
 0xa30   : > { %8258 = vrcp.f32 %v11525_v1  ;;  %v3790_v47 = vadd.f32 %v3789_v45, %v3788_v40  ;;  %v3761_v12 = vadd.f32 %v3736_v16, %v11014_v51  ;;  %v3775_v21 = vmul.f32 %v8402_v55, %v3762_v27  ;;  %vm11569_vm1 = vmor %vm6048_vm11, %vm6049_vm4 }
 0xa31   : > { %v6045_v52 = vsub.f32 1.0, %v6044_v17  ;;  %v11542_v6 = vadd.f32 %v11466_v49, %v5950_v30  ;;  %v6067_v53 = vand.u32 2147483647, %v11525_v1  ;;  %v5980_v40 = vadd.f32 2.0, %v11506_v39 }
 0xa32   : > { %v3774_v62 = vmul.f32 %v8401_v36, %v3761_v12  ;;  %v3792_v33 = vadd.f32 %v3791_v13, %v3790_v47  ;;  %v3776_v30 = vmul.f32 %v8403_v58, %v3763_v29  ;;  %v3795_v45 = vsel %vm3781_vm6, %v3775_v21, 0.0  ;;  %v3751_v12 = vpop.xlane.xlu1 %3750 }
 0xa33   : > { %v6046_v25 = vmul.f32 %v11522_v61, %v6045_v52  ;;  %6775 = vrot.lane.b32.xlu1 %v11506_v39, %s8435_s17  ;;  %v5981_v24 = vadd.f32 2.0, %v11542_v6  ;;  %v6069_v27 = vand.u32 2147483648, %v11525_v1  ;;  %v3765_v39 = vadd.f32 %v3748_v22, %v11361_v60  ;;  %v8406_v22 = vld [vmem:[%s12695_s0 + $0x58] sm:$0xff] }
 0xa34   : > { %v5880_v63 = vpop.f32.mrf.mxu3  ;;  %v3793_v17 = vsel %vm3781_vm6, %v3774_v62, 0.0  ;;  %vm6063_vm9 = vweird.f32 %v11525_v1  ;;  %vm6068_vm2 = vcmp.eq.f32.partialorder %v6067_v53, 8.507059e+37 }
 0xa35   : > { %v6047_v51 = vadd.f32 %v11522_v61, %v6046_v25  ;;  %v7959_v38 = vmul.f32 -1.442695, %v5981_v24  ;;  %v3794_v52 = vadd.f32 %v3793_v17, %v3792_v33  ;;  %v5561_v24 = vadd.f32 %v11319_v18, %v11390_v31 }
 0xa36   : > { %v8259_v34 = vpop.eup %8258  ;;  %v5924_v62 = vadd.f32 %v11428_v14, %v5880_v63  ;;  %v6070_v18 = vor.u32 1.1754944e-38, %v6069_v27  ;;  %v3766_v31 = vadd.f32 %v3751_v12, %v11350_v42  ;;  %v8405_v63 = vld [vmem:[%s12695_s0 + $0x50] sm:$0xff] }
 0xa37   : > { %v6059_v7 = vmul.f32 %v8259_v34, %v11525_v1  ;;  %8260 = vpow2.f32 %v7959_v38  ;;  %v3796_v16 = vadd.f32 %v3795_v45, %v3794_v52  ;;  %v3745_v25 = vpop.xlane.xlu0 %3744  ;;  %v6051_v47 = vsel %vm11569_vm1, %v11522_v61, %v6047_v51 }
 0xa38   : > { %vm6064_vm7 = vweird.f32 %v8259_v34  ;;  %v3764_v59 = vadd.f32 %v3745_v25, %v11139_v35  ;;  %v6056_v44 = vsel %vm11563_vm12, %v6055_v48, %v6051_v47  ;;  %v7958_v61 = vmul.f32 -1.442695, %v5980_v40  ;;  %v8404_v35 = vld [vmem:[%s12695_s0 + $0x48] sm:$0xff] }
 0xa39   : > { %v6060_v37 = vsub.f32 1.0, %v6059_v7  ;;  %v11590_v29 = vadd.f32 0.0001, %v6056_v44  ;;  %v3797_v51 = vsel %vm3781_vm6, %v3776_v30, 0.0  ;;  %vm6065_vm8 = vmor %vm6063_vm9, %vm6064_vm7  ;;  %v3778_v21 = vmul.f32 %v8405_v63, %v3765_v39 }
 0xa3a   : > { %v3777_v60 = vmul.f32 %v8404_v35, %v3764_v59  ;;  %v3798_v14 = vadd.f32 %v3797_v51, %v3796_v16  ;;  %v5951_v33 = vadd.f32 %v5924_v62, %v5561_v24  ;;  %8262 = vpow2.f32 %v7958_v61 }
 0xa3b   : > { %v6061_v46 = vmul.f32 %v8259_v34, %v6060_v37  ;;  %6537 = vrot.lane.b32.xlu0 %v11590_v29, %s8433_s30  ;;  %v3779_v52 = vmul.f32 %v8406_v22, %v3766_v31  ;;  %v3801_v15 = vsel %vm3781_vm6, %v3778_v21, 0.0 }
 0xa3c   : > { %v5882_v13 = vpop.f32.mrf.mxu3  ;;  %v3799_v7 = vsel %vm3781_vm6, %v3777_v60, 0.0  ;;  %v11617_v40 = vadd.f32 %v11466_v49, %v5951_v33 }
 0xa3d   : > { %v6062_v36 = vadd.f32 %v8259_v34, %v6061_v46  ;;  %v8261_v55 = vpop.eup %8260  ;;  %v3800_v17 = vadd.f32 %v3799_v7, %v3798_v14  ;;  %v5926_v42 = vadd.f32 %v11430_v43, %v5882_v13  ;;  %v8407_v43 = vld [vmem:[%s12695_s0 + $0x60] sm:$0xff]  ;;  %v3803_v27 = vsel %vm3781_vm6, %v3779_v52, 0.0 }
 0xa3e   : > { %v11601_v1 = vadd.f32 1.0, %v8261_v55  ;;  %v5982_v62 = vadd.f32 2.0, %v11617_v40 }
 0xa3f   : > { %v6066_v38 = vsel %vm6065_vm8, %v8259_v34, %v6062_v36  ;;  %v3754_v48 = vpop.xlane.xlu0 %3753  ;;  %v3802_v58 = vadd.f32 %v3801_v15, %v3800_v17  ;;  %v5952_v45 = vadd.f32 %v5926_v42, %v11406_v56 }
 0xa40   : > { %v6071_v32 = vsel %vm6068_vm2, %v6070_v18, %v6066_v38  ;;  %8264 = vrcp.f32 %v11601_v1  ;;  %v3767_v34 = vadd.f32 %v3754_v48, %v11295_v8  ;;  %v8263_v8 = vpop.eup %8262  ;;  %v7960_v60 = vmul.f32 -1.442695, %v5982_v62 }
 0xa41   : > { %v11608_v37 = vadd.f32 0.0001, %v6071_v32  ;;  %v3804_v25 = vadd.f32 %v3803_v27, %v3802_v58  ;;  %v11629_v12 = vadd.f32 1.0, %v8263_v8  ;;  %v5970_v39 = vadd.f32 %v11466_v49, %v5952_v45 }
 0xa42   : > { %v3780_v30 = vmul.f32 %v8407_v43, %v3767_v34  ;;  %v6099_v33 = vand.u32 2147483648, %v11601_v1  ;;  %vm6093_vm13 = vweird.f32 %v11601_v1  ;;  %v6097_v17 = vand.u32 2147483647, %v11601_v1 }
 0xa43   : > { %6539 = vrot.lane.b32.xlu1 %v11608_v37, %s8433_s30  ;;  %6779 = vrot.lane.b32.xlu0 %v11617_v40, %s8435_s17  ;;  %8266 = vrcp.f32 %v11629_v12  ;;  %v5983_v24 = vadd.f32 2.0, %v5970_v39  ;;  %vm6078_vm4 = vweird.f32 %v11629_v12 }
 0xa44   : > { %v5885_v53 = vpop.f32.mrf.mxu3  ;;  %v3805_v16 = vsel %vm3781_vm6, %v3780_v30, 0.0  ;;  %8268 = vlog2.f32 %v11590_v29  ;;  %v6100_v34 = vor.u32 1.1754944e-38, %v6099_v33  ;;  %vm6098_vm10 = vcmp.eq.f32.partialorder %v6097_v17, 8.507059e+37 }
 0xa45   : > { %v3992_v46 = vpop.permute.xlu1 %3991  ;;  %v5929_v59 = vadd.f32 %v11435_v3, %v5885_v53  ;;  %v3806_v44 = vadd.f32 %v3805_v16, %v3804_v25  ;;  %v7961_v35 = vmul.f32 -1.442695, %v5983_v24  ;;  %v6084_v16 = vand.u32 2147483648, %v11629_v12 }
 0xa46   : > { %v8265_v47 = vpop.eup %8264 }
 0xa47   : > { %v6089_v56 = vmul.f32 %v8265_v47, %v11601_v1  ;;  %3807 = vadd.xlane.f32.xlu2 %v3806_v44  ;;  %v5953_v36 = vadd.f32 %v5929_v59, %v11416_v57  ;;  %8270 = vpow2.f32 %v7961_v35  ;;  %vm6094_vm14 = vweird.f32 %v8265_v47  ;;  %v13035_v59 = vld [vmem:[#allocation13_spill] sm:$0xff]  ;;  %v13036_v35 = vld [vmem:[#allocation10_spill] sm:$0xff] }
 0xa48   : > { %8272 = vpow2.f32 %v7960_v60  ;;  %vm6095_vm5 = vmor %vm6093_vm13, %vm6094_vm14  ;;  %v5571_v44 = vadd.f32 %v13035_v59, %v11439_v10  ;;  %v6085_v24 = vor.u32 1.1754944e-38, %v6084_v16  ;;  %v5573_v60 = vadd.f32 %v13036_v35, %v11443_v4 }
 0xa49   : > { %v6090_v61 = vsub.f32 1.0, %v6089_v56  ;;  %v11640_v3 = vadd.f32 %v11466_v49, %v5953_v36  ;;  %v8267_v18 = vpop.eup %8266 }
 0xa4a   : > { %v6074_v63 = vmul.f32 %v8267_v18, %v11629_v12  ;;  %v8269_v21 = vpop.eup %8268  ;;  %vm6079_vm3 = vweird.f32 %v8267_v18 }
 0xa4b   : > { %6781 = vrot.lane.b32.xlu1 %v5970_v39, %s8435_s17  ;;  %6469 = vrot.lane.b32.xlu0 %v5970_v39, %s8430_s24  ;;  %v6091_v31 = vmul.f32 %v8265_v47, %v6090_v61  ;;  %v5984_v57 = vadd.f32 2.0, %v11640_v3  ;;  %v6824_v42 = vmul.f32 0.6931472, %v8269_v21  ;;  %v6082_v39 = vand.u32 2147483647, %v11629_v12  ;;  %vm6080_vm11 = vmor %vm6078_vm4, %vm6079_vm3 }
 0xa4c   : > { %v5887_v13 = vpop.f32.mrf.mxu3 }
 0xa4d   : > { %v5931_v14 = vadd.f32 %v11437_v0, %v5887_v13  ;;  %v6092_v7 = vadd.f32 %v8265_v47, %v6091_v31  ;;  %v7962_v32 = vmul.f32 -1.442695, %v5984_v57  ;;  %v6075_v0 = vsub.f32 1.0, %v6074_v63  ;;  %v8271_v22 = vpop.eup %8270 }
 0xa4e   : > { %v8273_v15 = vpop.eup %8272  ;;  %v11655_v1 = vadd.f32 1.0, %v8271_v22  ;;  %vm6083_vm12 = vcmp.eq.f32.partialorder %v6082_v39, 8.507059e+37 }
 0xa4f   : > { %v5954_v38 = vadd.f32 %v5931_v14, %v11423_v50  ;;  %v6096_v50 = vsel %vm6095_vm5, %v8265_v47, %v6092_v7  ;;  %8274 = vpow2.f32 %v7962_v32  ;;  %v6076_v53 = vmul.f32 %v8267_v18, %v6075_v0 }
 0xa50   : > { %v6101_v58 = vsel %vm6098_vm10, %v6100_v34, %v6096_v50  ;;  %v11657_v43 = vadd.f32 1.0, %v8273_v15  ;;  %8276 = vlog2.f32 %v11608_v37  ;;  %vm6123_vm9 = vweird.f32 %v11655_v1 }
 0xa51   : > { %v4099_v51 = vpop.permute.xlu0 %4098  ;;  %v11651_v52 = vadd.f32 %v11466_v49, %v5954_v38  ;;  %v11661_v45 = vadd.f32 0.0001, %v6101_v58  ;;  %v6077_v46 = vadd.f32 %v8267_v18, %v6076_v53  ;;  %8278 = vrcp.f32 %v11655_v1 }
 0xa52   : > { %8280 = vrcp.f32 %v11657_v43  ;;  %v6114_v34 = vand.u32 2147483648, %v11657_v43  ;;  %vm6108_vm8 = vweird.f32 %v11657_v43 }
 0xa53   : > { %6940 = vrot.lane.b32.xlu0 %v6824_v42, %s8433_s30  ;;  %6862 = vrot.lane.b32.xlu1 %v6824_v42, %s8436_s25  ;;  %v5985_v30 = vadd.f32 2.0, %v11651_v52  ;;  %v6081_v56 = vsel %vm6080_vm11, %v8267_v18, %v6077_v46  ;;  %v6127_v46 = vand.u32 2147483647, %v11655_v1 }
 0xa54   : > { %v5890_v55 = vpop.f32.mrf.mxu3  ;;  %v6086_v12 = vsel %vm6083_vm12, %v6085_v24, %v6081_v56  ;;  %v6115_v24 = vor.u32 1.1754944e-38, %v6114_v34 }
 0xa55   : > { %v8275_v27 = vpop.eup %8274  ;;  %v7963_v25 = vmul.f32 -1.442695, %v5985_v30  ;;  %v5934_v47 = vadd.f32 %v11441_v20, %v5890_v55  ;;  %v6129_v30 = vand.u32 2147483648, %v11655_v1  ;;  %vm6128_vm13 = vcmp.eq.f32.partialorder %v6127_v46, 8.507059e+37 }
 0xa56   : > { %v8277_v13 = vpop.eup %8276  ;;  %v11677_v20 = vadd.f32 1.0, %v8275_v27 }
 0xa57   : > { %8282 = vpow2.f32 %v7963_v25  ;;  %v5955_v36 = vadd.f32 %v5934_v47, %v5571_v44  ;;  %v11679_v62 = vpop.eup %8278  ;;  %v6112_v47 = vand.u32 2147483647, %v11657_v43 }
 0xa58   : > { %v11681_v61 = vpop.eup %8280  ;;  %8284 = vrcp.f32 %v11677_v20  ;;  %v6119_v55 = vmul.f32 %v11679_v62, %v11655_v1  ;;  %vm6124_vm7 = vweird.f32 %v11679_v62  ;;  %v13040_v1 = vld [vmem:[#allocation7_spill] sm:$0xff]  ;;  %vm6138_vm3 = vweird.f32 %v11677_v20 }
 0xa59   : > { %v5973_v18 = vadd.f32 %v11466_v49, %v5955_v36  ;;  %v6104_v31 = vmul.f32 %v11681_v61, %v11657_v43  ;;  %vm6109_vm1 = vweird.f32 %v11681_v61  ;;  %vm11742_vm2 = vmor %vm6123_vm9, %vm6124_vm7  ;;  %v6130_v36 = vor.u32 1.1754944e-38, %v6129_v30 }
 0xa5a   : > { %v6120_v57 = vsub.f32 1.0, %v6119_v55  ;;  %vm11753_vm14 = vmor %vm6108_vm8, %vm6109_vm1  ;;  %vm6113_vm5 = vcmp.eq.f32.partialorder %v6112_v47, 8.507059e+37 }
 0xa5b   : > { %6543 = vrot.lane.b32.xlu0 %v11661_v45, %s8433_s30  ;;  %6471 = vrot.lane.b32.xlu1 %v11640_v3, %s8430_s24  ;;  %v5986_v63 = vadd.f32 2.0, %v5973_v18  ;;  %v6105_v7 = vsub.f32 1.0, %v6104_v31 }
 0xa5c   : > { %v5892_v48 = vpop.f32.mrf.mxu3 }
 0xa5d   : > { %v5936_v51 = vadd.f32 %v11445_v28, %v5892_v48  ;;  %v11696_v28 = vadd.f32 0.0001, %v6086_v12  ;;  %v8283_v4 = vpop.eup %8282  ;;  %v7964_v0 = vmul.f32 -1.442695, %v5986_v63  ;;  %v13037_v48 = vld [vmem:[#allocation12_spill] sm:$0xff]  ;;  %v6106_v50 = vmul.f32 %v11681_v61, %v6105_v7 }
 0xa5e   : > { %v11702_v21 = vpop.eup %8284  ;;  %v11704_v38 = vadd.f32 1.0, %v8283_v4  ;;  %v5576_v22 = vadd.f32 %v13037_v48, %v11448_v41  ;;  %v5581_v48 = vadd.f32 %v11400_v26, %v11468_v9 }
 0xa5f   : > { %6459 = vrot.lane.b32.xlu2 %v11474_v23, %s8430_s24  ;;  %v11684_v23 = vmul.f32 0.6931472, %v8277_v13  ;;  %v5956_v14 = vadd.f32 %v5936_v51, %v5573_v60  ;;  %8286 = vlog2.f32 %v11696_v28  ;;  %v6134_v42 = vmul.f32 %v11702_v21, %v11677_v20 }
 0xa60   : > { %8288 = vrcp.f32 %v11704_v38  ;;  %v6107_v58 = vadd.f32 %v11681_v61, %v6106_v50  ;;  %v5578_v13 = vadd.f32 %v13040_v1, %v11453_v19  ;;  %vm6139_vm10 = vweird.f32 %v11702_v21 }
 0xa61   : > { %v11708_v33 = vadd.f32 %v11466_v49, %v5956_v14  ;;  %v6135_v41 = vsub.f32 1.0, %v6134_v42  ;;  %8290 = vpow2.f32 %v7964_v0  ;;  %vm11786_vm4 = vmor %vm6138_vm3, %vm6139_vm10  ;;  %v6159_v34 = vand.u32 2147483648, %v11704_v38 }
 0xa62   : > { %8292 = vlog2.f32 %v11661_v45  ;;  %v6111_v19 = vsel %vm11753_vm14, %v11681_v61, %v6107_v58  ;;  %vm6153_vm1 = vweird.f32 %v11704_v38 }
 0xa63   : > { %6473 = vrot.lane.b32.xlu0 %v11651_v52, %s8430_s24  ;;  %6942 = vrot.lane.b32.xlu1 %v11684_v23, %s8433_s30  ;;  %v6136_v56 = vmul.f32 %v11702_v21, %v6135_v41  ;;  %v6116_v55 = vsel %vm6113_vm5, %v6115_v24, %v6111_v19  ;;  %v6292_v19 = vand.u32 2147483648, %v11696_v28 }
 0xa64   : > { %v5895_v8 = vpop.f32.mrf.mxu3  ;;  %v11790_v42 = vadd.f32 0.0001, %v6116_v55 }
 0xa65   : > { %v5939_v17 = vadd.f32 %v11450_v11, %v5895_v8  ;;  %v5987_v11 = vadd.f32 2.0, %v11708_v33  ;;  %v8287_v15 = vpop.eup %8286  ;;  %v6137_v61 = vadd.f32 %v11702_v21, %v6136_v56 }
 0xa66   : > { %v11736_v16 = vmul.f32 0.6931472, %v8287_v15  ;;  %v11738_v25 = vpop.eup %8288 }
 0xa67   : > { %6773 = vrot.lane.b32.xlu2 %v11483_v5, %s8435_s17  ;;  %v6121_v5 = vmul.f32 %v11679_v62, %v6120_v57  ;;  %v7965_v8 = vmul.f32 -1.442695, %v5987_v11  ;;  %v8291_v12 = vpop.eup %8290  ;;  %v6149_v51 = vmul.f32 %v11738_v25, %v11704_v38  ;;  %v6141_v0 = vsel %vm11786_vm4, %v11702_v21, %v6137_v61 }
 0xa68   : > { %v8293_v35 = vpop.eup %8292  ;;  %v11777_v31 = vadd.f32 1.0, %v8291_v12  ;;  %vm6154_vm12 = vweird.f32 %v11738_v25 }
 0xa69   : > { %v6122_v53 = vadd.f32 %v11679_v62, %v6121_v5  ;;  %8294 = vpow2.f32 %v7965_v8  ;;  %v6150_v4 = vsub.f32 1.0, %v6149_v51  ;;  %v11784_v63 = vmul.f32 0.6931472, %v8293_v35  ;;  %vm6155_vm7 = vmor %vm6153_vm1, %vm6154_vm12 }
 0xa6a   : > { %8296 = vrcp.f32 %v11696_v28  ;;  %vm6168_vm10 = vweird.f32 %v11777_v31 }
 0xa6b   : > { %6785 = vrot.lane.b32.xlu0 %v11651_v52, %s8435_s17  ;;  %6475 = vrot.lane.b32.xlu1 %v5973_v18, %s8430_s24  ;;  %v5957_v52 = vadd.f32 %v5939_v17, %v5576_v22  ;;  %v6126_v43 = vsel %vm11742_vm2, %v11679_v62, %v6122_v53  ;;  %8298 = vrcp.f32 %v11777_v31  ;;  %v6157_v53 = vand.u32 2147483647, %v11704_v38 }
 0xa6c   : > { %v5897_v10 = vpop.f32.mrf.mxu3  ;;  %v6131_v60 = vsel %vm6128_vm13, %v6130_v36, %v6126_v43  ;;  %vm6286_vm2 = vweird.f32 %v11696_v28  ;;  %v6290_v36 = vand.u32 2147483647, %v11696_v28 }
 0xa6d   : > { %v5941_v27 = vadd.f32 %v11455_v54, %v5897_v10  ;;  %v11747_v59 = vadd.f32 %v11466_v49, %v5957_v52  ;;  %v11782_v57 = vadd.f32 0.0001, %v6131_v60  ;;  %vm6158_vm9 = vcmp.eq.f32.partialorder %v6157_v53, 8.507059e+37 }
 0xa6e   : > { %vm6291_vm13 = vcmp.eq.f32.partialorder %v6290_v36, 8.507059e+37 }
 0xa6f   : > { %6465 = vrot.lane.b32.xlu2 %v11542_v6, %s8430_s24  ;;  %v5958_v10 = vadd.f32 %v5941_v27, %v5578_v13  ;;  %v5988_v62 = vadd.f32 2.0, %v11747_v59  ;;  %v8295_v5 = vpop.eup %8294  ;;  %v6160_v27 = vor.u32 1.1754944e-38, %v6159_v34 }
 0xa70   : > { %v11809_v50 = vadd.f32 1.0, %v8295_v5  ;;  %v8297_v15 = vpop.eup %8296  ;;  %v6174_v5 = vand.u32 2147483648, %v11777_v31 }
 0xa71   : > { %v11780_v14 = vadd.f32 %v11466_v49, %v5958_v10  ;;  %v7966_v17 = vmul.f32 -1.442695, %v5988_v62  ;;  %v11819_v52 = vpop.eup %8298  ;;  %v6282_v58 = vmul.f32 %v8297_v15, %v11696_v28  ;;  %vm6287_vm8 = vweird.f32 %v8297_v15 }
 0xa72   : > { %v6164_v47 = vmul.f32 %v11819_v52, %v11777_v31  ;;  %vm6288_vm14 = vmor %vm6286_vm2, %vm6287_vm8  ;;  %vm6169_vm5 = vweird.f32 %v11819_v52  ;;  %vm6183_vm12 = vweird.f32 %v11809_v50 }
 0xa73   : > { %6944 = vrot.lane.b32.xlu0 %v11736_v16, %s8433_s30  ;;  %6787 = vrot.lane.b32.xlu1 %v5973_v18, %s8435_s17  ;;  %v6144_v18 = vand.u32 2147483648, %v11677_v20  ;;  %8300 = vpow2.f32 %v7966_v17  ;;  %v6283_v38 = vsub.f32 1.0, %v6282_v58  ;;  %vm6170_vm3 = vmor %vm6168_vm10, %vm6169_vm5 }
 0xa74   : > { %v11711_v32 = vpop.f32.mrf.mxu3  ;;  %8302 = vlog2.f32 %v11790_v42  ;;  %v6165_v24 = vsub.f32 1.0, %v6164_v47 }
 0xa75   : > { %v6145_v22 = vor.u32 1.1754944e-38, %v6144_v18  ;;  %8304 = vlog2.f32 %v11782_v57 }
 0xa76   : > { %8306 = vrcp.f32 %v11809_v50  ;;  %v6166_v55 = vmul.f32 %v11819_v52, %v6165_v24 }
 0xa77   : > { %6777 = vrot.lane.b32.xlu2 %v11542_v6, %s8435_s17  ;;  %v6142_v6 = vand.u32 2147483647, %v11677_v20  ;;  %v5944_v20 = vadd.f32 %v11470_v2, %v11711_v32  ;;  %v6151_v2 = vmul.f32 %v11738_v25, %v6150_v4  ;;  %v5989_v32 = vadd.f32 2.0, %v11780_v14 }
 0xa78   : > { %v6167_v4 = vadd.f32 %v11819_v52, %v6166_v55 }
 0xa79   : > { %vm6143_vm11 = vcmp.eq.f32.partialorder %v6142_v6, 8.507059e+37  ;;  %v5959_v11 = vadd.f32 %v5944_v20, %v5581_v48  ;;  %v6152_v26 = vadd.f32 %v11738_v25, %v6151_v2  ;;  %v7967_v9 = vmul.f32 -1.442695, %v5989_v32  ;;  %v8301_v30 = vpop.eup %8300 }
 0xa7a   : > { %v6146_v21 = vsel %vm6143_vm11, %v6145_v22, %v6141_v0  ;;  %v8303_v46 = vpop.eup %8302  ;;  %v11839_v54 = vadd.f32 1.0, %v8301_v30  ;;  %v6172_v48 = vand.u32 2147483647, %v11777_v31  ;;  %v6189_v31 = vand.u32 2147483648, %v11809_v50 }
 0xa7b   : > { %6547 = vrot.lane.b32.xlu0 %v11782_v57, %s8433_s30  ;;  %6868 = vrot.lane.b32.xlu1 %v11784_v63, %s8436_s25  ;;  %v11824_v41 = vadd.f32 %v11466_v49, %v5959_v11  ;;  %v6156_v8 = vsel %vm6155_vm7, %v11738_v25, %v6152_v26  ;;  %8308 = vpow2.f32 %v7967_v9  ;;  %v8305_v49 = vpop.eup %8304  ;;  %v11841_v56 = vmul.f32 0.6931472, %v8303_v46 }
 0xa7c   : > { %v5902_v44 = vpop.f32.mrf.mxu3  ;;  %v11837_v1 = vpop.eup %8306  ;;  %v6161_v13 = vsel %vm6158_vm9, %v6160_v27, %v6156_v8  ;;  %v6834_v25 = vmul.f32 0.6931472, %v8305_v49  ;;  %8310 = vrcp.f32 %v11839_v54  ;;  %v6175_v26 = vor.u32 1.1754944e-38, %v6174_v5 }
 0xa7d   : > { %v5990_v39 = vadd.f32 2.0, %v11824_v41  ;;  %v6284_v44 = vmul.f32 %v8297_v15, %v6283_v38  ;;  %v6179_v51 = vmul.f32 %v11837_v1, %v11809_v50  ;;  %v11853_v62 = vadd.f32 0.0001, %v6161_v13 }
 0xa7e   : > { %vm6184_vm4 = vweird.f32 %v11837_v1  ;;  %vm6173_vm11 = vcmp.eq.f32.partialorder %v6172_v48, 8.507059e+37  ;;  %v6190_v49 = vor.u32 1.1754944e-38, %v6189_v31  ;;  %v6202_v36 = vand.u32 2147483647, %v11839_v54 }
 0xa7f   : > { %6467 = vrot.lane.b32.xlu2 %v11617_v40, %s8430_s24  ;;  %v11815_v40 = vadd.f32 0.0001, %v6146_v21  ;;  %v6285_v43 = vadd.f32 %v8297_v15, %v6284_v44  ;;  %v7968_v10 = vmul.f32 -1.442695, %v5990_v39  ;;  %v6180_v6 = vsub.f32 1.0, %v6179_v51  ;;  %vm11900_vm1 = vmor %vm6183_vm12, %vm6184_vm4 }
 0xa80   : > { %v6171_v21 = vsel %vm6170_vm3, %v11819_v52, %v6167_v4  ;;  %v6187_v52 = vand.u32 2147483647, %v11809_v50  ;;  %vm6198_vm8 = vweird.f32 %v11839_v54  ;;  %vm6271_vm3 = vweird.f32 %v11608_v37 }
 0xa81   : > { %v8309_v12 = vpop.eup %8308  ;;  %v6289_v60 = vsel %vm6288_vm14, %v8297_v15, %v6285_v43  ;;  %8312 = vpow2.f32 %v7968_v10  ;;  %v6181_v20 = vmul.f32 %v11837_v1, %v6180_v6  ;;  %v6176_v34 = vsel %vm6173_vm11, %v6175_v26, %v6171_v21 }
 0xa82   : > { %v11859_v61 = vadd.f32 1.0, %v8309_v12  ;;  %8314 = vlog2.f32 %v11853_v62  ;;  %v11868_v17 = vpop.eup %8310  ;;  %v11915_v38 = vadd.f32 0.0001, %v6176_v34  ;;  %vm6188_vm7 = vcmp.eq.f32.partialorder %v6187_v52, 8.507059e+37  ;;  %v8084_v52 = vld [vmem:[%s12704_s9 + $0x8] sm:$0xff] }
 0xa83   : > { %6477 = vrot.lane.b32.xlu0 %v11708_v33, %s8430_s24  ;;  %6549 = vrot.lane.b32.xlu1 %v11815_v40, %s8433_s30  ;;  %v6194_v11 = vmul.f32 %v11868_v17, %v11839_v54  ;;  %v6182_v9 = vadd.f32 %v11837_v1, %v6181_v20  ;;  %vm6199_vm9 = vweird.f32 %v11868_v17  ;;  %v6204_v12 = vand.u32 2147483648, %v11839_v54 }
 0xa84   : > { %8316 = vrcp.f32 %v11859_v61  ;;  %vm11951_vm2 = vmor %vm6198_vm8, %vm6199_vm9  ;;  %vm6203_vm14 = vcmp.eq.f32.partialorder %v6202_v36, 8.507059e+37  ;;  %v6217_v48 = vand.u32 2147483647, %v11859_v61  ;;  %vm6256_vm11 = vweird.f32 %v11590_v29  ;;  %7129 = vmatpush.bf16.msrb.mxu1 %v8084_v52 }
 0xa85   : > { %8318 = vrcp.f32 %v11608_v37  ;;  %v6195_v30 = vsub.f32 1.0, %v6194_v11  ;;  %v6186_v50 = vsel %vm11900_vm1, %v11837_v1, %v6182_v9  ;;  %v6205_v5 = vor.u32 1.1754944e-38, %v6204_v12 }
 0xa86   : > { %8320 = vrcp.f32 %v11782_v57  ;;  %v6191_v39 = vsel %vm6188_vm7, %v6190_v49, %v6186_v50  ;;  %v6277_v50 = vand.u32 2147483648, %v11608_v37  ;;  %vm6218_vm1 = vcmp.eq.f32.partialorder %v6217_v48, 8.507059e+37 }
 0xa87   : > { %6541 = vrot.lane.b32.xlu2 %v11696_v28, %s8433_s30  ;;  %v6293_v28 = vor.u32 1.1754944e-38, %v6292_v19  ;;  %v8313_v2 = vpop.eup %8312  ;;  %8322 = vrcp.f32 %v11590_v29  ;;  %v6196_v47 = vmul.f32 %v11868_v17, %v6195_v30  ;;  %v11933_v43 = vadd.f32 0.0001, %v6191_v39 }
 0xa88   : > { %v8315_v32 = vpop.eup %8314  ;;  %v11894_v15 = vadd.f32 1.0, %v8313_v2  ;;  %v6219_v2 = vand.u32 2147483648, %v11859_v61  ;;  %v6260_v30 = vand.u32 2147483647, %v11590_v29  ;;  %vm6331_vm9 = vweird.f32 %v11782_v57 }
 0xa89   : > { %v6294_v18 = vsel %vm6291_vm13, %v6293_v28, %v6289_v60  ;;  %v11898_v53 = vmul.f32 0.6931472, %v8315_v32  ;;  %v6197_v24 = vadd.f32 %v11868_v17, %v6196_v47  ;;  %vm6213_vm13 = vweird.f32 %v11859_v61 }
 0xa8a   : > { %8324 = vrcp.f32 %v11894_v15  ;;  %v6335_v12 = vand.u32 2147483647, %v11782_v57  ;;  %v6234_v48 = vand.u32 2147483648, %v11894_v15 }
 0xa8b   : > { %6948 = vrot.lane.b32.xlu0 %v11841_v56, %s8433_s30  ;;  %6950 = vrot.lane.b32.xlu1 %v6834_v25, %s8433_s30  ;;  %8326 = vlog2.f32 %v11815_v40  ;;  %v6201_v54 = vsel %vm11951_vm2, %v11868_v17, %v6197_v24 }
 0xa8c   : > { %8328 = vlog2.f32 %v11915_v38  ;;  %v6206_v26 = vsel %vm6203_vm14, %v6205_v5, %v6201_v54 }
 0xa8d   : > { %v11851_v35 = vpop.permute.xlu1 %6771  ;;  %v11998_v49 = vadd.f32 0.0001, %v6206_v26 }
 0xa8f   : > { %6783 = vrot.lane.b32.xlu2 %v11640_v3, %s8435_s17  ;;  %v13045_v3 = vld [vmem:[#allocation21_spill] sm:$0xff] }
 0xa90   : > { %v11866_v7 = vmul.f32 %v6294_v18, %v13045_v3 }
 0xa93   : > { %6791 = vrot.lane.b32.xlu0 %v11747_v59, %s8435_s17  ;;  %6793 = vrot.lane.b32.xlu1 %v11780_v14, %s8435_s17 }
 0xa95   : > { %v11923_v13 = vpop.permute.xlu0 %6461 }
 0xa97   : > { %6864 = vrot.lane.b32.xlu2 %v11684_v23, %s8436_s25  ;;  %v11891_v23 = vpop.eup %8316 }
 0xa98   : > { %v6209_v46 = vmul.f32 %v11891_v23, %v11859_v61  ;;  %v11913_v8 = vpop.eup %8318  ;;  %vm6214_vm5 = vweird.f32 %v11891_v23 }
 0xa99   : > { %v11920_v27 = vpop.eup %8320  ;;  %v6267_v1 = vmul.f32 %v11913_v8, %v11608_v37  ;;  %vm11981_vm10 = vmor %vm6213_vm13, %vm6214_vm5  ;;  %vm6272_vm4 = vweird.f32 %v11913_v8  ;;  %vm6336_vm13 = vcmp.eq.f32.partialorder %v6335_v12, 8.507059e+37  ;;  %vm6228_vm5 = vweird.f32 %v11894_v15 }
 0xa9a   : > { %v6210_v44 = vsub.f32 1.0, %v6209_v46  ;;  %v6220_v46 = vor.u32 1.1754944e-38, %v6219_v2  ;;  %vm6332_vm12 = vweird.f32 %v11920_v27  ;;  %vm12016_vm7 = vmor %vm6271_vm3, %vm6272_vm4 }
 0xa9b   : > { %6872 = vrot.lane.b32.xlu0 %v6834_v25, %s8436_s25  ;;  %6876 = vrot.lane.b32.xlu1 %v11898_v53, %s8436_s25  ;;  %v6327_v25 = vmul.f32 %v11920_v27, %v11782_v57  ;;  %v6268_v10 = vsub.f32 1.0, %v6267_v1  ;;  %vm12030_vm8 = vmor %vm6331_vm9, %vm6332_vm12  ;;  %vm12073_vm12 = vcmp.eq.f32.partialorder %v6260_v30, 8.507059e+37 }
 0xa9c   : > { %v6211_v51 = vmul.f32 %v11891_v23, %v6210_v44 }
 0xa9d   : > { %v11876_v0 = vpop.permute.xlu1 %6463  ;;  %v6328_v60 = vsub.f32 1.0, %v6327_v25  ;;  %v6269_v21 = vmul.f32 %v11913_v8, %v6268_v10  ;;  %v6337_v25 = vand.u32 2147483648, %v11782_v57 }
 0xa9e   : > { %v6500_v22 = vsub.f32 %v11866_v7, %v11876_v0  ;;  %v6212_v20 = vadd.f32 %v11891_v23, %v6211_v51  ;;  %v6275_v51 = vand.u32 2147483647, %v11608_v37 }
 0xa9f   : > { %6866 = vrot.lane.b32.xlu2 %v11736_v16, %s8436_s25  ;;  %v11931_v16 = vpop.eup %8322  ;;  %v6329_v17 = vmul.f32 %v11920_v27, %v6328_v60  ;;  %v6270_v47 = vadd.f32 %v11913_v8, %v6269_v21  ;;  %v6338_v54 = vor.u32 1.1754944e-38, %v6337_v25 }
 0xaa0   : > { %v11935_v19 = vpop.eup %8324  ;;  %v6252_v28 = vmul.f32 %v11931_v16, %v11590_v29  ;;  %v6216_v61 = vsel %vm11981_vm10, %v11891_v23, %v6212_v20  ;;  %vm6257_vm2 = vweird.f32 %v11931_v16  ;;  %v6232_v20 = vand.u32 2147483647, %v11894_v15 }
 0xaa1   : > { %v8327_v55 = vpop.eup %8326  ;;  %v6330_v39 = vadd.f32 %v11920_v27, %v6329_v17  ;;  %v6221_v36 = vsel %vm6218_vm1, %v6220_v46, %v6216_v61  ;;  %vm6229_vm14 = vweird.f32 %v11935_v19  ;;  %v6274_v37 = vsel %vm12016_vm7, %v11913_v8, %v6270_v47  ;;  %vm12061_vm3 = vmor %vm6256_vm11, %vm6257_vm2 }
 0xaa2   : > { %v8329_v4 = vpop.eup %8328  ;;  %v6253_v11 = vsub.f32 1.0, %v6252_v28  ;;  %v11972_v31 = vmul.f32 0.6931472, %v8327_v55  ;;  %v6262_v55 = vand.u32 2147483648, %v11590_v29  ;;  %v6278_v8 = vor.u32 1.1754944e-38, %v6277_v50  ;;  %vm12067_vm4 = vmor %vm6228_vm5, %vm6229_vm14 }
 0xaa3   : > { %6481 = vrot.lane.b32.xlu0 %v11780_v14, %s8430_s24  ;;  %6555 = vrot.lane.b32.xlu1 %v11933_v43, %s8433_s30  ;;  %v6224_v14 = vmul.f32 %v11935_v19, %v11894_v15  ;;  %v11974_v34 = vmul.f32 0.6931472, %v8329_v4  ;;  %v6334_v57 = vsel %vm12030_vm8, %v11920_v27, %v6330_v39  ;;  %v12047_v4 = vadd.f32 0.0001, %v6221_v36  ;;  %v13063_v39 = vld [vmem:[#allocation30_spill] sm:$0xff] }
 0xaa4   : > { %v6254_v23 = vmul.f32 %v11931_v16, %v6253_v11  ;;  %vm6276_vm10 = vcmp.eq.f32.partialorder %v6275_v51, 8.507059e+37  ;;  %v6339_v27 = vsel %vm6336_vm13, %v6338_v54, %v6334_v57  ;;  %v6263_v58 = vor.u32 1.1754944e-38, %v6262_v55 }
 0xaa5   : > { %v11957_v18 = vpop.permute.xlu1 %6775  ;;  %v6225_v9 = vsub.f32 1.0, %v6224_v14  ;;  %v6279_v11 = vsel %vm6276_vm10, %v6278_v8, %v6274_v37  ;;  %vm6233_vm11 = vcmp.eq.f32.partialorder %v6232_v20, 8.507059e+37  ;;  %v6235_v50 = vor.u32 1.1754944e-38, %v6234_v48 }
 0xaa6   : > { %v6255_v5 = vadd.f32 %v11931_v16, %v6254_v23 }
 0xaa7   : > { %6545 = vrot.lane.b32.xlu2 %v11790_v42, %s8433_s30  ;;  %v6226_v44 = vmul.f32 %v11935_v19, %v6225_v9 }
 0xaa8   : > { %v6259_v52 = vsel %vm12061_vm3, %v11931_v16, %v6255_v5  ;;  %vm6346_vm3 = vweird.f32 %v11815_v40 }
 0xaa9   : > { %v6227_v14 = vadd.f32 %v11935_v19, %v6226_v44  ;;  %v6280_v44 = vmul.f32 %v6279_v11, %v13063_v39  ;;  %v6264_v12 = vsel %vm12073_vm12, %v6263_v58, %v6259_v52 }
 0xaab   : > { %6952 = vrot.lane.b32.xlu0 %v11972_v31, %s8433_s30  ;;  %6956 = vrot.lane.b32.xlu1 %v11974_v34, %s8433_s30  ;;  %v6231_v29 = vsel %vm12067_vm4, %v11935_v19, %v6227_v14 }
 0xaac   : > { %v6236_v16 = vsel %vm6233_vm11, %v6235_v50, %v6231_v29 }
 0xaad   : > { %v11967_v32 = vpop.permute.xlu0 %6537  ;;  %v12111_v48 = vadd.f32 0.0001, %v6236_v16 }
 0xaae   : > { %8330 = vrcp.f32 %v11967_v32  ;;  %vm6581_vm8 = vweird.f32 %v11967_v32  ;;  %v6587_v8 = vand.u32 2147483648, %v11967_v32  ;;  %v6585_v15 = vand.u32 2147483647, %v11967_v32 }
 0xaaf   : > { %8332 = vrcp.f32 %v11815_v40  ;;  %6946 = vrot.lane.b32.xlu2 %v11784_v63, %s8433_s30 }
 0xab0   : > { %v6588_v50 = vor.u32 1.1754944e-38, %v6587_v8  ;;  %vm6586_vm5 = vcmp.eq.f32.partialorder %v6585_v15, 8.507059e+37 }
 0xab3   : > { %6553 = vrot.lane.b32.xlu0 %v11915_v38, %s8433_s30  ;;  %6559 = vrot.lane.b32.xlu1 %v12047_v4, %s8433_s30 }
 0xab4   : > { %v12010_v24 = vpop.eup %8330 }
 0xab5   : > { %v12006_v1 = vpop.permute.xlu1 %6539  ;;  %v6577_v10 = vmul.f32 %v12010_v24, %v11967_v32  ;;  %v12026_v60 = vpop.permute.xlu0 %6779  ;;  %vm6582_vm9 = vweird.f32 %v12010_v24 }
 0xab6   : > { %8334 = vrcp.f32 %v12006_v1  ;;  %v12044_v6 = vpop.eup %8332  ;;  %vm6596_vm7 = vweird.f32 %v12006_v1  ;;  %v6600_v55 = vand.u32 2147483647, %v12006_v1  ;;  %v6602_v37 = vand.u32 2147483648, %v12006_v1  ;;  %vm12132_vm14 = vmor %vm6581_vm8, %vm6582_vm9 }
 0xab7   : > { %8336 = vlog2.f32 %v11998_v49  ;;  %v6578_v2 = vsub.f32 1.0, %v6577_v10  ;;  %6789 = vrot.lane.b32.xlu2 %v11708_v33, %s8435_s17  ;;  %v13062_v33 = vld [vmem:[#allocation27_spill] sm:$0xff]  ;;  %v6342_v47 = vmul.f32 %v12044_v6, %v11815_v40  ;;  %vm6347_vm10 = vweird.f32 %v12044_v6 }
 0xab8   : > { %v12085_v30 = vmul.f32 %v6339_v27, %v13062_v33  ;;  %8338 = vlog2.f32 %v12047_v4  ;;  %v6603_v52 = vor.u32 1.1754944e-38, %v6602_v37  ;;  %vm6601_vm13 = vcmp.eq.f32.partialorder %v6600_v55, 8.507059e+37  ;;  %vm6348_vm4 = vmor %vm6346_vm3, %vm6347_vm10 }
 0xab9   : > { %v6579_v19 = vmul.f32 %v12010_v24, %v6578_v2  ;;  %v6343_v57 = vsub.f32 1.0, %v6342_v47  ;;  %v13064_v2 = vld [vmem:[#allocation29_spill] sm:$0xff]  ;;  %8340 = vrcp.f32 %v11915_v38  ;;  %vm6391_vm3 = vweird.f32 %v11933_v43 }
 0xaba   : > { %v3808_v61 = vpop.xlane.xlu2 %3807  ;;  %v6265_v27 = vmul.f32 %v6264_v12, %v13064_v2  ;;  %8342 = vlog2.f32 %v12111_v48 }
 0xabb   : > { %v3809_v23 = vrot.slane %v3808_v61, 4  ;;  %v6580_v14 = vadd.f32 %v12010_v24, %v6579_v19  ;;  %6795 = vrot.lane.b32.xlu0 %v11824_v41, %s8435_s17  ;;  %v6344_v58 = vmul.f32 %v12044_v6, %v6343_v57  ;;  %8344 = vlog2.f32 %v11933_v43 }
 0xabc   : > { %v8335_v17 = vpop.eup %8334  ;;  %8346 = vrcp.f32 %v11661_v45 }
 0xabd   : > { %v6592_v9 = vmul.f32 %v8335_v17, %v12006_v1  ;;  %v8337_v46 = vpop.eup %8336  ;;  %v12091_v63 = vpop.permute.xlu0 %6469  ;;  %v3810_v10 = vadd.f32 %v3809_v23, %v3808_v61  ;;  %vm6597_vm1 = vweird.f32 %v8335_v17  ;;  %v6345_v23 = vadd.f32 %v12044_v6, %v6344_v58 }
 0xabe   : > { %v6503_v36 = vsub.f32 %v12085_v30, %v12091_v63  ;;  %v12098_v28 = vmul.f32 0.6931472, %v8337_v46  ;;  %v12109_v5 = vpop.permute.xlu1 %6781  ;;  %vm12121_vm2 = vmor %vm6596_vm7, %vm6597_vm1  ;;  %v8339_v29 = vpop.eup %8338  ;;  %vm6376_vm1 = vweird.f32 %v11915_v38  ;;  %v6380_v58 = vand.u32 2147483647, %v11915_v38 }
 0xabf   : > { %v6593_v25 = vsub.f32 1.0, %v6592_v9  ;;  %v3811_v54 = vrot.slane %v3810_v10, 2  ;;  %6870 = vrot.lane.b32.xlu2 %v11841_v56, %s8436_s25  ;;  %v6499_v56 = vsub.f32 %v6280_v44, %v11923_v13  ;;  %v12143_v47 = vmul.f32 0.6931472, %v8339_v29 }
 0xac0   : > { %6882 = vrot.lane.b32.xlu1 %v12098_v28, %s8436_s25  ;;  %v6349_v57 = vsel %vm6348_vm4, %v12044_v6, %v6345_v23  ;;  %v13069_v6 = vld [vmem:[#allocation11_spill] sm:$0xff]  ;;  %8348 = vrcp.f32 %v11933_v43  ;;  %vm6381_vm9 = vcmp.eq.f32.partialorder %v6380_v58, 8.507059e+37 }
 0xac1   : > { %v6594_v51 = vmul.f32 %v8335_v17, %v6593_v25  ;;  %v3812_v11 = vadd.f32 %v3811_v54, %v3810_v10  ;;  %v6512_v25 = vsel %vm637_vm0, %v13063_v39, %v6499_v56  ;;  %v6350_v39 = vand.u32 2147483647, %v11815_v40 }
 0xac2   : > { %v6460_v1 = vpop.permute.xlu2 %6459 }
 0xac3   : > { %v6595_v20 = vadd.f32 %v8335_v17, %v6594_v51  ;;  %v6498_v32 = vsub.f32 %v6265_v27, %v6460_v1  ;;  %v3813_v46 = vrot.slane %v3812_v11, 1  ;;  %6878 = vrot.lane.b32.xlu0 %v11974_v34, %s8436_s25  ;;  %v6352_v51 = vand.u32 2147483648, %v11815_v40 }
 0xac4   : > { %vm6351_vm12 = vcmp.eq.f32.partialorder %v6350_v39, 8.507059e+37 }
 0xac5   : > { %v6599_v26 = vsel %vm12121_vm2, %v8335_v17, %v6595_v20  ;;  %v6584_v17 = vsel %vm12132_vm14, %v12010_v24, %v6580_v14  ;;  %v6511_v13 = vsel %vm637_vm0, %v13064_v2, %v6498_v32  ;;  %v3814_v44 = vadd.f32 %v3813_v46, %v3812_v11  ;;  %v8341_v24 = vpop.eup %8340  ;;  %v12160_v55 = vpop.permute.xlu0 %6940 }
 0xac6   : > { %v6604_v61 = vsel %vm6601_vm13, %v6603_v52, %v6599_v26  ;;  %v6589_v19 = vsel %vm6586_vm5, %v6588_v50, %v6584_v17  ;;  %v12158_v10 = vpop.permute.xlu1 %6862  ;;  %v8343_v34 = vpop.eup %8342  ;;  %v6372_v14 = vmul.f32 %v8341_v24, %v11915_v38  ;;  %v6353_v8 = vor.u32 1.1754944e-38, %v6352_v51 }
 0xac7   : > { %v6590_v16 = vmul.f32 %v6589_v19, %v6511_v13  ;;  %8091 = vpush %v3814_v44  ;;  %v6605_v12 = vmul.f32 %v6604_v61, %v6512_v25  ;;  %6479 = vrot.lane.b32.xlu2 %v11747_v59, %s8430_s24  ;;  %v12166_v40 = vmul.f32 0.6931472, %v8343_v34  ;;  %v8345_v11 = vpop.eup %8344  ;;  %vm6377_vm11 = vweird.f32 %v8341_v24  ;;  %v13070_v25 = vld [vmem:[#allocation25_spill] sm:$0xff] }
 0xac8   : > { %6884 = vrot.lane.b32.xlu1 %v12143_v47, %s8436_s25  ;;  %v6354_v2 = vsel %vm6351_vm12, %v6353_v8, %v6349_v57  ;;  %v6373_v27 = vsub.f32 1.0, %v6372_v14  ;;  %v6842_v9 = vmul.f32 0.6931472, %v8345_v11  ;;  %v6382_v52 = vand.u32 2147483648, %v11915_v38  ;;  %v8347_v32 = vpop.eup %8346  ;;  %vm6378_vm7 = vmor %vm6376_vm1, %vm6377_vm11 }
 0xac9   : > { %v6810_v54 = vsub.f32 %v6590_v16, %v11851_v35  ;;  %v12173_v21 = vmul.f32 %v6354_v2, %v13069_v6  ;;  %v8349_v19 = vpop.eup %8348  ;;  %vm6302_vm8 = vweird.f32 %v8347_v32  ;;  %vm6301_vm2 = vweird.f32 %v11661_v45 }
 0xaca   : > { %v6774_v37 = vpop.permute.xlu2 %6773  ;;  %v6374_v56 = vmul.f32 %v8341_v24, %v6373_v27  ;;  %v6383_v13 = vor.u32 1.1754944e-38, %v6382_v52  ;;  %v6387_v34 = vmul.f32 %v8349_v19, %v11933_v43  ;;  %v6305_v2 = vand.u32 2147483647, %v11661_v45  ;;  %vm6303_vm14 = vmor %vm6301_vm2, %vm6302_vm8 }
 0xacb   : > { %v6811_v20 = vsub.f32 %v6605_v12, %v6774_v37  ;;  %6557 = vrot.lane.b32.xlu0 %v11998_v49, %s8433_s30  ;;  %vm6392_vm5 = vweird.f32 %v8349_v19 }
 0xacc   : > { %v6375_v1 = vadd.f32 %v8341_v24, %v6374_v56  ;;  %v6388_v14 = vsub.f32 1.0, %v6387_v34  ;;  %vm6306_vm13 = vcmp.eq.f32.partialorder %v6305_v2, 8.507059e+37  ;;  %vm12235_vm4 = vmor %vm6391_vm3, %vm6392_vm5  ;;  %vm6316_vm5 = vweird.f32 %v11790_v42 }
 0xacd   : > { %v7080_v59 = vpack.c.bf16 %v6811_v20, %v6810_v54  ;;  %v12180_v15 = vpop.permute.xlu0 %6543 }
 0xace   : > { %v12178_v35 = vpop.permute.xlu1 %6471  ;;  %v6379_v61 = vsel %vm6378_vm7, %v8341_v24, %v6375_v1  ;;  %8350 = vrcp.f32 %v12180_v15  ;;  %v6389_v11 = vmul.f32 %v8349_v19, %v6388_v14  ;;  %vm6626_vm12 = vweird.f32 %v12180_v15  ;;  %v13073_v14 = vld [vmem:[#allocation26_spill] sm:$0xff] }
 0xacf   : > { %6551 = vrot.lane.b32.xlu2 %v11853_v62, %s8433_s30  ;;  %7976 = vmatmul.msk.bf16.vlgmr.msrb.gmra.mxu1 %vm3715_vm15, %v7080_v59  ;;  %v6504_v26 = vsub.f32 %v12173_v21, %v12178_v35  ;;  %v6384_v44 = vsel %vm6381_vm9, %v6383_v13, %v6379_v61  ;;  %v6397_v61 = vand.u32 2147483648, %v11933_v43 }
 0xad0   : > { %6886 = vrot.lane.b32.xlu1 %v12166_v40, %s8436_s25  ;;  %v12205_v23 = vmul.f32 %v6384_v44, %v13070_v25  ;;  %v6390_v58 = vadd.f32 %v8349_v19, %v6389_v11  ;;  %v6632_v44 = vand.u32 2147483648, %v12180_v15 }
 0xad2   : > { %v12184_v29 = vpop.permute.xlu2 %6465 }
 0xad3   : > { %6958 = vrot.lane.b32.xlu0 %v6842_v9, %s8433_s30 }
 0xad4   : > { %v8351_v16 = vpop.eup %8350 }
 0xad5   : > { %v12196_v46 = vpop.permute.xlu0 %6473  ;;  %v6622_v37 = vmul.f32 %v8351_v16, %v12180_v15  ;;  %vm6627_vm10 = vweird.f32 %v8351_v16 }
 0xad6   : > { %v12194_v17 = vpop.permute.xlu1 %6942  ;;  %vm6628_vm11 = vmor %vm6626_vm12, %vm6627_vm10 }
 0xad7   : > { %6874 = vrot.lane.b32.xlu2 %v11972_v31, %s8436_s25  ;;  %v6297_v31 = vmul.f32 %v8347_v32, %v11661_v45  ;;  %v6623_v54 = vsub.f32 1.0, %v6622_v37  ;;  %v6630_v37 = vand.u32 2147483647, %v12180_v15 }
 0xad9   : > { %v6298_v38 = vsub.f32 1.0, %v6297_v31  ;;  %v6624_v56 = vmul.f32 %v8351_v16, %v6623_v54  ;;  %vm6631_vm7 = vcmp.eq.f32.partialorder %v6630_v37, 8.507059e+37 }
 0xada   : > { %v12198_v50 = vpop.permute.xlu2 %6777 }
 0xadb   : > { %6561 = vrot.lane.b32.xlu0 %v12111_v48, %s8433_s30  ;;  %v6299_v57 = vmul.f32 %v8347_v32, %v6298_v38  ;;  %v6625_v13 = vadd.f32 %v8351_v16, %v6624_v56  ;;  %v6633_v56 = vor.u32 1.1754944e-38, %v6632_v44 }
 0xadd   : > { %v12211_v12 = vpop.permute.xlu0 %6785  ;;  %v6300_v20 = vadd.f32 %v8347_v32, %v6299_v57 }
 0xade   : > { %v12209_v24 = vpop.permute.xlu1 %6475 }
 0xadf   : > { %6483 = vrot.lane.b32.xlu2 %v11824_v41, %s8430_s24  ;;  %v6506_v51 = vsub.f32 %v12205_v23, %v12209_v24  ;;  %v6307_v41 = vand.u32 2147483648, %v11661_v45  ;;  %v6304_v1 = vsel %vm6303_vm14, %v8347_v32, %v6300_v20  ;;  %v6395_v45 = vand.u32 2147483647, %v11933_v43 }
 0xae0   : > { %v6394_v43 = vsel %vm12235_vm4, %v8349_v19, %v6390_v58  ;;  %v6398_v20 = vor.u32 1.1754944e-38, %v6397_v61  ;;  %v6901_v58 = vsel %vm637_vm0, %v12158_v10, 0.0 }
 0xae1   : > { %v6308_v52 = vor.u32 1.1754944e-38, %v6307_v41  ;;  %v6629_v41 = vsel %vm6628_vm11, %v8351_v16, %v6625_v13  ;;  %vm6396_vm1 = vcmp.eq.f32.partialorder %v6395_v45, 8.507059e+37  ;;  %v13074_v13 = vld [vmem:[#allocation28_spill] sm:$0xff] }
 0xae2   : > { %v12215_v39 = vpop.permute.xlu2 %6467  ;;  %v6634_v19 = vsel %vm6631_vm7, %v6633_v56, %v6629_v41 }
 0xae5   : > { %v12224_v59 = vpop.permute.xlu0 %6944 }
 0xae6   : > { %v12222_v8 = vpop.permute.xlu1 %6787 }
 0xae7   : > { %6954 = vrot.lane.b32.xlu2 %v11898_v53, %s8433_s30  ;;  %v6309_v53 = vsel %vm6306_vm13, %v6308_v52, %v6304_v1  ;;  %v6399_v1 = vsel %vm6396_vm1, %v6398_v20, %v6394_v43 }
 0xae8   : > { %v6310_v54 = vmul.f32 %v6309_v53, %v13073_v14  ;;  %v12258_v45 = vmul.f32 %v6399_v1, %v13074_v13 }
 0xaea   : > { %v6542_v27 = vpop.permute.xlu2 %6541  ;;  %v6501_v11 = vsub.f32 %v6310_v54, %v12184_v29 }
 0xaeb   : > { %8352 = vrcp.f32 %v6542_v27  ;;  %v6617_v15 = vand.u32 2147483648, %v6542_v27  ;;  %v6615_v34 = vand.u32 2147483647, %v6542_v27  ;;  %vm6611_vm8 = vweird.f32 %v6542_v27 }
 0xaec   : > { %8354 = vrcp.f32 %v11790_v42  ;;  %v6514_v16 = vsel %vm637_vm0, %v13073_v14, %v6501_v11 }
 0xaed   : > { %v12233_v32 = vpop.permute.xlu0 %6547  ;;  %v6618_v29 = vor.u32 1.1754944e-38, %v6617_v15  ;;  %v6635_v10 = vmul.f32 %v6634_v19, %v6514_v16  ;;  %vm6616_vm14 = vcmp.eq.f32.partialorder %v6615_v34, 8.507059e+37  ;;  %v6985_v16 = vsel %vm3715_vm15, %v12224_v59, 0.0 }
 0xaee   : > { %v6869_v38 = vpop.permute.xlu1 %6868  ;;  %8356 = vrcp.f32 %v12233_v32  ;;  %vm6656_vm12 = vweird.f32 %v12233_v32  ;;  %v6660_v59 = vand.u32 2147483647, %v12233_v32 }
 0xaef   : > { %6880 = vrot.lane.b32.xlu2 %v6842_v9, %s8436_s25  ;;  %v6813_v20 = vsub.f32 %v6635_v10, %v12198_v50  ;;  %v6910_v15 = vsel %vm637_vm0, %v6869_v38, 0.0 }
 0xaf0   : > { %vm6661_vm1 = vcmp.eq.f32.partialorder %v6660_v59, 8.507059e+37 }
 0xaf1   : > { %v8353_v31 = vpop.eup %8352 }
 0xaf2   : > { %v6607_v57 = vmul.f32 %v8353_v31, %v6542_v27  ;;  %v12241_v9 = vpop.permute.xlu2 %6783  ;;  %vm6612_vm9 = vweird.f32 %v8353_v31  ;;  %v8355_v37 = vpop.eup %8354 }
 0xaf3   : > { %vm6613_vm2 = vmor %vm6611_vm8, %vm6612_vm9  ;;  %vm6317_vm13 = vweird.f32 %v8355_v37 }
 0xaf4   : > { %v6608_v2 = vsub.f32 1.0, %v6607_v57  ;;  %v8357_v7 = vpop.eup %8356  ;;  %vm6318_vm10 = vmor %vm6316_vm5, %vm6317_vm13  ;;  %vm6361_vm5 = vweird.f32 %v11853_v62 }
 0xaf5   : > { %v12260_v44 = vpop.permute.xlu0 %6477  ;;  %v6652_v50 = vmul.f32 %v8357_v7, %v12233_v32  ;;  %vm6657_vm4 = vweird.f32 %v8357_v7 }
 0xaf6   : > { %v6609_v52 = vmul.f32 %v8353_v31, %v6608_v2  ;;  %v12255_v61 = vpop.permute.xlu1 %6549  ;;  %v6507_v14 = vsub.f32 %v12258_v45, %v12260_v44  ;;  %v6982_v2 = vsel %vm3715_vm15, %v12194_v17, 0.0  ;;  %v6979_v17 = vsel %vm3715_vm15, %v12160_v55, 0.0  ;;  %vm6658_vm11 = vmor %vm6656_vm12, %vm6657_vm4 }
 0xaf7   : > { %6960 = vrot.lane.b32.xlu2 %v12098_v28, %s8433_s30  ;;  %v6513_v28 = vsel %vm637_vm0, %v13045_v3, %v6500_v22 }
 0xaf8   : > { %v6610_v53 = vadd.f32 %v8353_v31, %v6609_v52  ;;  %s8092_s24 = spop %8091 }
 0xafa   : > { %6902 = vadd.xlane.f32.xlu1 %v6901_v58  ;;  %v6614_v57 = vsel %vm6613_vm2, %v8353_v31, %v6610_v53  ;;  %v12262_v27 = vpop.permute.xlu2 %6864  ;;  %v6312_v31 = vmul.f32 %v8355_v37, %v11790_v42  ;;  %v6320_v58 = vand.u32 2147483647, %v11790_v42  ;;  %v6322_v53 = vand.u32 2147483648, %v11790_v42 }
 0xafb   : > { %v6619_v43 = vsel %vm6616_vm14, %v6618_v29, %v6614_v57 }
 0xafc   : > { %v6620_v54 = vmul.f32 %v6619_v43, %v6513_v28  ;;  %v6313_v11 = vsub.f32 1.0, %v6312_v31  ;;  %vm6321_vm3 = vcmp.eq.f32.partialorder %v6320_v58, 8.507059e+37  ;;  %v6662_v43 = vand.u32 2147483648, %v12233_v32 }
 0xafd   : > { %v6949_v22 = vpop.permute.xlu0 %6948 }
 0xafe   : > { %v6812_v41 = vsub.f32 %v6620_v54, %v11957_v18  ;;  %v12279_v0 = vpop.permute.xlu1 %6950  ;;  %v6314_v18 = vmul.f32 %v8355_v37, %v6313_v11  ;;  %v6991_v10 = vsel %vm3715_vm15, %v6949_v22, 0.0  ;;  %v6663_v22 = vor.u32 1.1754944e-38, %v6662_v43 }
 0xaff   : > { %6962 = vrot.lane.b32.xlu2 %v12143_v47, %s8433_s30  ;;  %v6653_v47 = vsub.f32 1.0, %v6652_v50 }
 0xb00   : > { %v7081_v3 = vpack.c.bf16 %v6813_v20, %v6812_v41  ;;  %v6315_v34 = vadd.f32 %v8355_v37, %v6314_v18 }
 0xb01   : > { %v6654_v55 = vmul.f32 %v8357_v7, %v6653_v47 }
 0xb02   : > { %6983 = vadd.xlane.f32.xlu1 %v6982_v2  ;;  %v12281_v56 = vpop.permute.xlu2 %6866  ;;  %7977 = vmatmul.msk.bf16.gmra.mxu1 %vm3715_vm15, %v7081_v3  ;;  %v6319_v38 = vsel %vm6318_vm10, %v8355_v37, %v6315_v34  ;;  %v13075_v2 = vld [vmem:[#allocation22_spill] sm:$0xff] }
 0xb03   : > { %v6655_v29 = vadd.f32 %v8357_v7, %v6654_v55 }
 0xb05   : > { %6980 = vadd.xlane.f32.xlu0 %v6979_v17  ;;  %v12292_v52 = vpop.permute.xlu0 %6791  ;;  %v6659_v31 = vsel %vm6658_vm11, %v8357_v7, %v6655_v29  ;;  %v6516_v7 = vsel %vm637_vm0, %v13062_v33, %v6503_v36 }
 0xb06   : > { %v12290_v1 = vpop.permute.xlu1 %6793 }
 0xb07   : > { %6964 = vrot.lane.b32.xlu2 %v12166_v40, %s8433_s30  ;;  %v6323_v40 = vor.u32 1.1754944e-38, %v6322_v53 }
 0xb09   : > { %v6324_v28 = vsel %vm6321_vm3, %v6323_v40, %v6319_v38  ;;  %vm6671_vm3 = vweird.f32 %v12255_v61 }
 0xb0a   : > { %6911 = vadd.xlane.f32.xlu1 %v6910_v15  ;;  %v6546_v19 = vpop.permute.xlu2 %6545  ;;  %v6325_v3 = vmul.f32 %v6324_v28, %v13075_v2  ;;  %v6664_v15 = vsel %vm6661_vm1, %v6663_v22, %v6659_v31  ;;  %vm6421_vm1 = vweird.f32 %v12047_v4 }
 0xb0b   : > { %8358 = vrcp.f32 %v6546_v19  ;;  %v6647_v11 = vand.u32 2147483648, %v6546_v19  ;;  %v6645_v18 = vand.u32 2147483647, %v6546_v19  ;;  %vm6641_vm9 = vweird.f32 %v6546_v19 }
 0xb0c   : > { %8360 = vrcp.f32 %v11853_v62  ;;  %v6502_v17 = vsub.f32 %v6325_v3, %v12215_v39  ;;  %v6665_v40 = vmul.f32 %v6664_v15, %v6516_v7  ;;  %v6675_v7 = vand.u32 2147483647, %v12255_v61 }
 0xb0d   : > { %6986 = vadd.xlane.f32.xlu0 %v6985_v16  ;;  %v12303_v42 = vpop.permute.xlu0 %6872  ;;  %8362 = vrcp.f32 %v12255_v61  ;;  %v6648_v58 = vor.u32 1.1754944e-38, %v6647_v11  ;;  %vm6646_vm2 = vcmp.eq.f32.partialorder %v6645_v18, 8.507059e+37  ;;  %v6367_v11 = vand.u32 2147483648, %v11853_v62 }
 0xb0e   : > { %v12301_v54 = vpop.permute.xlu1 %6876  ;;  %v6815_v29 = vsub.f32 %v6665_v40, %v12109_v5  ;;  %8364 = vrcp.f32 %v12047_v4  ;;  %vm6676_vm11 = vcmp.eq.f32.partialorder %v6675_v7, 8.507059e+37 }
 0xb11   : > { %v8359_v57 = vpop.eup %8358 }
 0xb12   : > { %6992 = vadd.xlane.f32.xlu1 %v6991_v10  ;;  %v6637_v37 = vmul.f32 %v8359_v57, %v6546_v19  ;;  %v12308_v20 = vpop.permute.xlu2 %6946  ;;  %vm6642_vm7 = vweird.f32 %v8359_v57  ;;  %v12313_v32 = vpop.eup %8360  ;;  %v6515_v19 = vsel %vm637_vm0, %v13075_v2, %v6502_v17 }
 0xb13   : > { %v12315_v34 = vpop.eup %8362  ;;  %vm6643_vm8 = vmor %vm6641_vm9, %vm6642_vm7  ;;  %v6357_v30 = vmul.f32 %v12313_v32, %v11853_v62  ;;  %vm6362_vm14 = vweird.f32 %v12313_v32 }
 0xb14   : > { %v6638_v41 = vsub.f32 1.0, %v6637_v37  ;;  %v6667_v33 = vmul.f32 %v12315_v34, %v12255_v61  ;;  %vm6672_vm13 = vweird.f32 %v12315_v34  ;;  %vm12362_vm10 = vmor %vm6361_vm5, %vm6362_vm14 }
 0xb15   : > { %v12324_v55 = vpop.permute.xlu0 %6481  ;;  %v6358_v10 = vsub.f32 1.0, %v6357_v30  ;;  %vm12375_vm4 = vmor %vm6671_vm3, %vm6672_vm13  ;;  %v6368_v30 = vor.u32 1.1754944e-38, %v6367_v11  ;;  %v6410_v11 = vand.u32 2147483647, %v11998_v49 }
 0xb16   : > { %v6639_v50 = vmul.f32 %v8359_v57, %v6638_v41  ;;  %v12322_v53 = vpop.permute.xlu1 %6555  ;;  %v12346_v41 = vpop.eup %8364 }
 0xb17   : > { %8366 = vrcp.f32 %v12322_v53  ;;  %v6417_v18 = vmul.f32 %v12346_v41, %v12047_v4  ;;  %vm6422_vm7 = vweird.f32 %v12346_v41  ;;  %vm6716_vm14 = vweird.f32 %v12322_v53 }
 0xb18   : > { %v6640_v47 = vadd.f32 %v8359_v57, %v6639_v50  ;;  %8368 = vrcp.f32 %v11998_v49  ;;  %v6677_v50 = vand.u32 2147483648, %v12255_v61  ;;  %vm12445_vm13 = vmor %vm6421_vm1, %vm6422_vm7 }
 0xb1a   : > { %v6644_v39 = vsel %vm6643_vm8, %v8359_v57, %v6640_v47  ;;  %v12326_v38 = vpop.permute.xlu2 %6789  ;;  %v6668_v57 = vsub.f32 1.0, %v6667_v33  ;;  %v6365_v47 = vand.u32 2147483647, %v11853_v62  ;;  %v6678_v33 = vor.u32 1.1754944e-38, %v6677_v50 }
 0xb1b   : > { %v6649_v16 = vsel %vm6646_vm2, %v6648_v58, %v6644_v39 }
 0xb1c   : > { %v6650_v63 = vmul.f32 %v6649_v16, %v6515_v19  ;;  %v6669_v5 = vmul.f32 %v12315_v34, %v6668_v57  ;;  %v6994_v16 = vsel %vm3715_vm15, %v12279_v0, 0.0  ;;  %vm6366_vm12 = vcmp.eq.f32.partialorder %v6365_v47, 8.507059e+37 }
 0xb1d   : > { %v12340_v59 = vpop.permute.xlu0 %6952  ;;  %v12348_v2 = vpop.eup %8366 }
 0xb1e   : > { %v6814_v36 = vsub.f32 %v6650_v63, %v12026_v60  ;;  %v12338_v43 = vpop.permute.xlu1 %6956  ;;  %v6359_v60 = vmul.f32 %v12313_v32, %v6358_v10  ;;  %v6670_v22 = vadd.f32 %v12315_v34, %v6669_v5  ;;  %v6712_v58 = vmul.f32 %v12348_v2, %v12322_v53 }
 0xb1f   : > { %v6418_v63 = vsub.f32 1.0, %v6417_v18  ;;  %v6412_v18 = vand.u32 2147483648, %v11998_v49  ;;  %vm6717_vm9 = vweird.f32 %v12348_v2 }
 0xb20   : > { %v7082_v28 = vpack.c.bf16 %v6815_v29, %v6814_v36  ;;  %v6360_v3 = vadd.f32 %v12313_v32, %v6359_v60  ;;  %v6674_v61 = vsel %vm12375_vm4, %v12315_v34, %v6670_v22  ;;  %v12389_v36 = vpop.eup %8368  ;;  %v6713_v0 = vsub.f32 1.0, %v6712_v58  ;;  %v13080_v60 = vld [vmem:[#allocation17_spill] sm:$0xff]  ;;  %vm12452_vm5 = vmor %vm6716_vm14, %vm6717_vm9 }
 0xb21   : > { %v6679_v10 = vsel %vm6676_vm11, %v6678_v33, %v6674_v61  ;;  %v6517_v34 = vsel %vm637_vm0, %v13069_v6, %v6504_v26  ;;  %v6922_v26 = vsel %vm637_vm0, %v12301_v54, 0.0  ;;  %v6425_v22 = vand.u32 2147483647, %v12047_v4 }
 0xb22   : > { %v6871_v37 = vpop.permute.xlu2 %6870  ;;  %7978 = vmatmul.msk.bf16.gmra.mxu1 %vm3715_vm15, %v7082_v28  ;;  %v6364_v62 = vsel %vm12362_vm10, %v12313_v32, %v6360_v3  ;;  %v6904_v32 = vsel %vm637_vm0, %v12262_v27, 0.0  ;;  %v6419_v28 = vmul.f32 %v12346_v41, %v6418_v63  ;;  %v6714_v27 = vmul.f32 %v12348_v2, %v6713_v0 }
 0xb23   : > { %v6913_v31 = vsel %vm637_vm0, %v6871_v37, 0.0  ;;  %v6369_v29 = vsel %vm6366_vm12, %v6368_v30, %v6364_v62  ;;  %v6402_v37 = vmul.f32 %v12389_v36, %v11998_v49  ;;  %v12413_v35 = vmul.f32 %v6679_v10, %v6517_v34 }
 0xb24   : > { %6914 = vadd.xlane.f32.xlu0 %v6913_v31  ;;  %v12406_v5 = vmul.f32 %v6369_v29, %v13080_v60  ;;  %v6420_v47 = vadd.f32 %v12346_v41, %v6419_v28  ;;  %v6427_v54 = vand.u32 2147483648, %v12047_v4  ;;  %v6715_v58 = vadd.f32 %v12348_v2, %v6714_v27 }
 0xb25   : > { %v12360_v17 = vpop.permute.xlu0 %6553  ;;  %v6816_v15 = vsub.f32 %v12413_v35, %v12241_v9  ;;  %v6403_v7 = vsub.f32 1.0, %v6402_v37  ;;  %v6907_v62 = vsel %vm637_vm0, %v12281_v56, 0.0  ;;  %vm12436_vm8 = vcmp.eq.f32.partialorder %v6425_v22, 8.507059e+37 }
 0xb26   : > { %v12371_v39 = vpop.permute.xlu1 %6559  ;;  %8370 = vrcp.f32 %v12360_v17  ;;  %v6722_v30 = vand.u32 2147483648, %v12322_v53  ;;  %v6720_v63 = vand.u32 2147483647, %v12322_v53  ;;  %v6707_v0 = vand.u32 2147483648, %v12360_v17 }
 0xb27   : > { %8372 = vrcp.f32 %v12371_v39  ;;  %v6428_v10 = vor.u32 1.1754944e-38, %v6427_v54  ;;  %vm6701_vm10 = vweird.f32 %v12360_v17  ;;  %v6705_v4 = vand.u32 2147483647, %v12360_v17 }
 0xb28   : > { %v6404_v34 = vmul.f32 %v12389_v36, %v6403_v7  ;;  %vm6407_vm3 = vweird.f32 %v12389_v36  ;;  %v6424_v53 = vsel %vm12445_vm13, %v12346_v41, %v6420_v47  ;;  %v6719_v37 = vsel %vm12452_vm5, %v12348_v2, %v6715_v58 }
 0xb29   : > { %v6723_v22 = vor.u32 1.1754944e-38, %v6722_v30  ;;  %vm6406_vm12 = vweird.f32 %v11998_v49  ;;  %v6505_v47 = vsub.f32 %v12406_v5, %v12196_v46  ;;  %vm6721_vm11 = vcmp.eq.f32.partialorder %v6720_v63, 8.507059e+37  ;;  %v12552_v49 = vld [vmem:[%s12705_s10 + $0x1] ss:$0 sm:$0xff] }
 0xb2a   : > { %v12373_v40 = vpop.permute.xlu2 %6479  ;;  %v6708_v54 = vor.u32 1.1754944e-38, %v6707_v0  ;;  %vm6706_vm1 = vcmp.eq.f32.partialorder %v6705_v4, 8.507059e+37  ;;  %v6519_v46 = vsel %vm637_vm0, %v13070_v25, %v6506_v51  ;;  %v6429_v5 = vsel %vm12436_vm8, %v6428_v10, %v6424_v53  ;;  %vm12521_vm5 = vmor %vm6406_vm12, %vm6407_vm3 }
 0xb2b   : > { %v6724_v58 = vsel %vm6721_vm11, %v6723_v22, %v6719_v37  ;;  %v6520_v30 = vsel %vm637_vm0, %v13074_v13, %v6507_v14  ;;  %v6405_v33 = vadd.f32 %v12389_v36, %v6404_v34  ;;  %v6988_v63 = vsel %vm3715_vm15, %v12308_v20, 0.0  ;;  %v13091_v34 = vld [vmem:[#allocation20_spill] sm:$0xff] }
 0xb2c   : > { %6995 = vadd.xlane.f32.xlu0 %v6994_v16  ;;  %v12393_v57 = vpop.eup %8370  ;;  %v6518_v25 = vsel %vm637_vm0, %v13080_v60, %v6505_v47  ;;  %vm6746_vm13 = vweird.f32 %v12371_v39  ;;  %v6752_v20 = vand.u32 2147483648, %v12371_v39  ;;  %v6750_v10 = vand.u32 2147483647, %v12371_v39 }
 0xb2d   : > { %v12403_v31 = vpop.permute.xlu0 %6795  ;;  %v6697_v3 = vmul.f32 %v12393_v57, %v12360_v17  ;;  %v12415_v6 = vpop.eup %8372  ;;  %vm6702_vm2 = vweird.f32 %v12393_v57  ;;  %v6430_v53 = vmul.f32 %v6429_v5, %v13091_v34  ;;  %v6916_v22 = vsel %vm637_vm0, %v12303_v42, 0.0 }
 0xb2e   : > { %v6742_v19 = vmul.f32 %v12415_v6, %v12371_v39  ;;  %vm12470_vm4 = vmor %vm6701_vm10, %vm6702_vm2  ;;  %vm6747_vm8 = vweird.f32 %v12415_v6  ;;  %v6409_v39 = vsel %vm12521_vm5, %v12389_v36, %v6405_v33  ;;  %vm6751_vm3 = vcmp.eq.f32.partialorder %v6750_v10, 8.507059e+37 }
 0xb2f   : > { %v6698_v50 = vsub.f32 1.0, %v6697_v3  ;;  %vm6748_vm10 = vmor %vm6746_vm13, %vm6747_vm8  ;;  %v6509_v17 = vsub.f32 %v6430_v53, %v12324_v55  ;;  %vm6436_vm8 = vweird.f32 %v12111_v48 }
 0xb30   : > { %6905 = vadd.xlane.f32.xlu2 %v6904_v32  ;;  %v6743_v27 = vsub.f32 1.0, %v6742_v19 }
 0xb31   : > { %v6699_v16 = vmul.f32 %v12393_v57, %v6698_v50  ;;  %v7003_v50 = vsel %vm3715_vm15, %v12338_v43, 0.0  ;;  %v6522_v9 = vsel %vm637_vm0, %v13091_v34, %v6509_v17 }
 0xb32   : > { %v12411_v21 = vpop.permute.xlu2 %6551  ;;  %v6883_v0 = vpop.permute.xlu1 %6882 }
 0xb33   : > { %8374 = vrcp.f32 %v12411_v21  ;;  %v6700_v56 = vadd.f32 %v12393_v57, %v6699_v16  ;;  %v6690_v43 = vand.u32 2147483647, %v12411_v21  ;;  %v6692_v19 = vand.u32 2147483648, %v12411_v21 }
 0xb34   : > { %6923 = vadd.xlane.f32.xlu0 %v6922_v26  ;;  %vm6686_vm9 = vweird.f32 %v12411_v21  ;;  %v6931_v60 = vsel %vm637_vm0, %v6883_v0, 0.0 }
 0xb35   : > { %v12460_v28 = vpop.permute.xlu0 %6878  ;;  %v6704_v41 = vsel %vm12470_vm4, %v12393_v57, %v6700_v56  ;;  %v6744_v57 = vmul.f32 %v12415_v6, %v6743_v27  ;;  %v6725_v56 = vmul.f32 %v6724_v58, %v6520_v30  ;;  %v6693_v24 = vor.u32 1.1754944e-38, %v6692_v19 }
 0xb36   : > { %v6709_v16 = vsel %vm6706_vm1, %v6708_v54, %v6704_v41  ;;  %vm6691_vm14 = vcmp.eq.f32.partialorder %v6690_v43, 8.507059e+37  ;;  %vm6411_vm4 = vcmp.eq.f32.partialorder %v6410_v11, 8.507059e+37  ;;  %v13092_v11 = vld [vmem:[#allocation14_spill] sm:$0xff] }
 0xb37   : > { %v6710_v13 = vmul.f32 %v6709_v16, %v6519_v46  ;;  %v6745_v45 = vadd.f32 %v12415_v6, %v6744_v57  ;;  %v6819_v61 = vsub.f32 %v6725_v56, %v12326_v38 }
 0xb38   : > { %6908 = vadd.xlane.f32.xlu2 %v6907_v62 }
 0xb39   : > { %v8375_v29 = vpop.eup %8374  ;;  %v6818_v4 = vsub.f32 %v6710_v13, %v12222_v8  ;;  %v6749_v38 = vsel %vm6748_vm10, %v12415_v6, %v6745_v45  ;;  %v6413_v8 = vor.u32 1.1754944e-38, %v6412_v18 }
 0xb3a   : > { %v6682_v3 = vmul.f32 %v8375_v29, %v12411_v21  ;;  %v6875_v26 = vpop.permute.xlu2 %6874  ;;  %vm6687_vm7 = vweird.f32 %v8375_v29 }
 0xb3b   : > { %v6919_v2 = vsel %vm637_vm0, %v6875_v26, 0.0  ;;  %vm6688_vm2 = vmor %vm6686_vm9, %vm6687_vm7  ;;  %v12534_v27 = vpack.c.bf16 %v6819_v61, %v6818_v4  ;;  %v6414_v6 = vsel %vm6411_vm4, %v6413_v8, %v6409_v39  ;;  %v6440_v4 = vand.u32 2147483647, %v12111_v48 }
 0xb3c   : > { %v6683_v7 = vsub.f32 1.0, %v6682_v3  ;;  %7004 = vadd.xlane.f32.xlu0 %v7003_v50  ;;  %6920 = vadd.xlane.f32.xlu1 %v6919_v2  ;;  %v6753_v3 = vor.u32 1.1754944e-38, %v6752_v20 }
 0xb3d   : > { %v12506_v51 = vpop.permute.xlu0 %6557 }
 0xb3e   : > { %v6684_v62 = vmul.f32 %v8375_v29, %v6683_v7  ;;  %8376 = vrcp.f32 %v12506_v51  ;;  %v6754_v36 = vsel %vm6751_vm3, %v6753_v3, %v6749_v38  ;;  %v6737_v41 = vand.u32 2147483648, %v12506_v51 }
 0xb3f   : > { %8378 = vrcp.f32 %v12111_v48  ;;  %v6755_v2 = vmul.f32 %v6754_v36, %v6522_v9  ;;  %v6735_v54 = vand.u32 2147483647, %v12506_v51  ;;  %vm6731_vm11 = vweird.f32 %v12506_v51 }
 0xb40   : > { %v6685_v23 = vadd.f32 %v8375_v29, %v6684_v62  ;;  %6989 = vadd.xlane.f32.xlu2 %v6988_v63  ;;  %v6997_v62 = vsel %vm3715_vm15, %v12340_v59, 0.0  ;;  %v6738_v46 = vor.u32 1.1754944e-38, %v6737_v41 }
 0xb41   : > { %v6821_v19 = vsub.f32 %v6755_v2, %v12290_v1  ;;  %vm6736_vm7 = vcmp.eq.f32.partialorder %v6735_v54, 8.507059e+37 }
 0xb42   : > { %v6689_v44 = vsel %vm6688_vm2, %v8375_v29, %v6685_v23  ;;  %v12510_v14 = vpop.permute.xlu2 %6483 }
 0xb43   : > { %v6694_v21 = vsel %vm6691_vm14, %v6693_v24, %v6689_v44  ;;  %v6925_v44 = vsel %vm637_vm0, %v12460_v28, 0.0  ;;  %vm6441_vm14 = vcmp.eq.f32.partialorder %v6440_v4, 8.507059e+37 }
 0xb44   : > { %6932 = vadd.xlane.f32.xlu0 %v6931_v60  ;;  %v6695_v32 = vmul.f32 %v6694_v21, %v6518_v25  ;;  %v8377_v26 = vpop.eup %8376  ;;  %v6885_v25 = vpop.permute.xlu1 %6884 }
 0xb45   : > { %v6727_v55 = vmul.f32 %v8377_v26, %v12506_v51  ;;  %v6959_v50 = vpop.permute.xlu0 %6958  ;;  %vm6732_vm12 = vweird.f32 %v8377_v26  ;;  %v8379_v16 = vpop.eup %8378 }
 0xb46   : > { %v6817_v37 = vsub.f32 %v6695_v32, %v12211_v12  ;;  %vm6733_vm1 = vmor %vm6731_vm11, %vm6732_vm12  ;;  %v6432_v63 = vmul.f32 %v8379_v16, %v12111_v48  ;;  %vm6437_vm9 = vweird.f32 %v8379_v16  ;;  %v6442_v32 = vand.u32 2147483648, %v12111_v48 }
 0xb47   : > { %v6728_v42 = vsub.f32 1.0, %v6727_v55  ;;  %v7006_v28 = vsel %vm3715_vm15, %v6959_v50, 0.0  ;;  %vm6438_vm2 = vmor %vm6436_vm8, %vm6437_vm9 }
 0xb48   : > { %v7083_v12 = vpack.c.bf16 %v6817_v37, %v6816_v15  ;;  %6917 = vadd.xlane.f32.xlu2 %v6916_v22  ;;  %v6415_v15 = vmul.f32 %v6414_v6, %v13092_v11  ;;  %v6433_v51 = vsub.f32 1.0, %v6432_v63  ;;  %v13093_v22 = vld [vmem:[#allocation8_spill] sm:$0xff] }
 0xb49   : > { %v6729_v47 = vmul.f32 %v8377_v26, %v6728_v42 }
 0xb4a   : > { %v6955_v18 = vpop.permute.xlu2 %6954  ;;  %7979 = vmatmul.msk.bf16.gmra.mxu1 %vm3715_vm15, %v7083_v12  ;;  %v6508_v58 = vsub.f32 %v6415_v15, %v12373_v40  ;;  %v6434_v21 = vmul.f32 %v8379_v16, %v6433_v51 }
 0xb4b   : > { %v7000_v35 = vsel %vm3715_vm15, %v6955_v18, 0.0  ;;  %v6730_v57 = vadd.f32 %v8377_v26, %v6729_v47 }
 0xb4c   : > { %7001 = vadd.xlane.f32.xlu1 %v7000_v35  ;;  %v7131_v7 = vpop.f32.mrf.mxu1  ;;  %v6521_v40 = vsel %vm637_vm0, %v13092_v11, %v6508_v58  ;;  %v6435_v10 = vadd.f32 %v8379_v16, %v6434_v21  ;;  %v6887_v29 = vpop.permute.xlu1 %6886  ;;  %v8409_v21 = vld [vmem:[%s12695_s0] sm:$0xff] }
 0xb4d   : > { %v7132_v43 = vadd.f32 %v12552_v49, %v7131_v7  ;;  %v6734_v5 = vsel %vm6733_vm1, %v8377_v26, %v6730_v57  ;;  %v6562_v30 = vpop.permute.xlu0 %6561  ;;  %v6937_v38 = vsel %vm637_vm0, %v6887_v29, 0.0  ;;  %v6934_v26 = vsel %vm637_vm0, %v6885_v25, 0.0 }
 0xb4e   : > { %v6739_v1 = vsel %vm6736_vm7, %v6738_v46, %v6734_v5  ;;  %8380 = vrcp.f32 %v6562_v30  ;;  %v6439_v39 = vsel %vm6438_vm2, %v8379_v16, %v6435_v10  ;;  %v6767_v8 = vand.u32 2147483648, %v6562_v30 }
 0xb4f   : > { %7165 = vst.msk [vmem:[%s12564_s20] sm:$0xff] %vm3715_vm15, %v7132_v43  ;;  %v6740_v59 = vmul.f32 %v6739_v1, %v6521_v40  ;;  %vm6761_vm5 = vweird.f32 %v6562_v30  ;;  %v6765_v48 = vand.u32 2147483647, %v6562_v30 }
 0xb50   : > { %6998 = vadd.xlane.f32.xlu2 %v6997_v62  ;;  %v6768_v55 = vor.u32 1.1754944e-38, %v6767_v8 }
 0xb51   : > { %v6820_v23 = vsub.f32 %v6740_v59, %v12292_v52  ;;  %vm6766_vm3 = vcmp.eq.f32.partialorder %v6765_v48, 8.507059e+37 }
 0xb52   : > { %v6881_v33 = vpop.permute.xlu2 %6880 }
 0xb53   : > { %v6928_v56 = vsel %vm637_vm0, %v6881_v33, 0.0  ;;  %v7085_v13 = vpack.c.bf16 %v6821_v19, %v6820_v23 }
 0xb54   : > { %6929 = vadd.xlane.f32.xlu1 %v6928_v56  ;;  %v7133_v0 = vpop.f32.mrf.mxu1  ;;  %v8381_v45 = vpop.eup %8380 }
 0xb55   : > { %v7134_v24 = vadd.f32 %v12552_v49, %v7133_v0  ;;  %v6757_v20 = vmul.f32 %v8381_v45, %v6562_v30  ;;  %vm6762_vm13 = vweird.f32 %v8381_v45 }
 0xb56   : > { %vm6763_vm10 = vmor %vm6761_vm5, %vm6762_vm13 }
 0xb57   : > { %7166 = vst.msk [vmem:[%s12564_s20 + $0x8] sm:$0xff] %vm3715_vm15, %v7134_v24  ;;  %v6758_v61 = vsub.f32 1.0, %v6757_v20 }
 0xb58   : > { %6926 = vadd.xlane.f32.xlu2 %v6925_v44 }
 0xb59   : > { %v6759_v34 = vmul.f32 %v8381_v45, %v6758_v61  ;;  %v8410_v61 = vld [vmem:[%s12695_s0 + $0x10] sm:$0xff] }
 0xb5a   : > { %v6961_v60 = vpop.permute.xlu2 %6960  ;;  %7980 = vmatmul.msk.bf16.gmra.mxu1 %vm3715_vm15, %v12534_v27  ;;  %v6443_v27 = vor.u32 1.1754944e-38, %v6442_v32 }
 0xb5b   : > { %v7009_v52 = vsel %vm3715_vm15, %v6961_v60, 0.0  ;;  %v6760_v3 = vadd.f32 %v8381_v45, %v6759_v34 }
 0xb5c   : > { %7010 = vadd.xlane.f32.xlu1 %v7009_v52  ;;  %v6444_v17 = vsel %vm6441_vm14, %v6443_v27, %v6439_v39 }
 0xb5d   : > { %v6445_v12 = vmul.f32 %v6444_v17, %v13093_v22  ;;  %v6764_v36 = vsel %vm6763_vm10, %v8381_v45, %v6760_v3 }
 0xb5e   : > { %v6769_v18 = vsel %vm6766_vm3, %v6768_v55, %v6764_v36 }
 0xb5f   : > { %v6510_v6 = vsub.f32 %v6445_v12, %v12510_v14  ;;  %v8412_v12 = vld [vmem:[%s12695_s0 + $0x20] sm:$0xff] }
 0xb60   : > { %7007 = vadd.xlane.f32.xlu2 %v7006_v28  ;;  %v8411_v28 = vld [vmem:[%s12695_s0 + $0x18] sm:$0xff] }
 0xb61   : > { %v6523_v9 = vsel %vm637_vm0, %v13093_v22, %v6510_v6  ;;  %v8413_v6 = vld [vmem:[%s12695_s0 + $0x28] sm:$0xff] }
 0xb62   : > { %v6963_v53 = vpop.permute.xlu2 %6962  ;;  %v6770_v35 = vmul.f32 %v6769_v18, %v6523_v9  ;;  %v8414_v18 = vld [vmem:[%s12695_s0 + $0x30] sm:$0xff] }
 0xb63   : > { %v7012_v37 = vsel %vm3715_vm15, %v6963_v53, 0.0 }
 0xb64   : > { %7013 = vadd.xlane.f32.xlu0 %v7012_v37  ;;  %6938 = vadd.xlane.f32.xlu1 %v6937_v38  ;;  %v6822_v11 = vsub.f32 %v6770_v35, %v12403_v31 }
 0xb66   : > { %v7086_v15 = vpack.c.bf16 %v6822_v11, %v6822_v11 }
 0xb68   : > { %6935 = vadd.xlane.f32.xlu2 %v6934_v26 }
 0xb6a   : > { %7981 = vmatmul.msk.bf16.gmra.mxu1 %vm3715_vm15, %v7085_v13  ;;  %v6965_v50 = vpop.permute.xlu2 %6964  ;;  %v8408_v13 = vld [vmem:[%s12695_s0 + $0x8] sm:$0xff] }
 0xb6b   : > { %v7015_v42 = vsel %vm3715_vm15, %v6965_v50, 0.0 }
 0xb6d   : > { %v6903_v54 = vpop.xlane.xlu1 %6902 }
 0xb70   : > { %7016 = vadd.xlane.f32.xlu2 %v7015_v42 }
 0xb75   : > { %v6984_v31 = vpop.xlane.xlu1 %6983 }
 0xb78   : > { %v6981_v7 = vpop.xlane.xlu0 %6980 }
 0xb79   : > { %v7018_v25 = vadd.f32 %v6981_v7, %v6903_v54 }
 0xb7a   : > { %7982 = vmatmul.msk.bf16.gmra.mxu1 %vm3715_vm15, %v7086_v15 }
 0xb7b   : > { %v7031_v52 = vmul.f32 %v8409_v21, %v7018_v25 }
 0xb7d   : > { %v6912_v46 = vpop.xlane.xlu1 %6911  ;;  %v7044_v53 = vsel %vm3781_vm6, %v7031_v52, 0.0 }
 0xb7f   : > { %v7136_v41 = vpop.f32.mrf.mxu1 }
 0xb80   : > { %v7137_v14 = vadd.f32 %v12552_v49, %v7136_v41  ;;  %v6987_v19 = vpop.xlane.xlu0 %6986 }
 0xb82   : > { %7167 = vst.msk [vmem:[%s12564_s20 + $0x10] sm:$0xff] %vm3715_vm15, %v7137_v14 }
 0xb85   : > { %v6993_v1 = vpop.xlane.xlu1 %6992 }
 0xb87   : > { %v7138_v2 = vpop.f32.mrf.mxu1 }
 0xb88   : > { %v7139_v47 = vadd.f32 %v12552_v49, %v7138_v2 }
 0xb8a   : > { %7168 = vst.msk [vmem:[%s12564_s20 + $0x18] sm:$0xff] %vm3715_vm15, %v7139_v47 }
 0xb97   : > { %v6915_v5 = vpop.xlane.xlu0 %6914 }
 0xb98   : > { %v7022_v38 = vadd.f32 %v6993_v1, %v6915_v5  ;;  %v8417_v5 = vld [vmem:[%s12695_s0 + $0x48] sm:$0xff] }
 0xb9a   : > { %v7035_v36 = vmul.f32 %v8412_v12, %v7022_v38 }
 0xb9c   : > { %v7051_v11 = vsel %vm3781_vm6, %v7035_v36, 0.0 }
 0xb9f   : > { %v7141_v58 = vpop.f32.mrf.mxu1  ;;  %v6996_v33 = vpop.xlane.xlu0 %6995 }
 0xba0   : > { %v7142_v43 = vadd.f32 %v12552_v49, %v7141_v58 }
 0xba2   : > { %7169 = vst.msk [vmem:[%s12564_s20 + $0x20] sm:$0xff] %vm3715_vm15, %v7142_v43 }
 0xba3   : > { %v6906_v57 = vpop.xlane.xlu2 %6905 }
 0xba4   : > { %v7019_v0 = vadd.f32 %v6984_v31, %v6906_v57  ;;  %v8415_v31 = vld [vmem:[%s12695_s0 + $0x38] sm:$0xff]  ;;  %v8416_v57 = vld [vmem:[%s12695_s0 + $0x40] sm:$0xff] }
 0xba6   : > { %v7032_v45 = vmul.f32 %v8408_v13, %v7019_v0  ;;  %v8418_v13 = vld [vmem:[%s12695_s0 + $0x50] sm:$0xff] }
 0xba7   : > { %v7143_v16 = vpop.f32.mrf.mxu1  ;;  %v6924_v59 = vpop.xlane.xlu0 %6923 }
 0xba8   : > { %v7144_v62 = vadd.f32 %v12552_v49, %v7143_v16  ;;  %v7045_v32 = vsel %vm3781_vm6, %v7032_v45, 0.0 }
 0xba9   : > { %v7046_v27 = vadd.f32 %v7045_v32, %v7044_v53 }
 0xbaa   : > { %7170 = vst.msk [vmem:[%s12564_s20 + $0x28] sm:$0xff] %vm3715_vm15, %v7144_v62 }
 0xbab   : > { %v6909_v30 = vpop.xlane.xlu2 %6908 }
 0xbac   : > { %v7020_v24 = vadd.f32 %v6987_v19, %v6909_v30 }
 0xbae   : > { %v7033_v10 = vmul.f32 %v8410_v61, %v7020_v24 }
 0xbaf   : > { %v6921_v56 = vpop.xlane.xlu1 %6920  ;;  %v7005_v29 = vpop.xlane.xlu0 %7004 }
 0xbb0   : > { %v7047_v39 = vsel %vm3781_vm6, %v7033_v10, 0.0 }
 0xbb1   : > { %v7048_v26 = vadd.f32 %v7047_v39, %v7046_v27 }
 0xbb3   : > { %v6990_v40 = vpop.xlane.xlu2 %6989 }
 0xbb4   : > { %v7021_v44 = vadd.f32 %v6990_v40, %v6912_v46 }
 0xbb6   : > { %v7034_v4 = vmul.f32 %v8411_v28, %v7021_v44  ;;  %v8419_v44 = vld [vmem:[%s12695_s0 + $0x58] sm:$0xff]  ;;  %v8420_v28 = vld [vmem:[%s12695_s0 + $0x60] sm:$0xff] }
 0xbb7   : > { %v6933_v42 = vpop.xlane.xlu0 %6932 }
 0xbb8   : > { %v7049_v17 = vsel %vm3781_vm6, %v7034_v4, 0.0 }
 0xbb9   : > { %v7050_v50 = vadd.f32 %v7049_v17, %v7048_v26 }
 0xbbb   : > { %v6918_v63 = vpop.xlane.xlu2 %6917  ;;  %v7052_v2 = vadd.f32 %v7051_v11, %v7050_v50 }
 0xbbc   : > { %v7023_v37 = vadd.f32 %v6996_v33, %v6918_v63 }
 0xbbe   : > { %v7036_v55 = vmul.f32 %v8413_v6, %v7023_v37 }
 0xbbf   : > { %v7002_v51 = vpop.xlane.xlu1 %7001 }
 0xbc0   : > { %v7053_v15 = vsel %vm3781_vm6, %v7036_v55, 0.0  ;;  %v7025_v41 = vadd.f32 %v7002_v51, %v6924_v59 }
 0xbc1   : > { %v7054_v58 = vadd.f32 %v7053_v15, %v7052_v2 }
 0xbc2   : > { %v7038_v19 = vmul.f32 %v8415_v31, %v7025_v41 }
 0xbc3   : > { %v6999_v23 = vpop.xlane.xlu2 %6998 }
 0xbc4   : > { %v7024_v3 = vadd.f32 %v6999_v23, %v6921_v56  ;;  %v7057_v33 = vsel %vm3781_vm6, %v7038_v19, 0.0 }
 0xbc6   : > { %v7037_v9 = vmul.f32 %v8414_v18, %v7024_v3  ;;  %v3816_v18 = vstv %s8092_s24 }
 0xbc7   : > { %v7146_v20 = vpop.f32.mrf.mxu1  ;;  %v6930_v48 = vpop.xlane.xlu1 %6929 }
 0xbc8   : > { %v7147_v60 = vadd.f32 %v12552_v49, %v7146_v20  ;;  %v7055_v47 = vsel %vm3781_vm6, %v7037_v9, 0.0 }
 0xbc9   : > { %v7056_v62 = vadd.f32 %v7055_v47, %v7054_v58 }
 0xbca   : > { %7171 = vst.msk [vmem:[%s12564_s20 + $0x30] sm:$0xff] %vm3715_vm15, %v7147_v60 }
 0xbcb   : > { %v6927_v34 = vpop.xlane.xlu2 %6926  ;;  %v7058_v0 = vadd.f32 %v7057_v33, %v7056_v62 }
 0xbcc   : > { %v7026_v14 = vadd.f32 %v7005_v29, %v6927_v34 }
 0xbce   : > { %v7039_v16 = vmul.f32 %v8416_v57, %v7026_v14 }
 0xbcf   : > { %v7148_v8 = vpop.f32.mrf.mxu1  ;;  %v7011_v46 = vpop.xlane.xlu1 %7010 }
 0xbd0   : > { %v7149_v22 = vadd.f32 %v12552_v49, %v7148_v8  ;;  %v7059_v63 = vsel %vm3781_vm6, %v7039_v16, 0.0  ;;  %v7028_v56 = vadd.f32 %v7011_v46, %v6933_v42 }
 0xbd1   : > { %v7060_v24 = vadd.f32 %v7059_v63, %v7058_v0 }
 0xbd2   : > { %7172 = vst.msk [vmem:[%s12564_s20 + $0x38] sm:$0xff] %vm3715_vm15, %v7149_v22  ;;  %v7041_v45 = vmul.f32 %v8418_v13, %v7028_v56 }
 0xbd3   : > { %v7008_v35 = vpop.xlane.xlu2 %7007 }
 0xbd4   : > { %v7027_v54 = vadd.f32 %v7008_v35, %v6930_v48  ;;  %v7063_v61 = vsel %vm3781_vm6, %v7041_v45, 0.0 }
 0xbd6   : > { %v7040_v30 = vmul.f32 %v8417_v5, %v7027_v54 }
 0xbd7   : > { %v7151_v7 = vpop.f32.mrf.mxu1  ;;  %v7014_v40 = vpop.xlane.xlu0 %7013 }
 0xbd8   : > { %v7152_v43 = vadd.f32 %v12552_v49, %v7151_v7  ;;  %v7061_v23 = vsel %vm3781_vm6, %v7040_v30, 0.0  ;;  %v6939_v21 = vpop.xlane.xlu1 %6938 }
 0xbd9   : > { %v7062_v60 = vadd.f32 %v7061_v23, %v7060_v24 }
 0xbda   : > { %7173 = vst.msk [vmem:[%s12564_s20 + $0x40] sm:$0xff] %vm3715_vm15, %v7152_v43 }
 0xbdb   : > { %v6936_v1 = vpop.xlane.xlu2 %6935  ;;  %v7064_v32 = vadd.f32 %v7063_v61, %v7062_v60 }
 0xbdc   : > { %v7029_v59 = vadd.f32 %v7014_v40, %v6936_v1 }
 0xbde   : > { %v7042_v20 = vmul.f32 %v8419_v44, %v7029_v59 }
 0xbdf   : > { %v7153_v25 = vpop.f32.mrf.mxu1 }
 0xbe0   : > { %v7154_v51 = vadd.f32 %v12552_v49, %v7153_v25  ;;  %v7065_v10 = vsel %vm3781_vm6, %v7042_v20, 0.0 }
 0xbe1   : > { %v7066_v53 = vadd.f32 %v7065_v10, %v7064_v32 }
 0xbe2   : > { %7174 = vst.msk [vmem:[%s12564_s20 + $0x48] sm:$0xff] %vm3715_vm15, %v7154_v51 }
 0xbe3   : > { %v7017_v52 = vpop.xlane.xlu2 %7016 }
 0xbe4   : > { %v7030_v29 = vadd.f32 %v7017_v52, %v6939_v21 }
 0xbe6   : > { %v7043_v4 = vmul.f32 %v8420_v28, %v7030_v29 }
 0xbe7   : > { %v7156_v34 = vpop.f32.mrf.mxu1 }
 0xbe8   : > { %v7157_v38 = vadd.f32 %v12552_v49, %v7156_v34  ;;  %v7067_v39 = vsel %vm3781_vm6, %v7043_v4, 0.0 }
 0xbe9   : > { %v7068_v37 = vadd.f32 %v7067_v39, %v7066_v53 }
 0xbea   : > { %7175 = vst.msk [vmem:[%s12564_s20 + $0x50] sm:$0xff] %vm3715_vm15, %v7157_v38 }
 0xbeb   : > { %7069 = vadd.xlane.f32.xlu0 %v7068_v37 }
 0xbef   : > { %v7158_v27 = vpop.f32.mrf.mxu1 }
 0xbf0   : > { %v7159_v17 = vadd.f32 %v12552_v49, %v7158_v27 }
 0xbf2   : > { %7176 = vst.msk [vmem:[%s12564_s20 + $0x58] sm:$0xff] %vm3715_vm15, %v7159_v17 }
 0xbf7   : > { %v7161_v3 = vpop.f32.mrf.mxu1 }
 0xbf8   : > { %v7162_v8 = vadd.f32 %v12552_v49, %v7161_v3 }
 0xbfa   : > { %7177 = vst.msk [vmem:[%s12564_s20 + $0x60] sm:$0xff] %vm3715_vm15, %v7162_v8  ;;  %s447_s20 = scalar_lea.vmem %s12707_s12, %s13097_s22 }
 0xbff   : > { %v7163_v26 = vpop.f32.mrf.mxu1 }
 0xc5e   : > { %v7070_v48 = vpop.xlane.xlu0 %7069 }
 0xc5f   : > { %v7071_v22 = vrot.slane %v7070_v48, 4 }
 0xc61   : > { %v7072_v12 = vadd.f32 %v7071_v22, %v7070_v48 }
 0xc63   : > { %v7073_v36 = vrot.slane %v7072_v12, 2 }
 0xc65   : > { %v7074_v6 = vadd.f32 %v7073_v36, %v7072_v12 }
 0xc67   : > { %v7075_v55 = vrot.slane %v7074_v6, 1 }
 0xc69   : > { %v7076_v50 = vadd.f32 %v7075_v55, %v7074_v6 }
 0xc6b   : > { %8093 = vpush %v7076_v50 }
 0xc9c   : > { %s8094_s30 = spop %8093 }
 0xc9d   : > { %v7078_v9 = vstv %s8094_s30 }
 0xc9e   : > { %v7079_v42 = vadd.f32 %v7078_v9, %v3816_v18 }
 0xca0   : > { %v7178_v49 = vsub.f32 0.0, %v7079_v42 }
 0xca2   : > { %7179 = vst [vmem:[%s447_s20] sm:$0x1] %v7178_v49 }
 0xca3 PF: > { %s23_s21 = sadd.s32 1, %s8427_s21  }
 0xca4   : > { %p20_p5 = scmp.ge.s32.totalorder %s23_s21, 4  }
 0xca6   :  { %22 = sbr.rel (!%p20_p5) target bundleno = 1 (0x1), region = 125 }

</bundles_post_ra>
